<compile_context>
chip_gen: v7x
topology: tpu7x:2x2x1
jax: 0.10.0
libtpu: 0.0.40
codegen_flags: <defaults>
</compile_context>

<pallas_src>
import functools
import math

import jax
import jax.numpy as jnp
from jax.experimental import pallas as pl
from jax.experimental.pallas import tpu as pltpu

LANES = 128          # channel lane padding
VMEM_LIMIT = 40 * 1024 * 1024


def _round_up(x, m):
    return ((x + m - 1) // m) * m


def _pick_block(M, target=512):
    """Largest divisor of M that is a multiple of 8 and <= target."""
    assert M % 8 == 0
    if M <= target:
        return M
    for d in range(target - target % 8, 7, -8):
        if M % d == 0:
            return d
    return 8


# ---------------------------------------------------------------------------
# Kernel 1: fused conv layer, gridded over M (output rows)
#   y = cols @ w + bias ; training-mode BatchNorm over all rows ; ReLU
# The full (M, 128) output stays resident in VMEM across the grid; per-channel
# sum / sumsq accumulate per step; scale/shift + ReLU applied in the last step.
# ---------------------------------------------------------------------------
def _conv_bn_relu_kernel(cols_ref, w_ref, stats_ref, o_ref, sum_ref, sq_ref, *,
                         tm, m_rows, eps):
    i = pl.program_id(0)

    @pl.when(i == 0)
    def _():
        sum_ref[...] = jnp.zeros_like(sum_ref)
        sq_ref[...] = jnp.zeros_like(sq_ref)

    # stats rows: 0 = conv bias, 1 = bn gamma, 2 = bn beta
    y = jnp.dot(cols_ref[...], w_ref[...], preferred_element_type=jnp.float32)
    y = y + stats_ref[0:1, :]                               # (tm, 128)

    row0 = pl.multiple_of(i * tm, 8)
    o_ref[pl.ds(row0, tm), :] = y                           # resident output

    sum_ref[...] += jnp.sum(y, axis=0, keepdims=True)
    sq_ref[...] += jnp.sum(y * y, axis=0, keepdims=True)

    @pl.when(i == pl.num_programs(0) - 1)
    def _():
        inv_m = 1.0 / m_rows
        mean = sum_ref[...] * inv_m                         # (1, 128)
        var = jnp.maximum(sq_ref[...] * inv_m - mean * mean, 0.0)
        scale = stats_ref[1:2, :] * jax.lax.rsqrt(var + eps)
        shift = stats_ref[2:3, :] - mean * scale
        o_ref[...] = jnp.maximum(o_ref[...] * scale + shift, 0.0)


def conv_bn_relu_fused(cols, w, stats, eps=1e-5):
    """cols: (M, K) f32, w: (K, 128) f32, stats: (8, 128). Returns (M, 128)."""
    M, K = cols.shape
    Kw, C = w.shape
    assert K == Kw and C == LANES and M % 8 == 0
    tm = _pick_block(M)

    return pl.pallas_call(
        functools.partial(_conv_bn_relu_kernel, tm=tm, m_rows=float(M), eps=eps),
        out_shape=jax.ShapeDtypeStruct((M, C), jnp.float32),
        grid_spec=pltpu.PrefetchScalarGridSpec(
            num_scalar_prefetch=0,
            grid=(M // tm,),
            in_specs=[
                pl.BlockSpec((tm, K), lambda i: (i, 0)),    # cols stream (pipelined)
                pl.BlockSpec((K, C), lambda i: (0, 0)),     # weight, resident
                pl.BlockSpec((8, C), lambda i: (0, 0)),     # bias/gamma/beta block
            ],
            out_specs=pl.BlockSpec((M, C), lambda i: (0, 0)),   # resident output
            scratch_shapes=[pltpu.VMEM((1, C), jnp.float32),
                            pltpu.VMEM((1, C), jnp.float32)],
        ),
        compiler_params=pltpu.CompilerParams(
            dimension_semantics=("arbitrary",),
            vmem_limit_bytes=VMEM_LIMIT),
    )(cols, w, stats)


# ---------------------------------------------------------------------------
# Kernel 2: fused MLP head: out = ReLU(ReLU(x @ w1 + b1) @ w2 + b2)
#   - w1 stored bf16 (halves HBM traffic of the dominant weight stream)
#   - fc1 accumulates over k tiles; fc2 is computed in the final k step from
#     the VMEM-resident hidden activations (no h HBM round trip, one launch).
# ---------------------------------------------------------------------------
def _mlp_head_kernel(x_ref, w1_ref, b1_ref, w2_ref, b2_ref, o_ref, acc_ref):
    k = pl.program_id(0)

    @pl.when(k == 0)
    def _():
        acc_ref[...] = jnp.zeros_like(acc_ref)

    acc_ref[...] += jnp.dot(x_ref[...].astype(jnp.bfloat16), w1_ref[...],
                            preferred_element_type=jnp.float32)

    @pl.when(k == pl.num_programs(0) - 1)
    def _():
        h = jnp.maximum(acc_ref[...] + b1_ref[...], 0.0)    # (M, 512) in VMEM
        o_ref[...] = jnp.maximum(
            jnp.dot(h, w2_ref[...], preferred_element_type=jnp.float32)
            + b2_ref[...], 0.0)


def mlp_head(x, w1, b1, w2, b2, *, tk):
    """x: (M, K) f32, w1: (K, H) bf16, b1: (1, H), w2: (H, N), b2: (1, N)."""
    M, K = x.shape
    Kw, H = w1.shape
    Hw, N = w2.shape
    assert K == Kw and H == Hw and K % tk == 0 and M % 8 == 0

    return pl.pallas_call(
        _mlp_head_kernel,
        out_shape=jax.ShapeDtypeStruct((M, N), jnp.float32),
        grid_spec=pltpu.PrefetchScalarGridSpec(
            num_scalar_prefetch=0,
            grid=(K // tk,),
            in_specs=[
                pl.BlockSpec((M, tk), lambda k: (0, k)),
                pl.BlockSpec((tk, H), lambda k: (k, 0)),    # contiguous bf16 tiles
                pl.BlockSpec((1, H), lambda k: (0, 0)),
                pl.BlockSpec((H, N), lambda k: (0, 0)),
                pl.BlockSpec((1, N), lambda k: (0, 0)),
            ],
            out_specs=pl.BlockSpec((M, N), lambda k: (0, 0)),
            scratch_shapes=[pltpu.VMEM((M, H), jnp.float32)],
        ),
        compiler_params=pltpu.CompilerParams(
            dimension_semantics=("arbitrary",),
            vmem_limit_bytes=VMEM_LIMIT),
    )(x, w1, b1, w2, b2)


# ---------------------------------------------------------------------------
# Glue: NHWC im2col (XLA), K ordered as (kh, kw, c) to match packed weights.
# ---------------------------------------------------------------------------
def im2col_nhwc(x, kh, kw, stride):
    N, H, W, C = x.shape
    OH = (H - kh) // stride + 1
    OW = (W - kw) // stride + 1
    patches = []
    for i in range(kh):
        for j in range(kw):
            patches.append(x[:, i:i + stride * OH:stride,
                              j:j + stride * OW:stride, :])   # (N, OH, OW, C)
    cols = jnp.stack(patches, axis=3)                          # (N,OH,OW,kh*kw,C)
    cols = cols.reshape(N * OH * OW, kh * kw * C)
    return cols, OH, OW


def conv_layer(x_nhwc, w, stats, kh, kw, stride, oc):
    N = x_nhwc.shape[0]
    cols, OH, OW = im2col_nhwc(x_nhwc, kh, kw, stride)
    y = conv_bn_relu_fused(cols, w, stats)             # (N*OH*OW, 128) lane-dense
    return y[:, :oc].reshape(N, OH, OW, oc)            # slice only at the end


# ---------------------------------------------------------------------------
# Parameters (PyTorch-style init) + one-time repack into kernel layout.
# ---------------------------------------------------------------------------
def init_params(key):
    ks = jax.random.split(key, 10)

    def u(k, shape, fan_in):
        bound = 1.0 / math.sqrt(fan_in)
        return jax.random.uniform(k, shape, jnp.float32, -bound, bound)

    return {
        "conv1_w": u(ks[0], (32, 10, 8, 8), 10 * 8 * 8),
        "conv1_b": u(ks[1], (32,), 10 * 8 * 8),
        "bn1_g": jnp.ones((32,), jnp.float32),
        "bn1_b": jnp.zeros((32,), jnp.float32),
        "conv2_w": u(ks[2], (64, 32, 4, 4), 32 * 4 * 4),
        "conv2_b": u(ks[3], (64,), 32 * 4 * 4),
        "bn2_g": jnp.ones((64,), jnp.float32),
        "bn2_b": jnp.zeros((64,), jnp.float32),
        "conv3_w": u(ks[4], (64, 64, 3, 3), 64 * 3 * 3),
        "conv3_b": u(ks[5], (64,), 64 * 3 * 3),
        "bn3_g": jnp.ones((64,), jnp.float32),
        "bn3_b": jnp.zeros((64,), jnp.float32),
        "fc1_w": u(ks[6], (500, 9216), 9216),
        "fc1_b": u(ks[7], (500,), 9216),
        "fc2_w": u(ks[8], (10, 500), 500),
        "fc2_b": u(ks[9], (10,), 500),
    }


def pack_params(p):
    """One-time repack (outside jit): pre-transposed fc weights (fc1 in bf16),
    lane-padded channels, conv weights in (KH*KW*IC, 128) matmul layout, and
    bias/gamma/beta merged into one (8,128) stats block per conv layer."""
    def conv_w(w):                          # (OC, IC, KH, KW) -> (KH*KW*IC, 128)
        OC, IC, KH, KW = w.shape
        wm = w.transpose(2, 3, 1, 0).reshape(KH * KW * IC, OC)
        return jnp.zeros((KH * KW * IC, LANES), jnp.float32).at[:, :OC].set(wm)

    def stats_block(bias, gamma, beta):     # -> (8, 128): rows 0/1/2 used
        s = jnp.zeros((8, LANES), jnp.float32)
        s = s.at[0, :bias.shape[0]].set(bias)
        s = s.at[1, :gamma.shape[0]].set(gamma)
        s = s.at[2, :beta.shape[0]].set(beta)
        return s

    def vec(v, n):                          # (C,) -> (1, n) zero padded
        return jnp.zeros((1, n), jnp.float32).at[0, :v.shape[0]].set(v)

    fc1_w = jnp.zeros((9216, 512), jnp.bfloat16).at[:, :500].set(
        p["fc1_w"].T.astype(jnp.bfloat16))
    fc2_w = jnp.zeros((512, LANES), jnp.float32).at[:500, :10].set(p["fc2_w"].T)

    return {
        "c1_w": conv_w(p["conv1_w"]),
        "c1_stats": stats_block(p["conv1_b"], p["bn1_g"], p["bn1_b"]),
        "c2_w": conv_w(p["conv2_w"]),
        "c2_stats": stats_block(p["conv2_b"], p["bn2_g"], p["bn2_b"]),
        "c3_w": conv_w(p["conv3_w"]),
        "c3_stats": stats_block(p["conv3_b"], p["bn3_g"], p["bn3_b"]),
        "fc1_w": fc1_w, "fc1_b": vec(p["fc1_b"], 512),
        "fc2_w": fc2_w, "fc2_b": vec(p["fc2_b"], LANES),
    }


# ---------------------------------------------------------------------------
# Full forward pass
# ---------------------------------------------------------------------------
@jax.jit
def dfqi_forward(params, x):
    """x: (N, 10, H, W) NCHW float32 -> (N, 10) float32."""
    N = x.shape[0]
    x = x.transpose(0, 2, 3, 1)                                  # NCHW -> NHWC once

    x = conv_layer(x, params["c1_w"], params["c1_stats"], 8, 8, 4, 32)
    x = conv_layer(x, params["c2_w"], params["c2_stats"], 4, 4, 2, 64)
    x = conv_layer(x, params["c3_w"], params["c3_stats"], 3, 3, 1, 64)

    # TODO(synk): the original PyTorch forward applies fc1 to the 4-D conv
    # output with no flatten (which would shape-error); fc1's 9216 = 64*12*12
    # input features imply the intended NCHW flatten, which we do here.
    x = x.transpose(0, 3, 1, 2).reshape(N, -1)                   # (N, 9216)

    Mp = _round_up(N, 8)                                         # tiny pad: 2 -> 8
    xp = jnp.zeros((Mp, 9216), jnp.float32).at[:N].set(x)

    out = mlp_head(xp, params["fc1_w"], params["fc1_b"],
                   params["fc2_w"], params["fc2_b"], tk=2304)
    return out[:N, :10]


if __name__ == "__main__":
    root = jax.random.PRNGKey(0)
    k_in, k_par = jax.random.split(root)
    # Smallest input consistent with fc1's 9216 = 64*12*12 features: 124x124.
    x = jax.random.normal(k_in, (2, 10, 124, 124), jnp.float32)
    params = pack_params(init_params(k_par))

    out = dfqi_forward(params, x)
    out = jax.block_until_ready(out)
    assert out.shape == (2, 10) and out.dtype == jnp.float32
    assert bool(jnp.all(jnp.isfinite(out)))
    print("KERNEL_OK")
</pallas_src>

<mosaic_0001>
module attributes {stable_mosaic.version = 11 : i64} {
  func.func @_conv_bn_relu_kernel(%arg0: i32, %arg1: memref<360x640xf32, #tpu.memory_space<vmem>>, %arg2: memref<640x128xf32, #tpu.memory_space<vmem>>, %arg3: memref<8x128xf32, #tpu.memory_space<vmem>>, %arg4: memref<1800x128xf32, #tpu.memory_space<vmem>>, %arg5: memref<1x128xf32, #tpu.memory_space<vmem>>, %arg6: memref<1x128xf32, #tpu.memory_space<vmem>>) attributes {dimension_semantics = [#tpu.dimension_semantics<arbitrary>], iteration_bounds = array<i64: 5>, scalar_prefetch = 0 : i64, scratch_operands = 2 : i64, tpu.core_type = #tpu.core_type<tc>, window_params = [{transform_indices = @transform_0, window_bounds = array<i64: 360, 640>}, {pipeline_mode = #tpu.pipeline_mode<synchronous>, transform_indices = @transform_1, window_bounds = array<i64: 640, 128>}, {pipeline_mode = #tpu.pipeline_mode<synchronous>, transform_indices = @transform_2, window_bounds = array<i64: 8, 128>}, {pipeline_mode = #tpu.pipeline_mode<synchronous>, transform_indices = @transform_3, window_bounds = array<i64: 1800, 128>}]} {
    %c0_i32 = arith.constant 0 : i32
    %0 = arith.cmpi eq, %arg0, %c0_i32 : i32
    %1 = arith.extui %0 : i1 to i32
    %c0_i32_0 = arith.constant 0 : i32
    %2 = arith.cmpi ne, %1, %c0_i32_0 : i32
    scf.if %2 {
      %cst_18 = arith.constant 0.000000e+00 : f32
      %27 = vector.broadcast %cst_18 : f32 to vector<1x128xf32>
      %c0_19 = arith.constant 0 : index
      %c0_20 = arith.constant 0 : index
      %28 = vector.load %arg5[%c0_19, %c0_20] : memref<1x128xf32, #tpu.memory_space<vmem>>, vector<1x128xf32>
      tpu.vector_store %arg5[%c0_19, %c0_20], %27 {strides = array<i32>} : memref<1x128xf32, #tpu.memory_space<vmem>>, vector<1x128xf32>,
      %cst_21 = arith.constant 0.000000e+00 : f32
      %29 = vector.broadcast %cst_21 : f32 to vector<1x128xf32>
      %c0_22 = arith.constant 0 : index
      %c0_23 = arith.constant 0 : index
      %30 = vector.load %arg6[%c0_22, %c0_23] : memref<1x128xf32, #tpu.memory_space<vmem>>, vector<1x128xf32>
      tpu.vector_store %arg6[%c0_22, %c0_23], %29 {strides = array<i32>} : memref<1x128xf32, #tpu.memory_space<vmem>>, vector<1x128xf32>,
    } else {
    }
    %c0 = arith.constant 0 : index
    %c0_1 = arith.constant 0 : index
    %3 = vector.load %arg1[%c0, %c0_1] : memref<360x640xf32, #tpu.memory_space<vmem>>, vector<360x640xf32>
    %c0_2 = arith.constant 0 : index
    %c0_3 = arith.constant 0 : index
    %4 = vector.load %arg2[%c0_2, %c0_3] : memref<640x128xf32, #tpu.memory_space<vmem>>, vector<640x128xf32>
    %cst = arith.constant dense<0.000000e+00> : vector<360x128xf32>
    %5 = tpu.matmul %3, %4, %cst {dimension_numbers = #tpu.dot_dimension_numbers<[1], [0], [0], [1], [0, 0, 1, 1], [], []>} : vector<360x640xf32>, vector<640x128xf32>, vector<360x128xf32> -> vector<360x128xf32>
    %c0_4 = arith.constant 0 : index
    %c0_5 = arith.constant 0 : index
    %6 = vector.load %arg3[%c0_4, %c0_5] : memref<8x128xf32, #tpu.memory_space<vmem>>, vector<1x128xf32>
    %7 = vector.broadcast %6 : vector<1x128xf32> to vector<360x128xf32>
    %8 = arith.addf %5, %7 : vector<360x128xf32>
    %c360_i32 = arith.constant 360 : i32
    %9 = arith.muli %arg0, %c360_i32 : i32
    %10 = tpu.assume_multiple %9, 8 : i32
    %11 = arith.index_cast %10 : i32 to index
    %c0_6 = arith.constant 0 : index
    %12 = vector.load %arg4[%11, %c0_6] : memref<1800x128xf32, #tpu.memory_space<vmem>>, vector<360x128xf32>
    tpu.vector_store %arg4[%11, %c0_6], %8 {strides = array<i32>} : memref<1800x128xf32, #tpu.memory_space<vmem>>, vector<360x128xf32>,
    %c0_7 = arith.constant 0 : index
    %c0_8 = arith.constant 0 : index
    %13 = vector.load %arg5[%c0_7, %c0_8] : memref<1x128xf32, #tpu.memory_space<vmem>>, vector<1x128xf32>
    %cst_9 = arith.constant dense<0.000000e+00> : vector<128xf32>
    %14 = vector.multi_reduction <add>, %8, %cst_9 [0] : vector<360x128xf32> to vector<128xf32>
    %15 = vector.shape_cast %14 : vector<128xf32> to vector<1x128xf32>
    %16 = arith.addf %13, %15 : vector<1x128xf32>
    %c0_10 = arith.constant 0 : index
    %c0_11 = arith.constant 0 : index
    %17 = vector.load %arg5[%c0_10, %c0_11] : memref<1x128xf32, #tpu.memory_space<vmem>>, vector<1x128xf32>
    tpu.vector_store %arg5[%c0_10, %c0_11], %16 {strides = array<i32>} : memref<1x128xf32, #tpu.memory_space<vmem>>, vector<1x128xf32>,
    %c0_12 = arith.constant 0 : index
    %c0_13 = arith.constant 0 : index
    %18 = vector.load %arg6[%c0_12, %c0_13] : memref<1x128xf32, #tpu.memory_space<vmem>>, vector<1x128xf32>
    %19 = arith.mulf %8, %8 : vector<360x128xf32>
    %cst_14 = arith.constant dense<0.000000e+00> : vector<128xf32>
    %20 = vector.multi_reduction <add>, %19, %cst_14 [0] : vector<360x128xf32> to vector<128xf32>
    %21 = vector.shape_cast %20 : vector<128xf32> to vector<1x128xf32>
    %22 = arith.addf %18, %21 : vector<1x128xf32>
    %c0_15 = arith.constant 0 : index
    %c0_16 = arith.constant 0 : index
    %23 = vector.load %arg6[%c0_15, %c0_16] : memref<1x128xf32, #tpu.memory_space<vmem>>, vector<1x128xf32>
    tpu.vector_store %arg6[%c0_15, %c0_16], %22 {strides = array<i32>} : memref<1x128xf32, #tpu.memory_space<vmem>>, vector<1x128xf32>,
    %c4_i32 = arith.constant 4 : i32
    %24 = arith.cmpi eq, %arg0, %c4_i32 : i32
    %25 = arith.extui %24 : i1 to i32
    %c0_i32_17 = arith.constant 0 : i32
    %26 = arith.cmpi ne, %25, %c0_i32_17 : i32
    scf.if %26 {
      %c0_18 = arith.constant 0 : index
      %c0_19 = arith.constant 0 : index
      %27 = vector.load %arg5[%c0_18, %c0_19] : memref<1x128xf32, #tpu.memory_space<vmem>>, vector<1x128xf32>
      %cst_20 = arith.constant 5.55555569E-4 : f32
      %28 = vector.broadcast %cst_20 : f32 to vector<1x128xf32>
      %29 = arith.mulf %27, %28 : vector<1x128xf32>
      %c0_21 = arith.constant 0 : index
      %c0_22 = arith.constant 0 : index
      %30 = vector.load %arg6[%c0_21, %c0_22] : memref<1x128xf32, #tpu.memory_space<vmem>>, vector<1x128xf32>
      %cst_23 = arith.constant 5.55555569E-4 : f32
      %31 = vector.broadcast %cst_23 : f32 to vector<1x128xf32>
      %32 = arith.mulf %30, %31 : vector<1x128xf32>
      %33 = arith.mulf %29, %29 : vector<1x128xf32>
      %34 = arith.subf %32, %33 : vector<1x128xf32>
      %cst_24 = arith.constant 0.000000e+00 : f32
      %35 = vector.broadcast %cst_24 : f32 to vector<1x128xf32>
      %36 = arith.maximumf %34, %35 : vector<1x128xf32>
      %c1 = arith.constant 1 : index
      %c0_25 = arith.constant 0 : index
      %37 = vector.load %arg3[%c1, %c0_25] : memref<8x128xf32, #tpu.memory_space<vmem>>, vector<1x128xf32>
      %cst_26 = arith.constant 9.99999974E-6 : f32
      %38 = vector.broadcast %cst_26 : f32 to vector<1x128xf32>
      %39 = arith.addf %36, %38 : vector<1x128xf32>
      %40 = math.rsqrt %39 : vector<1x128xf32>
      %41 = arith.mulf %37, %40 : vector<1x128xf32>
      %c2 = arith.constant 2 : index
      %c0_27 = arith.constant 0 : index
      %42 = vector.load %arg3[%c2, %c0_27] : memref<8x128xf32, #tpu.memory_space<vmem>>, vector<1x128xf32>
      %43 = arith.mulf %29, %41 : vector<1x128xf32>
      %44 = arith.subf %42, %43 : vector<1x128xf32>
      %c0_28 = arith.constant 0 : index
      %c0_29 = arith.constant 0 : index
      %45 = vector.load %arg4[%c0_28, %c0_29] : memref<1800x128xf32, #tpu.memory_space<vmem>>, vector<1800x128xf32>
      %46 = vector.broadcast %41 : vector<1x128xf32> to vector<1800x128xf32>
      %47 = arith.mulf %45, %46 : vector<1800x128xf32>
      %48 = vector.broadcast %44 : vector<1x128xf32> to vector<1800x128xf32>
      %49 = arith.addf %47, %48 : vector<1800x128xf32>
      %cst_30 = arith.constant 0.000000e+00 : f32
      %50 = vector.broadcast %cst_30 : f32 to vector<1800x128xf32>
      %51 = arith.maximumf %49, %50 : vector<1800x128xf32>
      %c0_31 = arith.constant 0 : index
      %c0_32 = arith.constant 0 : index
      %52 = vector.load %arg4[%c0_31, %c0_32] : memref<1800x128xf32, #tpu.memory_space<vmem>>, vector<1800x128xf32>
      tpu.vector_store %arg4[%c0_31, %c0_32], %51 {strides = array<i32>} : memref<1800x128xf32, #tpu.memory_space<vmem>>, vector<1800x128xf32>,
    } else {
    }
    return
  }
  func.func @transform_0(%arg0: i32) -> (i32, i32) {
    %c0_i32 = arith.constant 0 : i32
    %c0_i32_0 = arith.constant 0 : i32
    return %arg0, %c0_i32 : i32, i32
  }
  func.func @transform_1(%arg0: i32) -> (i32, i32) {
    %c0_i32 = arith.constant 0 : i32
    %c0_i32_0 = arith.constant 0 : i32
    %c0_i32_1 = arith.constant 0 : i32
    return %c0_i32, %c0_i32_0 : i32, i32
  }
  func.func @transform_2(%arg0: i32) -> (i32, i32) {
    %c0_i32 = arith.constant 0 : i32
    %c0_i32_0 = arith.constant 0 : i32
    %c0_i32_1 = arith.constant 0 : i32
    return %c0_i32, %c0_i32_0 : i32, i32
  }
  func.func @transform_3(%arg0: i32) -> (i32, i32) {
    %c0_i32 = arith.constant 0 : i32
    %c0_i32_0 = arith.constant 0 : i32
    %c0_i32_1 = arith.constant 0 : i32
    return %c0_i32, %c0_i32_0 : i32, i32
  }
}

module attributes {stable_mosaic.version = 11 : i64} {
  func.func @_conv_bn_relu_kernel(%arg0: i32, %arg1: memref<392x512xf32, #tpu.memory_space<vmem>>, %arg2: memref<512x128xf32, #tpu.memory_space<vmem>>, %arg3: memref<8x128xf32, #tpu.memory_space<vmem>>, %arg4: memref<392x128xf32, #tpu.memory_space<vmem>>, %arg5: memref<1x128xf32, #tpu.memory_space<vmem>>, %arg6: memref<1x128xf32, #tpu.memory_space<vmem>>) attributes {dimension_semantics = [#tpu.dimension_semantics<arbitrary>], iteration_bounds = array<i64: 1>, scalar_prefetch = 0 : i64, scratch_operands = 2 : i64, tpu.core_type = #tpu.core_type<tc>, window_params = [{transform_indices = @transform_0, window_bounds = array<i64: 392, 512>}, {pipeline_mode = #tpu.pipeline_mode<synchronous>, transform_indices = @transform_1, window_bounds = array<i64: 512, 128>}, {pipeline_mode = #tpu.pipeline_mode<synchronous>, transform_indices = @transform_2, window_bounds = array<i64: 8, 128>}, {pipeline_mode = #tpu.pipeline_mode<synchronous>, transform_indices = @transform_3, window_bounds = array<i64: 392, 128>}]} {
    %c0_i32 = arith.constant 0 : i32
    %0 = arith.cmpi eq, %arg0, %c0_i32 : i32
    %1 = arith.extui %0 : i1 to i32
    %c0_i32_0 = arith.constant 0 : i32
    %2 = arith.cmpi ne, %1, %c0_i32_0 : i32
    scf.if %2 {
      %cst_19 = arith.constant 0.000000e+00 : f32
      %27 = vector.broadcast %cst_19 : f32 to vector<1x128xf32>
      %c0_20 = arith.constant 0 : index
      %c0_21 = arith.constant 0 : index
      %28 = vector.load %arg5[%c0_20, %c0_21] : memref<1x128xf32, #tpu.memory_space<vmem>>, vector<1x128xf32>
      tpu.vector_store %arg5[%c0_20, %c0_21], %27 {strides = array<i32>} : memref<1x128xf32, #tpu.memory_space<vmem>>, vector<1x128xf32>,
      %cst_22 = arith.constant 0.000000e+00 : f32
      %29 = vector.broadcast %cst_22 : f32 to vector<1x128xf32>
      %c0_23 = arith.constant 0 : index
      %c0_24 = arith.constant 0 : index
      %30 = vector.load %arg6[%c0_23, %c0_24] : memref<1x128xf32, #tpu.memory_space<vmem>>, vector<1x128xf32>
      tpu.vector_store %arg6[%c0_23, %c0_24], %29 {strides = array<i32>} : memref<1x128xf32, #tpu.memory_space<vmem>>, vector<1x128xf32>,
    } else {
    }
    %c0 = arith.constant 0 : index
    %c0_1 = arith.constant 0 : index
    %3 = vector.load %arg1[%c0, %c0_1] : memref<392x512xf32, #tpu.memory_space<vmem>>, vector<392x512xf32>
    %c0_2 = arith.constant 0 : index
    %c0_3 = arith.constant 0 : index
    %4 = vector.load %arg2[%c0_2, %c0_3] : memref<512x128xf32, #tpu.memory_space<vmem>>, vector<512x128xf32>
    %cst = arith.constant dense<0.000000e+00> : vector<392x128xf32>
    %5 = tpu.matmul %3, %4, %cst {dimension_numbers = #tpu.dot_dimension_numbers<[1], [0], [0], [1], [0, 0, 1, 1], [], []>} : vector<392x512xf32>, vector<512x128xf32>, vector<392x128xf32> -> vector<392x128xf32>
    %c0_4 = arith.constant 0 : index
    %c0_5 = arith.constant 0 : index
    %6 = vector.load %arg3[%c0_4, %c0_5] : memref<8x128xf32, #tpu.memory_space<vmem>>, vector<1x128xf32>
    %7 = vector.broadcast %6 : vector<1x128xf32> to vector<392x128xf32>
    %8 = arith.addf %5, %7 : vector<392x128xf32>
    %c392_i32 = arith.constant 392 : i32
    %9 = arith.muli %arg0, %c392_i32 : i32
    %10 = tpu.assume_multiple %9, 8 : i32
    %11 = arith.index_cast %10 : i32 to index
    %c0_6 = arith.constant 0 : index
    %12 = vector.load %arg4[%11, %c0_6] : memref<392x128xf32, #tpu.memory_space<vmem>>, vector<392x128xf32>
    tpu.vector_store %arg4[%11, %c0_6], %8 {strides = array<i32>} : memref<392x128xf32, #tpu.memory_space<vmem>>, vector<392x128xf32>,
    %c0_7 = arith.constant 0 : index
    %c0_8 = arith.constant 0 : index
    %13 = vector.load %arg5[%c0_7, %c0_8] : memref<1x128xf32, #tpu.memory_space<vmem>>, vector<1x128xf32>
    %cst_9 = arith.constant dense<0.000000e+00> : vector<128xf32>
    %14 = vector.multi_reduction <add>, %8, %cst_9 [0] : vector<392x128xf32> to vector<128xf32>
    %15 = vector.shape_cast %14 : vector<128xf32> to vector<1x128xf32>
    %16 = arith.addf %13, %15 : vector<1x128xf32>
    %c0_10 = arith.constant 0 : index
    %c0_11 = arith.constant 0 : index
    %17 = vector.load %arg5[%c0_10, %c0_11] : memref<1x128xf32, #tpu.memory_space<vmem>>, vector<1x128xf32>
    tpu.vector_store %arg5[%c0_10, %c0_11], %16 {strides = array<i32>} : memref<1x128xf32, #tpu.memory_space<vmem>>, vector<1x128xf32>,
    %c0_12 = arith.constant 0 : index
    %c0_13 = arith.constant 0 : index
    %18 = vector.load %arg6[%c0_12, %c0_13] : memref<1x128xf32, #tpu.memory_space<vmem>>, vector<1x128xf32>
    %19 = arith.mulf %8, %8 : vector<392x128xf32>
    %cst_14 = arith.constant dense<0.000000e+00> : vector<128xf32>
    %20 = vector.multi_reduction <add>, %19, %cst_14 [0] : vector<392x128xf32> to vector<128xf32>
    %21 = vector.shape_cast %20 : vector<128xf32> to vector<1x128xf32>
    %22 = arith.addf %18, %21 : vector<1x128xf32>
    %c0_15 = arith.constant 0 : index
    %c0_16 = arith.constant 0 : index
    %23 = vector.load %arg6[%c0_15, %c0_16] : memref<1x128xf32, #tpu.memory_space<vmem>>, vector<1x128xf32>
    tpu.vector_store %arg6[%c0_15, %c0_16], %22 {strides = array<i32>} : memref<1x128xf32, #tpu.memory_space<vmem>>, vector<1x128xf32>,
    %c0_i32_17 = arith.constant 0 : i32
    %24 = arith.cmpi eq, %arg0, %c0_i32_17 : i32
    %25 = arith.extui %24 : i1 to i32
    %c0_i32_18 = arith.constant 0 : i32
    %26 = arith.cmpi ne, %25, %c0_i32_18 : i32
    scf.if %26 {
      %c0_19 = arith.constant 0 : index
      %c0_20 = arith.constant 0 : index
      %27 = vector.load %arg5[%c0_19, %c0_20] : memref<1x128xf32, #tpu.memory_space<vmem>>, vector<1x128xf32>
      %cst_21 = arith.constant 0.00255102036 : f32
      %28 = vector.broadcast %cst_21 : f32 to vector<1x128xf32>
      %29 = arith.mulf %27, %28 : vector<1x128xf32>
      %c0_22 = arith.constant 0 : index
      %c0_23 = arith.constant 0 : index
      %30 = vector.load %arg6[%c0_22, %c0_23] : memref<1x128xf32, #tpu.memory_space<vmem>>, vector<1x128xf32>
      %cst_24 = arith.constant 0.00255102036 : f32
      %31 = vector.broadcast %cst_24 : f32 to vector<1x128xf32>
      %32 = arith.mulf %30, %31 : vector<1x128xf32>
      %33 = arith.mulf %29, %29 : vector<1x128xf32>
      %34 = arith.subf %32, %33 : vector<1x128xf32>
      %cst_25 = arith.constant 0.000000e+00 : f32
      %35 = vector.broadcast %cst_25 : f32 to vector<1x128xf32>
      %36 = arith.maximumf %34, %35 : vector<1x128xf32>
      %c1 = arith.constant 1 : index
      %c0_26 = arith.constant 0 : index
      %37 = vector.load %arg3[%c1, %c0_26] : memref<8x128xf32, #tpu.memory_space<vmem>>, vector<1x128xf32>
      %cst_27 = arith.constant 9.99999974E-6 : f32
      %38 = vector.broadcast %cst_27 : f32 to vector<1x128xf32>
      %39 = arith.addf %36, %38 : vector<1x128xf32>
      %40 = math.rsqrt %39 : vector<1x128xf32>
      %41 = arith.mulf %37, %40 : vector<1x128xf32>
      %c2 = arith.constant 2 : index
      %c0_28 = arith.constant 0 : index
      %42 = vector.load %arg3[%c2, %c0_28] : memref<8x128xf32, #tpu.memory_space<vmem>>, vector<1x128xf32>
      %43 = arith.mulf %29, %41 : vector<1x128xf32>
      %44 = arith.subf %42, %43 : vector<1x128xf32>
      %c0_29 = arith.constant 0 : index
      %c0_30 = arith.constant 0 : index
      %45 = vector.load %arg4[%c0_29, %c0_30] : memref<392x128xf32, #tpu.memory_space<vmem>>, vector<392x128xf32>
      %46 = vector.broadcast %41 : vector<1x128xf32> to vector<392x128xf32>
      %47 = arith.mulf %45, %46 : vector<392x128xf32>
      %48 = vector.broadcast %44 : vector<1x128xf32> to vector<392x128xf32>
      %49 = arith.addf %47, %48 : vector<392x128xf32>
      %cst_31 = arith.constant 0.000000e+00 : f32
      %50 = vector.broadcast %cst_31 : f32 to vector<392x128xf32>
      %51 = arith.maximumf %49, %50 : vector<392x128xf32>
      %c0_32 = arith.constant 0 : index
      %c0_33 = arith.constant 0 : index
      %52 = vector.load %arg4[%c0_32, %c0_33] : memref<392x128xf32, #tpu.memory_space<vmem>>, vector<392x128xf32>
      tpu.vector_store %arg4[%c0_32, %c0_33], %51 {strides = array<i32>} : memref<392x128xf32, #tpu.memory_space<vmem>>, vector<392x128xf32>,
    } else {
    }
    return
  }
  func.func @transform_0(%arg0: i32) -> (i32, i32) {
    %c0_i32 = arith.constant 0 : i32
    %c0_i32_0 = arith.constant 0 : i32
    return %arg0, %c0_i32 : i32, i32
  }
  func.func @transform_1(%arg0: i32) -> (i32, i32) {
    %c0_i32 = arith.constant 0 : i32
    %c0_i32_0 = arith.constant 0 : i32
    %c0_i32_1 = arith.constant 0 : i32
    return %c0_i32, %c0_i32_0 : i32, i32
  }
  func.func @transform_2(%arg0: i32) -> (i32, i32) {
    %c0_i32 = arith.constant 0 : i32
    %c0_i32_0 = arith.constant 0 : i32
    %c0_i32_1 = arith.constant 0 : i32
    return %c0_i32, %c0_i32_0 : i32, i32
  }
  func.func @transform_3(%arg0: i32) -> (i32, i32) {
    %c0_i32 = arith.constant 0 : i32
    %c0_i32_0 = arith.constant 0 : i32
    %c0_i32_1 = arith.constant 0 : i32
    return %c0_i32, %c0_i32_0 : i32, i32
  }
}

module attributes {stable_mosaic.version = 11 : i64} {
  func.func @_conv_bn_relu_kernel(%arg0: i32, %arg1: memref<288x576xf32, #tpu.memory_space<vmem>>, %arg2: memref<576x128xf32, #tpu.memory_space<vmem>>, %arg3: memref<8x128xf32, #tpu.memory_space<vmem>>, %arg4: memref<288x128xf32, #tpu.memory_space<vmem>>, %arg5: memref<1x128xf32, #tpu.memory_space<vmem>>, %arg6: memref<1x128xf32, #tpu.memory_space<vmem>>) attributes {dimension_semantics = [#tpu.dimension_semantics<arbitrary>], iteration_bounds = array<i64: 1>, scalar_prefetch = 0 : i64, scratch_operands = 2 : i64, tpu.core_type = #tpu.core_type<tc>, window_params = [{transform_indices = @transform_0, window_bounds = array<i64: 288, 576>}, {pipeline_mode = #tpu.pipeline_mode<synchronous>, transform_indices = @transform_1, window_bounds = array<i64: 576, 128>}, {pipeline_mode = #tpu.pipeline_mode<synchronous>, transform_indices = @transform_2, window_bounds = array<i64: 8, 128>}, {pipeline_mode = #tpu.pipeline_mode<synchronous>, transform_indices = @transform_3, window_bounds = array<i64: 288, 128>}]} {
    %c0_i32 = arith.constant 0 : i32
    %0 = arith.cmpi eq, %arg0, %c0_i32 : i32
    %1 = arith.extui %0 : i1 to i32
    %c0_i32_0 = arith.constant 0 : i32
    %2 = arith.cmpi ne, %1, %c0_i32_0 : i32
    scf.if %2 {
      %cst_19 = arith.constant 0.000000e+00 : f32
      %27 = vector.broadcast %cst_19 : f32 to vector<1x128xf32>
      %c0_20 = arith.constant 0 : index
      %c0_21 = arith.constant 0 : index
      %28 = vector.load %arg5[%c0_20, %c0_21] : memref<1x128xf32, #tpu.memory_space<vmem>>, vector<1x128xf32>
      tpu.vector_store %arg5[%c0_20, %c0_21], %27 {strides = array<i32>} : memref<1x128xf32, #tpu.memory_space<vmem>>, vector<1x128xf32>,
      %cst_22 = arith.constant 0.000000e+00 : f32
      %29 = vector.broadcast %cst_22 : f32 to vector<1x128xf32>
      %c0_23 = arith.constant 0 : index
      %c0_24 = arith.constant 0 : index
      %30 = vector.load %arg6[%c0_23, %c0_24] : memref<1x128xf32, #tpu.memory_space<vmem>>, vector<1x128xf32>
      tpu.vector_store %arg6[%c0_23, %c0_24], %29 {strides = array<i32>} : memref<1x128xf32, #tpu.memory_space<vmem>>, vector<1x128xf32>,
    } else {
    }
    %c0 = arith.constant 0 : index
    %c0_1 = arith.constant 0 : index
    %3 = vector.load %arg1[%c0, %c0_1] : memref<288x576xf32, #tpu.memory_space<vmem>>, vector<288x576xf32>
    %c0_2 = arith.constant 0 : index
    %c0_3 = arith.constant 0 : index
    %4 = vector.load %arg2[%c0_2, %c0_3] : memref<576x128xf32, #tpu.memory_space<vmem>>, vector<576x128xf32>
    %cst = arith.constant dense<0.000000e+00> : vector<288x128xf32>
    %5 = tpu.matmul %3, %4, %cst {dimension_numbers = #tpu.dot_dimension_numbers<[1], [0], [0], [1], [0, 0, 1, 1], [], []>} : vector<288x576xf32>, vector<576x128xf32>, vector<288x128xf32> -> vector<288x128xf32>
    %c0_4 = arith.constant 0 : index
    %c0_5 = arith.constant 0 : index
    %6 = vector.load %arg3[%c0_4, %c0_5] : memref<8x128xf32, #tpu.memory_space<vmem>>, vector<1x128xf32>
    %7 = vector.broadcast %6 : vector<1x128xf32> to vector<288x128xf32>
    %8 = arith.addf %5, %7 : vector<288x128xf32>
    %c288_i32 = arith.constant 288 : i32
    %9 = arith.muli %arg0, %c288_i32 : i32
    %10 = tpu.assume_multiple %9, 8 : i32
    %11 = arith.index_cast %10 : i32 to index
    %c0_6 = arith.constant 0 : index
    %12 = vector.load %arg4[%11, %c0_6] : memref<288x128xf32, #tpu.memory_space<vmem>>, vector<288x128xf32>
    tpu.vector_store %arg4[%11, %c0_6], %8 {strides = array<i32>} : memref<288x128xf32, #tpu.memory_space<vmem>>, vector<288x128xf32>,
    %c0_7 = arith.constant 0 : index
    %c0_8 = arith.constant 0 : index
    %13 = vector.load %arg5[%c0_7, %c0_8] : memref<1x128xf32, #tpu.memory_space<vmem>>, vector<1x128xf32>
    %cst_9 = arith.constant dense<0.000000e+00> : vector<128xf32>
    %14 = vector.multi_reduction <add>, %8, %cst_9 [0] : vector<288x128xf32> to vector<128xf32>
    %15 = vector.shape_cast %14 : vector<128xf32> to vector<1x128xf32>
    %16 = arith.addf %13, %15 : vector<1x128xf32>
    %c0_10 = arith.constant 0 : index
    %c0_11 = arith.constant 0 : index
    %17 = vector.load %arg5[%c0_10, %c0_11] : memref<1x128xf32, #tpu.memory_space<vmem>>, vector<1x128xf32>
    tpu.vector_store %arg5[%c0_10, %c0_11], %16 {strides = array<i32>} : memref<1x128xf32, #tpu.memory_space<vmem>>, vector<1x128xf32>,
    %c0_12 = arith.constant 0 : index
    %c0_13 = arith.constant 0 : index
    %18 = vector.load %arg6[%c0_12, %c0_13] : memref<1x128xf32, #tpu.memory_space<vmem>>, vector<1x128xf32>
    %19 = arith.mulf %8, %8 : vector<288x128xf32>
    %cst_14 = arith.constant dense<0.000000e+00> : vector<128xf32>
    %20 = vector.multi_reduction <add>, %19, %cst_14 [0] : vector<288x128xf32> to vector<128xf32>
    %21 = vector.shape_cast %20 : vector<128xf32> to vector<1x128xf32>
    %22 = arith.addf %18, %21 : vector<1x128xf32>
    %c0_15 = arith.constant 0 : index
    %c0_16 = arith.constant 0 : index
    %23 = vector.load %arg6[%c0_15, %c0_16] : memref<1x128xf32, #tpu.memory_space<vmem>>, vector<1x128xf32>
    tpu.vector_store %arg6[%c0_15, %c0_16], %22 {strides = array<i32>} : memref<1x128xf32, #tpu.memory_space<vmem>>, vector<1x128xf32>,
    %c0_i32_17 = arith.constant 0 : i32
    %24 = arith.cmpi eq, %arg0, %c0_i32_17 : i32
    %25 = arith.extui %24 : i1 to i32
    %c0_i32_18 = arith.constant 0 : i32
    %26 = arith.cmpi ne, %25, %c0_i32_18 : i32
    scf.if %26 {
      %c0_19 = arith.constant 0 : index
      %c0_20 = arith.constant 0 : index
      %27 = vector.load %arg5[%c0_19, %c0_20] : memref<1x128xf32, #tpu.memory_space<vmem>>, vector<1x128xf32>
      %cst_21 = arith.constant 0.00347222225 : f32
      %28 = vector.broadcast %cst_21 : f32 to vector<1x128xf32>
      %29 = arith.mulf %27, %28 : vector<1x128xf32>
      %c0_22 = arith.constant 0 : index
      %c0_23 = arith.constant 0 : index
      %30 = vector.load %arg6[%c0_22, %c0_23] : memref<1x128xf32, #tpu.memory_space<vmem>>, vector<1x128xf32>
      %cst_24 = arith.constant 0.00347222225 : f32
      %31 = vector.broadcast %cst_24 : f32 to vector<1x128xf32>
      %32 = arith.mulf %30, %31 : vector<1x128xf32>
      %33 = arith.mulf %29, %29 : vector<1x128xf32>
      %34 = arith.subf %32, %33 : vector<1x128xf32>
      %cst_25 = arith.constant 0.000000e+00 : f32
      %35 = vector.broadcast %cst_25 : f32 to vector<1x128xf32>
      %36 = arith.maximumf %34, %35 : vector<1x128xf32>
      %c1 = arith.constant 1 : index
      %c0_26 = arith.constant 0 : index
      %37 = vector.load %arg3[%c1, %c0_26] : memref<8x128xf32, #tpu.memory_space<vmem>>, vector<1x128xf32>
      %cst_27 = arith.constant 9.99999974E-6 : f32
      %38 = vector.broadcast %cst_27 : f32 to vector<1x128xf32>
      %39 = arith.addf %36, %38 : vector<1x128xf32>
      %40 = math.rsqrt %39 : vector<1x128xf32>
      %41 = arith.mulf %37, %40 : vector<1x128xf32>
      %c2 = arith.constant 2 : index
      %c0_28 = arith.constant 0 : index
      %42 = vector.load %arg3[%c2, %c0_28] : memref<8x128xf32, #tpu.memory_space<vmem>>, vector<1x128xf32>
      %43 = arith.mulf %29, %41 : vector<1x128xf32>
      %44 = arith.subf %42, %43 : vector<1x128xf32>
      %c0_29 = arith.constant 0 : index
      %c0_30 = arith.constant 0 : index
      %45 = vector.load %arg4[%c0_29, %c0_30] : memref<288x128xf32, #tpu.memory_space<vmem>>, vector<288x128xf32>
      %46 = vector.broadcast %41 : vector<1x128xf32> to vector<288x128xf32>
      %47 = arith.mulf %45, %46 : vector<288x128xf32>
      %48 = vector.broadcast %44 : vector<1x128xf32> to vector<288x128xf32>
      %49 = arith.addf %47, %48 : vector<288x128xf32>
      %cst_31 = arith.constant 0.000000e+00 : f32
      %50 = vector.broadcast %cst_31 : f32 to vector<288x128xf32>
      %51 = arith.maximumf %49, %50 : vector<288x128xf32>
      %c0_32 = arith.constant 0 : index
      %c0_33 = arith.constant 0 : index
      %52 = vector.load %arg4[%c0_32, %c0_33] : memref<288x128xf32, #tpu.memory_space<vmem>>, vector<288x128xf32>
      tpu.vector_store %arg4[%c0_32, %c0_33], %51 {strides = array<i32>} : memref<288x128xf32, #tpu.memory_space<vmem>>, vector<288x128xf32>,
    } else {
    }
    return
  }
  func.func @transform_0(%arg0: i32) -> (i32, i32) {
    %c0_i32 = arith.constant 0 : i32
    %c0_i32_0 = arith.constant 0 : i32
    return %arg0, %c0_i32 : i32, i32
  }
  func.func @transform_1(%arg0: i32) -> (i32, i32) {
    %c0_i32 = arith.constant 0 : i32
    %c0_i32_0 = arith.constant 0 : i32
    %c0_i32_1 = arith.constant 0 : i32
    return %c0_i32, %c0_i32_0 : i32, i32
  }
  func.func @transform_2(%arg0: i32) -> (i32, i32) {
    %c0_i32 = arith.constant 0 : i32
    %c0_i32_0 = arith.constant 0 : i32
    %c0_i32_1 = arith.constant 0 : i32
    return %c0_i32, %c0_i32_0 : i32, i32
  }
  func.func @transform_3(%arg0: i32) -> (i32, i32) {
    %c0_i32 = arith.constant 0 : i32
    %c0_i32_0 = arith.constant 0 : i32
    %c0_i32_1 = arith.constant 0 : i32
    return %c0_i32, %c0_i32_0 : i32, i32
  }
}

module attributes {stable_mosaic.version = 11 : i64} {
  func.func @_mlp_head_kernel(%arg0: i32, %arg1: memref<8x2304xf32, #tpu.memory_space<vmem>>, %arg2: memref<2304x512xbf16, #tpu.memory_space<vmem>>, %arg3: memref<1x512xf32, #tpu.memory_space<vmem>>, %arg4: memref<512x128xf32, #tpu.memory_space<vmem>>, %arg5: memref<1x128xf32, #tpu.memory_space<vmem>>, %arg6: memref<8x128xf32, #tpu.memory_space<vmem>>, %arg7: memref<8x512xf32, #tpu.memory_space<vmem>>) attributes {dimension_semantics = [#tpu.dimension_semantics<arbitrary>], iteration_bounds = array<i64: 4>, scalar_prefetch = 0 : i64, scratch_operands = 1 : i64, tpu.core_type = #tpu.core_type<tc>, window_params = [{transform_indices = @transform_0, window_bounds = array<i64: 8, 2304>}, {transform_indices = @transform_1, window_bounds = array<i64: 2304, 512>}, {pipeline_mode = #tpu.pipeline_mode<synchronous>, transform_indices = @transform_2, window_bounds = array<i64: 1, 512>}, {pipeline_mode = #tpu.pipeline_mode<synchronous>, transform_indices = @transform_3, window_bounds = array<i64: 512, 128>}, {pipeline_mode = #tpu.pipeline_mode<synchronous>, transform_indices = @transform_4, window_bounds = array<i64: 1, 128>}, {pipeline_mode = #tpu.pipeline_mode<synchronous>, transform_indices = @transform_5, window_bounds = array<i64: 8, 128>}]} {
    %c0_i32 = arith.constant 0 : i32
    %0 = arith.cmpi eq, %arg0, %c0_i32 : i32
    %1 = arith.extui %0 : i1 to i32
    %c0_i32_0 = arith.constant 0 : i32
    %2 = arith.cmpi ne, %1, %c0_i32_0 : i32
    scf.if %2 {
      %cst_9 = arith.constant 0.000000e+00 : f32
      %13 = vector.broadcast %cst_9 : f32 to vector<8x512xf32>
      %c0_10 = arith.constant 0 : index
      %c0_11 = arith.constant 0 : index
      %14 = vector.load %arg7[%c0_10, %c0_11] : memref<8x512xf32, #tpu.memory_space<vmem>>, vector<8x512xf32>
      tpu.vector_store %arg7[%c0_10, %c0_11], %13 {strides = array<i32>} : memref<8x512xf32, #tpu.memory_space<vmem>>, vector<8x512xf32>,
    } else {
    }
    %c0 = arith.constant 0 : index
    %c0_1 = arith.constant 0 : index
    %3 = vector.load %arg7[%c0, %c0_1] : memref<8x512xf32, #tpu.memory_space<vmem>>, vector<8x512xf32>
    %c0_2 = arith.constant 0 : index
    %c0_3 = arith.constant 0 : index
    %4 = vector.load %arg1[%c0_2, %c0_3] : memref<8x2304xf32, #tpu.memory_space<vmem>>, vector<8x2304xf32>
    %5 = arith.truncf %4 : vector<8x2304xf32> to vector<8x2304xbf16>
    %c0_4 = arith.constant 0 : index
    %c0_5 = arith.constant 0 : index
    %6 = vector.load %arg2[%c0_4, %c0_5] : memref<2304x512xbf16, #tpu.memory_space<vmem>>, vector<2304x512xbf16>
    %cst = arith.constant dense<0.000000e+00> : vector<8x512xf32>
    %7 = tpu.matmul %5, %6, %cst {dimension_numbers = #tpu.dot_dimension_numbers<[1], [0], [0], [1], [0, 0, 1, 1], [], []>} : vector<8x2304xbf16>, vector<2304x512xbf16>, vector<8x512xf32> -> vector<8x512xf32>
    %8 = arith.addf %3, %7 : vector<8x512xf32>
    %c0_6 = arith.constant 0 : index
    %c0_7 = arith.constant 0 : index
    %9 = vector.load %arg7[%c0_6, %c0_7] : memref<8x512xf32, #tpu.memory_space<vmem>>, vector<8x512xf32>
    tpu.vector_store %arg7[%c0_6, %c0_7], %8 {strides = array<i32>} : memref<8x512xf32, #tpu.memory_space<vmem>>, vector<8x512xf32>,
    %c3_i32 = arith.constant 3 : i32
    %10 = arith.cmpi eq, %arg0, %c3_i32 : i32
    %11 = arith.extui %10 : i1 to i32
    %c0_i32_8 = arith.constant 0 : i32
    %12 = arith.cmpi ne, %11, %c0_i32_8 : i32
    scf.if %12 {
      %c0_9 = arith.constant 0 : index
      %c0_10 = arith.constant 0 : index
      %13 = vector.load %arg7[%c0_9, %c0_10] : memref<8x512xf32, #tpu.memory_space<vmem>>, vector<8x512xf32>
      %c0_11 = arith.constant 0 : index
      %c0_12 = arith.constant 0 : index
      %14 = vector.load %arg3[%c0_11, %c0_12] : memref<1x512xf32, #tpu.memory_space<vmem>>, vector<1x512xf32>
      %15 = vector.broadcast %14 : vector<1x512xf32> to vector<8x512xf32>
      %16 = arith.addf %13, %15 : vector<8x512xf32>
      %cst_13 = arith.constant 0.000000e+00 : f32
      %17 = vector.broadcast %cst_13 : f32 to vector<8x512xf32>
      %18 = arith.maximumf %16, %17 : vector<8x512xf32>
      %c0_14 = arith.constant 0 : index
      %c0_15 = arith.constant 0 : index
      %19 = vector.load %arg4[%c0_14, %c0_15] : memref<512x128xf32, #tpu.memory_space<vmem>>, vector<512x128xf32>
      %cst_16 = arith.constant dense<0.000000e+00> : vector<8x128xf32>
      %20 = tpu.matmul %18, %19, %cst_16 {dimension_numbers = #tpu.dot_dimension_numbers<[1], [0], [0], [1], [0, 0, 1, 1], [], []>} : vector<8x512xf32>, vector<512x128xf32>, vector<8x128xf32> -> vector<8x128xf32>
      %c0_17 = arith.constant 0 : index
      %c0_18 = arith.constant 0 : index
      %21 = vector.load %arg5[%c0_17, %c0_18] : memref<1x128xf32, #tpu.memory_space<vmem>>, vector<1x128xf32>
      %22 = vector.broadcast %21 : vector<1x128xf32> to vector<8x128xf32>
      %23 = arith.addf %20, %22 : vector<8x128xf32>
      %cst_19 = arith.constant 0.000000e+00 : f32
      %24 = vector.broadcast %cst_19 : f32 to vector<8x128xf32>
      %25 = arith.maximumf %23, %24 : vector<8x128xf32>
      %c0_20 = arith.constant 0 : index
      %c0_21 = arith.constant 0 : index
      %26 = vector.load %arg6[%c0_20, %c0_21] : memref<8x128xf32, #tpu.memory_space<vmem>>, vector<8x128xf32>
      tpu.vector_store %arg6[%c0_20, %c0_21], %25 {strides = array<i32>} : memref<8x128xf32, #tpu.memory_space<vmem>>, vector<8x128xf32>,
    } else {
    }
    return
  }
  func.func @transform_0(%arg0: i32) -> (i32, i32) {
    %c0_i32 = arith.constant 0 : i32
    %c0_i32_0 = arith.constant 0 : i32
    return %c0_i32, %arg0 : i32, i32
  }
  func.func @transform_1(%arg0: i32) -> (i32, i32) {
    %c0_i32 = arith.constant 0 : i32
    %c0_i32_0 = arith.constant 0 : i32
    return %arg0, %c0_i32 : i32, i32
  }
  func.func @transform_2(%arg0: i32) -> (i32, i32) {
    %c0_i32 = arith.constant 0 : i32
    %c0_i32_0 = arith.constant 0 : i32
    %c0_i32_1 = arith.constant 0 : i32
    return %c0_i32, %c0_i32_0 : i32, i32
  }
  func.func @transform_3(%arg0: i32) -> (i32, i32) {
    %c0_i32 = arith.constant 0 : i32
    %c0_i32_0 = arith.constant 0 : i32
    %c0_i32_1 = arith.constant 0 : i32
    return %c0_i32, %c0_i32_0 : i32, i32
  }
  func.func @transform_4(%arg0: i32) -> (i32, i32) {
    %c0_i32 = arith.constant 0 : i32
    %c0_i32_0 = arith.constant 0 : i32
    %c0_i32_1 = arith.constant 0 : i32
    return %c0_i32, %c0_i32_0 : i32, i32
  }
  func.func @transform_5(%arg0: i32) -> (i32, i32) {
    %c0_i32 = arith.constant 0 : i32
    %c0_i32_0 = arith.constant 0 : i32
    %c0_i32_1 = arith.constant 0 : i32
    return %c0_i32, %c0_i32_0 : i32, i32
  }
}

</mosaic_0001>

<bundles_post_ra>
// kernel: dfqi_forward.4
= control target key start
LH: loop header
LB: loop body
LE: loop exit
PB: predicated region body
PF: predicated region fallthrough
CT: control target
= control target key end

     0   :  { %s3343_s12 = smov 0   ;;  %s6019_s0 = inlined_call_operand.vmem [shape: f32[1800,640], index: 0, kind: input, shape index: {}]   ;;  %s6020_s1 = inlined_call_operand.vmem [shape: f32[640,128], index: 1, kind: input, shape index: {}]   ;;  %s6021_s2 = inlined_call_operand.vmem [shape: f32[8,128], index: 2, kind: input, shape index: {}]   ;;  %s6022_s3 = inlined_call_operand.vmem [shape: f32[1800,128], index: 3, kind: output, shape index: {}]  }
   0x1 LB: > { %s3349_s13 = sadd.s32 4294967295, %s3317_s12   ;;  %p2729_p0 = scmp.ge.s32.totalorder %s3317_s12, 1  ;;  %s3317_s12 = sphi %s3343_s12, %s13_s12  }
   0x2   : > { %p134_p1 = scmp.lt.s32.totalorder %s3317_s12, 6 }
   0x4   : > { %p135_p2 = pnand %p2729_p0, %p134_p1 }
   0x5   : > { %s154_s14 = smul.u32 (!%p135_p2), 45, %s3349_s13  ;;  %p2731_p4 = scmp.ne.s32.totalorder (!%p135_p2), %s3349_s13, 0 }
   0x6   : > { %138 = sbr.rel (%p135_p2) target bundleno = 794 (0x31a), region = 32 }
   0x7   : > { %p155_p3 = scmp.lt.s32.totalorder (!%p135_p2), %s154_s14, 224 }
   0xd   : > { %s6024_s14 = smov (!%p155_p3, %s154_s14), 224  ;;  %164 = sbr.rel (%p2731_p4) target bundleno = 20 (0x14), region = 36 }
   0xe   : > { %s3296_s15 = smul.u32 40, %s6024_s14  ;;  %v3319_v0 = vmov (!%p2731_p4), 0.0  }
   0xf   : > { %165 = vst [vmem:[#allocation2] sm:$0x1] (!%p2731_p4), %v3319_v0  ;;  %166 = vst [vmem:[#allocation3] sm:$0x1] (!%p2731_p4), %v3319_v0 }
  0x10   : > { %s3357_s18 = scalar_lea.vmem %s6019_s0, %s3296_s15 }
  0x14 PF: > { %v392_v1 = vld [vmem:[%s6020_s1] sm:$0xff]  ;;  %v393_v2 = vld [vmem:[%s6020_s1 + $0x8] sm:$0xff]  ;;  %v3320_v4 = vmov 0.0|0.0   ;;  %v394_v7 = vld [vmem:[%s6020_s1 + $0x10] sm:$0xff]  ;;  %vm3321_vm0 = vmmov 0   ;;  %s1347_s9 = smul.u32 360, %s3349_s13 }
  0x15   : > { %v424_v3 = vld [vmem:[%s6020_s1 + $0x100] sm:$0xff]  ;;  %2964 = vmatprep.subr.bf16.mxu1 %v3320_v4  ;;  %3012 = vmatprep.subr.bf16.mxu0 %v3320_v4  ;;  %v2965_v5 = vpack.c.bf16 %v393_v2, %v392_v1  ;;  %v425_v6 = vld [vmem:[%s6020_s1 + $0x108] sm:$0xff]  ;;  %v395_v8 = vld [vmem:[%s6020_s1 + $0x18] sm:$0xff]  ;;  %p2733_p5 = scmp.ne.s32.totalorder %s3349_s13, 4 }
  0x16   : > { %v3380_v9 = vpack.c.bf16 %v425_v6, %v424_v3  ;;  %v426_v10 = vld [vmem:[%s6020_s1 + $0x110] sm:$0xff]  ;;  %v427_v11 = vld [vmem:[%s6020_s1 + $0x118] sm:$0xff]  ;;  %v2968_v12 = vpack.c.bf16 %v395_v8, %v394_v7  ;;  %v396_v14 = vld [vmem:[%s6020_s1 + $0x20] sm:$0xff]  ;;  %s4092_s14 = scalar_lea.vmem %s6022_s3, %s1347_s9 }
  0x17   : > { %2966 = vmatpush1.bf16.msra.mxu1 %v2965_v5  ;;  %v3390_v13 = vpack.c.bf16 %v427_v11, %v426_v10  ;;  %v397_v15 = vld [vmem:[%s6020_s1 + $0x28] sm:$0xff]  ;;  %v428_v16 = vld [vmem:[%s6020_s1 + $0x120] sm:$0xff]  ;;  %v398_v20 = vld [vmem:[%s6020_s1 + $0x30] sm:$0xff] }
  0x18   : > { %3014 = vmatpush1.bf16.msra.mxu0 %v3380_v9  ;;  %2967 = vmatprep.subr.bf16.mxu1 %v3320_v4  ;;  %v429_v17 = vld [vmem:[%s6020_s1 + $0x128] sm:$0xff]  ;;  %v2971_v18 = vpack.c.bf16 %v397_v15, %v396_v14  ;;  %v399_v21 = vld [vmem:[%s6020_s1 + $0x38] sm:$0xff]  ;;  %v430_v22 = vld [vmem:[%s6020_s1 + $0x130] sm:$0xff] }
  0x19   : > { %3015 = vmatprep.subr.bf16.mxu0 %v3320_v4  ;;  %v3407_v19 = vpack.c.bf16 %v429_v17, %v428_v16  ;;  %v431_v23 = vld [vmem:[%s6020_s1 + $0x138] sm:$0xff]  ;;  %v2974_v24 = vpack.c.bf16 %v399_v21, %v398_v20  ;;  %v400_v26 = vld [vmem:[%s6020_s1 + $0x40] sm:$0xff]  ;;  %v401_v27 = vld [vmem:[%s6020_s1 + $0x48] sm:$0xff] }
  0x1a   : > { %v3424_v25 = vpack.c.bf16 %v431_v23, %v430_v22  ;;  %v432_v28 = vld [vmem:[%s6020_s1 + $0x140] sm:$0xff]  ;;  %v433_v29 = vld [vmem:[%s6020_s1 + $0x148] sm:$0xff]  ;;  %v2977_v30 = vpack.c.bf16 %v401_v27, %v400_v26  ;;  %v402_v32 = vld [vmem:[%s6020_s1 + $0x50] sm:$0xff] }
  0x1b   : > { %2969 = vmatpush1.bf16.msra.mxu1 %v2968_v12  ;;  %v3441_v31 = vpack.c.bf16 %v433_v29, %v432_v28  ;;  %v403_v33 = vld [vmem:[%s6020_s1 + $0x58] sm:$0xff]  ;;  %v434_v34 = vld [vmem:[%s6020_s1 + $0x150] sm:$0xff]  ;;  %v404_v38 = vld [vmem:[%s6020_s1 + $0x60] sm:$0xff] }
  0x1c   : > { %3017 = vmatpush1.bf16.msra.mxu0 %v3390_v13  ;;  %2970 = vmatprep.subr.bf16.mxu1 %v3320_v4  ;;  %v435_v35 = vld [vmem:[%s6020_s1 + $0x158] sm:$0xff]  ;;  %v2980_v36 = vpack.c.bf16 %v403_v33, %v402_v32  ;;  %v405_v39 = vld [vmem:[%s6020_s1 + $0x68] sm:$0xff]  ;;  %v436_v40 = vld [vmem:[%s6020_s1 + $0x160] sm:$0xff] }
  0x1d   : > { %3018 = vmatprep.subr.bf16.mxu0 %v3320_v4  ;;  %v3458_v37 = vpack.c.bf16 %v435_v35, %v434_v34  ;;  %v437_v41 = vld [vmem:[%s6020_s1 + $0x168] sm:$0xff]  ;;  %v170_v43 = vld [vmem:[%s3357_s18 + $0x18] sm:$0xff]  ;;  %v2983_v44 = vpack.c.bf16 %v405_v39, %v404_v38  ;;  %v406_v46 = vld [vmem:[%s6020_s1 + $0x70] sm:$0xff] }
  0x1e   : > { %v168_v42 = vld [vmem:[%s3357_s18 + $0x8] sm:$0xff]  ;;  %831 = vmatprep.mubr.f32.mxu0 %v170_v43  ;;  %v3477_v45 = vpack.c.bf16 %v437_v41, %v436_v40  ;;  %v407_v47 = vld [vmem:[%s6020_s1 + $0x78] sm:$0xff]  ;;  %v438_v48 = vld [vmem:[%s6020_s1 + $0x170] sm:$0xff] }
  0x1f   : > { %2972 = vmatpush1.bf16.msra.mxu1 %v2971_v18  ;;  %541 = vmatprep.mubr.f32.mxu1 %v168_v42  ;;  %v439_v49 = vld [vmem:[%s6020_s1 + $0x178] sm:$0xff]  ;;  %v2986_v50 = vpack.c.bf16 %v407_v47, %v406_v46  ;;  %v408_v52 = vld [vmem:[%s6020_s1 + $0x80] sm:$0xff]  ;;  %v409_v53 = vld [vmem:[%s6020_s1 + $0x88] sm:$0xff] }
  0x20   : > { %3020 = vmatpush1.bf16.msra.mxu0 %v3407_v19  ;;  %2973 = vmatprep.subr.bf16.mxu1 %v3320_v4  ;;  %v3494_v51 = vpack.c.bf16 %v439_v49, %v438_v48  ;;  %v440_v54 = vld [vmem:[%s6020_s1 + $0x180] sm:$0xff]  ;;  %v441_v55 = vld [vmem:[%s6020_s1 + $0x188] sm:$0xff]  ;;  %v2989_v56 = vpack.c.bf16 %v409_v53, %v408_v52  ;;  %v410_v58 = vld [vmem:[%s6020_s1 + $0x90] sm:$0xff] }
  0x21   : > { %3021 = vmatprep.subr.bf16.mxu0 %v3320_v4  ;;  %v3511_v57 = vpack.c.bf16 %v441_v55, %v440_v54  ;;  %v411_v59 = vld [vmem:[%s6020_s1 + $0x98] sm:$0xff]  ;;  %v442_v60 = vld [vmem:[%s6020_s1 + $0x190] sm:$0xff]  ;;  %v412_v0 = vld [vmem:[%s6020_s1 + $0xa0] sm:$0xff] }
  0x22   : > { %v443_v61 = vld [vmem:[%s6020_s1 + $0x198] sm:$0xff]  ;;  %v2992_v62 = vpack.c.bf16 %v411_v59, %v410_v58  ;;  %v413_v1 = vld [vmem:[%s6020_s1 + $0xa8] sm:$0xff]  ;;  %v444_v2 = vld [vmem:[%s6020_s1 + $0x1a0] sm:$0xff] }
  0x23   : > { %2975 = vmatpush1.bf16.msra.mxu1 %v2974_v24  ;;  %v3528_v63 = vpack.c.bf16 %v443_v61, %v442_v60  ;;  %v445_v3 = vld [vmem:[%s6020_s1 + $0x1a8] sm:$0xff]  ;;  %v2995_v5 = vpack.c.bf16 %v413_v1, %v412_v0  ;;  %v414_v7 = vld [vmem:[%s6020_s1 + $0xb0] sm:$0xff]  ;;  %v415_v8 = vld [vmem:[%s6020_s1 + $0xb8] sm:$0xff] }
  0x24   : > { %3023 = vmatpush1.bf16.msra.mxu0 %v3424_v25  ;;  %2976 = vmatprep.subr.bf16.mxu1 %v3320_v4  ;;  %v3545_v6 = vpack.c.bf16 %v445_v3, %v444_v2  ;;  %v446_v10 = vld [vmem:[%s6020_s1 + $0x1b0] sm:$0xff]  ;;  %v447_v11 = vld [vmem:[%s6020_s1 + $0x1b8] sm:$0xff]  ;;  %v2998_v12 = vpack.c.bf16 %v415_v8, %v414_v7  ;;  %v416_v15 = vld [vmem:[%s6020_s1 + $0xc0] sm:$0xff] }
  0x25   : > { %3024 = vmatprep.subr.bf16.mxu0 %v3320_v4  ;;  %v3562_v14 = vpack.c.bf16 %v447_v11, %v446_v10  ;;  %v417_v16 = vld [vmem:[%s6020_s1 + $0xc8] sm:$0xff]  ;;  %v448_v17 = vld [vmem:[%s6020_s1 + $0x1c0] sm:$0xff]  ;;  %v418_v22 = vld [vmem:[%s6020_s1 + $0xd0] sm:$0xff] }
  0x26   : > { %v449_v18 = vld [vmem:[%s6020_s1 + $0x1c8] sm:$0xff]  ;;  %v3001_v20 = vpack.c.bf16 %v417_v16, %v416_v15  ;;  %v419_v23 = vld [vmem:[%s6020_s1 + $0xd8] sm:$0xff]  ;;  %v450_v24 = vld [vmem:[%s6020_s1 + $0x1d0] sm:$0xff] }
  0x27   : > { %2978 = vmatpush1.bf16.msra.mxu1 %v2977_v30  ;;  %v3579_v21 = vpack.c.bf16 %v449_v18, %v448_v17  ;;  %v451_v26 = vld [vmem:[%s6020_s1 + $0x1d8] sm:$0xff]  ;;  %v3004_v27 = vpack.c.bf16 %v419_v23, %v418_v22  ;;  %v420_v29 = vld [vmem:[%s6020_s1 + $0xe0] sm:$0xff]  ;;  %v421_v30 = vld [vmem:[%s6020_s1 + $0xe8] sm:$0xff] }
  0x28   : > { %3026 = vmatpush1.bf16.msra.mxu0 %v3441_v31  ;;  %2979 = vmatprep.subr.bf16.mxu1 %v3320_v4  ;;  %v3596_v28 = vpack.c.bf16 %v451_v26, %v450_v24  ;;  %v452_v32 = vld [vmem:[%s6020_s1 + $0x1e0] sm:$0xff]  ;;  %v453_v33 = vld [vmem:[%s6020_s1 + $0x1e8] sm:$0xff]  ;;  %v3007_v34 = vpack.c.bf16 %v421_v30, %v420_v29  ;;  %v423_v38 = vld [vmem:[%s6020_s1 + $0xf8] sm:$0xff] }
  0x29   : > { %3027 = vmatprep.subr.bf16.mxu0 %v3320_v4  ;;  %v3613_v35 = vpack.c.bf16 %v453_v33, %v452_v32  ;;  %v454_v39 = vld [vmem:[%s6020_s1 + $0x1f0] sm:$0xff]  ;;  %v455_v40 = vld [vmem:[%s6020_s1 + $0x1f8] sm:$0xff]  ;;  %v456_v43 = vld [vmem:[%s6020_s1 + $0x200] sm:$0xff] }
  0x2a   : > { %v3630_v42 = vpack.c.bf16 %v455_v40, %v454_v39  ;;  %v167_v46 = vld [vmem:[%s3357_s18] sm:$0xff]  ;;  %v169_v47 = vld [vmem:[%s3357_s18 + $0x10] sm:$0xff]  ;;  %v459_v52 = vld [vmem:[%s6020_s1 + $0x218] sm:$0xff] }
  0x2b   : > { %2981 = vmatpush1.bf16.msra.mxu1 %v2980_v36  ;;  %v422_v36 = vld [vmem:[%s6020_s1 + $0xf0] sm:$0xff]  ;;  %v175_v53 = vld [vmem:[%s3357_s18 + $0x40] sm:$0xff]  ;;  %v172_v54 = vld [vmem:[%s3357_s18 + $0x28] sm:$0xff] }
  0x2c   : > { %3029 = vmatpush1.bf16.msra.mxu0 %v3458_v37  ;;  %2982 = vmatprep.subr.bf16.mxu1 %v3320_v4  ;;  %v3010_v41 = vpack.c.bf16 %v423_v38, %v422_v36  ;;  %v173_v49 = vld [vmem:[%s3357_s18 + $0x30] sm:$0xff]  ;;  %v174_v55 = vld [vmem:[%s3357_s18 + $0x38] sm:$0xff]  ;;  %v180_v59 = vld [vmem:[%s3357_s18 + $0x68] sm:$0xff] }
  0x2d   : > { %3030 = vmatprep.subr.bf16.mxu0 %v3320_v4  ;;  %v460_v60 = vld [vmem:[%s6020_s1 + $0x220] sm:$0xff]  ;;  %v461_v61 = vld [vmem:[%s6020_s1 + $0x228] sm:$0xff]  ;;  %v185_v2 = vld [vmem:[%s3357_s18 + $0x90] sm:$0xff] }
  0x2e   : > { %v183_v0 = vld [vmem:[%s3357_s18 + $0x80] sm:$0xff]  ;;  %v3067_v1 = vpack.c.bf16 %v461_v61, %v460_v60  ;;  %v462_v3 = vld [vmem:[%s6020_s1 + $0x230] sm:$0xff]  ;;  %v182_v7 = vld [vmem:[%s3357_s18 + $0x78] sm:$0xff] }
  0x2f   : > { %2984 = vmatpush1.bf16.msra.mxu1 %v2983_v44  ;;  %v457_v44 = vld [vmem:[%s6020_s1 + $0x208] sm:$0xff]  ;;  %v190_v11 = vld [vmem:[%s3357_s18 + $0xb8] sm:$0xff]  ;;  %v187_v16 = vld [vmem:[%s3357_s18 + $0xa0] sm:$0xff] }
  0x30   : > { %3032 = vmatpush1.bf16.msra.mxu0 %v3477_v45  ;;  %2985 = vmatprep.subr.bf16.mxu1 %v3320_v4  ;;  %v3061_v48 = vpack.c.bf16 %v457_v44, %v456_v43  ;;  %v188_v8 = vld [vmem:[%s3357_s18 + $0xa8] sm:$0xff]  ;;  %v193_v17 = vld [vmem:[%s3357_s18 + $0xd0] sm:$0xff]  ;;  %v467_v23 = vld [vmem:[%s6020_s1 + $0x258] sm:$0xff] }
  0x31   : > { %3033 = vmatprep.subr.bf16.mxu0 %v3320_v4  ;;  %v465_v15 = vld [vmem:[%s6020_s1 + $0x248] sm:$0xff]  ;;  %v466_v22 = vld [vmem:[%s6020_s1 + $0x250] sm:$0xff]  ;;  %v198_v26 = vld [vmem:[%s3357_s18 + $0xf8] sm:$0xff] }
  0x32   : > { %v192_v24 = vld [vmem:[%s3357_s18 + $0xc8] sm:$0xff]  ;;  %v468_v30 = vld [vmem:[%s6020_s1 + $0x260] sm:$0xff]  ;;  %v197_v33 = vld [vmem:[%s3357_s18 + $0xf0] sm:$0xff] }
  0x33   : > { %2987 = vmatpush1.bf16.msra.mxu1 %v2986_v50  ;;  %v458_v50 = vld [vmem:[%s6020_s1 + $0x210] sm:$0xff]  ;;  %v200_v29 = vld [vmem:[%s3357_s18 + $0x108] sm:$0xff]  ;;  %v471_v40 = vld [vmem:[%s6020_s1 + $0x278] sm:$0xff] }
  0x34   : > { %3035 = vmatpush1.bf16.msra.mxu0 %v3494_v51  ;;  %2988 = vmatprep.subr.bf16.mxu1 %v3320_v4  ;;  %v3064_v58 = vpack.c.bf16 %v459_v52, %v458_v50  ;;  %v469_v32 = vld [vmem:[%s6020_s1 + $0x268] sm:$0xff]  ;;  %v205_v38 = vld [vmem:[%s3357_s18 + $0x130] sm:$0xff]  ;;  %v215_v50 = vld [vmem:[%s3357_s18 + $0x180] sm:$0xff] }
  0x35   : > { %3036 = vmatprep.subr.bf16.mxu0 %v3320_v4  ;;  %v3079_v36 = vpack.c.bf16 %v469_v32, %v468_v30  ;;  %v470_v39 = vld [vmem:[%s6020_s1 + $0x270] sm:$0xff]  ;;  %v208_v43 = vld [vmem:[%s3357_s18 + $0x148] sm:$0xff]  ;;  %v214_v52 = vld [vmem:[%s3357_s18 + $0x178] sm:$0xff] }
  0x36   : > { %v3082_v44 = vpack.c.bf16 %v471_v40, %v470_v39  ;;  %v228_v60 = vld [vmem:[%s3357_s18 + $0x1e8] sm:$0xff]  ;;  %v230_v61 = vld [vmem:[%s3357_s18 + $0x1f8] sm:$0xff]  ;;  %v273_v30 = vld [vmem:[%s3357_s18 + $0x350] sm:$0xff] }
  0x37   : > { %2990 = vmatpush1.bf16.msra.mxu1 %v2989_v56  ;;  %v178_v56 = vld [vmem:[%s3357_s18 + $0x58] sm:$0xff]  ;;  %v275_v32 = vld [vmem:[%s3357_s18 + $0x360] sm:$0xff] }
  0x38   : > { %3038 = vmatpush1.bf16.msra.mxu0 %v3511_v57  ;;  %2991 = vmatprep.subr.bf16.mxu1 %v3320_v4  ;;  %v279_v39 = vld [vmem:[%s3357_s18 + $0x380] sm:$0xff] }
  0x39   : > { %3039 = vmatprep.subr.bf16.mxu0 %v3320_v4  ;;  %v283_v40 = vld [vmem:[%s3357_s18 + $0x3a0] sm:$0xff] }
  0x3b   : > { %2993 = vmatpush1.bf16.msra.mxu1 %v2992_v62  ;;  %v179_v62 = vld [vmem:[%s3357_s18 + $0x60] sm:$0xff] }
  0x3c   : > { %3041 = vmatpush1.bf16.msra.mxu0 %v3528_v63  ;;  %2994 = vmatprep.subr.bf16.mxu1 %v3320_v4 }
  0x3d   : > { %3042 = vmatprep.subr.bf16.mxu0 %v3320_v4 }
  0x3f   : > { %2996 = vmatpush1.bf16.msra.mxu1 %v2995_v5  ;;  %v463_v5 = vld [vmem:[%s6020_s1 + $0x238] sm:$0xff] }
  0x40   : > { %3044 = vmatpush1.bf16.msra.mxu0 %v3545_v6  ;;  %2997 = vmatprep.subr.bf16.mxu1 %v3320_v4  ;;  %v3070_v10 = vpack.c.bf16 %v463_v5, %v462_v3  ;;  %v240_v3 = vld [vmem:[%s3357_s18 + $0x248] sm:$0xff]  ;;  %v239_v5 = vld [vmem:[%s3357_s18 + $0x240] sm:$0xff] }
  0x41   : > { %3045 = vmatprep.subr.bf16.mxu0 %v3320_v4 }
  0x43   : > { %2999 = vmatpush1.bf16.msra.mxu1 %v2998_v12  ;;  %v464_v12 = vld [vmem:[%s6020_s1 + $0x240] sm:$0xff] }
  0x44   : > { %3047 = vmatpush1.bf16.msra.mxu0 %v3562_v14  ;;  %3000 = vmatprep.subr.bf16.mxu1 %v3320_v4  ;;  %v3073_v18 = vpack.c.bf16 %v465_v15, %v464_v12  ;;  %v249_v12 = vld [vmem:[%s3357_s18 + $0x290] sm:$0xff] }
  0x45   : > { %3048 = vmatprep.subr.bf16.mxu0 %v3320_v4  ;;  %v253_v15 = vld [vmem:[%s3357_s18 + $0x2b0] sm:$0xff] }
  0x47   : > { %3002 = vmatpush1.bf16.msra.mxu1 %v3001_v20  ;;  %v195_v20 = vld [vmem:[%s3357_s18 + $0xe0] sm:$0xff] }
  0x48   : > { %3050 = vmatpush1.bf16.msra.mxu0 %v3579_v21  ;;  %3003 = vmatprep.subr.bf16.mxu1 %v3320_v4 }
  0x49   : > { %3051 = vmatprep.subr.bf16.mxu0 %v3320_v4 }
  0x4b   : > { %3005 = vmatpush1.bf16.msra.mxu1 %v3004_v27  ;;  %v3076_v27 = vpack.c.bf16 %v467_v23, %v466_v22  ;;  %v265_v22 = vld [vmem:[%s3357_s18 + $0x310] sm:$0xff]  ;;  %v262_v23 = vld [vmem:[%s3357_s18 + $0x2f8] sm:$0xff] }
  0x4c   : > { %3053 = vmatpush1.bf16.msra.mxu0 %v3596_v28  ;;  %3006 = vmatprep.subr.bf16.mxu1 %v3320_v4 }
  0x4d   : > { %3054 = vmatprep.subr.bf16.mxu0 %v3320_v4 }
  0x4f   : > { %3008 = vmatpush1.bf16.msra.mxu1 %v3007_v34  ;;  %v203_v34 = vld [vmem:[%s3357_s18 + $0x120] sm:$0xff] }
  0x50   : > { %3056 = vmatpush1.bf16.msra.mxu0 %v3613_v35  ;;  %3009 = vmatprep.subr.bf16.mxu1 %v3320_v4 }
  0x51   : > { %3057 = vmatprep.subr.bf16.mxu0 %v3320_v4 }
  0x53   : > { %3011 = vmatpush1.bf16.msra.mxu1 %v3010_v41  ;;  %v202_v41 = vld [vmem:[%s3357_s18 + $0x118] sm:$0xff] }
  0x54   : > { %3059 = vmatpush1.bf16.msra.mxu0 %v3630_v42  ;;  %3084 = vmatprep.subr.bf16.mxu1 %v3320_v4 }
  0x55   : > { %3060 = vmatprep.subr.bf16.mxu0 %v3320_v4 }
  0x56   : > { %542 = vmatmul.mubr.f32.vlgmr.msra.gmra.mrb[0].mxu1 %v167_v46  ;;  %v210_v46 = vld [vmem:[%s3357_s18 + $0x158] sm:$0xff] }
  0x57   : > { %832 = vmatmul.mubr.f32.vlgmr.msra.gmra.mrb[0].mxu0 %v169_v47  ;;  %546 = vmatprep.mubr.f32.mxu1 %v173_v49  ;;  %v207_v47 = vld [vmem:[%s3357_s18 + $0x140] sm:$0xff]  ;;  %v213_v49 = vld [vmem:[%s3357_s18 + $0x170] sm:$0xff] }
  0x58   : > { %3062 = vmatpush3.bf16.msra.mxu0 %v3061_v48  ;;  %3100 = vmatpush1.bf16.msra.mxu1 %v3380_v9  ;;  %v177_v9 = vld [vmem:[%s3357_s18 + $0x50] sm:$0xff] }
  0x59   : > { %836 = vmatprep.mubr.f32.mxu0 %v175_v53  ;;  %3063 = vmatprep.subr.bf16.mxu0 %v3320_v4  ;;  %v209_v48 = vld [vmem:[%s3357_s18 + $0x150] sm:$0xff]  ;;  %v218_v53 = vld [vmem:[%s3357_s18 + $0x198] sm:$0xff] }
  0x5a   : > { %547 = vmatmul.mubr.f32.gmra.mrb[2].mxu1 %v172_v54  ;;  %3085 = vmatprep.subr.bf16.mxu1 %v3320_v4  ;;  %v220_v54 = vld [vmem:[%s3357_s18 + $0x1a8] sm:$0xff] }
  0x5b   : > { %837 = vmatmul.mubr.f32.gmra.mrb[2].mxu0 %v174_v55  ;;  %551 = vmatprep.mubr.f32.mxu1 %v178_v56  ;;  %v219_v55 = vld [vmem:[%s3357_s18 + $0x1a0] sm:$0xff] }
  0x5c   : > { %841 = vmatprep.mubr.f32.mxu0 %v180_v59  ;;  %3065 = vmatpush3.bf16.msra.mxu0 %v3064_v58  ;;  %v223_v56 = vld [vmem:[%s3357_s18 + $0x1c0] sm:$0xff]  ;;  %v225_v58 = vld [vmem:[%s3357_s18 + $0x1d0] sm:$0xff]  ;;  %v224_v59 = vld [vmem:[%s3357_s18 + $0x1c8] sm:$0xff] }
  0x5d   : > { %3101 = vmatpush1.bf16.msra.mxu1 %v3390_v13  ;;  %3066 = vmatprep.subr.bf16.mxu0 %v3320_v4  ;;  %v184_v13 = vld [vmem:[%s3357_s18 + $0x88] sm:$0xff] }
  0x5e   : > { %552 = vmatmul.mubr.f32.gmra.mrb[4].mxu1 %v177_v9  ;;  %3086 = vmatprep.subr.bf16.mxu1 %v3320_v4  ;;  %v229_v9 = vld [vmem:[%s3357_s18 + $0x1f0] sm:$0xff] }
  0x5f   : > { %842 = vmatmul.mubr.f32.gmra.mrb[4].mxu0 %v179_v62  ;;  %556 = vmatprep.mubr.f32.mxu1 %v183_v0  ;;  %v233_v62 = vld [vmem:[%s3357_s18 + $0x210] sm:$0xff]  ;;  %v235_v0 = vld [vmem:[%s3357_s18 + $0x220] sm:$0xff] }
  0x60   : > { %846 = vmatprep.mubr.f32.mxu0 %v185_v2  ;;  %3068 = vmatpush3.bf16.msra.mxu0 %v3067_v1  ;;  %v234_v1 = vld [vmem:[%s3357_s18 + $0x218] sm:$0xff] }
  0x61   : > { %3102 = vmatpush1.bf16.msra.mxu1 %v3407_v19  ;;  %3069 = vmatprep.subr.bf16.mxu0 %v3320_v4  ;;  %v189_v19 = vld [vmem:[%s3357_s18 + $0xb0] sm:$0xff]  ;;  %v238_v2 = vld [vmem:[%s3357_s18 + $0x238] sm:$0xff] }
  0x62   : > { %557 = vmatmul.mubr.f32.gmra.mrb[6].mxu1 %v182_v7  ;;  %3087 = vmatprep.subr.bf16.mxu1 %v3320_v4  ;;  %v243_v7 = vld [vmem:[%s3357_s18 + $0x260] sm:$0xff] }
  0x63   : > { %847 = vmatmul.mubr.f32.gmra.mrb[6].mxu0 %v184_v13  ;;  %561 = vmatprep.mubr.f32.mxu1 %v188_v8  ;;  %v245_v13 = vld [vmem:[%s3357_s18 + $0x270] sm:$0xff]  ;;  %v244_v8 = vld [vmem:[%s3357_s18 + $0x268] sm:$0xff] }
  0x64   : > { %851 = vmatprep.mubr.f32.mxu0 %v190_v11  ;;  %3071 = vmatpush3.bf16.msra.mxu0 %v3070_v10  ;;  %v248_v10 = vld [vmem:[%s3357_s18 + $0x288] sm:$0xff]  ;;  %v250_v11 = vld [vmem:[%s3357_s18 + $0x298] sm:$0xff] }
  0x65   : > { %3103 = vmatpush1.bf16.msra.mxu1 %v3424_v25  ;;  %3072 = vmatprep.subr.bf16.mxu0 %v3320_v4  ;;  %v194_v25 = vld [vmem:[%s3357_s18 + $0xd8] sm:$0xff] }
  0x66   : > { %562 = vmatmul.mubr.f32.gmra.mrb[8].mxu1 %v187_v16  ;;  %3088 = vmatprep.subr.bf16.mxu1 %v3320_v4  ;;  %v255_v16 = vld [vmem:[%s3357_s18 + $0x2c0] sm:$0xff] }
  0x67   : > { %852 = vmatmul.mubr.f32.gmra.mrb[8].mxu0 %v189_v19  ;;  %566 = vmatprep.mubr.f32.mxu1 %v193_v17  ;;  %v258_v19 = vld [vmem:[%s3357_s18 + $0x2d8] sm:$0xff]  ;;  %v260_v17 = vld [vmem:[%s3357_s18 + $0x2e8] sm:$0xff] }
  0x68   : > { %856 = vmatprep.mubr.f32.mxu0 %v195_v20  ;;  %3074 = vmatpush3.bf16.msra.mxu0 %v3073_v18  ;;  %v257_v18 = vld [vmem:[%s3357_s18 + $0x2d0] sm:$0xff]  ;;  %v263_v20 = vld [vmem:[%s3357_s18 + $0x300] sm:$0xff] }
  0x69   : > { %3104 = vmatpush1.bf16.msra.mxu1 %v3441_v31  ;;  %3075 = vmatprep.subr.bf16.mxu0 %v3320_v4  ;;  %v199_v31 = vld [vmem:[%s3357_s18 + $0x100] sm:$0xff] }
  0x6a   : > { %567 = vmatmul.mubr.f32.gmra.mrb[10].mxu1 %v192_v24  ;;  %3089 = vmatprep.subr.bf16.mxu1 %v3320_v4  ;;  %v264_v24 = vld [vmem:[%s3357_s18 + $0x308] sm:$0xff] }
  0x6b   : > { %857 = vmatmul.mubr.f32.gmra.mrb[10].mxu0 %v194_v25  ;;  %571 = vmatprep.mubr.f32.mxu1 %v198_v26  ;;  %v268_v25 = vld [vmem:[%s3357_s18 + $0x328] sm:$0xff]  ;;  %v270_v26 = vld [vmem:[%s3357_s18 + $0x338] sm:$0xff] }
  0x6c   : > { %861 = vmatprep.mubr.f32.mxu0 %v200_v29  ;;  %3077 = vmatpush3.bf16.msra.mxu0 %v3076_v27  ;;  %v267_v27 = vld [vmem:[%s3357_s18 + $0x320] sm:$0xff]  ;;  %v269_v29 = vld [vmem:[%s3357_s18 + $0x330] sm:$0xff] }
  0x6d   : > { %3105 = vmatpush1.bf16.msra.mxu1 %v3458_v37  ;;  %3078 = vmatprep.subr.bf16.mxu0 %v3320_v4  ;;  %v204_v37 = vld [vmem:[%s3357_s18 + $0x128] sm:$0xff] }
  0x6e   : > { %572 = vmatmul.mubr.f32.gmra.mrb[12].mxu1 %v197_v33  ;;  %3090 = vmatprep.subr.bf16.mxu1 %v3320_v4  ;;  %v272_v33 = vld [vmem:[%s3357_s18 + $0x348] sm:$0xff] }
  0x6f   : > { %862 = vmatmul.mubr.f32.gmra.mrb[12].mxu0 %v199_v31  ;;  %576 = vmatprep.mubr.f32.mxu1 %v203_v34  ;;  %v274_v31 = vld [vmem:[%s3357_s18 + $0x358] sm:$0xff] }
  0x70   : > { %866 = vmatprep.mubr.f32.mxu0 %v205_v38  ;;  %3080 = vmatpush3.bf16.msra.mxu0 %v3079_v36  ;;  %v278_v34 = vld [vmem:[%s3357_s18 + $0x378] sm:$0xff]  ;;  %v280_v36 = vld [vmem:[%s3357_s18 + $0x388] sm:$0xff]  ;;  %v277_v38 = vld [vmem:[%s3357_s18 + $0x370] sm:$0xff] }
  0x71   : > { %3106 = vmatpush1.bf16.msra.mxu1 %v3477_v45  ;;  %3081 = vmatprep.subr.bf16.mxu0 %v3320_v4  ;;  %v212_v45 = vld [vmem:[%s3357_s18 + $0x168] sm:$0xff] }
  0x72   : > { %577 = vmatmul.mubr.f32.gmra.mrb[14].mxu1 %v202_v41  ;;  %3091 = vmatprep.subr.bf16.mxu1 %v3320_v4  ;;  %v282_v41 = vld [vmem:[%s3357_s18 + $0x398] sm:$0xff] }
  0x73   : > { %867 = vmatmul.mubr.f32.gmra.mrb[14].mxu0 %v204_v37  ;;  %581 = vmatprep.mubr.f32.mxu1 %v208_v43  ;;  %v3322_v37 = vmov 0.0   ;;  %v171_v43 = vld [vmem:[%s3357_s18 + $0x20] sm:$0xff] }
  0x74   : > { %871 = vmatprep.mubr.f32.mxu0 %v210_v46  ;;  %3083 = vmatpush3.bf16.msra.mxu0 %v3082_v44  ;;  %v288_v44 = vld [vmem:[%s3357_s18 + $0x3c8] sm:$0xff]  ;;  %v287_v46 = vld [vmem:[%s3357_s18 + $0x3c0] sm:$0xff] }
  0x75   : > { %3107 = vmatpush1.bf16.msra.mxu1 %v3494_v51  ;;  %v217_v51 = vld [vmem:[%s3357_s18 + $0x190] sm:$0xff] }
  0x76   : > { %582 = vmatmul.mubr.f32.gmra.mrb[16].mxu1 %v207_v47  ;;  %3092 = vmatprep.subr.bf16.mxu1 %v3320_v4  ;;  %v176_v47 = vld [vmem:[%s3357_s18 + $0x48] sm:$0xff] }
  0x77   : > { %872 = vmatmul.mubr.f32.gmra.mrb[16].mxu0 %v209_v48  ;;  %586 = vmatprep.mubr.f32.mxu1 %v213_v49  ;;  %v293_v48 = vld [vmem:[%s3357_s18 + $0x3f0] sm:$0xff]  ;;  %v292_v49 = vld [vmem:[%s3357_s18 + $0x3e8] sm:$0xff] }
  0x78   : > { %876 = vmatprep.mubr.f32.mxu0 %v215_v50  ;;  %v181_v50 = vld [vmem:[%s3357_s18 + $0x70] sm:$0xff] }
  0x79   : > { %3108 = vmatpush1.bf16.msra.mxu1 %v3511_v57  ;;  %v222_v57 = vld [vmem:[%s3357_s18 + $0x1b8] sm:$0xff] }
  0x7a   : > { %587 = vmatmul.mubr.f32.gmra.mrb[18].mxu1 %v212_v45  ;;  %3093 = vmatprep.subr.bf16.mxu1 %v3320_v4  ;;  %v298_v45 = vld [vmem:[%s3357_s18 + $0x418] sm:$0xff] }
  0x7b   : > { %877 = vmatmul.mubr.f32.gmra.mrb[18].mxu0 %v214_v52  ;;  %591 = vmatprep.mubr.f32.mxu1 %v218_v53  ;;  %v297_v52 = vld [vmem:[%s3357_s18 + $0x410] sm:$0xff]  ;;  %v186_v53 = vld [vmem:[%s3357_s18 + $0x98] sm:$0xff] }
  0x7c   : > { %881 = vmatprep.mubr.f32.mxu0 %v220_v54  ;;  %v303_v54 = vld [vmem:[%s3357_s18 + $0x440] sm:$0xff] }
  0x7d   : > { %3109 = vmatpush1.bf16.msra.mxu1 %v3528_v63  ;;  %v227_v63 = vld [vmem:[%s3357_s18 + $0x1e0] sm:$0xff] }
  0x7e   : > { %592 = vmatmul.mubr.f32.gmra.mrb[20].mxu1 %v217_v51  ;;  %3094 = vmatprep.subr.bf16.mxu1 %v3320_v4  ;;  %v302_v51 = vld [vmem:[%s3357_s18 + $0x438] sm:$0xff] }
  0x7f   : > { %882 = vmatmul.mubr.f32.gmra.mrb[20].mxu0 %v219_v55  ;;  %596 = vmatprep.mubr.f32.mxu1 %v223_v56  ;;  %v191_v55 = vld [vmem:[%s3357_s18 + $0xc0] sm:$0xff]  ;;  %v308_v56 = vld [vmem:[%s3357_s18 + $0x468] sm:$0xff] }
  0x80   : > { %886 = vmatprep.mubr.f32.mxu0 %v225_v58  ;;  %v307_v58 = vld [vmem:[%s3357_s18 + $0x460] sm:$0xff] }
  0x81   : > { %3110 = vmatpush1.bf16.msra.mxu1 %v3545_v6  ;;  %v232_v6 = vld [vmem:[%s3357_s18 + $0x208] sm:$0xff] }
  0x82   : > { %597 = vmatmul.mubr.f32.gmra.mrb[22].mxu1 %v222_v57  ;;  %3095 = vmatprep.subr.bf16.mxu1 %v3320_v4  ;;  %v196_v57 = vld [vmem:[%s3357_s18 + $0xe8] sm:$0xff] }
  0x83   : > { %887 = vmatmul.mubr.f32.gmra.mrb[22].mxu0 %v224_v59  ;;  %601 = vmatprep.mubr.f32.mxu1 %v228_v60  ;;  %v313_v59 = vld [vmem:[%s3357_s18 + $0x490] sm:$0xff]  ;;  %v312_v60 = vld [vmem:[%s3357_s18 + $0x488] sm:$0xff] }
  0x84   : > { %891 = vmatprep.mubr.f32.mxu0 %v230_v61  ;;  %v201_v61 = vld [vmem:[%s3357_s18 + $0x110] sm:$0xff] }
  0x85   : > { %3111 = vmatpush1.bf16.msra.mxu1 %v3562_v14  ;;  %v237_v14 = vld [vmem:[%s3357_s18 + $0x230] sm:$0xff] }
  0x86   : > { %602 = vmatmul.mubr.f32.gmra.mrb[24].mxu1 %v227_v63  ;;  %3096 = vmatprep.subr.bf16.mxu1 %v3320_v4  ;;  %v318_v63 = vld [vmem:[%s3357_s18 + $0x4b8] sm:$0xff] }
  0x87   : > { %892 = vmatmul.mubr.f32.gmra.mrb[24].mxu0 %v229_v9  ;;  %606 = vmatprep.mubr.f32.mxu1 %v233_v62  ;;  %v317_v9 = vld [vmem:[%s3357_s18 + $0x4b0] sm:$0xff]  ;;  %v206_v62 = vld [vmem:[%s3357_s18 + $0x138] sm:$0xff] }
  0x88   : > { %896 = vmatprep.mubr.f32.mxu0 %v235_v0  ;;  %v323_v0 = vld [vmem:[%s3357_s18 + $0x4e0] sm:$0xff] }
  0x89   : > { %3112 = vmatpush1.bf16.msra.mxu1 %v3579_v21  ;;  %v242_v21 = vld [vmem:[%s3357_s18 + $0x258] sm:$0xff] }
  0x8a   : > { %607 = vmatmul.mubr.f32.gmra.mrb[26].mxu1 %v232_v6  ;;  %3097 = vmatprep.subr.bf16.mxu1 %v3320_v4  ;;  %v322_v6 = vld [vmem:[%s3357_s18 + $0x4d8] sm:$0xff] }
  0x8b   : > { %897 = vmatmul.mubr.f32.gmra.mrb[26].mxu0 %v234_v1  ;;  %611 = vmatprep.mubr.f32.mxu1 %v238_v2  ;;  %v211_v1 = vld [vmem:[%s3357_s18 + $0x160] sm:$0xff]  ;;  %v328_v2 = vld [vmem:[%s3357_s18 + $0x508] sm:$0xff] }
  0x8c   : > { %901 = vmatprep.mubr.f32.mxu0 %v240_v3  ;;  %v327_v3 = vld [vmem:[%s3357_s18 + $0x500] sm:$0xff] }
  0x8d   : > { %3113 = vmatpush1.bf16.msra.mxu1 %v3596_v28  ;;  %v247_v28 = vld [vmem:[%s3357_s18 + $0x280] sm:$0xff] }
  0x8e   : > { %612 = vmatmul.mubr.f32.gmra.mrb[28].mxu1 %v237_v14  ;;  %3098 = vmatprep.subr.bf16.mxu1 %v3320_v4  ;;  %v216_v14 = vld [vmem:[%s3357_s18 + $0x188] sm:$0xff] }
  0x8f   : > { %902 = vmatmul.mubr.f32.gmra.mrb[28].mxu0 %v239_v5  ;;  %616 = vmatprep.mubr.f32.mxu1 %v243_v7  ;;  %v333_v5 = vld [vmem:[%s3357_s18 + $0x530] sm:$0xff]  ;;  %v332_v7 = vld [vmem:[%s3357_s18 + $0x528] sm:$0xff] }
  0x90   : > { %906 = vmatprep.mubr.f32.mxu0 %v245_v13  ;;  %v221_v13 = vld [vmem:[%s3357_s18 + $0x1b0] sm:$0xff] }
  0x91   : > { %3114 = vmatpush1.bf16.msra.mxu1 %v3613_v35  ;;  %v252_v35 = vld [vmem:[%s3357_s18 + $0x2a8] sm:$0xff] }
  0x92   : > { %617 = vmatmul.mubr.f32.gmra.mrb[30].mxu1 %v242_v21  ;;  %3099 = vmatprep.subr.bf16.mxu1 %v3320_v4  ;;  %v254_v4 = vld [vmem:[%s3357_s18 + $0x2b8] sm:$0xff] }
  0x93   : > { %907 = vmatmul.mubr.f32.gmra.mrb[30].mxu0 %v244_v8  ;;  %621 = vmatprep.mubr.f32.mxu1 %v248_v10  ;;  %v338_v21 = vld [vmem:[%s3357_s18 + $0x558] sm:$0xff]  ;;  %v337_v8 = vld [vmem:[%s3357_s18 + $0x550] sm:$0xff] }
  0x94   : > { %911 = vmatprep.mubr.f32.mxu0 %v250_v11  ;;  %v226_v10 = vld [vmem:[%s3357_s18 + $0x1d8] sm:$0xff]  ;;  %v343_v11 = vld [vmem:[%s3357_s18 + $0x580] sm:$0xff] }
  0x95   : > { %3115 = vmatpush1.bf16.msra.mxu1 %v3630_v42  ;;  %v259_v42 = vld [vmem:[%s3357_s18 + $0x2e0] sm:$0xff] }
  0x96   : > { %622 = vmatmul.mubr.f32.gmra.mrb[32].mxu1 %v247_v28  ;;  %v342_v28 = vld [vmem:[%s3357_s18 + $0x578] sm:$0xff] }
  0x97   : > { %912 = vmatmul.mubr.f32.gmra.mrb[32].mxu0 %v249_v12  ;;  %626 = vmatprep.mubr.f32.mxu1 %v253_v15  ;;  %v231_v12 = vld [vmem:[%s3357_s18 + $0x200] sm:$0xff]  ;;  %v348_v15 = vld [vmem:[%s3357_s18 + $0x5a8] sm:$0xff] }
  0x98   : > { %916 = vmatprep.mubr.f32.mxu0 %v255_v16  ;;  %v347_v16 = vld [vmem:[%s3357_s18 + $0x5a0] sm:$0xff] }
  0x9a   : > { %627 = vmatmul.mubr.f32.gmra.mrb[34].mxu1 %v252_v35  ;;  %v236_v35 = vld [vmem:[%s3357_s18 + $0x228] sm:$0xff] }
  0x9b   : > { %917 = vmatmul.mubr.f32.gmra.mrb[34].mxu0 %v254_v4  ;;  %631 = vmatprep.mubr.f32.mxu1 %v258_v19  ;;  %v353_v4 = vld [vmem:[%s3357_s18 + $0x5d0] sm:$0xff]  ;;  %v352_v19 = vld [vmem:[%s3357_s18 + $0x5c8] sm:$0xff] }
  0x9c   : > { %921 = vmatprep.mubr.f32.mxu0 %v260_v17  ;;  %v241_v17 = vld [vmem:[%s3357_s18 + $0x250] sm:$0xff] }
  0x9e   : > { %632 = vmatmul.mubr.f32.gmra.mrb[36].mxu1 %v257_v18  ;;  %v358_v18 = vld [vmem:[%s3357_s18 + $0x5f8] sm:$0xff] }
  0x9f   : > { %922 = vmatmul.mubr.f32.gmra.mrb[36].mxu0 %v259_v42  ;;  %636 = vmatprep.mubr.f32.mxu1 %v263_v20  ;;  %v357_v42 = vld [vmem:[%s3357_s18 + $0x5f0] sm:$0xff]  ;;  %v246_v20 = vld [vmem:[%s3357_s18 + $0x278] sm:$0xff] }
  0xa0   : > { %926 = vmatprep.mubr.f32.mxu0 %v265_v22  ;;  %v363_v22 = vld [vmem:[%s3357_s18 + $0x620] sm:$0xff] }
  0xa2   : > { %637 = vmatmul.mubr.f32.gmra.mrb[38].mxu1 %v262_v23  ;;  %v362_v23 = vld [vmem:[%s3357_s18 + $0x618] sm:$0xff] }
  0xa3   : > { %927 = vmatmul.mubr.f32.gmra.mrb[38].mxu0 %v264_v24  ;;  %641 = vmatprep.mubr.f32.mxu1 %v268_v25  ;;  %v251_v24 = vld [vmem:[%s3357_s18 + $0x2a0] sm:$0xff]  ;;  %v368_v25 = vld [vmem:[%s3357_s18 + $0x648] sm:$0xff] }
  0xa4   : > { %931 = vmatprep.mubr.f32.mxu0 %v270_v26  ;;  %v367_v26 = vld [vmem:[%s3357_s18 + $0x640] sm:$0xff] }
  0xa6   : > { %642 = vmatmul.mubr.f32.gmra.mrb[40].mxu1 %v267_v27  ;;  %v256_v27 = vld [vmem:[%s3357_s18 + $0x2c8] sm:$0xff] }
  0xa7   : > { %932 = vmatmul.mubr.f32.gmra.mrb[40].mxu0 %v269_v29  ;;  %646 = vmatprep.mubr.f32.mxu1 %v273_v30  ;;  %v373_v29 = vld [vmem:[%s3357_s18 + $0x670] sm:$0xff]  ;;  %v372_v30 = vld [vmem:[%s3357_s18 + $0x668] sm:$0xff] }
  0xa8   : > { %936 = vmatprep.mubr.f32.mxu0 %v275_v32  ;;  %v261_v32 = vld [vmem:[%s3357_s18 + $0x2f0] sm:$0xff] }
  0xaa   : > { %647 = vmatmul.mubr.f32.gmra.mrb[42].mxu1 %v272_v33  ;;  %v378_v33 = vld [vmem:[%s3357_s18 + $0x698] sm:$0xff] }
  0xab   : > { %937 = vmatmul.mubr.f32.gmra.mrb[42].mxu0 %v274_v31  ;;  %651 = vmatprep.mubr.f32.mxu1 %v278_v34  ;;  %v377_v31 = vld [vmem:[%s3357_s18 + $0x690] sm:$0xff]  ;;  %v266_v34 = vld [vmem:[%s3357_s18 + $0x318] sm:$0xff] }
  0xac   : > { %941 = vmatprep.mubr.f32.mxu0 %v280_v36  ;;  %v383_v36 = vld [vmem:[%s3357_s18 + $0x6c0] sm:$0xff] }
  0xae   : > { %652 = vmatmul.mubr.f32.gmra.mrb[44].mxu1 %v277_v38  ;;  %v382_v38 = vld [vmem:[%s3357_s18 + $0x6b8] sm:$0xff] }
  0xaf   : > { %942 = vmatmul.mubr.f32.gmra.mrb[44].mxu0 %v279_v39  ;;  %656 = vmatprep.mubr.f32.mxu1 %v283_v40  ;;  %v271_v39 = vld [vmem:[%s3357_s18 + $0x340] sm:$0xff]  ;;  %v388_v40 = vld [vmem:[%s3357_s18 + $0x6e8] sm:$0xff] }
  0xb0   : > { %2829 = vmatprep.mubr.msk.f32.mxu0 %vm3321_vm0, %v3322_v37 }
  0xb2   : > { %657 = vmatmul.mubr.f32.gmra.mrb[46].mxu1 %v282_v41  ;;  %v387_v41 = vld [vmem:[%s3357_s18 + $0x6e0] sm:$0xff] }
  0xb3   : > { %2830 = vmatmul.mubr.f32.vlgmr.msra.gmra.mrb[0].mxu0 %v171_v43  ;;  %661 = vmatprep.mubr.f32.mxu1 %v288_v44  ;;  %v276_v43 = vld [vmem:[%s3357_s18 + $0x368] sm:$0xff]  ;;  %v285_v44 = vld [vmem:[%s3357_s18 + $0x3b0] sm:$0xff] }
  0xb4   : > { %2832 = vmatprep.mubr.msk.f32.mxu0 %vm3321_vm0, %v3322_v37 }
  0xb6   : > { %662 = vmatmul.mubr.f32.gmra.mrb[48].mxu1 %v287_v46  ;;  %v284_v46 = vld [vmem:[%s3357_s18 + $0x3a8] sm:$0xff] }
  0xb7   : > { %2833 = vmatmul.mubr.f32.gmra.mrb[2].mxu0 %v176_v47  ;;  %666 = vmatprep.mubr.f32.mxu1 %v293_v48  ;;  %v281_v47 = vld [vmem:[%s3357_s18 + $0x390] sm:$0xff]  ;;  %v290_v48 = vld [vmem:[%s3357_s18 + $0x3d8] sm:$0xff] }
  0xb8   : > { %2835 = vmatprep.mubr.msk.f32.mxu0 %vm3321_vm0, %v3322_v37 }
  0xba   : > { %667 = vmatmul.mubr.f32.gmra.mrb[50].mxu1 %v292_v49  ;;  %v289_v49 = vld [vmem:[%s3357_s18 + $0x3d0] sm:$0xff] }
  0xbb   : > { %2836 = vmatmul.mubr.f32.gmra.mrb[4].mxu0 %v181_v50  ;;  %671 = vmatprep.mubr.f32.mxu1 %v298_v45  ;;  %v286_v50 = vld [vmem:[%s3357_s18 + $0x3b8] sm:$0xff]  ;;  %v295_v45 = vld [vmem:[%s3357_s18 + $0x400] sm:$0xff] }
  0xbc   : > { %2838 = vmatprep.mubr.msk.f32.mxu0 %vm3321_vm0, %v3322_v37 }
  0xbe   : > { %672 = vmatmul.mubr.f32.gmra.mrb[52].mxu1 %v297_v52  ;;  %v294_v52 = vld [vmem:[%s3357_s18 + $0x3f8] sm:$0xff] }
  0xbf   : > { %2839 = vmatmul.mubr.f32.gmra.mrb[6].mxu0 %v186_v53  ;;  %676 = vmatprep.mubr.f32.mxu1 %v303_v54  ;;  %v291_v53 = vld [vmem:[%s3357_s18 + $0x3e0] sm:$0xff]  ;;  %v300_v54 = vld [vmem:[%s3357_s18 + $0x428] sm:$0xff] }
  0xc0   : > { %2841 = vmatprep.mubr.msk.f32.mxu0 %vm3321_vm0, %v3322_v37 }
  0xc2   : > { %677 = vmatmul.mubr.f32.gmra.mrb[54].mxu1 %v302_v51  ;;  %v299_v51 = vld [vmem:[%s3357_s18 + $0x420] sm:$0xff] }
  0xc3   : > { %2842 = vmatmul.mubr.f32.gmra.mrb[8].mxu0 %v191_v55  ;;  %681 = vmatprep.mubr.f32.mxu1 %v308_v56  ;;  %v296_v55 = vld [vmem:[%s3357_s18 + $0x408] sm:$0xff]  ;;  %v305_v56 = vld [vmem:[%s3357_s18 + $0x450] sm:$0xff] }
  0xc4   : > { %2844 = vmatprep.mubr.msk.f32.mxu0 %vm3321_vm0, %v3322_v37 }
  0xc6   : > { %682 = vmatmul.mubr.f32.gmra.mrb[56].mxu1 %v307_v58  ;;  %v304_v58 = vld [vmem:[%s3357_s18 + $0x448] sm:$0xff] }
  0xc7   : > { %2845 = vmatmul.mubr.f32.gmra.mrb[10].mxu0 %v196_v57  ;;  %686 = vmatprep.mubr.f32.mxu1 %v313_v59  ;;  %v301_v57 = vld [vmem:[%s3357_s18 + $0x430] sm:$0xff]  ;;  %v310_v59 = vld [vmem:[%s3357_s18 + $0x478] sm:$0xff] }
  0xc8   : > { %2847 = vmatprep.mubr.msk.f32.mxu0 %vm3321_vm0, %v3322_v37 }
  0xca   : > { %687 = vmatmul.mubr.f32.gmra.mrb[58].mxu1 %v312_v60  ;;  %v309_v60 = vld [vmem:[%s3357_s18 + $0x470] sm:$0xff] }
  0xcb   : > { %2848 = vmatmul.mubr.f32.gmra.mrb[12].mxu0 %v201_v61  ;;  %691 = vmatprep.mubr.f32.mxu1 %v318_v63  ;;  %v306_v61 = vld [vmem:[%s3357_s18 + $0x458] sm:$0xff]  ;;  %v315_v63 = vld [vmem:[%s3357_s18 + $0x4a0] sm:$0xff] }
  0xcc   : > { %2850 = vmatprep.mubr.msk.f32.mxu0 %vm3321_vm0, %v3322_v37 }
  0xce   : > { %692 = vmatmul.mubr.f32.gmra.mrb[60].mxu1 %v317_v9  ;;  %v314_v9 = vld [vmem:[%s3357_s18 + $0x498] sm:$0xff] }
  0xcf   : > { %2851 = vmatmul.mubr.f32.gmra.mrb[14].mxu0 %v206_v62  ;;  %696 = vmatprep.mubr.f32.mxu1 %v323_v0  ;;  %v311_v62 = vld [vmem:[%s3357_s18 + $0x480] sm:$0xff]  ;;  %v320_v0 = vld [vmem:[%s3357_s18 + $0x4c8] sm:$0xff] }
  0xd0   : > { %2853 = vmatprep.mubr.msk.f32.mxu0 %vm3321_vm0, %v3322_v37 }
  0xd2   : > { %697 = vmatmul.mubr.f32.gmra.mrb[62].mxu1 %v322_v6  ;;  %v319_v6 = vld [vmem:[%s3357_s18 + $0x4c0] sm:$0xff] }
  0xd3   : > { %2854 = vmatmul.mubr.f32.gmra.mrb[16].mxu0 %v211_v1  ;;  %701 = vmatprep.mubr.f32.mxu1 %v328_v2  ;;  %v316_v1 = vld [vmem:[%s3357_s18 + $0x4a8] sm:$0xff]  ;;  %v325_v2 = vld [vmem:[%s3357_s18 + $0x4f0] sm:$0xff] }
  0xd4   : > { %2856 = vmatprep.mubr.msk.f32.mxu0 %vm3321_vm0, %v3322_v37 }
  0xd6   : > { %702 = vmatmul.mubr.f32.gmra.mrb[64].mxu1 %v327_v3  ;;  %v324_v3 = vld [vmem:[%s3357_s18 + $0x4e8] sm:$0xff] }
  0xd7   : > { %2857 = vmatmul.mubr.f32.gmra.mrb[18].mxu0 %v216_v14  ;;  %706 = vmatprep.mubr.f32.mxu1 %v333_v5  ;;  %v321_v14 = vld [vmem:[%s3357_s18 + $0x4d0] sm:$0xff]  ;;  %v330_v5 = vld [vmem:[%s3357_s18 + $0x518] sm:$0xff] }
  0xd8   : > { %2859 = vmatprep.mubr.msk.f32.mxu0 %vm3321_vm0, %v3322_v37 }
  0xda   : > { %707 = vmatmul.mubr.f32.gmra.mrb[66].mxu1 %v332_v7 }
  0xdb   : > { %2860 = vmatmul.mubr.f32.gmra.mrb[20].mxu0 %v221_v13  ;;  %711 = vmatprep.mubr.f32.mxu1 %v338_v21  ;;  %v329_v21 = vld [vmem:[%s3357_s18 + $0x510] sm:$0xff] }
  0xdc   : > { %2862 = vmatprep.mubr.msk.f32.mxu0 %vm3321_vm0, %v3322_v37 }
  0xde   : > { %712 = vmatmul.mubr.f32.gmra.mrb[68].mxu1 %v337_v8  ;;  %v326_v8 = vld [vmem:[%s3357_s18 + $0x4f8] sm:$0xff] }
  0xdf   : > { %2863 = vmatmul.mubr.f32.gmra.mrb[22].mxu0 %v226_v10  ;;  %716 = vmatprep.mubr.f32.mxu1 %v343_v11  ;;  %v335_v10 = vld [vmem:[%s3357_s18 + $0x540] sm:$0xff] }
  0xe0   : > { %2865 = vmatprep.mubr.msk.f32.mxu0 %vm3321_vm0, %v3322_v37 }
  0xe2   : > { %717 = vmatmul.mubr.f32.gmra.mrb[70].mxu1 %v342_v28 }
  0xe3   : > { %2866 = vmatmul.mubr.f32.gmra.mrb[24].mxu0 %v231_v12  ;;  %721 = vmatprep.mubr.f32.mxu1 %v348_v15  ;;  %v334_v12 = vld [vmem:[%s3357_s18 + $0x538] sm:$0xff]  ;;  %v331_v15 = vld [vmem:[%s3357_s18 + $0x520] sm:$0xff] }
  0xe4   : > { %2868 = vmatprep.mubr.msk.f32.mxu0 %vm3321_vm0, %v3322_v37 }
  0xe6   : > { %722 = vmatmul.mubr.f32.gmra.mrb[72].mxu1 %v347_v16  ;;  %v340_v16 = vld [vmem:[%s3357_s18 + $0x568] sm:$0xff] }
  0xe7   : > { %2869 = vmatmul.mubr.f32.gmra.mrb[26].mxu0 %v236_v35  ;;  %726 = vmatprep.mubr.f32.mxu1 %v353_v4 }
  0xe8   : > { %2871 = vmatprep.mubr.msk.f32.mxu0 %vm3321_vm0, %v3322_v37 }
  0xea   : > { %727 = vmatmul.mubr.f32.gmra.mrb[74].mxu1 %v352_v19  ;;  %v339_v19 = vld [vmem:[%s3357_s18 + $0x560] sm:$0xff] }
  0xeb   : > { %2872 = vmatmul.mubr.f32.gmra.mrb[28].mxu0 %v241_v17  ;;  %731 = vmatprep.mubr.f32.mxu1 %v358_v18  ;;  %v336_v17 = vld [vmem:[%s3357_s18 + $0x548] sm:$0xff]  ;;  %v345_v18 = vld [vmem:[%s3357_s18 + $0x590] sm:$0xff] }
  0xec   : > { %2874 = vmatprep.mubr.msk.f32.mxu0 %vm3321_vm0, %v3322_v37 }
  0xee   : > { %732 = vmatmul.mubr.f32.gmra.mrb[76].mxu1 %v357_v42 }
  0xef   : > { %2875 = vmatmul.mubr.f32.gmra.mrb[30].mxu0 %v246_v20  ;;  %736 = vmatprep.mubr.f32.mxu1 %v363_v22  ;;  %v344_v22 = vld [vmem:[%s3357_s18 + $0x588] sm:$0xff] }
  0xf0   : > { %2877 = vmatprep.mubr.msk.f32.mxu0 %vm3321_vm0, %v3322_v37 }
  0xf2   : > { %737 = vmatmul.mubr.f32.gmra.mrb[78].mxu1 %v362_v23  ;;  %v341_v23 = vld [vmem:[%s3357_s18 + $0x570] sm:$0xff] }
  0xf3   : > { %2878 = vmatmul.mubr.f32.gmra.mrb[32].mxu0 %v251_v24  ;;  %741 = vmatprep.mubr.f32.mxu1 %v368_v25  ;;  %v350_v24 = vld [vmem:[%s3357_s18 + $0x5b8] sm:$0xff] }
  0xf4   : > { %2880 = vmatprep.mubr.msk.f32.mxu0 %vm3321_vm0, %v3322_v37 }
  0xf6   : > { %742 = vmatmul.mubr.f32.gmra.mrb[80].mxu1 %v367_v26 }
  0xf7   : > { %2881 = vmatmul.mubr.f32.gmra.mrb[34].mxu0 %v256_v27  ;;  %746 = vmatprep.mubr.f32.mxu1 %v373_v29  ;;  %v349_v27 = vld [vmem:[%s3357_s18 + $0x5b0] sm:$0xff]  ;;  %v346_v29 = vld [vmem:[%s3357_s18 + $0x598] sm:$0xff] }
  0xf8   : > { %2883 = vmatprep.mubr.msk.f32.mxu0 %vm3321_vm0, %v3322_v37 }
  0xfa   : > { %747 = vmatmul.mubr.f32.gmra.mrb[82].mxu1 %v372_v30  ;;  %v355_v30 = vld [vmem:[%s3357_s18 + $0x5e0] sm:$0xff] }
  0xfb   : > { %2884 = vmatmul.mubr.f32.gmra.mrb[36].mxu0 %v261_v32  ;;  %751 = vmatprep.mubr.f32.mxu1 %v378_v33 }
  0xfc   : > { %2886 = vmatprep.mubr.msk.f32.mxu0 %vm3321_vm0, %v3322_v37 }
  0xfe   : > { %752 = vmatmul.mubr.f32.gmra.mrb[84].mxu1 %v377_v31  ;;  %v354_v31 = vld [vmem:[%s3357_s18 + $0x5d8] sm:$0xff] }
  0xff   : > { %2887 = vmatmul.mubr.f32.gmra.mrb[38].mxu0 %v266_v34  ;;  %756 = vmatprep.mubr.f32.mxu1 %v383_v36  ;;  %v351_v34 = vld [vmem:[%s3357_s18 + $0x5c0] sm:$0xff]  ;;  %v360_v36 = vld [vmem:[%s3357_s18 + $0x608] sm:$0xff] }
 0x100   : > { %2889 = vmatprep.mubr.msk.f32.mxu0 %vm3321_vm0, %v3322_v37 }
 0x102   : > { %757 = vmatmul.mubr.f32.gmra.mrb[86].mxu1 %v382_v38 }
 0x103   : > { %2890 = vmatmul.mubr.f32.gmra.mrb[40].mxu0 %v271_v39  ;;  %761 = vmatprep.mubr.f32.mxu1 %v388_v40  ;;  %v359_v40 = vld [vmem:[%s3357_s18 + $0x600] sm:$0xff] }
 0x104   : > { %2892 = vmatprep.mubr.msk.f32.mxu0 %vm3321_vm0, %v3322_v37 }
 0x106   : > { %762 = vmatmul.mubr.f32.gmra.mrb[88].mxu1 %v387_v41  ;;  %v356_v41 = vld [vmem:[%s3357_s18 + $0x5e8] sm:$0xff] }
 0x107   : > { %2893 = vmatmul.mubr.f32.gmra.mrb[42].mxu0 %v276_v43  ;;  %946 = vmatprep.mubr.f32.mxu1 %v285_v44  ;;  %v365_v43 = vld [vmem:[%s3357_s18 + $0x630] sm:$0xff] }
 0x108   : > { %2895 = vmatprep.mubr.msk.f32.mxu0 %vm3321_vm0, %v3322_v37 }
 0x10a   : > { %947 = vmatmul.mubr.f32.vlgmr.msra.gmra.mrb[46].mxu1 %v284_v46 }
 0x10b   : > { %2896 = vmatmul.mubr.f32.gmra.mrb[44].mxu0 %v281_v47  ;;  %951 = vmatprep.mubr.f32.mxu1 %v290_v48  ;;  %v364_v47 = vld [vmem:[%s3357_s18 + $0x628] sm:$0xff]  ;;  %v361_v48 = vld [vmem:[%s3357_s18 + $0x610] sm:$0xff] }
 0x10c   : > { %2898 = vmatprep.mubr.msk.f32.mxu0 %vm3321_vm0, %v3322_v37 }
 0x10e   : > { %952 = vmatmul.mubr.f32.gmra.mrb[48].mxu1 %v289_v49  ;;  %v370_v49 = vld [vmem:[%s3357_s18 + $0x658] sm:$0xff] }
 0x10f   : > { %2899 = vmatmul.mubr.f32.gmra.mrb[46].mxu0 %v286_v50  ;;  %956 = vmatprep.mubr.f32.mxu1 %v295_v45 }
 0x110   : > { %2901 = vmatprep.mubr.msk.f32.mxu0 %vm3321_vm0, %v3322_v37 }
 0x112   : > { %957 = vmatmul.mubr.f32.gmra.mrb[50].mxu1 %v294_v52  ;;  %v369_v52 = vld [vmem:[%s3357_s18 + $0x650] sm:$0xff] }
 0x113   : > { %2902 = vmatmul.mubr.f32.gmra.mrb[48].mxu0 %v291_v53  ;;  %961 = vmatprep.mubr.f32.mxu1 %v300_v54  ;;  %v366_v53 = vld [vmem:[%s3357_s18 + $0x638] sm:$0xff]  ;;  %v375_v54 = vld [vmem:[%s3357_s18 + $0x680] sm:$0xff] }
 0x114   : > { %2904 = vmatprep.mubr.msk.f32.mxu0 %vm3321_vm0, %v3322_v37 }
 0x116   : > { %962 = vmatmul.mubr.f32.gmra.mrb[52].mxu1 %v299_v51 }
 0x117   : > { %2905 = vmatmul.mubr.f32.gmra.mrb[50].mxu0 %v296_v55  ;;  %966 = vmatprep.mubr.f32.mxu1 %v305_v56  ;;  %v374_v56 = vld [vmem:[%s3357_s18 + $0x678] sm:$0xff] }
 0x118   : > { %2907 = vmatprep.mubr.msk.f32.mxu0 %vm3321_vm0, %v3322_v37 }
 0x11a   : > { %967 = vmatmul.mubr.f32.gmra.mrb[54].mxu1 %v304_v58  ;;  %v371_v58 = vld [vmem:[%s3357_s18 + $0x660] sm:$0xff] }
 0x11b   : > { %2908 = vmatmul.mubr.f32.gmra.mrb[52].mxu0 %v301_v57  ;;  %971 = vmatprep.mubr.f32.mxu1 %v310_v59  ;;  %v380_v57 = vld [vmem:[%s3357_s18 + $0x6a8] sm:$0xff] }
 0x11c   : > { %2910 = vmatprep.mubr.msk.f32.mxu0 %vm3321_vm0, %v3322_v37 }
 0x11e   : > { %972 = vmatmul.mubr.f32.gmra.mrb[56].mxu1 %v309_v60 }
 0x11f   : > { %2911 = vmatmul.mubr.f32.gmra.mrb[54].mxu0 %v306_v61  ;;  %976 = vmatprep.mubr.f32.mxu1 %v315_v63  ;;  %v379_v61 = vld [vmem:[%s3357_s18 + $0x6a0] sm:$0xff]  ;;  %v376_v63 = vld [vmem:[%s3357_s18 + $0x688] sm:$0xff] }
 0x120   : > { %2913 = vmatprep.mubr.msk.f32.mxu0 %vm3321_vm0, %v3322_v37 }
 0x122   : > { %977 = vmatmul.mubr.f32.gmra.mrb[58].mxu1 %v314_v9  ;;  %v385_v9 = vld [vmem:[%s3357_s18 + $0x6d0] sm:$0xff] }
 0x123   : > { %2914 = vmatmul.mubr.f32.gmra.mrb[56].mxu0 %v311_v62  ;;  %981 = vmatprep.mubr.f32.mxu1 %v320_v0 }
 0x124   : > { %2916 = vmatprep.mubr.msk.f32.mxu0 %vm3321_vm0, %v3322_v37 }
 0x126   : > { %982 = vmatmul.mubr.f32.gmra.mrb[60].mxu1 %v319_v6  ;;  %v384_v6 = vld [vmem:[%s3357_s18 + $0x6c8] sm:$0xff] }
 0x127   : > { %2917 = vmatmul.mubr.f32.gmra.mrb[58].mxu0 %v316_v1  ;;  %986 = vmatprep.mubr.f32.mxu1 %v325_v2  ;;  %v381_v1 = vld [vmem:[%s3357_s18 + $0x6b0] sm:$0xff]  ;;  %v390_v2 = vld [vmem:[%s3357_s18 + $0x6f8] sm:$0xff] }
 0x128   : > { %2919 = vmatprep.mubr.msk.f32.mxu0 %vm3321_vm0, %v3322_v37 }
 0x129   : > { %v3968_v7 = vpop.f32.mrb[0].mxu1 }
 0x12a   : > { %987 = vmatmul.mubr.f32.gmra.mrb[62].mxu1 %v324_v3  ;;  %v545_v13 = vpop.f32.mrb[1].mxu1 }
 0x12b   : > { %2920 = vmatmul.mubr.f32.gmra.mrb[60].mxu0 %v321_v14  ;;  %991 = vmatprep.mubr.f32.mxu1 %v330_v5  ;;  %v389_v5 = vld [vmem:[%s3357_s18 + $0x6f0] sm:$0xff]  ;;  %v386_v13 = vld [vmem:[%s3357_s18 + $0x6d8] sm:$0xff] }
 0x12c   : > { %2922 = vmatprep.mubr.msk.f32.mxu0 %vm3321_vm0, %v3322_v37 }
 0x12d   : > { %v3975_v11 = vpop.f32.mrb[2].mxu1 }
 0x12e   : > { %992 = vmatmul.mubr.f32.gmra.mrb[64].mxu1 %v329_v21  ;;  %v550_v28 = vpop.f32.mrb[3].mxu1 }
 0x12f   : > { %2923 = vmatmul.mubr.f32.gmra.mrb[62].mxu0 %v326_v8  ;;  %996 = vmatprep.mubr.f32.mxu1 %v335_v10  ;;  %v391_v10 = vld [vmem:[%s3357_s18 + $0x700] sm:$0xff] }
 0x130   : > { %2925 = vmatprep.mubr.msk.f32.mxu0 %vm3321_vm0, %v3322_v37 }
 0x131   : > { %v3982_v35 = vpop.f32.mrb[4].mxu1 }
 0x132   : > { %997 = vmatmul.mubr.f32.gmra.mrb[66].mxu1 %v334_v12  ;;  %v555_v4 = vpop.f32.mrb[5].mxu1 }
 0x133   : > { %2926 = vmatmul.mubr.f32.gmra.mrb[64].mxu0 %v331_v15  ;;  %1001 = vmatprep.mubr.f32.mxu1 %v340_v16 }
 0x134   : > { %2928 = vmatprep.mubr.msk.f32.mxu0 %vm3321_vm0, %v3322_v37 }
 0x135   : > { %v3989_v42 = vpop.f32.mrb[6].mxu1 }
 0x136   : > { %1002 = vmatmul.mubr.f32.gmra.mrb[68].mxu1 %v339_v19  ;;  %v560_v20 = vpop.f32.mrb[7].mxu1 }
 0x137   : > { %2929 = vmatmul.mubr.f32.gmra.mrb[66].mxu0 %v336_v17  ;;  %1006 = vmatprep.mubr.f32.mxu1 %v345_v18 }
 0x138   : > { %2931 = vmatprep.mubr.msk.f32.mxu0 %vm3321_vm0, %v3322_v37 }
 0x139   : > { %v3996_v25 = vpop.f32.mrb[8].mxu1 }
 0x13a   : > { %1007 = vmatmul.mubr.f32.gmra.mrb[70].mxu1 %v344_v22  ;;  %v565_v26 = vpop.f32.mrb[9].mxu1 }
 0x13b   : > { %2932 = vmatmul.mubr.f32.gmra.mrb[68].mxu0 %v341_v23  ;;  %1011 = vmatprep.mubr.f32.mxu1 %v350_v24 }
 0x13c   : > { %2934 = vmatprep.mubr.msk.f32.mxu0 %vm3321_vm0, %v3322_v37 }
 0x13d   : > { %v4003_v32 = vpop.f32.mrb[10].mxu1 }
 0x13e   : > { %1012 = vmatmul.mubr.f32.gmra.mrb[72].mxu1 %v349_v27  ;;  %v570_v33 = vpop.f32.mrb[11].mxu1 }
 0x13f   : > { %2935 = vmatmul.mubr.f32.gmra.mrb[70].mxu0 %v346_v29  ;;  %1016 = vmatprep.mubr.f32.mxu1 %v355_v30  ;;  %v4084_v33 = vld [vmem:[%s6021_s2] ss:$0 sm:$0xff] }
 0x140   : > { %2937 = vmatprep.mubr.msk.f32.mxu0 %vm3321_vm0, %v3322_v37 }
 0x141   : > { %v4010_v38 = vpop.f32.mrb[12].mxu1 }
 0x142   : > { %1017 = vmatmul.mubr.f32.gmra.mrb[74].mxu1 %v354_v31  ;;  %v575_v39 = vpop.f32.mrb[13].mxu1 }
 0x143   : > { %2938 = vmatmul.mubr.f32.gmra.mrb[72].mxu0 %v351_v34  ;;  %1021 = vmatprep.mubr.f32.mxu1 %v360_v36  ;;  %v544_v34 = vadd.f32 %v4084_v33, %v3968_v7  ;;  %v554_v7 = vadd.f32 %v4084_v33, %v3982_v35 }
 0x144   : > { %2940 = vmatprep.mubr.msk.f32.mxu0 %vm3321_vm0, %v3322_v37 }
 0x145   : > { %v4017_v44 = vpop.f32.mrb[14].mxu1 }
 0x146   : > { %1022 = vmatmul.mubr.f32.gmra.mrb[76].mxu1 %v359_v40  ;;  %v580_v46 = vpop.f32.mrb[15].mxu1 }
 0x147   : > { %2941 = vmatmul.mubr.f32.gmra.mrb[74].mxu0 %v356_v41  ;;  %1026 = vmatprep.mubr.f32.mxu1 %v365_v43  ;;  %v549_v41 = vadd.f32 %v4084_v33, %v3975_v11 }
 0x148   : > { %2943 = vmatprep.mubr.msk.f32.mxu0 %vm3321_vm0, %v3322_v37 }
 0x149   : > { %v4024_v50 = vpop.f32.mrb[16].mxu1 }
 0x14a   : > { %1027 = vmatmul.mubr.f32.gmra.mrb[78].mxu1 %v364_v47  ;;  %v585_v45 = vpop.f32.mrb[17].mxu1 }
 0x14b   : > { %2944 = vmatmul.mubr.f32.gmra.mrb[76].mxu0 %v361_v48  ;;  %1031 = vmatprep.mubr.f32.mxu1 %v370_v49 }
 0x14c   : > { %2946 = vmatprep.mubr.msk.f32.mxu0 %vm3321_vm0, %v3322_v37 }
 0x14d   : > { %v4031_v51 = vpop.f32.mrb[18].mxu1 }
 0x14e   : > { %1032 = vmatmul.mubr.f32.gmra.mrb[80].mxu1 %v369_v52  ;;  %v590_v55 = vpop.f32.mrb[19].mxu1 }
 0x14f   : > { %2947 = vmatmul.mubr.f32.gmra.mrb[78].mxu0 %v366_v53  ;;  %1036 = vmatprep.mubr.f32.mxu1 %v375_v54 }
 0x150   : > { %2949 = vmatprep.mubr.msk.f32.mxu0 %vm3321_vm0, %v3322_v37 }
 0x151   : > { %v4038_v59 = vpop.f32.mrb[20].mxu1 }
 0x152   : > { %1037 = vmatmul.mubr.f32.gmra.mrb[82].mxu1 %v374_v56  ;;  %v595_v60 = vpop.f32.mrb[21].mxu1  ;;  %v559_v56 = vadd.f32 %v4084_v33, %v3989_v42  ;;  %v569_v42 = vadd.f32 %v4084_v33, %v4003_v32  ;;  %v579_v32 = vadd.f32 %v4084_v33, %v4017_v44  ;;  %v589_v44 = vadd.f32 %v4084_v33, %v4031_v51 }
 0x153   : > { %2950 = vmatmul.mubr.f32.gmra.mrb[80].mxu0 %v371_v58  ;;  %1041 = vmatprep.mubr.f32.mxu1 %v380_v57 }
 0x154   : > { %2952 = vmatprep.mubr.msk.f32.mxu0 %vm3321_vm0, %v3322_v37 }
 0x155   : > { %v4045_v62 = vpop.f32.mrb[22].mxu1 }
 0x156   : > { %1042 = vmatmul.mubr.f32.gmra.mrb[84].mxu1 %v379_v61  ;;  %v600_v0 = vpop.f32.mrb[23].mxu1  ;;  %v599_v51 = vadd.f32 %v4084_v33, %v4045_v62 }
 0x157   : > { %2953 = vmatmul.mubr.f32.gmra.mrb[82].mxu0 %v376_v63  ;;  %1046 = vmatprep.mubr.f32.mxu1 %v385_v9  ;;  %v564_v63 = vadd.f32 %v4084_v33, %v3996_v25  ;;  %v574_v25 = vadd.f32 %v4084_v33, %v4010_v38  ;;  %v584_v38 = vadd.f32 %v4084_v33, %v4024_v50 }
 0x158   : > { %2955 = vmatprep.mubr.msk.f32.mxu0 %vm3321_vm0, %v3322_v37  ;;  %v594_v50 = vadd.f32 %v4084_v33, %v4038_v59 }
 0x159   : > { %v4052_v3 = vpop.f32.mrb[24].mxu1 }
 0x15a   : > { %1047 = vmatmul.mubr.f32.gmra.mrb[86].mxu1 %v384_v6  ;;  %v605_v14 = vpop.f32.mrb[25].mxu1  ;;  %v604_v59 = vadd.f32 %v4084_v33, %v4052_v3 }
 0x15b   : > { %2956 = vmatmul.mubr.f32.gmra.mrb[84].mxu0 %v381_v1  ;;  %1051 = vmatprep.mubr.f32.mxu1 %v390_v2 }
 0x15c   : > { %2958 = vmatprep.mubr.msk.f32.mxu0 %vm3321_vm0, %v3322_v37 }
 0x15d   : > { %v4058_v21 = vpop.f32.mrb[26].mxu1 }
 0x15e   : > { %1052 = vmatmul.mubr.f32.gmra.mrb[88].mxu1 %v389_v5  ;;  %v610_v8 = vpop.f32.mrb[27].mxu1  ;;  %v609_v62 = vadd.f32 %v4084_v33, %v4058_v21 }
 0x15f   : > { %2959 = vmatmul.mubr.f32.gmra.mrb[86].mxu0 %v386_v13 }
 0x160   : > { %2961 = vmatprep.mubr.msk.f32.mxu0 %vm3321_vm0, %v3322_v37 }
 0x161   : > { %v4063_v28 = vpop.f32.mrb[28].mxu1 }
 0x162   : > { %v615_v12 = vpop.f32.mrb[29].mxu1  ;;  %v614_v3 = vadd.f32 %v4084_v33, %v4063_v28 }
 0x163   : > { %2962 = vmatmul.mubr.f32.gmra.mrb[88].mxu0 %v391_v10 }
 0x165   : > { %v4065_v15 = vpop.f32.mrb[30].mxu1 }
 0x166   : > { %v620_v16 = vpop.f32.mrb[31].mxu1  ;;  %v619_v21 = vadd.f32 %v4084_v33, %v4065_v15 }
 0x169   : > { %v4067_v4 = vpop.f32.mrb[32].mxu1 }
 0x16a   : > { %v625_v19 = vpop.f32.mrb[33].mxu1  ;;  %v624_v28 = vadd.f32 %v4084_v33, %v4067_v4 }
 0x16d   : > { %v4069_v17 = vpop.f32.mrb[34].mxu1 }
 0x16e   : > { %v630_v18 = vpop.f32.mrb[35].mxu1  ;;  %v629_v15 = vadd.f32 %v4084_v33, %v4069_v17 }
 0x171   : > { %v4071_v20 = vpop.f32.mrb[36].mxu1 }
 0x172   : > { %v635_v22 = vpop.f32.mrb[37].mxu1  ;;  %v634_v4 = vadd.f32 %v4084_v33, %v4071_v20 }
 0x175   : > { %v4073_v23 = vpop.f32.mrb[38].mxu1 }
 0x176   : > { %v640_v37 = vpop.f32.mrb[39].mxu1  ;;  %v639_v17 = vadd.f32 %v4084_v33, %v4073_v23 }
 0x179   : > { %v4075_v24 = vpop.f32.mrb[40].mxu1 }
 0x17a   : > { %v645_v26 = vpop.f32.mrb[41].mxu1  ;;  %v644_v20 = vadd.f32 %v4084_v33, %v4075_v24 }
 0x17d   : > { %v4077_v27 = vpop.f32.mrb[42].mxu1 }
 0x17e   : > { %v650_v29 = vpop.f32.mrb[43].mxu1  ;;  %v649_v23 = vadd.f32 %v4084_v33, %v4077_v27 }
 0x181   : > { %v4079_v30 = vpop.f32.mrb[44].mxu1 }
 0x182   : > { %v655_v31 = vpop.f32.mrb[45].mxu1  ;;  %v654_v24 = vadd.f32 %v4084_v33, %v4079_v30 }
 0x186   : > { %v1123_v36 = vpop.f32.mrb[0].mxu0 }
 0x187   : > { %v3117_v39 = vadd.f32 %v1123_v36, %v544_v34  ;;  %v2831_v40 = vpop.f32.mrb[1].mxu0 }
 0x189   : > { %1349 = vst [vmem:[%s4092_s14] sm:$0xff] %v3117_v39  ;;  %v1448_v48 = vmul.f32 %v3117_v39, %v3117_v39 }
 0x18a   : > { %v1128_v43 = vpop.f32.mrb[2].mxu0 }
 0x18b   : > { %v3119_v46 = vadd.f32 %v1128_v43, %v549_v41  ;;  %v2834_v47 = vpop.f32.mrb[3].mxu0 }
 0x18d   : > { %1350 = vst [vmem:[%s4092_s14 + $0x8] sm:$0xff] %v3119_v46  ;;  %v1395_v49 = vadd.f32 %v3119_v46, %v3117_v39  ;;  %v1449_v45 = vmul.f32 %v3119_v46, %v3119_v46 }
 0x18e   : > { %v1133_v52 = vpop.f32.mrb[4].mxu0 }
 0x18f   : > { %v1493_v53 = vadd.f32 %v1449_v45, %v1448_v48  ;;  %v3121_v54 = vadd.f32 %v1133_v52, %v554_v7  ;;  %v2837_v55 = vpop.f32.mrb[5].mxu0 }
 0x191   : > { %1351 = vst [vmem:[%s4092_s14 + $0x10] sm:$0xff] %v3121_v54  ;;  %v1396_v11 = vadd.f32 %v3121_v54, %v1395_v49  ;;  %v1450_v58 = vmul.f32 %v3121_v54, %v3121_v54 }
 0x192   : > { %v1138_v57 = vpop.f32.mrb[6].mxu0 }
 0x193   : > { %v1494_v60 = vadd.f32 %v1493_v53, %v1450_v58  ;;  %v3123_v61 = vadd.f32 %v1138_v57, %v559_v56  ;;  %v2840_v35 = vpop.f32.mrb[7].mxu0 }
 0x195   : > { %1352 = vst [vmem:[%s4092_s14 + $0x18] sm:$0xff] %v3123_v61  ;;  %v1397_v9 = vadd.f32 %v3123_v61, %v1396_v11  ;;  %v1451_v0 = vmul.f32 %v3123_v61, %v3123_v61 }
 0x196   : > { %v1143_v6 = vpop.f32.mrb[8].mxu0 }
 0x197   : > { %v1495_v1 = vadd.f32 %v1494_v60, %v1451_v0  ;;  %v3125_v2 = vadd.f32 %v1143_v6, %v564_v63  ;;  %v2843_v14 = vpop.f32.mrb[9].mxu0 }
 0x199   : > { %1353 = vst [vmem:[%s4092_s14 + $0x20] sm:$0xff] %v3125_v2  ;;  %v1398_v5 = vadd.f32 %v3125_v2, %v1397_v9  ;;  %v1452_v13 = vmul.f32 %v3125_v2, %v3125_v2 }
 0x19a   : > { %v1148_v8 = vpop.f32.mrb[10].mxu0 }
 0x19b   : > { %v1496_v10 = vadd.f32 %v1495_v1, %v1452_v13  ;;  %v3127_v12 = vadd.f32 %v1148_v8, %v569_v42  ;;  %v2846_v16 = vpop.f32.mrb[11].mxu0 }
 0x19d   : > { %1354 = vst [vmem:[%s4092_s14 + $0x28] sm:$0xff] %v3127_v12  ;;  %v1399_v19 = vadd.f32 %v3127_v12, %v1398_v5  ;;  %v1453_v18 = vmul.f32 %v3127_v12, %v3127_v12 }
 0x19e   : > { %v1153_v22 = vpop.f32.mrb[12].mxu0 }
 0x19f   : > { %v1497_v37 = vadd.f32 %v1496_v10, %v1453_v18  ;;  %v3129_v26 = vadd.f32 %v1153_v22, %v574_v25  ;;  %v2849_v29 = vpop.f32.mrb[13].mxu0 }
 0x1a1   : > { %1355 = vst [vmem:[%s4092_s14 + $0x30] sm:$0xff] %v3129_v26  ;;  %v1400_v31 = vadd.f32 %v3129_v26, %v1399_v19  ;;  %v1454_v34 = vmul.f32 %v3129_v26, %v3129_v26 }
 0x1a2   : > { %v1158_v36 = vpop.f32.mrb[14].mxu0 }
 0x1a3   : > { %v1498_v39 = vadd.f32 %v1497_v37, %v1454_v34  ;;  %v3131_v40 = vadd.f32 %v1158_v36, %v579_v32  ;;  %v2852_v41 = vpop.f32.mrb[15].mxu0 }
 0x1a5   : > { %1356 = vst [vmem:[%s4092_s14 + $0x38] sm:$0xff] %v3131_v40  ;;  %v1401_v43 = vadd.f32 %v3131_v40, %v1400_v31  ;;  %v1455_v46 = vmul.f32 %v3131_v40, %v3131_v40 }
 0x1a6   : > { %v1163_v47 = vpop.f32.mrb[16].mxu0 }
 0x1a7   : > { %v1499_v7 = vadd.f32 %v1498_v39, %v1455_v46  ;;  %v3133_v48 = vadd.f32 %v1163_v47, %v584_v38  ;;  %v2855_v49 = vpop.f32.mrb[17].mxu0 }
 0x1a9   : > { %1357 = vst [vmem:[%s4092_s14 + $0x40] sm:$0xff] %v3133_v48  ;;  %v1402_v45 = vadd.f32 %v3133_v48, %v1401_v43  ;;  %v1456_v52 = vmul.f32 %v3133_v48, %v3133_v48 }
 0x1aa   : > { %v1168_v53 = vpop.f32.mrb[18].mxu0 }
 0x1ab   : > { %v1500_v54 = vadd.f32 %v1499_v7, %v1456_v52  ;;  %v3135_v55 = vadd.f32 %v1168_v53, %v589_v44  ;;  %v2858_v56 = vpop.f32.mrb[19].mxu0 }
 0x1ad   : > { %1358 = vst [vmem:[%s4092_s14 + $0x48] sm:$0xff] %v3135_v55  ;;  %v1403_v11 = vadd.f32 %v3135_v55, %v1402_v45  ;;  %v1457_v58 = vmul.f32 %v3135_v55, %v3135_v55 }
 0x1ae   : > { %v1173_v57 = vpop.f32.mrb[20].mxu0 }
 0x1af   : > { %v1501_v60 = vadd.f32 %v1500_v54, %v1457_v58  ;;  %v3137_v61 = vadd.f32 %v1173_v57, %v594_v50  ;;  %v2861_v35 = vpop.f32.mrb[21].mxu0 }
 0x1b1   : > { %1359 = vst [vmem:[%s4092_s14 + $0x50] sm:$0xff] %v3137_v61  ;;  %v1404_v63 = vadd.f32 %v3137_v61, %v1403_v11  ;;  %v1458_v9 = vmul.f32 %v3137_v61, %v3137_v61 }
 0x1b2   : > { %v1178_v0 = vpop.f32.mrb[22].mxu0 }
 0x1b3   : > { %v1502_v6 = vadd.f32 %v1501_v60, %v1458_v9  ;;  %v3139_v1 = vadd.f32 %v1178_v0, %v599_v51  ;;  %v2864_v2 = vpop.f32.mrb[23].mxu0 }
 0x1b5   : > { %1360 = vst [vmem:[%s4092_s14 + $0x58] sm:$0xff] %v3139_v1  ;;  %v1405_v14 = vadd.f32 %v3139_v1, %v1404_v63  ;;  %v1459_v42 = vmul.f32 %v3139_v1, %v3139_v1 }
 0x1b6   : > { %v1183_v5 = vpop.f32.mrb[24].mxu0 }
 0x1b7   : > { %v1503_v13 = vadd.f32 %v1502_v6, %v1459_v42  ;;  %v3141_v8 = vadd.f32 %v1183_v5, %v604_v59  ;;  %v2867_v10 = vpop.f32.mrb[25].mxu0 }
 0x1b9   : > { %1361 = vst [vmem:[%s4092_s14 + $0x60] sm:$0xff] %v3141_v8  ;;  %v1406_v12 = vadd.f32 %v3141_v8, %v1405_v14  ;;  %v1460_v16 = vmul.f32 %v3141_v8, %v3141_v8 }
 0x1ba   : > { %v1188_v25 = vpop.f32.mrb[26].mxu0 }
 0x1bb   : > { %v1504_v19 = vadd.f32 %v1503_v13, %v1460_v16  ;;  %v3143_v18 = vadd.f32 %v1188_v25, %v609_v62  ;;  %v2870_v22 = vpop.f32.mrb[27].mxu0 }
 0x1bd   : > { %1362 = vst [vmem:[%s4092_s14 + $0x68] sm:$0xff] %v3143_v18  ;;  %v1407_v37 = vadd.f32 %v3143_v18, %v1406_v12  ;;  %v1461_v26 = vmul.f32 %v3143_v18, %v3143_v18 }
 0x1be   : > { %v1193_v29 = vpop.f32.mrb[28].mxu0 }
 0x1bf   : > { %v1505_v32 = vadd.f32 %v1504_v19, %v1461_v26  ;;  %v3145_v31 = vadd.f32 %v1193_v29, %v614_v3  ;;  %v2873_v34 = vpop.f32.mrb[29].mxu0 }
 0x1c1   : > { %1363 = vst [vmem:[%s4092_s14 + $0x70] sm:$0xff] %v3145_v31  ;;  %v1408_v36 = vadd.f32 %v3145_v31, %v1407_v37  ;;  %v1462_v39 = vmul.f32 %v3145_v31, %v3145_v31 }
 0x1c2   : > { %v1198_v40 = vpop.f32.mrb[30].mxu0 }
 0x1c3   : > { %v1506_v41 = vadd.f32 %v1505_v32, %v1462_v39  ;;  %v3147_v38 = vadd.f32 %v1198_v40, %v619_v21  ;;  %v2876_v43 = vpop.f32.mrb[31].mxu0 }
 0x1c5   : > { %1364 = vst [vmem:[%s4092_s14 + $0x78] sm:$0xff] %v3147_v38  ;;  %v1409_v46 = vadd.f32 %v3147_v38, %v1408_v36  ;;  %v1463_v47 = vmul.f32 %v3147_v38, %v3147_v38 }
 0x1c6   : > { %v1203_v7 = vpop.f32.mrb[32].mxu0 }
 0x1c7   : > { %v1507_v48 = vadd.f32 %v1506_v41, %v1463_v47  ;;  %v3149_v49 = vadd.f32 %v1203_v7, %v624_v28  ;;  %v2879_v44 = vpop.f32.mrb[33].mxu0 }
 0x1c9   : > { %1365 = vst [vmem:[%s4092_s14 + $0x80] sm:$0xff] %v3149_v49  ;;  %v1410_v45 = vadd.f32 %v3149_v49, %v1409_v46  ;;  %v1464_v52 = vmul.f32 %v3149_v49, %v3149_v49 }
 0x1ca   : > { %v1208_v53 = vpop.f32.mrb[34].mxu0 }
 0x1cb   : > { %v1508_v54 = vadd.f32 %v1507_v48, %v1464_v52  ;;  %v3151_v55 = vadd.f32 %v1208_v53, %v629_v15  ;;  %v2882_v56 = vpop.f32.mrb[35].mxu0 }
 0x1cd   : > { %1366 = vst [vmem:[%s4092_s14 + $0x88] sm:$0xff] %v3151_v55  ;;  %v1411_v50 = vadd.f32 %v3151_v55, %v1410_v45  ;;  %v1465_v11 = vmul.f32 %v3151_v55, %v3151_v55 }
 0x1ce   : > { %v1213_v58 = vpop.f32.mrb[36].mxu0 }
 0x1cf   : > { %v1509_v57 = vadd.f32 %v1508_v54, %v1465_v11  ;;  %v3153_v60 = vadd.f32 %v1213_v58, %v634_v4  ;;  %v2885_v61 = vpop.f32.mrb[37].mxu0 }
 0x1d1   : > { %1367 = vst [vmem:[%s4092_s14 + $0x90] sm:$0xff] %v3153_v60  ;;  %v1412_v35 = vadd.f32 %v3153_v60, %v1411_v50  ;;  %v1466_v51 = vmul.f32 %v3153_v60, %v3153_v60 }
 0x1d2   : > { %v1218_v63 = vpop.f32.mrb[38].mxu0 }
 0x1d3   : > { %v1510_v9 = vadd.f32 %v1509_v57, %v1466_v51  ;;  %v3155_v0 = vadd.f32 %v1218_v63, %v639_v17  ;;  %v2888_v6 = vpop.f32.mrb[39].mxu0 }
 0x1d5   : > { %1368 = vst [vmem:[%s4092_s14 + $0x98] sm:$0xff] %v3155_v0  ;;  %v1413_v1 = vadd.f32 %v3155_v0, %v1412_v35  ;;  %v1467_v2 = vmul.f32 %v3155_v0, %v3155_v0 }
 0x1d6   : > { %v1223_v59 = vpop.f32.mrb[40].mxu0 }
 0x1d7   : > { %v1511_v14 = vadd.f32 %v1510_v9, %v1467_v2  ;;  %v3157_v42 = vadd.f32 %v1223_v59, %v644_v20  ;;  %v2891_v5 = vpop.f32.mrb[41].mxu0 }
 0x1d9   : > { %1369 = vst [vmem:[%s4092_s14 + $0xa0] sm:$0xff] %v3157_v42  ;;  %v1414_v13 = vadd.f32 %v3157_v42, %v1413_v1  ;;  %v1468_v8 = vmul.f32 %v3157_v42, %v3157_v42 }
 0x1da   : > { %v1228_v10 = vpop.f32.mrb[42].mxu0 }
 0x1db   : > { %v1512_v62 = vadd.f32 %v1511_v14, %v1468_v8  ;;  %v3159_v12 = vadd.f32 %v1228_v10, %v649_v23  ;;  %v2894_v16 = vpop.f32.mrb[43].mxu0 }
 0x1dd   : > { %1370 = vst [vmem:[%s4092_s14 + $0xa8] sm:$0xff] %v3159_v12  ;;  %v1415_v25 = vadd.f32 %v3159_v12, %v1414_v13  ;;  %v1469_v19 = vmul.f32 %v3159_v12, %v3159_v12  ;;  %v948_v18 = vpop.f32.mrb[46].mxu1 }
 0x1de   : > { %v1233_v22 = vpop.f32.mrb[44].mxu0  ;;  %v950_v3 = vpop.f32.mrb[47].mxu1  ;;  %v3162_v29 = vadd.f32 %v4084_v33, %v948_v18 }
 0x1df   : > { %v1513_v37 = vadd.f32 %v1512_v62, %v1469_v19  ;;  %v3161_v27 = vadd.f32 %v1233_v22, %v654_v24  ;;  %v2897_v26 = vpop.f32.mrb[45].mxu0 }
 0x1e1   : > { %1371 = vst [vmem:[%s4092_s14 + $0xb0] sm:$0xff] %v3161_v27  ;;  %v1416_v32 = vadd.f32 %v3161_v27, %v1415_v25  ;;  %v1470_v31 = vmul.f32 %v3161_v27, %v3161_v27  ;;  %v953_v34 = vpop.f32.mrb[48].mxu1 }
 0x1e2   : > { %v1238_v21 = vpop.f32.mrb[46].mxu0  ;;  %v955_v36 = vpop.f32.mrb[49].mxu1  ;;  %v3164_v41 = vadd.f32 %v4084_v33, %v953_v34 }
 0x1e3   : > { %v1514_v30 = vadd.f32 %v1513_v37, %v1470_v31  ;;  %v3163_v39 = vadd.f32 %v3162_v29, %v1238_v21  ;;  %v2900_v40 = vpop.f32.mrb[47].mxu0 }
 0x1e5   : > { %1372 = vst [vmem:[%s4092_s14 + $0xb8] sm:$0xff] %v3163_v39  ;;  %v1417_v38 = vadd.f32 %v3163_v39, %v1416_v32  ;;  %v1471_v43 = vmul.f32 %v3163_v39, %v3163_v39  ;;  %v958_v28 = vpop.f32.mrb[50].mxu1 }
 0x1e6   : > { %v1243_v46 = vpop.f32.mrb[48].mxu0  ;;  %v960_v47 = vpop.f32.mrb[51].mxu1  ;;  %v3166_v44 = vadd.f32 %v4084_v33, %v958_v28 }
 0x1e7   : > { %v1515_v7 = vadd.f32 %v1514_v30, %v1471_v43  ;;  %v3165_v48 = vadd.f32 %v3164_v41, %v1243_v46  ;;  %v2903_v49 = vpop.f32.mrb[49].mxu0 }
 0x1e9   : > { %1373 = vst [vmem:[%s4092_s14 + $0xc0] sm:$0xff] %v3165_v48  ;;  %v1418_v15 = vadd.f32 %v3165_v48, %v1417_v38  ;;  %v1472_v45 = vmul.f32 %v3165_v48, %v3165_v48  ;;  %v963_v52 = vpop.f32.mrb[52].mxu1 }
 0x1ea   : > { %v1248_v53 = vpop.f32.mrb[50].mxu0  ;;  %v965_v54 = vpop.f32.mrb[53].mxu1  ;;  %v3168_v50 = vadd.f32 %v4084_v33, %v963_v52 }
 0x1eb   : > { %v1516_v55 = vadd.f32 %v1515_v7, %v1472_v45  ;;  %v3167_v56 = vadd.f32 %v3166_v44, %v1248_v53  ;;  %v2906_v4 = vpop.f32.mrb[51].mxu0 }
 0x1ed   : > { %1374 = vst [vmem:[%s4092_s14 + $0xc8] sm:$0xff] %v3167_v56  ;;  %v1419_v11 = vadd.f32 %v3167_v56, %v1418_v15  ;;  %v1473_v58 = vmul.f32 %v3167_v56, %v3167_v56  ;;  %v968_v57 = vpop.f32.mrb[54].mxu1 }
 0x1ee   : > { %v1253_v60 = vpop.f32.mrb[52].mxu0  ;;  %v970_v61 = vpop.f32.mrb[55].mxu1  ;;  %v3170_v63 = vadd.f32 %v4084_v33, %v968_v57 }
 0x1ef   : > { %v1517_v17 = vadd.f32 %v1516_v55, %v1473_v58  ;;  %v3169_v35 = vadd.f32 %v3168_v50, %v1253_v60  ;;  %v2909_v51 = vpop.f32.mrb[53].mxu0 }
 0x1f1   : > { %1375 = vst [vmem:[%s4092_s14 + $0xd0] sm:$0xff] %v3169_v35  ;;  %v1420_v9 = vadd.f32 %v3169_v35, %v1419_v11  ;;  %v1474_v0 = vmul.f32 %v3169_v35, %v3169_v35  ;;  %v973_v6 = vpop.f32.mrb[56].mxu1 }
 0x1f2   : > { %v1258_v20 = vpop.f32.mrb[54].mxu0  ;;  %v975_v1 = vpop.f32.mrb[57].mxu1  ;;  %v3172_v42 = vadd.f32 %v4084_v33, %v973_v6 }
 0x1f3   : > { %v1518_v2 = vadd.f32 %v1517_v17, %v1474_v0  ;;  %v3171_v59 = vadd.f32 %v3170_v63, %v1258_v20  ;;  %v2912_v14 = vpop.f32.mrb[55].mxu0 }
 0x1f5   : > { %1376 = vst [vmem:[%s4092_s14 + $0xd8] sm:$0xff] %v3171_v59  ;;  %v1421_v5 = vadd.f32 %v3171_v59, %v1420_v9  ;;  %v1475_v23 = vmul.f32 %v3171_v59, %v3171_v59  ;;  %v978_v13 = vpop.f32.mrb[58].mxu1 }
 0x1f6   : > { %v1263_v8 = vpop.f32.mrb[56].mxu0  ;;  %v980_v10 = vpop.f32.mrb[59].mxu1  ;;  %v3174_v24 = vadd.f32 %v4084_v33, %v978_v13 }
 0x1f7   : > { %v1519_v62 = vadd.f32 %v1518_v2, %v1475_v23  ;;  %v3173_v12 = vadd.f32 %v3172_v42, %v1263_v8  ;;  %v2915_v16 = vpop.f32.mrb[57].mxu0 }
 0x1f9   : > { %1377 = vst [vmem:[%s4092_s14 + $0xe0] sm:$0xff] %v3173_v12  ;;  %v1422_v25 = vadd.f32 %v3173_v12, %v1421_v5  ;;  %v1476_v19 = vmul.f32 %v3173_v12, %v3173_v12  ;;  %v983_v18 = vpop.f32.mrb[60].mxu1 }
 0x1fa   : > { %v1268_v22 = vpop.f32.mrb[58].mxu0  ;;  %v985_v3 = vpop.f32.mrb[61].mxu1  ;;  %v3176_v29 = vadd.f32 %v4084_v33, %v983_v18 }
 0x1fb   : > { %v1520_v37 = vadd.f32 %v1519_v62, %v1476_v19  ;;  %v3175_v27 = vadd.f32 %v3174_v24, %v1268_v22  ;;  %v2918_v26 = vpop.f32.mrb[59].mxu0 }
 0x1fd   : > { %1378 = vst [vmem:[%s4092_s14 + $0xe8] sm:$0xff] %v3175_v27  ;;  %v1423_v32 = vadd.f32 %v3175_v27, %v1422_v25  ;;  %v1477_v31 = vmul.f32 %v3175_v27, %v3175_v27  ;;  %v988_v34 = vpop.f32.mrb[62].mxu1 }
 0x1fe   : > { %v1273_v21 = vpop.f32.mrb[60].mxu0  ;;  %v990_v36 = vpop.f32.mrb[63].mxu1  ;;  %v3178_v41 = vadd.f32 %v4084_v33, %v988_v34 }
 0x1ff   : > { %v1521_v30 = vadd.f32 %v1520_v37, %v1477_v31  ;;  %v3177_v39 = vadd.f32 %v3176_v29, %v1273_v21  ;;  %v2921_v40 = vpop.f32.mrb[61].mxu0 }
 0x201   : > { %1379 = vst [vmem:[%s4092_s14 + $0xf0] sm:$0xff] %v3177_v39  ;;  %v1424_v38 = vadd.f32 %v3177_v39, %v1423_v32  ;;  %v1478_v43 = vmul.f32 %v3177_v39, %v3177_v39  ;;  %v993_v28 = vpop.f32.mrb[64].mxu1 }
 0x202   : > { %v1278_v46 = vpop.f32.mrb[62].mxu0  ;;  %v995_v47 = vpop.f32.mrb[65].mxu1  ;;  %v3180_v44 = vadd.f32 %v4084_v33, %v993_v28 }
 0x203   : > { %v1522_v7 = vadd.f32 %v1521_v30, %v1478_v43  ;;  %v3179_v48 = vadd.f32 %v3178_v41, %v1278_v46  ;;  %v2924_v49 = vpop.f32.mrb[63].mxu0 }
 0x205   : > { %1380 = vst [vmem:[%s4092_s14 + $0xf8] sm:$0xff] %v3179_v48  ;;  %v1425_v15 = vadd.f32 %v3179_v48, %v1424_v38  ;;  %v1479_v45 = vmul.f32 %v3179_v48, %v3179_v48  ;;  %v998_v52 = vpop.f32.mrb[66].mxu1 }
 0x206   : > { %v1283_v53 = vpop.f32.mrb[64].mxu0  ;;  %v1000_v54 = vpop.f32.mrb[67].mxu1  ;;  %v3182_v50 = vadd.f32 %v4084_v33, %v998_v52 }
 0x207   : > { %v1523_v55 = vadd.f32 %v1522_v7, %v1479_v45  ;;  %v3181_v56 = vadd.f32 %v3180_v44, %v1283_v53  ;;  %v2927_v4 = vpop.f32.mrb[65].mxu0 }
 0x209   : > { %1381 = vst [vmem:[%s4092_s14 + $0x100] sm:$0xff] %v3181_v56  ;;  %v1426_v11 = vadd.f32 %v3181_v56, %v1425_v15  ;;  %v1480_v58 = vmul.f32 %v3181_v56, %v3181_v56  ;;  %v1003_v57 = vpop.f32.mrb[68].mxu1 }
 0x20a   : > { %v1288_v60 = vpop.f32.mrb[66].mxu0  ;;  %v1005_v61 = vpop.f32.mrb[69].mxu1  ;;  %v3184_v63 = vadd.f32 %v4084_v33, %v1003_v57 }
 0x20b   : > { %v1524_v17 = vadd.f32 %v1523_v55, %v1480_v58  ;;  %v3183_v35 = vadd.f32 %v3182_v50, %v1288_v60  ;;  %v2930_v51 = vpop.f32.mrb[67].mxu0 }
 0x20d   : > { %1382 = vst [vmem:[%s4092_s14 + $0x108] sm:$0xff] %v3183_v35  ;;  %v1427_v9 = vadd.f32 %v3183_v35, %v1426_v11  ;;  %v1481_v0 = vmul.f32 %v3183_v35, %v3183_v35  ;;  %v1008_v6 = vpop.f32.mrb[70].mxu1 }
 0x20e   : > { %v1293_v20 = vpop.f32.mrb[68].mxu0  ;;  %v1010_v1 = vpop.f32.mrb[71].mxu1  ;;  %v3186_v42 = vadd.f32 %v4084_v33, %v1008_v6 }
 0x20f   : > { %v1525_v2 = vadd.f32 %v1524_v17, %v1481_v0  ;;  %v3185_v59 = vadd.f32 %v3184_v63, %v1293_v20  ;;  %v2933_v14 = vpop.f32.mrb[69].mxu0 }
 0x211   : > { %1383 = vst [vmem:[%s4092_s14 + $0x110] sm:$0xff] %v3185_v59  ;;  %v1428_v5 = vadd.f32 %v3185_v59, %v1427_v9  ;;  %v1482_v23 = vmul.f32 %v3185_v59, %v3185_v59  ;;  %v1013_v13 = vpop.f32.mrb[72].mxu1 }
 0x212   : > { %v1298_v8 = vpop.f32.mrb[70].mxu0  ;;  %v1015_v10 = vpop.f32.mrb[73].mxu1  ;;  %v3188_v24 = vadd.f32 %v4084_v33, %v1013_v13 }
 0x213   : > { %v1526_v62 = vadd.f32 %v1525_v2, %v1482_v23  ;;  %v3187_v12 = vadd.f32 %v3186_v42, %v1298_v8  ;;  %v2936_v16 = vpop.f32.mrb[71].mxu0 }
 0x215   : > { %1384 = vst [vmem:[%s4092_s14 + $0x118] sm:$0xff] %v3187_v12  ;;  %v1429_v25 = vadd.f32 %v3187_v12, %v1428_v5  ;;  %v1483_v19 = vmul.f32 %v3187_v12, %v3187_v12  ;;  %v1018_v18 = vpop.f32.mrb[74].mxu1 }
 0x216   : > { %v1303_v22 = vpop.f32.mrb[72].mxu0  ;;  %v1020_v3 = vpop.f32.mrb[75].mxu1  ;;  %v3190_v29 = vadd.f32 %v4084_v33, %v1018_v18 }
 0x217   : > { %v1527_v37 = vadd.f32 %v1526_v62, %v1483_v19  ;;  %v3189_v27 = vadd.f32 %v3188_v24, %v1303_v22  ;;  %v2939_v26 = vpop.f32.mrb[73].mxu0 }
 0x219   : > { %1385 = vst [vmem:[%s4092_s14 + $0x120] sm:$0xff] %v3189_v27  ;;  %v1430_v32 = vadd.f32 %v3189_v27, %v1429_v25  ;;  %v1484_v31 = vmul.f32 %v3189_v27, %v3189_v27  ;;  %v1023_v34 = vpop.f32.mrb[76].mxu1 }
 0x21a   : > { %v1308_v21 = vpop.f32.mrb[74].mxu0  ;;  %v1025_v36 = vpop.f32.mrb[77].mxu1  ;;  %v3192_v41 = vadd.f32 %v4084_v33, %v1023_v34 }
 0x21b   : > { %v1528_v30 = vadd.f32 %v1527_v37, %v1484_v31  ;;  %v3191_v39 = vadd.f32 %v3190_v29, %v1308_v21  ;;  %v2942_v40 = vpop.f32.mrb[75].mxu0 }
 0x21d   : > { %1386 = vst [vmem:[%s4092_s14 + $0x128] sm:$0xff] %v3191_v39  ;;  %v1431_v38 = vadd.f32 %v3191_v39, %v1430_v32  ;;  %v1485_v43 = vmul.f32 %v3191_v39, %v3191_v39  ;;  %v1028_v28 = vpop.f32.mrb[78].mxu1 }
 0x21e   : > { %v1313_v46 = vpop.f32.mrb[76].mxu0  ;;  %v1030_v47 = vpop.f32.mrb[79].mxu1  ;;  %v3194_v44 = vadd.f32 %v4084_v33, %v1028_v28 }
 0x21f   : > { %v1529_v7 = vadd.f32 %v1528_v30, %v1485_v43  ;;  %v3193_v48 = vadd.f32 %v3192_v41, %v1313_v46  ;;  %v2945_v49 = vpop.f32.mrb[77].mxu0 }
 0x221   : > { %1387 = vst [vmem:[%s4092_s14 + $0x130] sm:$0xff] %v3193_v48  ;;  %v1432_v15 = vadd.f32 %v3193_v48, %v1431_v38  ;;  %v1486_v45 = vmul.f32 %v3193_v48, %v3193_v48  ;;  %v1033_v52 = vpop.f32.mrb[80].mxu1 }
 0x222   : > { %v1318_v53 = vpop.f32.mrb[78].mxu0  ;;  %v1035_v54 = vpop.f32.mrb[81].mxu1  ;;  %v3196_v50 = vadd.f32 %v4084_v33, %v1033_v52  ;;  %v1447_v52 = vld [vmem:[#allocation3] sm:$0x1] }
 0x223   : > { %v1530_v55 = vadd.f32 %v1529_v7, %v1486_v45  ;;  %v3195_v56 = vadd.f32 %v3194_v44, %v1318_v53  ;;  %v2948_v4 = vpop.f32.mrb[79].mxu0  ;;  %v1394_v44 = vld [vmem:[#allocation2] sm:$0x1] }
 0x225   : > { %1388 = vst [vmem:[%s4092_s14 + $0x138] sm:$0xff] %v3195_v56  ;;  %v1433_v11 = vadd.f32 %v3195_v56, %v1432_v15  ;;  %v1487_v58 = vmul.f32 %v3195_v56, %v3195_v56  ;;  %v1038_v57 = vpop.f32.mrb[82].mxu1 }
 0x226   : > { %v1323_v60 = vpop.f32.mrb[80].mxu0  ;;  %v1040_v61 = vpop.f32.mrb[83].mxu1  ;;  %v3198_v63 = vadd.f32 %v4084_v33, %v1038_v57 }
 0x227   : > { %v1531_v17 = vadd.f32 %v1530_v55, %v1487_v58  ;;  %v3197_v35 = vadd.f32 %v3196_v50, %v1323_v60  ;;  %v2951_v51 = vpop.f32.mrb[81].mxu0 }
 0x228   : > { %v1556_v51 = vld [vmem:[%s6021_s2 + $0x1] sm:$0x1] (!%p2733_p5) }
 0x229   : > { %1389 = vst [vmem:[%s4092_s14 + $0x140] sm:$0xff] %v3197_v35  ;;  %v1434_v9 = vadd.f32 %v3197_v35, %v1433_v11  ;;  %v1488_v0 = vmul.f32 %v3197_v35, %v3197_v35  ;;  %v1043_v6 = vpop.f32.mrb[84].mxu1 }
 0x22a   : > { %v1328_v20 = vpop.f32.mrb[82].mxu0  ;;  %v1045_v1 = vpop.f32.mrb[85].mxu1  ;;  %v3200_v42 = vadd.f32 %v4084_v33, %v1043_v6  ;;  %v1560_v6 = vld [vmem:[%s6021_s2 + $0x2] sm:$0x1] (!%p2733_p5) }
 0x22b   : > { %v1532_v2 = vadd.f32 %v1531_v17, %v1488_v0  ;;  %v3199_v59 = vadd.f32 %v3198_v63, %v1328_v20  ;;  %v2954_v14 = vpop.f32.mrb[83].mxu0  ;;  %v1788_v17 = vlaneseq (!%p2733_p5) }
 0x22d   : > { %1390 = vst [vmem:[%s4092_s14 + $0x148] sm:$0xff] %v3199_v59  ;;  %v1435_v5 = vadd.f32 %v3199_v59, %v1434_v9  ;;  %v1489_v23 = vmul.f32 %v3199_v59, %v3199_v59  ;;  %v1048_v13 = vpop.f32.mrb[86].mxu1  ;;  %v1789_v35 = vshrl.u32 (!%p2733_p5), %v1788_v17, 7 }
 0x22e   : > { %v1333_v8 = vpop.f32.mrb[84].mxu0  ;;  %v1050_v10 = vpop.f32.mrb[87].mxu1  ;;  %v3202_v24 = vadd.f32 %v4084_v33, %v1048_v13 }
 0x22f   : > { %v1533_v62 = vadd.f32 %v1532_v2, %v1489_v23  ;;  %v3201_v12 = vadd.f32 %v3200_v42, %v1333_v8  ;;  %v2957_v16 = vpop.f32.mrb[85].mxu0  ;;  %v1790_v63 = vsub.s32 (!%p2733_p5), 0, %v1789_v35 }
 0x231   : > { %1391 = vst [vmem:[%s4092_s14 + $0x150] sm:$0xff] %v3201_v12  ;;  %v1436_v25 = vadd.f32 %v3201_v12, %v1435_v5  ;;  %v1490_v19 = vmul.f32 %v3201_v12, %v3201_v12  ;;  %v1053_v18 = vpop.f32.mrb[88].mxu1 }
 0x232   : > { %v1338_v22 = vpop.f32.mrb[86].mxu0  ;;  %v1055_v3 = vpop.f32.mrb[89].mxu1  ;;  %v3204_v29 = vadd.f32 %v4084_v33, %v1053_v18 }
 0x233   : > { %v1534_v37 = vadd.f32 %v1533_v62, %v1490_v19  ;;  %v3203_v27 = vadd.f32 %v3202_v24, %v1338_v22  ;;  %v2960_v26 = vpop.f32.mrb[87].mxu0 }
 0x235   : > { %1392 = vst [vmem:[%s4092_s14 + $0x158] sm:$0xff] %v3203_v27  ;;  %v1437_v32 = vadd.f32 %v3203_v27, %v1436_v25  ;;  %v1491_v31 = vmul.f32 %v3203_v27, %v3203_v27 }
 0x236   : > { %v1343_v34 = vpop.f32.mrb[88].mxu0 }
 0x237   : > { %v1535_v21 = vadd.f32 %v1534_v37, %v1491_v31  ;;  %v3205_v36 = vadd.f32 %v3204_v29, %v1343_v34  ;;  %v2963_v30 = vpop.f32.mrb[89].mxu0 }
 0x239   : > { %1393 = vst [vmem:[%s4092_s14 + $0x160] sm:$0xff] %v3205_v36  ;;  %v1438_v39 = vadd.f32 %v3205_v36, %v1437_v32  ;;  %v1492_v40 = vmul.f32 %v3205_v36, %v3205_v36 }
 0x23b   : > { %v1439_v41 = vrot.slane %v1438_v39, 4  ;;  %v1536_v38 = vadd.f32 %v1535_v21, %v1492_v40 }
 0x23d   : > { %v1440_v43 = vadd.f32 %v1439_v41, %v1438_v39  ;;  %v1537_v28 = vrot.slane %v1536_v38, 4 }
 0x23f   : > { %v1441_v46 = vrot.slane %v1440_v43, 2  ;;  %v1538_v47 = vadd.f32 %v1537_v28, %v1536_v38 }
 0x240   : > { %v1563_v20 = vld [vmem:[%s6022_s3] sm:$0xff] (!%p2733_p5)  ;;  %v1564_v1 = vld [vmem:[%s6022_s3 + $0x8] sm:$0xff] (!%p2733_p5)  ;;  %v1565_v2 = vld [vmem:[%s6022_s3 + $0x10] sm:$0xff] (!%p2733_p5) }
 0x241   : > { %v1442_v7 = vadd.f32 %v1441_v46, %v1440_v43  ;;  %v1539_v48 = vrot.slane %v1538_v47, 2  ;;  %v1566_v59 = vld [vmem:[%s6022_s3 + $0x18] sm:$0xff] (!%p2733_p5)  ;;  %v1567_v14 = vld [vmem:[%s6022_s3 + $0x20] sm:$0xff] (!%p2733_p5)  ;;  %v1568_v23 = vld [vmem:[%s6022_s3 + $0x28] sm:$0xff] (!%p2733_p5) }
 0x242   : > { %v1569_v13 = vld [vmem:[%s6022_s3 + $0x30] sm:$0xff] (!%p2733_p5)  ;;  %v1570_v8 = vld [vmem:[%s6022_s3 + $0x38] sm:$0xff] (!%p2733_p5)  ;;  %v1571_v10 = vld [vmem:[%s6022_s3 + $0x40] sm:$0xff] (!%p2733_p5) }
 0x243   : > { %v1443_v49 = vrot.slane %v1442_v7, 1  ;;  %v1540_v33 = vadd.f32 %v1539_v48, %v1538_v47  ;;  %v1572_v62 = vld [vmem:[%s6022_s3 + $0x48] sm:$0xff] (!%p2733_p5)  ;;  %v1573_v12 = vld [vmem:[%s6022_s3 + $0x50] sm:$0xff] (!%p2733_p5)  ;;  %v1574_v18 = vld [vmem:[%s6022_s3 + $0x58] sm:$0xff] (!%p2733_p5) }
 0x244   : > { %v1575_v22 = vld [vmem:[%s6022_s3 + $0x60] sm:$0xff] (!%p2733_p5)  ;;  %v1576_v3 = vld [vmem:[%s6022_s3 + $0x68] sm:$0xff] (!%p2733_p5) }
 0x245   : > { %v1444_v15 = vadd.f32 %v1443_v49, %v1442_v7  ;;  %v1541_v45 = vrot.slane %v1540_v33, 1  ;;  %1548 = sbr.rel (%p2733_p5) target bundleno = 794 (0x31a), region = 40 }
 0x247   : > { %v1445_v53 = vadd.f32 %v1444_v15, %v1394_v44  ;;  %v1542_v54 = vadd.f32 %v1541_v45, %v1540_v33  ;;  %v1577_v45 = vld [vmem:[%s6022_s3 + $0x70] sm:$0xff] (!%p2733_p5) }
 0x249   : > { %1446 = vst [vmem:[#allocation2] sm:$0x1] %v1445_v53  ;;  %v1543_v55 = vadd.f32 %v1542_v54, %v1447_v52  ;;  %v1578_v52 = vld [vmem:[%s6022_s3 + $0x78] sm:$0xff] (!%p2733_p5) }
 0x24b   : > { %1544 = vst [vmem:[#allocation3] sm:$0x1] %v1543_v55 }
 0x250   : > { %v1549_v56 = vld [vmem:[#allocation2] sm:$0x1] }
 0x251   : > { %v1550_v50 = vmul.f32 0.00055555557, %v1549_v56 }
 0x252   : > { %v1551_v4 = vld [vmem:[#allocation3] sm:$0x1] }
 0x253   : > { %v1552_v11 = vmul.f32 0.00055555557, %v1551_v4  ;;  %v1553_v58 = vmul.f32 %v1550_v50, %v1550_v50 }
 0x255   : > { %v1554_v57 = vsub.f32 %v1552_v11, %v1553_v58 }
 0x257   : > { %v1555_v60 = vmax.f32 %v1554_v57, 0.0  ;;  %v1579_v57 = vld [vmem:[%s6022_s3 + $0x80] sm:$0xff] }
 0x259   : > { %v1557_v61 = vadd.f32 1e-05, %v1555_v60 }
 0x25b   : > { %3309 = vrsqrt.f32 %v1557_v61 }
 0x265   : > { %v3310_v9 = vpop.eup %3309 }
 0x266   : > { %v1559_v0 = vmul.f32 %v3310_v9, %v1556_v51  ;;  %v1580_v51 = vld [vmem:[%s6022_s3 + $0x88] sm:$0xff]  ;;  %v1582_v9 = vld [vmem:[%s6022_s3 + $0x98] sm:$0xff] }
 0x268   : > { %v1561_v42 = vmul.f32 %v1559_v0, %v1550_v50  ;;  %v4227_v5 = vrot.slane %v1559_v0, %v1790_v63 }
 0x26a   : > { %v1562_v16 = vsub.f32 %v1560_v6, %v1561_v42  ;;  %v1792_v24 = vmul.f32 %v4227_v5, %v1563_v20  ;;  %v1793_v25 = vmul.f32 %v4227_v5, %v1564_v1  ;;  %v1794_v19 = vmul.f32 %v4227_v5, %v1565_v2  ;;  %v1583_v2 = vld [vmem:[%s6022_s3 + $0xa0] sm:$0xff] }
 0x26b   : > { %v1795_v37 = vmul.f32 %v4227_v5, %v1566_v59  ;;  %v1796_v27 = vmul.f32 %v4227_v5, %v1567_v14  ;;  %v1797_v26 = vmul.f32 %v4227_v5, %v1568_v23  ;;  %v1798_v29 = vmul.f32 %v4227_v5, %v1569_v13  ;;  %v1584_v59 = vld [vmem:[%s6022_s3 + $0xa8] sm:$0xff] }
 0x26c   : > { %v4263_v32 = vrot.slane %v1562_v16, %v1790_v63  ;;  %v1799_v31 = vmul.f32 %v4227_v5, %v1570_v8  ;;  %v1800_v34 = vmul.f32 %v4227_v5, %v1571_v10  ;;  %v1801_v21 = vmul.f32 %v4227_v5, %v1572_v62  ;;  %v1581_v63 = vld [vmem:[%s6022_s3 + $0x90] sm:$0xff] }
 0x26d   : > { %v1802_v36 = vmul.f32 %v4227_v5, %v1573_v12  ;;  %v1803_v30 = vmul.f32 %v4227_v5, %v1574_v18  ;;  %v1804_v39 = vmul.f32 %v4227_v5, %v1575_v22  ;;  %v1805_v40 = vmul.f32 %v4227_v5, %v1576_v3  ;;  %v1585_v16 = vld [vmem:[%s6022_s3 + $0xb0] sm:$0xff] }
 0x26e   : > { %v2021_v41 = vadd.f32 %v4263_v32, %v1792_v24  ;;  %v2022_v38 = vadd.f32 %v4263_v32, %v1793_v25  ;;  %v2023_v43 = vadd.f32 %v4263_v32, %v1794_v19  ;;  %v2024_v28 = vadd.f32 %v4263_v32, %v1795_v37  ;;  %v1586_v24 = vld [vmem:[%s6022_s3 + $0xb8] sm:$0xff] }
 0x26f   : > { %v2025_v46 = vadd.f32 %v4263_v32, %v1796_v27  ;;  %v2026_v47 = vadd.f32 %v4263_v32, %v1797_v26  ;;  %v2027_v7 = vadd.f32 %v4263_v32, %v1798_v29  ;;  %v2028_v48 = vadd.f32 %v4263_v32, %v1799_v31  ;;  %v1587_v29 = vld [vmem:[%s6022_s3 + $0xc0] sm:$0xff] }
 0x270   : > { %v2246_v49 = vmax.f32 %v2021_v41, 0.0  ;;  %v2247_v33 = vmax.f32 %v2022_v38, 0.0  ;;  %v2248_v44 = vmax.f32 %v2023_v43, 0.0  ;;  %v2249_v15 = vmax.f32 %v2024_v28, 0.0 }
 0x271   : > { %v2250_v53 = vmax.f32 %v2025_v46, 0.0  ;;  %v2251_v54 = vmax.f32 %v2026_v47, 0.0  ;;  %v2252_v55 = vmax.f32 %v2027_v7, 0.0  ;;  %v2253_v56 = vmax.f32 %v2028_v48, 0.0  ;;  %v1591_v46 = vld [vmem:[%s6022_s3 + $0xe0] sm:$0xff]  ;;  %v1592_v47 = vld [vmem:[%s6022_s3 + $0xe8] sm:$0xff] }
 0x272   : > { %2471 = vst [vmem:[%s6022_s3] sm:$0xff] %v2246_v49  ;;  %2472 = vst [vmem:[%s6022_s3 + $0x8] sm:$0xff] %v2247_v33  ;;  %v2029_v4 = vadd.f32 %v4263_v32, %v1800_v34  ;;  %v2030_v50 = vadd.f32 %v4263_v32, %v1801_v21  ;;  %v2031_v11 = vadd.f32 %v4263_v32, %v1802_v36 }
 0x273   : > { %2473 = vst [vmem:[%s6022_s3 + $0x10] sm:$0xff] %v2248_v44  ;;  %2474 = vst [vmem:[%s6022_s3 + $0x18] sm:$0xff] %v2249_v15  ;;  %v2032_v58 = vadd.f32 %v4263_v32, %v1803_v30  ;;  %v2033_v60 = vadd.f32 %v4263_v32, %v1804_v39  ;;  %v2034_v61 = vadd.f32 %v4263_v32, %v1805_v40  ;;  %v1588_v30 = vld [vmem:[%s6022_s3 + $0xc8] sm:$0xff]  ;;  %v1589_v39 = vld [vmem:[%s6022_s3 + $0xd0] sm:$0xff] }
 0x274   : > { %2475 = vst [vmem:[%s6022_s3 + $0x20] sm:$0xff] %v2250_v53  ;;  %2476 = vst [vmem:[%s6022_s3 + $0x28] sm:$0xff] %v2251_v54  ;;  %v1806_v17 = vmul.f32 %v4227_v5, %v1577_v45  ;;  %v1807_v35 = vmul.f32 %v4227_v5, %v1578_v52  ;;  %v2254_v0 = vmax.f32 %v2029_v4, 0.0  ;;  %v2255_v6 = vmax.f32 %v2030_v50, 0.0  ;;  %v1590_v40 = vld [vmem:[%s6022_s3 + $0xd8] sm:$0xff]  ;;  %v1593_v53 = vld [vmem:[%s6022_s3 + $0xf0] sm:$0xff] }
 0x275   : > { %2477 = vst [vmem:[%s6022_s3 + $0x30] sm:$0xff] %v2252_v55  ;;  %2478 = vst [vmem:[%s6022_s3 + $0x38] sm:$0xff] %v2253_v56  ;;  %v2256_v20 = vmax.f32 %v2031_v11, 0.0  ;;  %v2257_v1 = vmax.f32 %v2032_v58, 0.0  ;;  %v2258_v14 = vmax.f32 %v2033_v60, 0.0  ;;  %v2259_v42 = vmax.f32 %v2034_v61, 0.0 }
 0x276   : > { %v2035_v23 = vadd.f32 %v4263_v32, %v1806_v17  ;;  %v2036_v13 = vadd.f32 %v4263_v32, %v1807_v35  ;;  %2479 = vst [vmem:[%s6022_s3 + $0x40] sm:$0xff] %v2254_v0  ;;  %2480 = vst [vmem:[%s6022_s3 + $0x48] sm:$0xff] %v2255_v6  ;;  %v1808_v8 = vmul.f32 %v4227_v5, %v1579_v57  ;;  %v1594_v54 = vld [vmem:[%s6022_s3 + $0xf8] sm:$0xff]  ;;  %v1595_v61 = vld [vmem:[%s6022_s3 + $0x100] sm:$0xff] }
 0x277   : > { %2481 = vst [vmem:[%s6022_s3 + $0x50] sm:$0xff] %v2256_v20  ;;  %2482 = vst [vmem:[%s6022_s3 + $0x58] sm:$0xff] %v2257_v1  ;;  %v1809_v10 = vmul.f32 %v4227_v5, %v1580_v51  ;;  %v1810_v62 = vmul.f32 %v4227_v5, %v1581_v63  ;;  %v1811_v12 = vmul.f32 %v4227_v5, %v1582_v9  ;;  %v1596_v9 = vld [vmem:[%s6022_s3 + $0x108] sm:$0xff]  ;;  %v1597_v0 = vld [vmem:[%s6022_s3 + $0x110] sm:$0xff] }
 0x278   : > { %2483 = vst [vmem:[%s6022_s3 + $0x60] sm:$0xff] %v2258_v14  ;;  %2484 = vst [vmem:[%s6022_s3 + $0x68] sm:$0xff] %v2259_v42  ;;  %v2260_v25 = vmax.f32 %v2035_v23, 0.0  ;;  %v2261_v19 = vmax.f32 %v2036_v13, 0.0  ;;  %v1812_v18 = vmul.f32 %v4227_v5, %v1583_v2  ;;  %v1813_v22 = vmul.f32 %v4227_v5, %v1584_v59  ;;  %v1598_v6 = vld [vmem:[%s6022_s3 + $0x118] sm:$0xff]  ;;  %v1599_v14 = vld [vmem:[%s6022_s3 + $0x120] sm:$0xff] }
 0x279   : > { %v2037_v3 = vadd.f32 %v4263_v32, %v1808_v8  ;;  %v2038_v37 = vadd.f32 %v4263_v32, %v1809_v10  ;;  %v2039_v27 = vadd.f32 %v4263_v32, %v1810_v62  ;;  %v2040_v26 = vadd.f32 %v4263_v32, %v1811_v12  ;;  %v1600_v42 = vld [vmem:[%s6022_s3 + $0x128] sm:$0xff] }
 0x27a   : > { %2485 = vst [vmem:[%s6022_s3 + $0x70] sm:$0xff] %v2260_v25  ;;  %2486 = vst [vmem:[%s6022_s3 + $0x78] sm:$0xff] %v2261_v19  ;;  %v2041_v31 = vadd.f32 %v4263_v32, %v1812_v18  ;;  %v2042_v34 = vadd.f32 %v4263_v32, %v1813_v22  ;;  %v1814_v21 = vmul.f32 %v4227_v5, %v1585_v16  ;;  %v1601_v25 = vld [vmem:[%s6022_s3 + $0x130] sm:$0xff]  ;;  %v1602_v19 = vld [vmem:[%s6022_s3 + $0x138] sm:$0xff] }
 0x27b   : > { %v1815_v36 = vmul.f32 %v4227_v5, %v1586_v24  ;;  %v2262_v41 = vmax.f32 %v2037_v3, 0.0  ;;  %v2263_v38 = vmax.f32 %v2038_v37, 0.0  ;;  %v2264_v43 = vmax.f32 %v2039_v27, 0.0 }
 0x27c   : > { %v2265_v28 = vmax.f32 %v2040_v26, 0.0  ;;  %v2266_v7 = vmax.f32 %v2041_v31, 0.0  ;;  %v2267_v48 = vmax.f32 %v2042_v34, 0.0  ;;  %v2043_v49 = vadd.f32 %v4263_v32, %v1814_v21  ;;  %v1603_v34 = vld [vmem:[%s6022_s3 + $0x140] sm:$0xff] }
 0x27d   : > { %v2044_v33 = vadd.f32 %v4263_v32, %v1815_v36  ;;  %2487 = vst [vmem:[%s6022_s3 + $0x80] sm:$0xff] %v2262_v41  ;;  %2488 = vst [vmem:[%s6022_s3 + $0x88] sm:$0xff] %v2263_v38  ;;  %v1816_v44 = vmul.f32 %v4227_v5, %v1587_v29  ;;  %v1817_v15 = vmul.f32 %v4227_v5, %v1588_v30  ;;  %v1605_v41 = vld [vmem:[%s6022_s3 + $0x150] sm:$0xff]  ;;  %v1606_v38 = vld [vmem:[%s6022_s3 + $0x158] sm:$0xff] }
 0x27e   : > { %2489 = vst [vmem:[%s6022_s3 + $0x90] sm:$0xff] %v2264_v43  ;;  %2490 = vst [vmem:[%s6022_s3 + $0x98] sm:$0xff] %v2265_v28  ;;  %v1818_v45 = vmul.f32 %v4227_v5, %v1589_v39  ;;  %v1819_v52 = vmul.f32 %v4227_v5, %v1590_v40  ;;  %v2268_v55 = vmax.f32 %v2043_v49, 0.0  ;;  %v1820_v4 = vmul.f32 %v4227_v5, %v1591_v46  ;;  %v1604_v40 = vld [vmem:[%s6022_s3 + $0x148] sm:$0xff] }
 0x27f   : > { %2491 = vst [vmem:[%s6022_s3 + $0xa0] sm:$0xff] %v2266_v7  ;;  %2492 = vst [vmem:[%s6022_s3 + $0xa8] sm:$0xff] %v2267_v48  ;;  %v2269_v56 = vmax.f32 %v2044_v33, 0.0  ;;  %v1821_v50 = vmul.f32 %v4227_v5, %v1592_v47  ;;  %v2045_v11 = vadd.f32 %v4263_v32, %v1816_v44  ;;  %v2046_v58 = vadd.f32 %v4263_v32, %v1817_v15  ;;  %v1607_v7 = vld [vmem:[%s6022_s3 + $0x160] sm:$0xff]  ;;  %v1608_v48 = vld [vmem:[%s6022_s3 + $0x168] sm:$0xff] }
 0x280   : > { %v2047_v57 = vadd.f32 %v4263_v32, %v1818_v45  ;;  %v2048_v60 = vadd.f32 %v4263_v32, %v1819_v52  ;;  %2493 = vst [vmem:[%s6022_s3 + $0xb0] sm:$0xff] %v2268_v55  ;;  %v2049_v17 = vadd.f32 %v4263_v32, %v1820_v4  ;;  %v1822_v51 = vmul.f32 %v4227_v5, %v1593_v53  ;;  %v1609_v55 = vld [vmem:[%s6022_s3 + $0x170] sm:$0xff] }
 0x281   : > { %2494 = vst [vmem:[%s6022_s3 + $0xb8] sm:$0xff] %v2269_v56  ;;  %v2050_v35 = vadd.f32 %v4263_v32, %v1821_v50  ;;  %v1823_v63 = vmul.f32 %v4227_v5, %v1594_v54  ;;  %v2270_v20 = vmax.f32 %v2045_v11, 0.0  ;;  %v2271_v1 = vmax.f32 %v2046_v58, 0.0  ;;  %v1610_v56 = vld [vmem:[%s6022_s3 + $0x178] sm:$0xff] }
 0x282   : > { %v2272_v2 = vmax.f32 %v2047_v57, 0.0  ;;  %v2273_v59 = vmax.f32 %v2048_v60, 0.0  ;;  %v2274_v23 = vmax.f32 %v2049_v17, 0.0  ;;  %v2051_v8 = vadd.f32 %v4263_v32, %v1822_v51 }
 0x283   : > { %v2275_v13 = vmax.f32 %v2050_v35, 0.0  ;;  %v2052_v10 = vadd.f32 %v4263_v32, %v1823_v63  ;;  %2495 = vst [vmem:[%s6022_s3 + $0xc0] sm:$0xff] %v2270_v20  ;;  %2496 = vst [vmem:[%s6022_s3 + $0xc8] sm:$0xff] %v2271_v1  ;;  %v1824_v62 = vmul.f32 %v4227_v5, %v1595_v61  ;;  %v1825_v12 = vmul.f32 %v4227_v5, %v1596_v9  ;;  %v1611_v35 = vld [vmem:[%s6022_s3 + $0x180] sm:$0xff]  ;;  %v1613_v20 = vld [vmem:[%s6022_s3 + $0x190] sm:$0xff] }
 0x284   : > { %2497 = vst [vmem:[%s6022_s3 + $0xd0] sm:$0xff] %v2272_v2  ;;  %2498 = vst [vmem:[%s6022_s3 + $0xd8] sm:$0xff] %v2273_v59  ;;  %v1826_v16 = vmul.f32 %v4227_v5, %v1597_v0  ;;  %v1827_v24 = vmul.f32 %v4227_v5, %v1598_v6  ;;  %v2276_v18 = vmax.f32 %v2051_v8, 0.0  ;;  %v1828_v3 = vmul.f32 %v4227_v5, %v1599_v14  ;;  %v1612_v6 = vld [vmem:[%s6022_s3 + $0x188] sm:$0xff]  ;;  %v1614_v1 = vld [vmem:[%s6022_s3 + $0x198] sm:$0xff] }
 0x285   : > { %2499 = vst [vmem:[%s6022_s3 + $0xe0] sm:$0xff] %v2274_v23  ;;  %2500 = vst [vmem:[%s6022_s3 + $0xe8] sm:$0xff] %v2275_v13  ;;  %v2277_v22 = vmax.f32 %v2052_v10, 0.0  ;;  %v1829_v37 = vmul.f32 %v4227_v5, %v1600_v42  ;;  %v2053_v27 = vadd.f32 %v4263_v32, %v1824_v62  ;;  %v2054_v26 = vadd.f32 %v4263_v32, %v1825_v12  ;;  %v1615_v23 = vld [vmem:[%s6022_s3 + $0x1a0] sm:$0xff]  ;;  %v1616_v13 = vld [vmem:[%s6022_s3 + $0x1a8] sm:$0xff] }
 0x286   : > { %v2055_v29 = vadd.f32 %v4263_v32, %v1826_v16  ;;  %v2056_v31 = vadd.f32 %v4263_v32, %v1827_v24  ;;  %2501 = vst [vmem:[%s6022_s3 + $0xf0] sm:$0xff] %v2276_v18  ;;  %v2057_v21 = vadd.f32 %v4263_v32, %v1828_v3  ;;  %v1830_v30 = vmul.f32 %v4227_v5, %v1601_v25  ;;  %v1617_v18 = vld [vmem:[%s6022_s3 + $0x1b0] sm:$0xff] }
 0x287   : > { %2502 = vst [vmem:[%s6022_s3 + $0xf8] sm:$0xff] %v2277_v22  ;;  %v2058_v36 = vadd.f32 %v4263_v32, %v1829_v37  ;;  %v1831_v39 = vmul.f32 %v4227_v5, %v1602_v19  ;;  %v2278_v43 = vmax.f32 %v2053_v27, 0.0  ;;  %v2279_v28 = vmax.f32 %v2054_v26, 0.0  ;;  %v1618_v22 = vld [vmem:[%s6022_s3 + $0x1b8] sm:$0xff] }
 0x288   : > { %v2280_v46 = vmax.f32 %v2055_v29, 0.0  ;;  %v2281_v47 = vmax.f32 %v2056_v31, 0.0  ;;  %v2282_v49 = vmax.f32 %v2057_v21, 0.0  ;;  %v2059_v44 = vadd.f32 %v4263_v32, %v1830_v30 }
 0x289   : > { %v2283_v33 = vmax.f32 %v2058_v36, 0.0  ;;  %v2060_v15 = vadd.f32 %v4263_v32, %v1831_v39  ;;  %2503 = vst [vmem:[%s6022_s3 + $0x100] sm:$0xff] %v2278_v43  ;;  %2504 = vst [vmem:[%s6022_s3 + $0x108] sm:$0xff] %v2279_v28  ;;  %v1832_v45 = vmul.f32 %v4227_v5, %v1603_v34  ;;  %v1833_v52 = vmul.f32 %v4227_v5, %v1604_v40  ;;  %v1619_v36 = vld [vmem:[%s6022_s3 + $0x1c0] sm:$0xff]  ;;  %v1621_v43 = vld [vmem:[%s6022_s3 + $0x1d0] sm:$0xff] }
 0x28a   : > { %2505 = vst [vmem:[%s6022_s3 + $0x110] sm:$0xff] %v2280_v46  ;;  %2506 = vst [vmem:[%s6022_s3 + $0x118] sm:$0xff] %v2281_v47  ;;  %v1834_v53 = vmul.f32 %v4227_v5, %v1605_v41  ;;  %v1835_v54 = vmul.f32 %v4227_v5, %v1606_v38  ;;  %v2284_v4 = vmax.f32 %v2059_v44, 0.0  ;;  %v1836_v11 = vmul.f32 %v4227_v5, %v1607_v7  ;;  %v1620_v38 = vld [vmem:[%s6022_s3 + $0x1c8] sm:$0xff]  ;;  %v1622_v28 = vld [vmem:[%s6022_s3 + $0x1d8] sm:$0xff] }
 0x28b   : > { %2507 = vst [vmem:[%s6022_s3 + $0x120] sm:$0xff] %v2282_v49  ;;  %2508 = vst [vmem:[%s6022_s3 + $0x128] sm:$0xff] %v2283_v33  ;;  %v2285_v50 = vmax.f32 %v2060_v15, 0.0  ;;  %v1837_v58 = vmul.f32 %v4227_v5, %v1608_v48  ;;  %v2061_v57 = vadd.f32 %v4263_v32, %v1832_v45  ;;  %v2062_v60 = vadd.f32 %v4263_v32, %v1833_v52  ;;  %v1623_v49 = vld [vmem:[%s6022_s3 + $0x1e0] sm:$0xff]  ;;  %v1624_v33 = vld [vmem:[%s6022_s3 + $0x1e8] sm:$0xff] }
 0x28c   : > { %v2063_v61 = vadd.f32 %v4263_v32, %v1834_v53  ;;  %v2064_v17 = vadd.f32 %v4263_v32, %v1835_v54  ;;  %2509 = vst [vmem:[%s6022_s3 + $0x130] sm:$0xff] %v2284_v4  ;;  %v2065_v51 = vadd.f32 %v4263_v32, %v1836_v11  ;;  %v1838_v9 = vmul.f32 %v4227_v5, %v1609_v55  ;;  %v1625_v4 = vld [vmem:[%s6022_s3 + $0x1f0] sm:$0xff] }
 0x28d   : > { %2510 = vst [vmem:[%s6022_s3 + $0x138] sm:$0xff] %v2285_v50  ;;  %v2066_v63 = vadd.f32 %v4263_v32, %v1837_v58  ;;  %v1839_v0 = vmul.f32 %v4227_v5, %v1610_v56  ;;  %v2286_v2 = vmax.f32 %v2061_v57, 0.0  ;;  %v2287_v59 = vmax.f32 %v2062_v60, 0.0  ;;  %v1626_v50 = vld [vmem:[%s6022_s3 + $0x1f8] sm:$0xff] }
 0x28e   : > { %v2288_v14 = vmax.f32 %v2063_v61, 0.0  ;;  %v2289_v42 = vmax.f32 %v2064_v17, 0.0  ;;  %v2290_v8 = vmax.f32 %v2065_v51, 0.0  ;;  %v2067_v62 = vadd.f32 %v4263_v32, %v1838_v9 }
 0x28f   : > { %v2291_v10 = vmax.f32 %v2066_v63, 0.0  ;;  %v2068_v12 = vadd.f32 %v4263_v32, %v1839_v0  ;;  %2511 = vst [vmem:[%s6022_s3 + $0x140] sm:$0xff] %v2286_v2  ;;  %2512 = vst [vmem:[%s6022_s3 + $0x148] sm:$0xff] %v2287_v59  ;;  %v1840_v16 = vmul.f32 %v4227_v5, %v1611_v35  ;;  %v1841_v24 = vmul.f32 %v4227_v5, %v1612_v6  ;;  %v1627_v63 = vld [vmem:[%s6022_s3 + $0x200] sm:$0xff]  ;;  %v1629_v2 = vld [vmem:[%s6022_s3 + $0x210] sm:$0xff] }
 0x290   : > { %2513 = vst [vmem:[%s6022_s3 + $0x150] sm:$0xff] %v2288_v14  ;;  %2514 = vst [vmem:[%s6022_s3 + $0x158] sm:$0xff] %v2289_v42  ;;  %v1842_v25 = vmul.f32 %v4227_v5, %v1613_v20  ;;  %v1843_v19 = vmul.f32 %v4227_v5, %v1614_v1  ;;  %v2292_v3 = vmax.f32 %v2067_v62, 0.0  ;;  %v1844_v27 = vmul.f32 %v4227_v5, %v1615_v23  ;;  %v1628_v1 = vld [vmem:[%s6022_s3 + $0x208] sm:$0xff]  ;;  %v1630_v59 = vld [vmem:[%s6022_s3 + $0x218] sm:$0xff] }
 0x291   : > { %2515 = vst [vmem:[%s6022_s3 + $0x160] sm:$0xff] %v2290_v8  ;;  %2516 = vst [vmem:[%s6022_s3 + $0x168] sm:$0xff] %v2291_v10  ;;  %v2293_v37 = vmax.f32 %v2068_v12, 0.0  ;;  %v1845_v26 = vmul.f32 %v4227_v5, %v1616_v13  ;;  %v2069_v29 = vadd.f32 %v4263_v32, %v1840_v16  ;;  %v2070_v31 = vadd.f32 %v4263_v32, %v1841_v24  ;;  %v1631_v8 = vld [vmem:[%s6022_s3 + $0x220] sm:$0xff]  ;;  %v1632_v10 = vld [vmem:[%s6022_s3 + $0x228] sm:$0xff] }
 0x292   : > { %v2071_v34 = vadd.f32 %v4263_v32, %v1842_v25  ;;  %v2072_v21 = vadd.f32 %v4263_v32, %v1843_v19  ;;  %2517 = vst [vmem:[%s6022_s3 + $0x170] sm:$0xff] %v2292_v3  ;;  %v2073_v30 = vadd.f32 %v4263_v32, %v1844_v27  ;;  %v1846_v40 = vmul.f32 %v4227_v5, %v1617_v18  ;;  %v1633_v3 = vld [vmem:[%s6022_s3 + $0x230] sm:$0xff] }
 0x293   : > { %2518 = vst [vmem:[%s6022_s3 + $0x178] sm:$0xff] %v2293_v37  ;;  %v2074_v39 = vadd.f32 %v4263_v32, %v1845_v26  ;;  %v1847_v41 = vmul.f32 %v4227_v5, %v1618_v22  ;;  %v2294_v46 = vmax.f32 %v2069_v29, 0.0  ;;  %v2295_v47 = vmax.f32 %v2070_v31, 0.0  ;;  %v1634_v37 = vld [vmem:[%s6022_s3 + $0x238] sm:$0xff] }
 0x294   : > { %v2296_v7 = vmax.f32 %v2071_v34, 0.0  ;;  %v2297_v48 = vmax.f32 %v2072_v21, 0.0  ;;  %v2298_v44 = vmax.f32 %v2073_v30, 0.0  ;;  %v2075_v45 = vadd.f32 %v4263_v32, %v1846_v40 }
 0x295   : > { %v2299_v15 = vmax.f32 %v2074_v39, 0.0  ;;  %v2076_v52 = vadd.f32 %v4263_v32, %v1847_v41  ;;  %2519 = vst [vmem:[%s6022_s3 + $0x180] sm:$0xff] %v2294_v46  ;;  %2520 = vst [vmem:[%s6022_s3 + $0x188] sm:$0xff] %v2295_v47  ;;  %v1848_v53 = vmul.f32 %v4227_v5, %v1619_v36  ;;  %v1849_v54 = vmul.f32 %v4227_v5, %v1620_v38  ;;  %v1635_v39 = vld [vmem:[%s6022_s3 + $0x240] sm:$0xff]  ;;  %v1637_v46 = vld [vmem:[%s6022_s3 + $0x250] sm:$0xff] }
 0x296   : > { %2521 = vst [vmem:[%s6022_s3 + $0x190] sm:$0xff] %v2296_v7  ;;  %2522 = vst [vmem:[%s6022_s3 + $0x198] sm:$0xff] %v2297_v48  ;;  %v1850_v55 = vmul.f32 %v4227_v5, %v1621_v43  ;;  %v1851_v56 = vmul.f32 %v4227_v5, %v1622_v28  ;;  %v2300_v11 = vmax.f32 %v2075_v45, 0.0  ;;  %v1852_v57 = vmul.f32 %v4227_v5, %v1623_v49  ;;  %v1636_v28 = vld [vmem:[%s6022_s3 + $0x248] sm:$0xff]  ;;  %v1638_v47 = vld [vmem:[%s6022_s3 + $0x258] sm:$0xff] }
 0x297   : > { %2523 = vst [vmem:[%s6022_s3 + $0x1a0] sm:$0xff] %v2298_v44  ;;  %2524 = vst [vmem:[%s6022_s3 + $0x1a8] sm:$0xff] %v2299_v15  ;;  %v2301_v58 = vmax.f32 %v2076_v52, 0.0  ;;  %v1853_v60 = vmul.f32 %v4227_v5, %v1624_v33  ;;  %v2077_v61 = vadd.f32 %v4263_v32, %v1848_v53  ;;  %v2078_v17 = vadd.f32 %v4263_v32, %v1849_v54  ;;  %v1639_v44 = vld [vmem:[%s6022_s3 + $0x260] sm:$0xff]  ;;  %v1640_v15 = vld [vmem:[%s6022_s3 + $0x268] sm:$0xff] }
 0x298   : > { %v2079_v35 = vadd.f32 %v4263_v32, %v1850_v55  ;;  %v2080_v51 = vadd.f32 %v4263_v32, %v1851_v56  ;;  %2525 = vst [vmem:[%s6022_s3 + $0x1b0] sm:$0xff] %v2300_v11  ;;  %v2081_v9 = vadd.f32 %v4263_v32, %v1852_v57  ;;  %v1854_v6 = vmul.f32 %v4227_v5, %v1625_v4  ;;  %v1641_v11 = vld [vmem:[%s6022_s3 + $0x270] sm:$0xff] }
 0x299   : > { %2526 = vst [vmem:[%s6022_s3 + $0x1b8] sm:$0xff] %v2301_v58  ;;  %v2082_v0 = vadd.f32 %v4263_v32, %v1853_v60  ;;  %v1855_v20 = vmul.f32 %v4227_v5, %v1626_v50  ;;  %v2302_v14 = vmax.f32 %v2077_v61, 0.0  ;;  %v2303_v42 = vmax.f32 %v2078_v17, 0.0  ;;  %v1642_v58 = vld [vmem:[%s6022_s3 + $0x278] sm:$0xff] }
 0x29a   : > { %v2304_v23 = vmax.f32 %v2079_v35, 0.0  ;;  %v2305_v13 = vmax.f32 %v2080_v51, 0.0  ;;  %v2306_v62 = vmax.f32 %v2081_v9, 0.0  ;;  %v2083_v16 = vadd.f32 %v4263_v32, %v1854_v6 }
 0x29b   : > { %v2307_v12 = vmax.f32 %v2082_v0, 0.0  ;;  %v2084_v24 = vadd.f32 %v4263_v32, %v1855_v20  ;;  %2527 = vst [vmem:[%s6022_s3 + $0x1c0] sm:$0xff] %v2302_v14  ;;  %2528 = vst [vmem:[%s6022_s3 + $0x1c8] sm:$0xff] %v2303_v42  ;;  %v1856_v25 = vmul.f32 %v4227_v5, %v1627_v63  ;;  %v1857_v19 = vmul.f32 %v4227_v5, %v1628_v1  ;;  %v1643_v0 = vld [vmem:[%s6022_s3 + $0x280] sm:$0xff]  ;;  %v1645_v14 = vld [vmem:[%s6022_s3 + $0x290] sm:$0xff] }
 0x29c   : > { %2529 = vst [vmem:[%s6022_s3 + $0x1d0] sm:$0xff] %v2304_v23  ;;  %2530 = vst [vmem:[%s6022_s3 + $0x1d8] sm:$0xff] %v2305_v13  ;;  %v1858_v18 = vmul.f32 %v4227_v5, %v1629_v2  ;;  %v1859_v22 = vmul.f32 %v4227_v5, %v1630_v59  ;;  %v2308_v27 = vmax.f32 %v2083_v16, 0.0  ;;  %v1860_v29 = vmul.f32 %v4227_v5, %v1631_v8  ;;  %v1644_v59 = vld [vmem:[%s6022_s3 + $0x288] sm:$0xff]  ;;  %v1646_v42 = vld [vmem:[%s6022_s3 + $0x298] sm:$0xff] }
 0x29d   : > { %2531 = vst [vmem:[%s6022_s3 + $0x1e0] sm:$0xff] %v2306_v62  ;;  %2532 = vst [vmem:[%s6022_s3 + $0x1e8] sm:$0xff] %v2307_v12  ;;  %v2309_v26 = vmax.f32 %v2084_v24, 0.0  ;;  %v1861_v31 = vmul.f32 %v4227_v5, %v1632_v10  ;;  %v2085_v34 = vadd.f32 %v4263_v32, %v1856_v25  ;;  %v2086_v21 = vadd.f32 %v4263_v32, %v1857_v19  ;;  %v1647_v62 = vld [vmem:[%s6022_s3 + $0x2a0] sm:$0xff]  ;;  %v1648_v12 = vld [vmem:[%s6022_s3 + $0x2a8] sm:$0xff] }
 0x29e   : > { %v2087_v36 = vadd.f32 %v4263_v32, %v1858_v18  ;;  %v2088_v30 = vadd.f32 %v4263_v32, %v1859_v22  ;;  %2533 = vst [vmem:[%s6022_s3 + $0x1f0] sm:$0xff] %v2308_v27  ;;  %v2089_v40 = vadd.f32 %v4263_v32, %v1860_v29  ;;  %v1862_v38 = vmul.f32 %v4227_v5, %v1633_v3  ;;  %v1649_v27 = vld [vmem:[%s6022_s3 + $0x2b0] sm:$0xff] }
 0x29f   : > { %2534 = vst [vmem:[%s6022_s3 + $0x1f8] sm:$0xff] %v2309_v26  ;;  %v2090_v41 = vadd.f32 %v4263_v32, %v1861_v31  ;;  %v1863_v43 = vmul.f32 %v4227_v5, %v1634_v37  ;;  %v2310_v7 = vmax.f32 %v2085_v34, 0.0  ;;  %v2311_v48 = vmax.f32 %v2086_v21, 0.0  ;;  %v1650_v26 = vld [vmem:[%s6022_s3 + $0x2b8] sm:$0xff] }
 0x2a0   : > { %v2312_v49 = vmax.f32 %v2087_v36, 0.0  ;;  %v2313_v33 = vmax.f32 %v2088_v30, 0.0  ;;  %v2314_v45 = vmax.f32 %v2089_v40, 0.0  ;;  %v2091_v53 = vadd.f32 %v4263_v32, %v1862_v38 }
 0x2a1   : > { %v2315_v52 = vmax.f32 %v2090_v41, 0.0  ;;  %v2092_v54 = vadd.f32 %v4263_v32, %v1863_v43  ;;  %2535 = vst [vmem:[%s6022_s3 + $0x200] sm:$0xff] %v2310_v7  ;;  %2536 = vst [vmem:[%s6022_s3 + $0x208] sm:$0xff] %v2311_v48  ;;  %v1864_v55 = vmul.f32 %v4227_v5, %v1635_v39  ;;  %v1865_v56 = vmul.f32 %v4227_v5, %v1636_v28  ;;  %v1651_v41 = vld [vmem:[%s6022_s3 + $0x2c0] sm:$0xff]  ;;  %v1653_v7 = vld [vmem:[%s6022_s3 + $0x2d0] sm:$0xff] }
 0x2a2   : > { %2537 = vst [vmem:[%s6022_s3 + $0x210] sm:$0xff] %v2312_v49  ;;  %2538 = vst [vmem:[%s6022_s3 + $0x218] sm:$0xff] %v2313_v33  ;;  %v1866_v4 = vmul.f32 %v4227_v5, %v1637_v46  ;;  %v1867_v50 = vmul.f32 %v4227_v5, %v1638_v47  ;;  %v2316_v57 = vmax.f32 %v2091_v53, 0.0  ;;  %v1868_v61 = vmul.f32 %v4227_v5, %v1639_v44  ;;  %v1652_v47 = vld [vmem:[%s6022_s3 + $0x2c8] sm:$0xff]  ;;  %v1654_v48 = vld [vmem:[%s6022_s3 + $0x2d8] sm:$0xff] }
 0x2a3   : > { %2539 = vst [vmem:[%s6022_s3 + $0x220] sm:$0xff] %v2314_v45  ;;  %2540 = vst [vmem:[%s6022_s3 + $0x228] sm:$0xff] %v2315_v52  ;;  %v2317_v60 = vmax.f32 %v2092_v54, 0.0  ;;  %v1869_v17 = vmul.f32 %v4227_v5, %v1640_v15  ;;  %v2093_v35 = vadd.f32 %v4263_v32, %v1864_v55  ;;  %v2094_v51 = vadd.f32 %v4263_v32, %v1865_v56  ;;  %v1655_v45 = vld [vmem:[%s6022_s3 + $0x2e0] sm:$0xff]  ;;  %v1656_v52 = vld [vmem:[%s6022_s3 + $0x2e8] sm:$0xff] }
 0x2a4   : > { %v2095_v63 = vadd.f32 %v4263_v32, %v1866_v4  ;;  %v2096_v9 = vadd.f32 %v4263_v32, %v1867_v50  ;;  %2541 = vst [vmem:[%s6022_s3 + $0x230] sm:$0xff] %v2316_v57  ;;  %v2097_v6 = vadd.f32 %v4263_v32, %v1868_v61  ;;  %v1870_v1 = vmul.f32 %v4227_v5, %v1641_v11  ;;  %v1657_v57 = vld [vmem:[%s6022_s3 + $0x2f0] sm:$0xff] }
 0x2a5   : > { %2542 = vst [vmem:[%s6022_s3 + $0x238] sm:$0xff] %v2317_v60  ;;  %v2098_v20 = vadd.f32 %v4263_v32, %v1869_v17  ;;  %v1871_v2 = vmul.f32 %v4227_v5, %v1642_v58  ;;  %v2318_v23 = vmax.f32 %v2093_v35, 0.0  ;;  %v2319_v13 = vmax.f32 %v2094_v51, 0.0  ;;  %v1658_v60 = vld [vmem:[%s6022_s3 + $0x2f8] sm:$0xff] }
 0x2a6   : > { %v2320_v8 = vmax.f32 %v2095_v63, 0.0  ;;  %v2321_v10 = vmax.f32 %v2096_v9, 0.0  ;;  %v2322_v16 = vmax.f32 %v2097_v6, 0.0  ;;  %v2099_v25 = vadd.f32 %v4263_v32, %v1870_v1 }
 0x2a7   : > { %v2323_v24 = vmax.f32 %v2098_v20, 0.0  ;;  %v2100_v19 = vadd.f32 %v4263_v32, %v1871_v2  ;;  %2543 = vst [vmem:[%s6022_s3 + $0x240] sm:$0xff] %v2318_v23  ;;  %2544 = vst [vmem:[%s6022_s3 + $0x248] sm:$0xff] %v2319_v13  ;;  %v1872_v18 = vmul.f32 %v4227_v5, %v1643_v0  ;;  %v1873_v22 = vmul.f32 %v4227_v5, %v1644_v59  ;;  %v1659_v20 = vld [vmem:[%s6022_s3 + $0x300] sm:$0xff]  ;;  %v1661_v23 = vld [vmem:[%s6022_s3 + $0x310] sm:$0xff] }
 0x2a8   : > { %2545 = vst [vmem:[%s6022_s3 + $0x250] sm:$0xff] %v2320_v8  ;;  %2546 = vst [vmem:[%s6022_s3 + $0x258] sm:$0xff] %v2321_v10  ;;  %v1874_v3 = vmul.f32 %v4227_v5, %v1645_v14  ;;  %v1875_v37 = vmul.f32 %v4227_v5, %v1646_v42  ;;  %v2324_v29 = vmax.f32 %v2099_v25, 0.0  ;;  %v1876_v34 = vmul.f32 %v4227_v5, %v1647_v62  ;;  %v1660_v42 = vld [vmem:[%s6022_s3 + $0x308] sm:$0xff]  ;;  %v1662_v13 = vld [vmem:[%s6022_s3 + $0x318] sm:$0xff] }
 0x2a9   : > { %2547 = vst [vmem:[%s6022_s3 + $0x260] sm:$0xff] %v2322_v16  ;;  %2548 = vst [vmem:[%s6022_s3 + $0x268] sm:$0xff] %v2323_v24  ;;  %v2325_v31 = vmax.f32 %v2100_v19, 0.0  ;;  %v1877_v21 = vmul.f32 %v4227_v5, %v1648_v12  ;;  %v2101_v36 = vadd.f32 %v4263_v32, %v1872_v18  ;;  %v2102_v30 = vadd.f32 %v4263_v32, %v1873_v22  ;;  %v1663_v16 = vld [vmem:[%s6022_s3 + $0x320] sm:$0xff]  ;;  %v1664_v24 = vld [vmem:[%s6022_s3 + $0x328] sm:$0xff] }
 0x2aa   : > { %v2103_v39 = vadd.f32 %v4263_v32, %v1874_v3  ;;  %v2104_v40 = vadd.f32 %v4263_v32, %v1875_v37  ;;  %2549 = vst [vmem:[%s6022_s3 + $0x270] sm:$0xff] %v2324_v29  ;;  %v2105_v38 = vadd.f32 %v4263_v32, %v1876_v34  ;;  %v1878_v28 = vmul.f32 %v4227_v5, %v1649_v27  ;;  %v1665_v29 = vld [vmem:[%s6022_s3 + $0x330] sm:$0xff] }
 0x2ab   : > { %2550 = vst [vmem:[%s6022_s3 + $0x278] sm:$0xff] %v2325_v31  ;;  %v2106_v43 = vadd.f32 %v4263_v32, %v1877_v21  ;;  %v1879_v46 = vmul.f32 %v4227_v5, %v1650_v26  ;;  %v2326_v49 = vmax.f32 %v2101_v36, 0.0  ;;  %v2327_v33 = vmax.f32 %v2102_v30, 0.0  ;;  %v1666_v31 = vld [vmem:[%s6022_s3 + $0x338] sm:$0xff] }
 0x2ac   : > { %v2328_v44 = vmax.f32 %v2103_v39, 0.0  ;;  %v2329_v15 = vmax.f32 %v2104_v40, 0.0  ;;  %v2330_v53 = vmax.f32 %v2105_v38, 0.0  ;;  %v2107_v55 = vadd.f32 %v4263_v32, %v1878_v28 }
 0x2ad   : > { %v2331_v54 = vmax.f32 %v2106_v43, 0.0  ;;  %v2108_v56 = vadd.f32 %v4263_v32, %v1879_v46  ;;  %2551 = vst [vmem:[%s6022_s3 + $0x280] sm:$0xff] %v2326_v49  ;;  %2552 = vst [vmem:[%s6022_s3 + $0x288] sm:$0xff] %v2327_v33  ;;  %v1880_v4 = vmul.f32 %v4227_v5, %v1651_v41  ;;  %v1881_v50 = vmul.f32 %v4227_v5, %v1652_v47  ;;  %v1667_v43 = vld [vmem:[%s6022_s3 + $0x340] sm:$0xff]  ;;  %v1669_v49 = vld [vmem:[%s6022_s3 + $0x350] sm:$0xff] }
 0x2ae   : > { %2553 = vst [vmem:[%s6022_s3 + $0x290] sm:$0xff] %v2328_v44  ;;  %2554 = vst [vmem:[%s6022_s3 + $0x298] sm:$0xff] %v2329_v15  ;;  %v1882_v11 = vmul.f32 %v4227_v5, %v1653_v7  ;;  %v1883_v58 = vmul.f32 %v4227_v5, %v1654_v48  ;;  %v2332_v61 = vmax.f32 %v2107_v55, 0.0  ;;  %v1884_v35 = vmul.f32 %v4227_v5, %v1655_v45  ;;  %v1668_v48 = vld [vmem:[%s6022_s3 + $0x348] sm:$0xff]  ;;  %v1670_v33 = vld [vmem:[%s6022_s3 + $0x358] sm:$0xff] }
 0x2af   : > { %2555 = vst [vmem:[%s6022_s3 + $0x2a0] sm:$0xff] %v2330_v53  ;;  %2556 = vst [vmem:[%s6022_s3 + $0x2a8] sm:$0xff] %v2331_v54  ;;  %v2333_v17 = vmax.f32 %v2108_v56, 0.0  ;;  %v1885_v51 = vmul.f32 %v4227_v5, %v1656_v52  ;;  %v2109_v63 = vadd.f32 %v4263_v32, %v1880_v4  ;;  %v2110_v9 = vadd.f32 %v4263_v32, %v1881_v50  ;;  %v1671_v53 = vld [vmem:[%s6022_s3 + $0x360] sm:$0xff]  ;;  %v1672_v54 = vld [vmem:[%s6022_s3 + $0x368] sm:$0xff] }
 0x2b0   : > { %v2111_v0 = vadd.f32 %v4263_v32, %v1882_v11  ;;  %v2112_v6 = vadd.f32 %v4263_v32, %v1883_v58  ;;  %2557 = vst [vmem:[%s6022_s3 + $0x2b0] sm:$0xff] %v2332_v61  ;;  %v2113_v1 = vadd.f32 %v4263_v32, %v1884_v35  ;;  %v1886_v59 = vmul.f32 %v4227_v5, %v1657_v57  ;;  %v1673_v61 = vld [vmem:[%s6022_s3 + $0x370] sm:$0xff] }
 0x2b1   : > { %2558 = vst [vmem:[%s6022_s3 + $0x2b8] sm:$0xff] %v2333_v17  ;;  %v2114_v2 = vadd.f32 %v4263_v32, %v1885_v51  ;;  %v1887_v14 = vmul.f32 %v4227_v5, %v1658_v60  ;;  %v2334_v8 = vmax.f32 %v2109_v63, 0.0  ;;  %v2335_v10 = vmax.f32 %v2110_v9, 0.0  ;;  %v1674_v17 = vld [vmem:[%s6022_s3 + $0x378] sm:$0xff] }
 0x2b2   : > { %v2336_v62 = vmax.f32 %v2111_v0, 0.0  ;;  %v2337_v12 = vmax.f32 %v2112_v6, 0.0  ;;  %v2338_v25 = vmax.f32 %v2113_v1, 0.0  ;;  %v2115_v18 = vadd.f32 %v4263_v32, %v1886_v59 }
 0x2b3   : > { %v2339_v19 = vmax.f32 %v2114_v2, 0.0  ;;  %v2116_v22 = vadd.f32 %v4263_v32, %v1887_v14  ;;  %2559 = vst [vmem:[%s6022_s3 + $0x2c0] sm:$0xff] %v2334_v8  ;;  %2560 = vst [vmem:[%s6022_s3 + $0x2c8] sm:$0xff] %v2335_v10  ;;  %v1888_v3 = vmul.f32 %v4227_v5, %v1659_v20  ;;  %v1889_v37 = vmul.f32 %v4227_v5, %v1660_v42  ;;  %v1675_v2 = vld [vmem:[%s6022_s3 + $0x380] sm:$0xff]  ;;  %v1677_v8 = vld [vmem:[%s6022_s3 + $0x390] sm:$0xff] }
 0x2b4   : > { %2561 = vst [vmem:[%s6022_s3 + $0x2d0] sm:$0xff] %v2336_v62  ;;  %2562 = vst [vmem:[%s6022_s3 + $0x2d8] sm:$0xff] %v2337_v12  ;;  %v1890_v27 = vmul.f32 %v4227_v5, %v1661_v23  ;;  %v1891_v26 = vmul.f32 %v4227_v5, %v1662_v13  ;;  %v2340_v34 = vmax.f32 %v2115_v18, 0.0  ;;  %v1892_v36 = vmul.f32 %v4227_v5, %v1663_v16  ;;  %v1676_v13 = vld [vmem:[%s6022_s3 + $0x388] sm:$0xff]  ;;  %v1678_v10 = vld [vmem:[%s6022_s3 + $0x398] sm:$0xff] }
 0x2b5   : > { %2563 = vst [vmem:[%s6022_s3 + $0x2e0] sm:$0xff] %v2338_v25  ;;  %2564 = vst [vmem:[%s6022_s3 + $0x2e8] sm:$0xff] %v2339_v19  ;;  %v2341_v21 = vmax.f32 %v2116_v22, 0.0  ;;  %v1893_v30 = vmul.f32 %v4227_v5, %v1664_v24  ;;  %v2117_v39 = vadd.f32 %v4263_v32, %v1888_v3  ;;  %v2118_v40 = vadd.f32 %v4263_v32, %v1889_v37  ;;  %v1679_v25 = vld [vmem:[%s6022_s3 + $0x3a0] sm:$0xff]  ;;  %v1680_v19 = vld [vmem:[%s6022_s3 + $0x3a8] sm:$0xff] }
 0x2b6   : > { %v2119_v41 = vadd.f32 %v4263_v32, %v1890_v27  ;;  %v2120_v38 = vadd.f32 %v4263_v32, %v1891_v26  ;;  %2565 = vst [vmem:[%s6022_s3 + $0x2f0] sm:$0xff] %v2340_v34  ;;  %v2121_v28 = vadd.f32 %v4263_v32, %v1892_v36  ;;  %v1894_v47 = vmul.f32 %v4227_v5, %v1665_v29  ;;  %v1681_v34 = vld [vmem:[%s6022_s3 + $0x3b0] sm:$0xff] }
 0x2b7   : > { %2566 = vst [vmem:[%s6022_s3 + $0x2f8] sm:$0xff] %v2341_v21  ;;  %v2122_v46 = vadd.f32 %v4263_v32, %v1893_v30  ;;  %v1895_v7 = vmul.f32 %v4227_v5, %v1666_v31  ;;  %v2342_v44 = vmax.f32 %v2117_v39, 0.0  ;;  %v2343_v15 = vmax.f32 %v2118_v40, 0.0  ;;  %v1682_v21 = vld [vmem:[%s6022_s3 + $0x3b8] sm:$0xff] }
 0x2b8   : > { %v2344_v45 = vmax.f32 %v2119_v41, 0.0  ;;  %v2345_v52 = vmax.f32 %v2120_v38, 0.0  ;;  %v2346_v55 = vmax.f32 %v2121_v28, 0.0  ;;  %v2123_v4 = vadd.f32 %v4263_v32, %v1894_v47 }
 0x2b9   : > { %v2347_v56 = vmax.f32 %v2122_v46, 0.0  ;;  %v2124_v50 = vadd.f32 %v4263_v32, %v1895_v7  ;;  %2567 = vst [vmem:[%s6022_s3 + $0x300] sm:$0xff] %v2342_v44  ;;  %2568 = vst [vmem:[%s6022_s3 + $0x308] sm:$0xff] %v2343_v15  ;;  %v1896_v11 = vmul.f32 %v4227_v5, %v1667_v43  ;;  %v1897_v58 = vmul.f32 %v4227_v5, %v1668_v48  ;;  %v1683_v46 = vld [vmem:[%s6022_s3 + $0x3c0] sm:$0xff]  ;;  %v1685_v44 = vld [vmem:[%s6022_s3 + $0x3d0] sm:$0xff] }
 0x2ba   : > { %2569 = vst [vmem:[%s6022_s3 + $0x310] sm:$0xff] %v2344_v45  ;;  %2570 = vst [vmem:[%s6022_s3 + $0x318] sm:$0xff] %v2345_v52  ;;  %v1898_v57 = vmul.f32 %v4227_v5, %v1669_v49  ;;  %v1899_v60 = vmul.f32 %v4227_v5, %v1670_v33  ;;  %v2348_v35 = vmax.f32 %v2123_v4, 0.0  ;;  %v1900_v63 = vmul.f32 %v4227_v5, %v1671_v53  ;;  %v1684_v33 = vld [vmem:[%s6022_s3 + $0x3c8] sm:$0xff]  ;;  %v1686_v15 = vld [vmem:[%s6022_s3 + $0x3d8] sm:$0xff] }
 0x2bb   : > { %2571 = vst [vmem:[%s6022_s3 + $0x320] sm:$0xff] %v2346_v55  ;;  %2572 = vst [vmem:[%s6022_s3 + $0x328] sm:$0xff] %v2347_v56  ;;  %v2349_v51 = vmax.f32 %v2124_v50, 0.0  ;;  %v1901_v9 = vmul.f32 %v4227_v5, %v1672_v54  ;;  %v2125_v0 = vadd.f32 %v4263_v32, %v1896_v11  ;;  %v2126_v6 = vadd.f32 %v4263_v32, %v1897_v58  ;;  %v1687_v55 = vld [vmem:[%s6022_s3 + $0x3e0] sm:$0xff]  ;;  %v1688_v56 = vld [vmem:[%s6022_s3 + $0x3e8] sm:$0xff] }
 0x2bc   : > { %v2127_v20 = vadd.f32 %v4263_v32, %v1898_v57  ;;  %v2128_v1 = vadd.f32 %v4263_v32, %v1899_v60  ;;  %2573 = vst [vmem:[%s6022_s3 + $0x330] sm:$0xff] %v2348_v35  ;;  %v2129_v59 = vadd.f32 %v4263_v32, %v1900_v63  ;;  %v1902_v42 = vmul.f32 %v4227_v5, %v1673_v61  ;;  %v1689_v35 = vld [vmem:[%s6022_s3 + $0x3f0] sm:$0xff] }
 0x2bd   : > { %2574 = vst [vmem:[%s6022_s3 + $0x338] sm:$0xff] %v2349_v51  ;;  %v2130_v14 = vadd.f32 %v4263_v32, %v1901_v9  ;;  %v1903_v23 = vmul.f32 %v4227_v5, %v1674_v17  ;;  %v2350_v62 = vmax.f32 %v2125_v0, 0.0  ;;  %v2351_v12 = vmax.f32 %v2126_v6, 0.0  ;;  %v1690_v51 = vld [vmem:[%s6022_s3 + $0x3f8] sm:$0xff] }
 0x2be   : > { %v2352_v16 = vmax.f32 %v2127_v20, 0.0  ;;  %v2353_v24 = vmax.f32 %v2128_v1, 0.0  ;;  %v2354_v18 = vmax.f32 %v2129_v59, 0.0  ;;  %v2131_v3 = vadd.f32 %v4263_v32, %v1902_v42 }
 0x2bf   : > { %v2355_v22 = vmax.f32 %v2130_v14, 0.0  ;;  %v2132_v37 = vadd.f32 %v4263_v32, %v1903_v23  ;;  %2575 = vst [vmem:[%s6022_s3 + $0x340] sm:$0xff] %v2350_v62  ;;  %2576 = vst [vmem:[%s6022_s3 + $0x348] sm:$0xff] %v2351_v12  ;;  %v1904_v27 = vmul.f32 %v4227_v5, %v1675_v2  ;;  %v1905_v26 = vmul.f32 %v4227_v5, %v1676_v13  ;;  %v1691_v14 = vld [vmem:[%s6022_s3 + $0x400] sm:$0xff]  ;;  %v1693_v62 = vld [vmem:[%s6022_s3 + $0x410] sm:$0xff] }
 0x2c0   : > { %2577 = vst [vmem:[%s6022_s3 + $0x350] sm:$0xff] %v2352_v16  ;;  %2578 = vst [vmem:[%s6022_s3 + $0x358] sm:$0xff] %v2353_v24  ;;  %v1906_v29 = vmul.f32 %v4227_v5, %v1677_v8  ;;  %v1907_v31 = vmul.f32 %v4227_v5, %v1678_v10  ;;  %v2356_v36 = vmax.f32 %v2131_v3, 0.0  ;;  %v1908_v39 = vmul.f32 %v4227_v5, %v1679_v25  ;;  %v1692_v10 = vld [vmem:[%s6022_s3 + $0x408] sm:$0xff]  ;;  %v1694_v12 = vld [vmem:[%s6022_s3 + $0x418] sm:$0xff] }
 0x2c1   : > { %2579 = vst [vmem:[%s6022_s3 + $0x360] sm:$0xff] %v2354_v18  ;;  %2580 = vst [vmem:[%s6022_s3 + $0x368] sm:$0xff] %v2355_v22  ;;  %v2357_v30 = vmax.f32 %v2132_v37, 0.0  ;;  %v1909_v40 = vmul.f32 %v4227_v5, %v1680_v19  ;;  %v2133_v41 = vadd.f32 %v4263_v32, %v1904_v27  ;;  %v2134_v38 = vadd.f32 %v4263_v32, %v1905_v26  ;;  %v1695_v18 = vld [vmem:[%s6022_s3 + $0x420] sm:$0xff]  ;;  %v1696_v22 = vld [vmem:[%s6022_s3 + $0x428] sm:$0xff] }
 0x2c2   : > { %v2135_v43 = vadd.f32 %v4263_v32, %v1906_v29  ;;  %v2136_v28 = vadd.f32 %v4263_v32, %v1907_v31  ;;  %2581 = vst [vmem:[%s6022_s3 + $0x370] sm:$0xff] %v2356_v36  ;;  %v2137_v47 = vadd.f32 %v4263_v32, %v1908_v39  ;;  %v1910_v48 = vmul.f32 %v4227_v5, %v1681_v34  ;;  %v1697_v36 = vld [vmem:[%s6022_s3 + $0x430] sm:$0xff] }
 0x2c3   : > { %2582 = vst [vmem:[%s6022_s3 + $0x378] sm:$0xff] %v2357_v30  ;;  %v2138_v7 = vadd.f32 %v4263_v32, %v1909_v40  ;;  %v1911_v49 = vmul.f32 %v4227_v5, %v1682_v21  ;;  %v2358_v45 = vmax.f32 %v2133_v41, 0.0  ;;  %v2359_v52 = vmax.f32 %v2134_v38, 0.0  ;;  %v1698_v30 = vld [vmem:[%s6022_s3 + $0x438] sm:$0xff] }
 0x2c4   : > { %v2360_v53 = vmax.f32 %v2135_v43, 0.0  ;;  %v2361_v54 = vmax.f32 %v2136_v28, 0.0  ;;  %v2362_v4 = vmax.f32 %v2137_v47, 0.0  ;;  %v2139_v11 = vadd.f32 %v4263_v32, %v1910_v48 }
 0x2c5   : > { %v2363_v50 = vmax.f32 %v2138_v7, 0.0  ;;  %v2140_v58 = vadd.f32 %v4263_v32, %v1911_v49  ;;  %2583 = vst [vmem:[%s6022_s3 + $0x380] sm:$0xff] %v2358_v45  ;;  %2584 = vst [vmem:[%s6022_s3 + $0x388] sm:$0xff] %v2359_v52  ;;  %v1912_v57 = vmul.f32 %v4227_v5, %v1683_v46  ;;  %v1913_v60 = vmul.f32 %v4227_v5, %v1684_v33  ;;  %v1699_v7 = vld [vmem:[%s6022_s3 + $0x440] sm:$0xff]  ;;  %v1701_v45 = vld [vmem:[%s6022_s3 + $0x450] sm:$0xff] }
 0x2c6   : > { %2585 = vst [vmem:[%s6022_s3 + $0x390] sm:$0xff] %v2360_v53  ;;  %2586 = vst [vmem:[%s6022_s3 + $0x398] sm:$0xff] %v2361_v54  ;;  %v1914_v61 = vmul.f32 %v4227_v5, %v1685_v44  ;;  %v1915_v17 = vmul.f32 %v4227_v5, %v1686_v15  ;;  %v2364_v63 = vmax.f32 %v2139_v11, 0.0  ;;  %v1916_v0 = vmul.f32 %v4227_v5, %v1687_v55  ;;  %v1700_v15 = vld [vmem:[%s6022_s3 + $0x448] sm:$0xff]  ;;  %v1702_v52 = vld [vmem:[%s6022_s3 + $0x458] sm:$0xff] }
 0x2c7   : > { %2587 = vst [vmem:[%s6022_s3 + $0x3a0] sm:$0xff] %v2362_v4  ;;  %2588 = vst [vmem:[%s6022_s3 + $0x3a8] sm:$0xff] %v2363_v50  ;;  %v2365_v9 = vmax.f32 %v2140_v58, 0.0  ;;  %v1917_v6 = vmul.f32 %v4227_v5, %v1688_v56  ;;  %v2141_v20 = vadd.f32 %v4263_v32, %v1912_v57  ;;  %v2142_v1 = vadd.f32 %v4263_v32, %v1913_v60  ;;  %v1703_v4 = vld [vmem:[%s6022_s3 + $0x460] sm:$0xff]  ;;  %v1704_v50 = vld [vmem:[%s6022_s3 + $0x468] sm:$0xff] }
 0x2c8   : > { %v2143_v2 = vadd.f32 %v4263_v32, %v1914_v61  ;;  %v2144_v59 = vadd.f32 %v4263_v32, %v1915_v17  ;;  %2589 = vst [vmem:[%s6022_s3 + $0x3b0] sm:$0xff] %v2364_v63  ;;  %v2145_v42 = vadd.f32 %v4263_v32, %v1916_v0  ;;  %v1918_v13 = vmul.f32 %v4227_v5, %v1689_v35  ;;  %v1705_v63 = vld [vmem:[%s6022_s3 + $0x470] sm:$0xff] }
 0x2c9   : > { %2590 = vst [vmem:[%s6022_s3 + $0x3b8] sm:$0xff] %v2365_v9  ;;  %v2146_v23 = vadd.f32 %v4263_v32, %v1917_v6  ;;  %v1919_v8 = vmul.f32 %v4227_v5, %v1690_v51  ;;  %v2366_v16 = vmax.f32 %v2141_v20, 0.0  ;;  %v2367_v24 = vmax.f32 %v2142_v1, 0.0  ;;  %v1706_v9 = vld [vmem:[%s6022_s3 + $0x478] sm:$0xff] }
 0x2ca   : > { %v2368_v25 = vmax.f32 %v2143_v2, 0.0  ;;  %v2369_v19 = vmax.f32 %v2144_v59, 0.0  ;;  %v2370_v3 = vmax.f32 %v2145_v42, 0.0  ;;  %v2147_v27 = vadd.f32 %v4263_v32, %v1918_v13 }
 0x2cb   : > { %v2371_v37 = vmax.f32 %v2146_v23, 0.0  ;;  %v2148_v26 = vadd.f32 %v4263_v32, %v1919_v8  ;;  %2591 = vst [vmem:[%s6022_s3 + $0x3c0] sm:$0xff] %v2366_v16  ;;  %2592 = vst [vmem:[%s6022_s3 + $0x3c8] sm:$0xff] %v2367_v24  ;;  %v1920_v29 = vmul.f32 %v4227_v5, %v1691_v14  ;;  %v1921_v31 = vmul.f32 %v4227_v5, %v1692_v10  ;;  %v1707_v23 = vld [vmem:[%s6022_s3 + $0x480] sm:$0xff]  ;;  %v1709_v16 = vld [vmem:[%s6022_s3 + $0x490] sm:$0xff] }
 0x2cc   : > { %2593 = vst [vmem:[%s6022_s3 + $0x3d0] sm:$0xff] %v2368_v25  ;;  %2594 = vst [vmem:[%s6022_s3 + $0x3d8] sm:$0xff] %v2369_v19  ;;  %v1922_v34 = vmul.f32 %v4227_v5, %v1693_v62  ;;  %v1923_v21 = vmul.f32 %v4227_v5, %v1694_v12  ;;  %v2372_v39 = vmax.f32 %v2147_v27, 0.0  ;;  %v1924_v41 = vmul.f32 %v4227_v5, %v1695_v18  ;;  %v1708_v12 = vld [vmem:[%s6022_s3 + $0x488] sm:$0xff]  ;;  %v1710_v24 = vld [vmem:[%s6022_s3 + $0x498] sm:$0xff] }
 0x2cd   : > { %2595 = vst [vmem:[%s6022_s3 + $0x3e0] sm:$0xff] %v2370_v3  ;;  %2596 = vst [vmem:[%s6022_s3 + $0x3e8] sm:$0xff] %v2371_v37  ;;  %v2373_v40 = vmax.f32 %v2148_v26, 0.0  ;;  %v1925_v38 = vmul.f32 %v4227_v5, %v1696_v22  ;;  %v2149_v43 = vadd.f32 %v4263_v32, %v1920_v29  ;;  %v2150_v28 = vadd.f32 %v4263_v32, %v1921_v31  ;;  %v1711_v3 = vld [vmem:[%s6022_s3 + $0x4a0] sm:$0xff]  ;;  %v1712_v37 = vld [vmem:[%s6022_s3 + $0x4a8] sm:$0xff] }
 0x2ce   : > { %v2151_v46 = vadd.f32 %v4263_v32, %v1922_v34  ;;  %v2152_v47 = vadd.f32 %v4263_v32, %v1923_v21  ;;  %2597 = vst [vmem:[%s6022_s3 + $0x3f0] sm:$0xff] %v2372_v39  ;;  %v2153_v48 = vadd.f32 %v4263_v32, %v1924_v41  ;;  %v1926_v33 = vmul.f32 %v4227_v5, %v1697_v36  ;;  %v1713_v39 = vld [vmem:[%s6022_s3 + $0x4b0] sm:$0xff] }
 0x2cf   : > { %2598 = vst [vmem:[%s6022_s3 + $0x3f8] sm:$0xff] %v2373_v40  ;;  %v2154_v49 = vadd.f32 %v4263_v32, %v1925_v38  ;;  %v1927_v44 = vmul.f32 %v4227_v5, %v1698_v30  ;;  %v2374_v53 = vmax.f32 %v2149_v43, 0.0  ;;  %v2375_v54 = vmax.f32 %v2150_v28, 0.0  ;;  %v1714_v40 = vld [vmem:[%s6022_s3 + $0x4b8] sm:$0xff] }
 0x2d0   : > { %v2376_v55 = vmax.f32 %v2151_v46, 0.0  ;;  %v2377_v56 = vmax.f32 %v2152_v47, 0.0  ;;  %v2378_v11 = vmax.f32 %v2153_v48, 0.0  ;;  %v2155_v57 = vadd.f32 %v4263_v32, %v1926_v33 }
 0x2d1   : > { %v2379_v58 = vmax.f32 %v2154_v49, 0.0  ;;  %v2156_v60 = vadd.f32 %v4263_v32, %v1927_v44  ;;  %2599 = vst [vmem:[%s6022_s3 + $0x400] sm:$0xff] %v2374_v53  ;;  %2600 = vst [vmem:[%s6022_s3 + $0x408] sm:$0xff] %v2375_v54  ;;  %v1928_v61 = vmul.f32 %v4227_v5, %v1699_v7  ;;  %v1929_v17 = vmul.f32 %v4227_v5, %v1700_v15  ;;  %v1715_v49 = vld [vmem:[%s6022_s3 + $0x4c0] sm:$0xff]  ;;  %v1717_v53 = vld [vmem:[%s6022_s3 + $0x4d0] sm:$0xff] }
 0x2d2   : > { %2601 = vst [vmem:[%s6022_s3 + $0x410] sm:$0xff] %v2376_v55  ;;  %2602 = vst [vmem:[%s6022_s3 + $0x418] sm:$0xff] %v2377_v56  ;;  %v1930_v35 = vmul.f32 %v4227_v5, %v1701_v45  ;;  %v1931_v51 = vmul.f32 %v4227_v5, %v1702_v52  ;;  %v2380_v0 = vmax.f32 %v2155_v57, 0.0  ;;  %v1932_v20 = vmul.f32 %v4227_v5, %v1703_v4  ;;  %v1716_v52 = vld [vmem:[%s6022_s3 + $0x4c8] sm:$0xff]  ;;  %v1718_v54 = vld [vmem:[%s6022_s3 + $0x4d8] sm:$0xff] }
 0x2d3   : > { %2603 = vst [vmem:[%s6022_s3 + $0x420] sm:$0xff] %v2378_v11  ;;  %2604 = vst [vmem:[%s6022_s3 + $0x428] sm:$0xff] %v2379_v58  ;;  %v2381_v6 = vmax.f32 %v2156_v60, 0.0  ;;  %v1933_v1 = vmul.f32 %v4227_v5, %v1704_v50  ;;  %v2157_v2 = vadd.f32 %v4263_v32, %v1928_v61  ;;  %v2158_v59 = vadd.f32 %v4263_v32, %v1929_v17  ;;  %v1719_v11 = vld [vmem:[%s6022_s3 + $0x4e0] sm:$0xff]  ;;  %v1720_v58 = vld [vmem:[%s6022_s3 + $0x4e8] sm:$0xff] }
 0x2d4   : > { %v2159_v14 = vadd.f32 %v4263_v32, %v1930_v35  ;;  %v2160_v42 = vadd.f32 %v4263_v32, %v1931_v51  ;;  %2605 = vst [vmem:[%s6022_s3 + $0x430] sm:$0xff] %v2380_v0  ;;  %v2161_v13 = vadd.f32 %v4263_v32, %v1932_v20  ;;  %v1934_v10 = vmul.f32 %v4227_v5, %v1705_v63  ;;  %v1721_v0 = vld [vmem:[%s6022_s3 + $0x4f0] sm:$0xff] }
 0x2d5   : > { %2606 = vst [vmem:[%s6022_s3 + $0x438] sm:$0xff] %v2381_v6  ;;  %v2162_v8 = vadd.f32 %v4263_v32, %v1933_v1  ;;  %v1935_v62 = vmul.f32 %v4227_v5, %v1706_v9  ;;  %v2382_v25 = vmax.f32 %v2157_v2, 0.0  ;;  %v2383_v19 = vmax.f32 %v2158_v59, 0.0  ;;  %v1722_v6 = vld [vmem:[%s6022_s3 + $0x4f8] sm:$0xff] }
 0x2d6   : > { %v2384_v18 = vmax.f32 %v2159_v14, 0.0  ;;  %v2385_v22 = vmax.f32 %v2160_v42, 0.0  ;;  %v2386_v27 = vmax.f32 %v2161_v13, 0.0  ;;  %v2163_v29 = vadd.f32 %v4263_v32, %v1934_v10 }
 0x2d7   : > { %v2387_v26 = vmax.f32 %v2162_v8, 0.0  ;;  %v2164_v31 = vadd.f32 %v4263_v32, %v1935_v62  ;;  %2607 = vst [vmem:[%s6022_s3 + $0x440] sm:$0xff] %v2382_v25  ;;  %2608 = vst [vmem:[%s6022_s3 + $0x448] sm:$0xff] %v2383_v19  ;;  %v1936_v34 = vmul.f32 %v4227_v5, %v1707_v23  ;;  %v1937_v21 = vmul.f32 %v4227_v5, %v1708_v12  ;;  %v1723_v8 = vld [vmem:[%s6022_s3 + $0x500] sm:$0xff]  ;;  %v1725_v25 = vld [vmem:[%s6022_s3 + $0x510] sm:$0xff] }
 0x2d8   : > { %2609 = vst [vmem:[%s6022_s3 + $0x450] sm:$0xff] %v2384_v18  ;;  %2610 = vst [vmem:[%s6022_s3 + $0x458] sm:$0xff] %v2385_v22  ;;  %v1938_v36 = vmul.f32 %v4227_v5, %v1709_v16  ;;  %v1939_v30 = vmul.f32 %v4227_v5, %v1710_v24  ;;  %v2388_v41 = vmax.f32 %v2163_v29, 0.0  ;;  %v1940_v43 = vmul.f32 %v4227_v5, %v1711_v3  ;;  %v1724_v24 = vld [vmem:[%s6022_s3 + $0x508] sm:$0xff]  ;;  %v1726_v19 = vld [vmem:[%s6022_s3 + $0x518] sm:$0xff] }
 0x2d9   : > { %2611 = vst [vmem:[%s6022_s3 + $0x460] sm:$0xff] %v2386_v27  ;;  %2612 = vst [vmem:[%s6022_s3 + $0x468] sm:$0xff] %v2387_v26  ;;  %v2389_v38 = vmax.f32 %v2164_v31, 0.0  ;;  %v1941_v28 = vmul.f32 %v4227_v5, %v1712_v37  ;;  %v2165_v46 = vadd.f32 %v4263_v32, %v1936_v34  ;;  %v2166_v47 = vadd.f32 %v4263_v32, %v1937_v21  ;;  %v1727_v27 = vld [vmem:[%s6022_s3 + $0x520] sm:$0xff]  ;;  %v1728_v26 = vld [vmem:[%s6022_s3 + $0x528] sm:$0xff] }
 0x2da   : > { %v2167_v7 = vadd.f32 %v4263_v32, %v1938_v36  ;;  %v2168_v48 = vadd.f32 %v4263_v32, %v1939_v30  ;;  %2613 = vst [vmem:[%s6022_s3 + $0x470] sm:$0xff] %v2388_v41  ;;  %v2169_v33 = vadd.f32 %v4263_v32, %v1940_v43  ;;  %v1942_v15 = vmul.f32 %v4227_v5, %v1713_v39  ;;  %v1729_v41 = vld [vmem:[%s6022_s3 + $0x530] sm:$0xff] }
 0x2db   : > { %2614 = vst [vmem:[%s6022_s3 + $0x478] sm:$0xff] %v2389_v38  ;;  %v2170_v44 = vadd.f32 %v4263_v32, %v1941_v28  ;;  %v1943_v45 = vmul.f32 %v4227_v5, %v1714_v40  ;;  %v2390_v55 = vmax.f32 %v2165_v46, 0.0  ;;  %v2391_v56 = vmax.f32 %v2166_v47, 0.0  ;;  %v1730_v38 = vld [vmem:[%s6022_s3 + $0x538] sm:$0xff] }
 0x2dc   : > { %v2392_v4 = vmax.f32 %v2167_v7, 0.0  ;;  %v2393_v50 = vmax.f32 %v2168_v48, 0.0  ;;  %v2394_v57 = vmax.f32 %v2169_v33, 0.0  ;;  %v2171_v61 = vadd.f32 %v4263_v32, %v1942_v15 }
 0x2dd   : > { %v2395_v60 = vmax.f32 %v2170_v44, 0.0  ;;  %v2172_v17 = vadd.f32 %v4263_v32, %v1943_v45  ;;  %2615 = vst [vmem:[%s6022_s3 + $0x480] sm:$0xff] %v2390_v55  ;;  %2616 = vst [vmem:[%s6022_s3 + $0x488] sm:$0xff] %v2391_v56  ;;  %v1944_v35 = vmul.f32 %v4227_v5, %v1715_v49  ;;  %v1945_v51 = vmul.f32 %v4227_v5, %v1716_v52  ;;  %v1731_v44 = vld [vmem:[%s6022_s3 + $0x540] sm:$0xff]  ;;  %v1733_v55 = vld [vmem:[%s6022_s3 + $0x550] sm:$0xff] }
 0x2de   : > { %2617 = vst [vmem:[%s6022_s3 + $0x490] sm:$0xff] %v2392_v4  ;;  %2618 = vst [vmem:[%s6022_s3 + $0x498] sm:$0xff] %v2393_v50  ;;  %v1946_v63 = vmul.f32 %v4227_v5, %v1717_v53  ;;  %v1947_v9 = vmul.f32 %v4227_v5, %v1718_v54  ;;  %v2396_v20 = vmax.f32 %v2171_v61, 0.0  ;;  %v1948_v2 = vmul.f32 %v4227_v5, %v1719_v11  ;;  %v1732_v54 = vld [vmem:[%s6022_s3 + $0x548] sm:$0xff]  ;;  %v1734_v56 = vld [vmem:[%s6022_s3 + $0x558] sm:$0xff] }
 0x2df   : > { %2619 = vst [vmem:[%s6022_s3 + $0x4a0] sm:$0xff] %v2394_v57  ;;  %2620 = vst [vmem:[%s6022_s3 + $0x4a8] sm:$0xff] %v2395_v60  ;;  %v2397_v1 = vmax.f32 %v2172_v17, 0.0  ;;  %v1949_v59 = vmul.f32 %v4227_v5, %v1720_v58  ;;  %v2173_v14 = vadd.f32 %v4263_v32, %v1944_v35  ;;  %v2174_v42 = vadd.f32 %v4263_v32, %v1945_v51  ;;  %v1735_v57 = vld [vmem:[%s6022_s3 + $0x560] sm:$0xff]  ;;  %v1736_v60 = vld [vmem:[%s6022_s3 + $0x568] sm:$0xff] }
 0x2e0   : > { %v2175_v23 = vadd.f32 %v4263_v32, %v1946_v63  ;;  %v2176_v13 = vadd.f32 %v4263_v32, %v1947_v9  ;;  %2621 = vst [vmem:[%s6022_s3 + $0x4b0] sm:$0xff] %v2396_v20  ;;  %v2177_v10 = vadd.f32 %v4263_v32, %v1948_v2  ;;  %v1950_v12 = vmul.f32 %v4227_v5, %v1721_v0  ;;  %v1737_v20 = vld [vmem:[%s6022_s3 + $0x570] sm:$0xff] }
 0x2e1   : > { %2622 = vst [vmem:[%s6022_s3 + $0x4b8] sm:$0xff] %v2397_v1  ;;  %v2178_v62 = vadd.f32 %v4263_v32, %v1949_v59  ;;  %v1951_v16 = vmul.f32 %v4227_v5, %v1722_v6  ;;  %v2398_v18 = vmax.f32 %v2173_v14, 0.0  ;;  %v2399_v22 = vmax.f32 %v2174_v42, 0.0  ;;  %v1738_v1 = vld [vmem:[%s6022_s3 + $0x578] sm:$0xff] }
 0x2e2   : > { %v2400_v3 = vmax.f32 %v2175_v23, 0.0  ;;  %v2401_v37 = vmax.f32 %v2176_v13, 0.0  ;;  %v2402_v29 = vmax.f32 %v2177_v10, 0.0  ;;  %v2179_v34 = vadd.f32 %v4263_v32, %v1950_v12 }
 0x2e3   : > { %v2403_v31 = vmax.f32 %v2178_v62, 0.0  ;;  %v2180_v21 = vadd.f32 %v4263_v32, %v1951_v16  ;;  %2623 = vst [vmem:[%s6022_s3 + $0x4c0] sm:$0xff] %v2398_v18  ;;  %2624 = vst [vmem:[%s6022_s3 + $0x4c8] sm:$0xff] %v2399_v22  ;;  %v1952_v36 = vmul.f32 %v4227_v5, %v1723_v8  ;;  %v1953_v30 = vmul.f32 %v4227_v5, %v1724_v24  ;;  %v1739_v62 = vld [vmem:[%s6022_s3 + $0x580] sm:$0xff]  ;;  %v1741_v18 = vld [vmem:[%s6022_s3 + $0x590] sm:$0xff] }
 0x2e4   : > { %2625 = vst [vmem:[%s6022_s3 + $0x4d0] sm:$0xff] %v2400_v3  ;;  %2626 = vst [vmem:[%s6022_s3 + $0x4d8] sm:$0xff] %v2401_v37  ;;  %v1954_v39 = vmul.f32 %v4227_v5, %v1725_v25  ;;  %v1955_v40 = vmul.f32 %v4227_v5, %v1726_v19  ;;  %v2404_v43 = vmax.f32 %v2179_v34, 0.0  ;;  %v1956_v46 = vmul.f32 %v4227_v5, %v1727_v27  ;;  %v1740_v19 = vld [vmem:[%s6022_s3 + $0x588] sm:$0xff]  ;;  %v1742_v22 = vld [vmem:[%s6022_s3 + $0x598] sm:$0xff] }
 0x2e5   : > { %2627 = vst [vmem:[%s6022_s3 + $0x4e0] sm:$0xff] %v2402_v29  ;;  %2628 = vst [vmem:[%s6022_s3 + $0x4e8] sm:$0xff] %v2403_v31  ;;  %v2405_v28 = vmax.f32 %v2180_v21, 0.0  ;;  %v1957_v47 = vmul.f32 %v4227_v5, %v1728_v26  ;;  %v2181_v7 = vadd.f32 %v4263_v32, %v1952_v36  ;;  %v2182_v48 = vadd.f32 %v4263_v32, %v1953_v30  ;;  %v1743_v29 = vld [vmem:[%s6022_s3 + $0x5a0] sm:$0xff]  ;;  %v1744_v31 = vld [vmem:[%s6022_s3 + $0x5a8] sm:$0xff] }
 0x2e6   : > { %v2183_v49 = vadd.f32 %v4263_v32, %v1954_v39  ;;  %v2184_v33 = vadd.f32 %v4263_v32, %v1955_v40  ;;  %2629 = vst [vmem:[%s6022_s3 + $0x4f0] sm:$0xff] %v2404_v43  ;;  %v2185_v15 = vadd.f32 %v4263_v32, %v1956_v46  ;;  %v1958_v52 = vmul.f32 %v4227_v5, %v1729_v41  ;;  %v1745_v43 = vld [vmem:[%s6022_s3 + $0x5b0] sm:$0xff] }
 0x2e7   : > { %2630 = vst [vmem:[%s6022_s3 + $0x4f8] sm:$0xff] %v2405_v28  ;;  %v2186_v45 = vadd.f32 %v4263_v32, %v1957_v47  ;;  %v1959_v53 = vmul.f32 %v4227_v5, %v1730_v38  ;;  %v2406_v4 = vmax.f32 %v2181_v7, 0.0  ;;  %v2407_v50 = vmax.f32 %v2182_v48, 0.0  ;;  %v1746_v28 = vld [vmem:[%s6022_s3 + $0x5b8] sm:$0xff] }
 0x2e8   : > { %v2408_v11 = vmax.f32 %v2183_v49, 0.0  ;;  %v2409_v58 = vmax.f32 %v2184_v33, 0.0  ;;  %v2410_v61 = vmax.f32 %v2185_v15, 0.0  ;;  %v2187_v35 = vadd.f32 %v4263_v32, %v1958_v52 }
 0x2e9   : > { %v2411_v17 = vmax.f32 %v2186_v45, 0.0  ;;  %v2188_v51 = vadd.f32 %v4263_v32, %v1959_v53  ;;  %2631 = vst [vmem:[%s6022_s3 + $0x500] sm:$0xff] %v2406_v4  ;;  %2632 = vst [vmem:[%s6022_s3 + $0x508] sm:$0xff] %v2407_v50  ;;  %v1960_v63 = vmul.f32 %v4227_v5, %v1731_v44  ;;  %v1961_v9 = vmul.f32 %v4227_v5, %v1732_v54  ;;  %v1747_v45 = vld [vmem:[%s6022_s3 + $0x5c0] sm:$0xff]  ;;  %v1749_v4 = vld [vmem:[%s6022_s3 + $0x5d0] sm:$0xff] }
 0x2ea   : > { %2633 = vst [vmem:[%s6022_s3 + $0x510] sm:$0xff] %v2408_v11  ;;  %2634 = vst [vmem:[%s6022_s3 + $0x518] sm:$0xff] %v2409_v58  ;;  %v1962_v0 = vmul.f32 %v4227_v5, %v1733_v55  ;;  %v1963_v6 = vmul.f32 %v4227_v5, %v1734_v56  ;;  %v2412_v2 = vmax.f32 %v2187_v35, 0.0  ;;  %v1964_v14 = vmul.f32 %v4227_v5, %v1735_v57  ;;  %v1748_v56 = vld [vmem:[%s6022_s3 + $0x5c8] sm:$0xff]  ;;  %v1750_v50 = vld [vmem:[%s6022_s3 + $0x5d8] sm:$0xff] }
 0x2eb   : > { %2635 = vst [vmem:[%s6022_s3 + $0x520] sm:$0xff] %v2410_v61  ;;  %2636 = vst [vmem:[%s6022_s3 + $0x528] sm:$0xff] %v2411_v17  ;;  %v2413_v59 = vmax.f32 %v2188_v51, 0.0  ;;  %v1965_v42 = vmul.f32 %v4227_v5, %v1736_v60  ;;  %v2189_v23 = vadd.f32 %v4263_v32, %v1960_v63  ;;  %v2190_v13 = vadd.f32 %v4263_v32, %v1961_v9  ;;  %v1751_v61 = vld [vmem:[%s6022_s3 + $0x5e0] sm:$0xff]  ;;  %v1752_v17 = vld [vmem:[%s6022_s3 + $0x5e8] sm:$0xff] }
 0x2ec   : > { %v2191_v8 = vadd.f32 %v4263_v32, %v1962_v0  ;;  %v2192_v10 = vadd.f32 %v4263_v32, %v1963_v6  ;;  %2637 = vst [vmem:[%s6022_s3 + $0x530] sm:$0xff] %v2412_v2  ;;  %v2193_v12 = vadd.f32 %v4263_v32, %v1964_v14  ;;  %v1966_v24 = vmul.f32 %v4227_v5, %v1737_v20  ;;  %v1753_v2 = vld [vmem:[%s6022_s3 + $0x5f0] sm:$0xff] }
 0x2ed   : > { %2638 = vst [vmem:[%s6022_s3 + $0x538] sm:$0xff] %v2413_v59  ;;  %v2194_v16 = vadd.f32 %v4263_v32, %v1965_v42  ;;  %v1967_v25 = vmul.f32 %v4227_v5, %v1738_v1  ;;  %v2414_v3 = vmax.f32 %v2189_v23, 0.0  ;;  %v2415_v37 = vmax.f32 %v2190_v13, 0.0  ;;  %v1754_v59 = vld [vmem:[%s6022_s3 + $0x5f8] sm:$0xff] }
 0x2ee   : > { %v2416_v27 = vmax.f32 %v2191_v8, 0.0  ;;  %v2417_v26 = vmax.f32 %v2192_v10, 0.0  ;;  %v2418_v34 = vmax.f32 %v2193_v12, 0.0  ;;  %v2195_v36 = vadd.f32 %v4263_v32, %v1966_v24 }
 0x2ef   : > { %v2419_v21 = vmax.f32 %v2194_v16, 0.0  ;;  %v2196_v30 = vadd.f32 %v4263_v32, %v1967_v25  ;;  %2639 = vst [vmem:[%s6022_s3 + $0x540] sm:$0xff] %v2414_v3  ;;  %2640 = vst [vmem:[%s6022_s3 + $0x548] sm:$0xff] %v2415_v37  ;;  %v1968_v39 = vmul.f32 %v4227_v5, %v1739_v62  ;;  %v1969_v40 = vmul.f32 %v4227_v5, %v1740_v19  ;;  %v1755_v16 = vld [vmem:[%s6022_s3 + $0x600] sm:$0xff]  ;;  %v1757_v3 = vld [vmem:[%s6022_s3 + $0x610] sm:$0xff] }
 0x2f0   : > { %2641 = vst [vmem:[%s6022_s3 + $0x550] sm:$0xff] %v2416_v27  ;;  %2642 = vst [vmem:[%s6022_s3 + $0x558] sm:$0xff] %v2417_v26  ;;  %v1970_v41 = vmul.f32 %v4227_v5, %v1741_v18  ;;  %v1971_v38 = vmul.f32 %v4227_v5, %v1742_v22  ;;  %v2420_v46 = vmax.f32 %v2195_v36, 0.0  ;;  %v1972_v7 = vmul.f32 %v4227_v5, %v1743_v29  ;;  %v1756_v22 = vld [vmem:[%s6022_s3 + $0x608] sm:$0xff]  ;;  %v1758_v37 = vld [vmem:[%s6022_s3 + $0x618] sm:$0xff] }
 0x2f1   : > { %2643 = vst [vmem:[%s6022_s3 + $0x560] sm:$0xff] %v2418_v34  ;;  %2644 = vst [vmem:[%s6022_s3 + $0x568] sm:$0xff] %v2419_v21  ;;  %v2421_v47 = vmax.f32 %v2196_v30, 0.0  ;;  %v1973_v48 = vmul.f32 %v4227_v5, %v1744_v31  ;;  %v2197_v49 = vadd.f32 %v4263_v32, %v1968_v39  ;;  %v2198_v33 = vadd.f32 %v4263_v32, %v1969_v40  ;;  %v1759_v34 = vld [vmem:[%s6022_s3 + $0x620] sm:$0xff]  ;;  %v1760_v21 = vld [vmem:[%s6022_s3 + $0x628] sm:$0xff] }
 0x2f2   : > { %v2199_v44 = vadd.f32 %v4263_v32, %v1970_v41  ;;  %v2200_v15 = vadd.f32 %v4263_v32, %v1971_v38  ;;  %2645 = vst [vmem:[%s6022_s3 + $0x570] sm:$0xff] %v2420_v46  ;;  %v2201_v52 = vadd.f32 %v4263_v32, %v1972_v7  ;;  %v1974_v54 = vmul.f32 %v4227_v5, %v1745_v43  ;;  %v1761_v46 = vld [vmem:[%s6022_s3 + $0x630] sm:$0xff] }
 0x2f3   : > { %2646 = vst [vmem:[%s6022_s3 + $0x578] sm:$0xff] %v2421_v47  ;;  %v2202_v53 = vadd.f32 %v4263_v32, %v1973_v48  ;;  %v1975_v55 = vmul.f32 %v4227_v5, %v1746_v28  ;;  %v2422_v11 = vmax.f32 %v2197_v49, 0.0  ;;  %v2423_v58 = vmax.f32 %v2198_v33, 0.0  ;;  %v1762_v47 = vld [vmem:[%s6022_s3 + $0x638] sm:$0xff] }
 0x2f4   : > { %v2424_v57 = vmax.f32 %v2199_v44, 0.0  ;;  %v2425_v60 = vmax.f32 %v2200_v15, 0.0  ;;  %v2426_v35 = vmax.f32 %v2201_v52, 0.0  ;;  %v2203_v63 = vadd.f32 %v4263_v32, %v1974_v54 }
 0x2f5   : > { %v2427_v51 = vmax.f32 %v2202_v53, 0.0  ;;  %v2204_v9 = vadd.f32 %v4263_v32, %v1975_v55  ;;  %2647 = vst [vmem:[%s6022_s3 + $0x580] sm:$0xff] %v2422_v11  ;;  %2648 = vst [vmem:[%s6022_s3 + $0x588] sm:$0xff] %v2423_v58  ;;  %v1976_v0 = vmul.f32 %v4227_v5, %v1747_v45  ;;  %v1977_v6 = vmul.f32 %v4227_v5, %v1748_v56  ;;  %v1763_v53 = vld [vmem:[%s6022_s3 + $0x640] sm:$0xff]  ;;  %v1765_v11 = vld [vmem:[%s6022_s3 + $0x650] sm:$0xff] }
 0x2f6   : > { %2649 = vst [vmem:[%s6022_s3 + $0x590] sm:$0xff] %v2424_v57  ;;  %2650 = vst [vmem:[%s6022_s3 + $0x598] sm:$0xff] %v2425_v60  ;;  %v1978_v20 = vmul.f32 %v4227_v5, %v1749_v4  ;;  %v1979_v1 = vmul.f32 %v4227_v5, %v1750_v50  ;;  %v2428_v14 = vmax.f32 %v2203_v63, 0.0  ;;  %v1980_v23 = vmul.f32 %v4227_v5, %v1751_v61  ;;  %v1764_v50 = vld [vmem:[%s6022_s3 + $0x648] sm:$0xff]  ;;  %v1766_v58 = vld [vmem:[%s6022_s3 + $0x658] sm:$0xff] }
 0x2f7   : > { %2651 = vst [vmem:[%s6022_s3 + $0x5a0] sm:$0xff] %v2426_v35  ;;  %2652 = vst [vmem:[%s6022_s3 + $0x5a8] sm:$0xff] %v2427_v51  ;;  %v2429_v42 = vmax.f32 %v2204_v9, 0.0  ;;  %v1981_v13 = vmul.f32 %v4227_v5, %v1752_v17  ;;  %v2205_v8 = vadd.f32 %v4263_v32, %v1976_v0  ;;  %v2206_v10 = vadd.f32 %v4263_v32, %v1977_v6  ;;  %v1767_v35 = vld [vmem:[%s6022_s3 + $0x660] sm:$0xff]  ;;  %v1768_v51 = vld [vmem:[%s6022_s3 + $0x668] sm:$0xff] }
 0x2f8   : > { %v2207_v62 = vadd.f32 %v4263_v32, %v1978_v20  ;;  %v2208_v12 = vadd.f32 %v4263_v32, %v1979_v1  ;;  %2653 = vst [vmem:[%s6022_s3 + $0x5b0] sm:$0xff] %v2428_v14  ;;  %v2209_v24 = vadd.f32 %v4263_v32, %v1980_v23  ;;  %v1982_v19 = vmul.f32 %v4227_v5, %v1753_v2  ;;  %v1769_v14 = vld [vmem:[%s6022_s3 + $0x670] sm:$0xff] }
 0x2f9   : > { %2654 = vst [vmem:[%s6022_s3 + $0x5b8] sm:$0xff] %v2429_v42  ;;  %v2210_v25 = vadd.f32 %v4263_v32, %v1981_v13  ;;  %v1983_v18 = vmul.f32 %v4227_v5, %v1754_v59  ;;  %v2430_v27 = vmax.f32 %v2205_v8, 0.0  ;;  %v2431_v26 = vmax.f32 %v2206_v10, 0.0  ;;  %v1770_v42 = vld [vmem:[%s6022_s3 + $0x678] sm:$0xff] }
 0x2fa   : > { %v2432_v29 = vmax.f32 %v2207_v62, 0.0  ;;  %v2433_v31 = vmax.f32 %v2208_v12, 0.0  ;;  %v2434_v36 = vmax.f32 %v2209_v24, 0.0  ;;  %v2211_v39 = vadd.f32 %v4263_v32, %v1982_v19 }
 0x2fb   : > { %v2435_v30 = vmax.f32 %v2210_v25, 0.0  ;;  %v2212_v40 = vadd.f32 %v4263_v32, %v1983_v18  ;;  %2655 = vst [vmem:[%s6022_s3 + $0x5c0] sm:$0xff] %v2430_v27  ;;  %2656 = vst [vmem:[%s6022_s3 + $0x5c8] sm:$0xff] %v2431_v26  ;;  %v1984_v41 = vmul.f32 %v4227_v5, %v1755_v16  ;;  %v1985_v38 = vmul.f32 %v4227_v5, %v1756_v22  ;;  %v1771_v25 = vld [vmem:[%s6022_s3 + $0x680] sm:$0xff]  ;;  %v1773_v27 = vld [vmem:[%s6022_s3 + $0x690] sm:$0xff] }
 0x2fc   : > { %2657 = vst [vmem:[%s6022_s3 + $0x5d0] sm:$0xff] %v2432_v29  ;;  %2658 = vst [vmem:[%s6022_s3 + $0x5d8] sm:$0xff] %v2433_v31  ;;  %v1986_v43 = vmul.f32 %v4227_v5, %v1757_v3  ;;  %v1987_v28 = vmul.f32 %v4227_v5, %v1758_v37  ;;  %v2436_v7 = vmax.f32 %v2211_v39, 0.0  ;;  %v1988_v49 = vmul.f32 %v4227_v5, %v1759_v34  ;;  %v1772_v37 = vld [vmem:[%s6022_s3 + $0x688] sm:$0xff]  ;;  %v1774_v26 = vld [vmem:[%s6022_s3 + $0x698] sm:$0xff] }
 0x2fd   : > { %2659 = vst [vmem:[%s6022_s3 + $0x5e0] sm:$0xff] %v2434_v36  ;;  %2660 = vst [vmem:[%s6022_s3 + $0x5e8] sm:$0xff] %v2435_v30  ;;  %v2437_v48 = vmax.f32 %v2212_v40, 0.0  ;;  %v1989_v33 = vmul.f32 %v4227_v5, %v1760_v21  ;;  %v2213_v44 = vadd.f32 %v4263_v32, %v1984_v41  ;;  %v2214_v15 = vadd.f32 %v4263_v32, %v1985_v38  ;;  %v1775_v36 = vld [vmem:[%s6022_s3 + $0x6a0] sm:$0xff]  ;;  %v1776_v30 = vld [vmem:[%s6022_s3 + $0x6a8] sm:$0xff] }
 0x2fe   : > { %v2215_v45 = vadd.f32 %v4263_v32, %v1986_v43  ;;  %v2216_v52 = vadd.f32 %v4263_v32, %v1987_v28  ;;  %2661 = vst [vmem:[%s6022_s3 + $0x5f0] sm:$0xff] %v2436_v7  ;;  %v2217_v54 = vadd.f32 %v4263_v32, %v1988_v49  ;;  %v1990_v56 = vmul.f32 %v4227_v5, %v1761_v46  ;;  %v1777_v7 = vld [vmem:[%s6022_s3 + $0x6b0] sm:$0xff] }
 0x2ff   : > { %2662 = vst [vmem:[%s6022_s3 + $0x5f8] sm:$0xff] %v2437_v48  ;;  %v2218_v55 = vadd.f32 %v4263_v32, %v1989_v33  ;;  %v1991_v4 = vmul.f32 %v4227_v5, %v1762_v47  ;;  %v2438_v57 = vmax.f32 %v2213_v44, 0.0  ;;  %v2439_v60 = vmax.f32 %v2214_v15, 0.0  ;;  %v1778_v48 = vld [vmem:[%s6022_s3 + $0x6b8] sm:$0xff] }
 0x300   : > { %v2440_v61 = vmax.f32 %v2215_v45, 0.0  ;;  %v2441_v17 = vmax.f32 %v2216_v52, 0.0  ;;  %v2442_v63 = vmax.f32 %v2217_v54, 0.0  ;;  %v2219_v0 = vadd.f32 %v4263_v32, %v1990_v56 }
 0x301   : > { %v2443_v9 = vmax.f32 %v2218_v55, 0.0  ;;  %v2220_v6 = vadd.f32 %v4263_v32, %v1991_v4  ;;  %2663 = vst [vmem:[%s6022_s3 + $0x600] sm:$0xff] %v2438_v57  ;;  %2664 = vst [vmem:[%s6022_s3 + $0x608] sm:$0xff] %v2439_v60  ;;  %v1992_v20 = vmul.f32 %v4227_v5, %v1763_v53  ;;  %v1993_v1 = vmul.f32 %v4227_v5, %v1764_v50  ;;  %v1779_v55 = vld [vmem:[%s6022_s3 + $0x6c0] sm:$0xff]  ;;  %v1781_v57 = vld [vmem:[%s6022_s3 + $0x6d0] sm:$0xff] }
 0x302   : > { %2665 = vst [vmem:[%s6022_s3 + $0x610] sm:$0xff] %v2440_v61  ;;  %2666 = vst [vmem:[%s6022_s3 + $0x618] sm:$0xff] %v2441_v17  ;;  %v1994_v2 = vmul.f32 %v4227_v5, %v1765_v11  ;;  %v1995_v59 = vmul.f32 %v4227_v5, %v1766_v58  ;;  %v2444_v23 = vmax.f32 %v2219_v0, 0.0  ;;  %v1996_v8 = vmul.f32 %v4227_v5, %v1767_v35  ;;  %v1780_v58 = vld [vmem:[%s6022_s3 + $0x6c8] sm:$0xff]  ;;  %v1782_v60 = vld [vmem:[%s6022_s3 + $0x6d8] sm:$0xff] }
 0x303   : > { %2667 = vst [vmem:[%s6022_s3 + $0x620] sm:$0xff] %v2442_v63  ;;  %2668 = vst [vmem:[%s6022_s3 + $0x628] sm:$0xff] %v2443_v9  ;;  %v2445_v13 = vmax.f32 %v2220_v6, 0.0  ;;  %v1997_v10 = vmul.f32 %v4227_v5, %v1768_v51  ;;  %v2221_v62 = vadd.f32 %v4263_v32, %v1992_v20  ;;  %v2222_v12 = vadd.f32 %v4263_v32, %v1993_v1  ;;  %v1783_v63 = vld [vmem:[%s6022_s3 + $0x6e0] sm:$0xff]  ;;  %v1784_v9 = vld [vmem:[%s6022_s3 + $0x6e8] sm:$0xff] }
 0x304   : > { %v2223_v16 = vadd.f32 %v4263_v32, %v1994_v2  ;;  %v2224_v24 = vadd.f32 %v4263_v32, %v1995_v59  ;;  %2669 = vst [vmem:[%s6022_s3 + $0x630] sm:$0xff] %v2444_v23  ;;  %v2225_v19 = vadd.f32 %v4263_v32, %v1996_v8  ;;  %v1998_v22 = vmul.f32 %v4227_v5, %v1769_v14  ;;  %v1785_v23 = vld [vmem:[%s6022_s3 + $0x6f0] sm:$0xff] }
 0x305   : > { %2670 = vst [vmem:[%s6022_s3 + $0x638] sm:$0xff] %v2445_v13  ;;  %v2226_v18 = vadd.f32 %v4263_v32, %v1997_v10  ;;  %v1999_v3 = vmul.f32 %v4227_v5, %v1770_v42  ;;  %v2446_v29 = vmax.f32 %v2221_v62, 0.0  ;;  %v2447_v31 = vmax.f32 %v2222_v12, 0.0  ;;  %v1786_v13 = vld [vmem:[%s6022_s3 + $0x6f8] sm:$0xff] }
 0x306   : > { %v2448_v34 = vmax.f32 %v2223_v16, 0.0  ;;  %v2449_v21 = vmax.f32 %v2224_v24, 0.0  ;;  %v2450_v39 = vmax.f32 %v2225_v19, 0.0  ;;  %v2227_v41 = vadd.f32 %v4263_v32, %v1998_v22 }
 0x307   : > { %v2451_v40 = vmax.f32 %v2226_v18, 0.0  ;;  %v2228_v38 = vadd.f32 %v4263_v32, %v1999_v3  ;;  %2671 = vst [vmem:[%s6022_s3 + $0x640] sm:$0xff] %v2446_v29  ;;  %2672 = vst [vmem:[%s6022_s3 + $0x648] sm:$0xff] %v2447_v31  ;;  %v2000_v43 = vmul.f32 %v4227_v5, %v1771_v25  ;;  %v2001_v28 = vmul.f32 %v4227_v5, %v1772_v37 }
 0x308   : > { %2673 = vst [vmem:[%s6022_s3 + $0x650] sm:$0xff] %v2448_v34  ;;  %2674 = vst [vmem:[%s6022_s3 + $0x658] sm:$0xff] %v2449_v21  ;;  %v2002_v46 = vmul.f32 %v4227_v5, %v1773_v27  ;;  %v2003_v47 = vmul.f32 %v4227_v5, %v1774_v26  ;;  %v2452_v49 = vmax.f32 %v2227_v41, 0.0  ;;  %v2004_v44 = vmul.f32 %v4227_v5, %v1775_v36  ;;  %v1787_v27 = vld [vmem:[%s6022_s3 + $0x700] sm:$0xff] }
 0x309   : > { %2675 = vst [vmem:[%s6022_s3 + $0x660] sm:$0xff] %v2450_v39  ;;  %2676 = vst [vmem:[%s6022_s3 + $0x668] sm:$0xff] %v2451_v40  ;;  %v2453_v33 = vmax.f32 %v2228_v38, 0.0  ;;  %v2005_v15 = vmul.f32 %v4227_v5, %v1776_v30  ;;  %v2229_v45 = vadd.f32 %v4263_v32, %v2000_v43  ;;  %v2230_v52 = vadd.f32 %v4263_v32, %v2001_v28 }
 0x30a   : > { %v2231_v53 = vadd.f32 %v4263_v32, %v2002_v46  ;;  %v2232_v54 = vadd.f32 %v4263_v32, %v2003_v47  ;;  %2677 = vst [vmem:[%s6022_s3 + $0x670] sm:$0xff] %v2452_v49  ;;  %v2233_v56 = vadd.f32 %v4263_v32, %v2004_v44  ;;  %v2006_v50 = vmul.f32 %v4227_v5, %v1777_v7 }
 0x30b   : > { %2678 = vst [vmem:[%s6022_s3 + $0x678] sm:$0xff] %v2453_v33  ;;  %v2234_v4 = vadd.f32 %v4263_v32, %v2005_v15  ;;  %v2007_v11 = vmul.f32 %v4227_v5, %v1778_v48  ;;  %v2454_v61 = vmax.f32 %v2229_v45, 0.0  ;;  %v2455_v17 = vmax.f32 %v2230_v52, 0.0 }
 0x30c   : > { %v2456_v35 = vmax.f32 %v2231_v53, 0.0  ;;  %v2457_v51 = vmax.f32 %v2232_v54, 0.0  ;;  %v2458_v0 = vmax.f32 %v2233_v56, 0.0  ;;  %v2235_v20 = vadd.f32 %v4263_v32, %v2006_v50 }
 0x30d   : > { %v2459_v6 = vmax.f32 %v2234_v4, 0.0  ;;  %v2236_v1 = vadd.f32 %v4263_v32, %v2007_v11  ;;  %2679 = vst [vmem:[%s6022_s3 + $0x680] sm:$0xff] %v2454_v61  ;;  %2680 = vst [vmem:[%s6022_s3 + $0x688] sm:$0xff] %v2455_v17  ;;  %v2008_v2 = vmul.f32 %v4227_v5, %v1779_v55  ;;  %v2009_v59 = vmul.f32 %v4227_v5, %v1780_v58 }
 0x30e   : > { %2681 = vst [vmem:[%s6022_s3 + $0x690] sm:$0xff] %v2456_v35  ;;  %2682 = vst [vmem:[%s6022_s3 + $0x698] sm:$0xff] %v2457_v51  ;;  %v2010_v14 = vmul.f32 %v4227_v5, %v1781_v57  ;;  %v2011_v42 = vmul.f32 %v4227_v5, %v1782_v60  ;;  %v2460_v8 = vmax.f32 %v2235_v20, 0.0  ;;  %v2012_v62 = vmul.f32 %v4227_v5, %v1783_v63 }
 0x30f   : > { %2683 = vst [vmem:[%s6022_s3 + $0x6a0] sm:$0xff] %v2458_v0  ;;  %2684 = vst [vmem:[%s6022_s3 + $0x6a8] sm:$0xff] %v2459_v6  ;;  %v2461_v10 = vmax.f32 %v2236_v1, 0.0  ;;  %v2013_v12 = vmul.f32 %v4227_v5, %v1784_v9  ;;  %v2237_v16 = vadd.f32 %v4263_v32, %v2008_v2  ;;  %v2238_v24 = vadd.f32 %v4263_v32, %v2009_v59 }
 0x310   : > { %v2239_v25 = vadd.f32 %v4263_v32, %v2010_v14  ;;  %v2240_v19 = vadd.f32 %v4263_v32, %v2011_v42  ;;  %2685 = vst [vmem:[%s6022_s3 + $0x6b0] sm:$0xff] %v2460_v8  ;;  %v2241_v18 = vadd.f32 %v4263_v32, %v2012_v62  ;;  %v2014_v3 = vmul.f32 %v4227_v5, %v1785_v23 }
 0x311   : > { %2686 = vst [vmem:[%s6022_s3 + $0x6b8] sm:$0xff] %v2461_v10  ;;  %v2242_v22 = vadd.f32 %v4263_v32, %v2013_v12  ;;  %v2015_v37 = vmul.f32 %v4227_v5, %v1786_v13  ;;  %v2462_v26 = vmax.f32 %v2237_v16, 0.0  ;;  %v2463_v29 = vmax.f32 %v2238_v24, 0.0 }
 0x312   : > { %v2464_v31 = vmax.f32 %v2239_v25, 0.0  ;;  %v2465_v34 = vmax.f32 %v2240_v19, 0.0  ;;  %v2466_v21 = vmax.f32 %v2241_v18, 0.0  ;;  %v2243_v30 = vadd.f32 %v4263_v32, %v2014_v3 }
 0x313   : > { %v2467_v36 = vmax.f32 %v2242_v22, 0.0  ;;  %v2244_v39 = vadd.f32 %v4263_v32, %v2015_v37  ;;  %2687 = vst [vmem:[%s6022_s3 + $0x6c0] sm:$0xff] %v2462_v26  ;;  %2688 = vst [vmem:[%s6022_s3 + $0x6c8] sm:$0xff] %v2463_v29  ;;  %v2016_v40 = vmul.f32 %v4227_v5, %v1787_v27 }
 0x314   : > { %2689 = vst [vmem:[%s6022_s3 + $0x6d0] sm:$0xff] %v2464_v31  ;;  %2690 = vst [vmem:[%s6022_s3 + $0x6d8] sm:$0xff] %v2465_v34  ;;  %v2468_v41 = vmax.f32 %v2243_v30, 0.0 }
 0x315   : > { %2691 = vst [vmem:[%s6022_s3 + $0x6e0] sm:$0xff] %v2466_v21  ;;  %2692 = vst [vmem:[%s6022_s3 + $0x6e8] sm:$0xff] %v2467_v36  ;;  %v2469_v38 = vmax.f32 %v2244_v39, 0.0  ;;  %v2245_v43 = vadd.f32 %v4263_v32, %v2016_v40 }
 0x316   : > { %2693 = vst [vmem:[%s6022_s3 + $0x6f0] sm:$0xff] %v2468_v41 }
 0x317   : > { %2694 = vst [vmem:[%s6022_s3 + $0x6f8] sm:$0xff] %v2469_v38  ;;  %v2470_v5 = vmax.f32 %v2245_v43, 0.0 }
 0x319   : > { %2695 = vst [vmem:[%s6022_s3 + $0x700] sm:$0xff] %v2470_v5 }
 0x31a PF: > { %s13_s12 = sadd.s32 1, %s3317_s12  }
 0x31b   : > { %p10_p6 = scmp.ge.s32.totalorder %s13_s12, 7  }
 0x31d   :  { %12 = sbr.rel (!%p10_p6) target bundleno = 1 (0x1), region = 67 }

// kernel: dfqi_forward.5
= control target key start
LH: loop header
LB: loop body
LE: loop exit
PB: predicated region body
PF: predicated region fallthrough
CT: control target
= control target key end

     0   :  { %v1592_v0 = vmov 0.0|0.0   ;;  %s3065_s1 = inlined_call_operand.vmem [shape: f32[512,128], index: 1, kind: input, shape index: {}]   ;;  %s3066_s0 = inlined_call_operand.vmem [shape: f32[392,512], index: 0, kind: input, shape index: {}]   ;;  %s3067_s2 = inlined_call_operand.vmem [shape: f32[8,128], index: 2, kind: input, shape index: {}]   ;;  %s3068_s3 = inlined_call_operand.vmem [shape: f32[392,128], index: 3, kind: output, shape index: {}]  }
   0x1   :  { %1394 = vmatprep.subr.bf16.mxu1 %v1592_v0  ;;  %v216_v1 = vld [vmem:[%s3065_s1] sm:$0xff]  ;;  %v217_v2 = vld [vmem:[%s3065_s1 + $0x8] sm:$0xff]  ;;  %1442 = vmatprep.subr.bf16.mxu0 %v1592_v0  ;;  %v218_v6 = vld [vmem:[%s3065_s1 + $0x10] sm:$0xff] }
   0x2   :  { %v248_v3 = vld [vmem:[%s3065_s1 + $0x100] sm:$0xff]  ;;  %v1395_v4 = vpack.c.bf16 %v217_v2, %v216_v1  ;;  %v249_v5 = vld [vmem:[%s3065_s1 + $0x108] sm:$0xff]  ;;  %v219_v7 = vld [vmem:[%s3065_s1 + $0x18] sm:$0xff] }
   0x3   :  { %v1443_v8 = vpack.c.bf16 %v249_v5, %v248_v3  ;;  %v250_v9 = vld [vmem:[%s3065_s1 + $0x110] sm:$0xff]  ;;  %v251_v10 = vld [vmem:[%s3065_s1 + $0x118] sm:$0xff]  ;;  %v1398_v11 = vpack.c.bf16 %v219_v7, %v218_v6  ;;  %v220_v13 = vld [vmem:[%s3065_s1 + $0x20] sm:$0xff] }
   0x4   :  { %1396 = vmatpush1.bf16.msra.mxu1 %v1395_v4  ;;  %v1446_v12 = vpack.c.bf16 %v251_v10, %v250_v9  ;;  %v221_v14 = vld [vmem:[%s3065_s1 + $0x28] sm:$0xff]  ;;  %v252_v15 = vld [vmem:[%s3065_s1 + $0x120] sm:$0xff]  ;;  %v222_v19 = vld [vmem:[%s3065_s1 + $0x30] sm:$0xff] }
   0x5   :  { %1444 = vmatpush1.bf16.msra.mxu0 %v1443_v8  ;;  %1397 = vmatprep.subr.bf16.mxu1 %v1592_v0  ;;  %v253_v16 = vld [vmem:[%s3065_s1 + $0x128] sm:$0xff]  ;;  %v1401_v17 = vpack.c.bf16 %v221_v14, %v220_v13  ;;  %v223_v20 = vld [vmem:[%s3065_s1 + $0x38] sm:$0xff]  ;;  %v254_v21 = vld [vmem:[%s3065_s1 + $0x130] sm:$0xff] }
   0x6   :  { %1445 = vmatprep.subr.bf16.mxu0 %v1592_v0  ;;  %v1449_v18 = vpack.c.bf16 %v253_v16, %v252_v15  ;;  %v255_v22 = vld [vmem:[%s3065_s1 + $0x138] sm:$0xff]  ;;  %v1404_v23 = vpack.c.bf16 %v223_v20, %v222_v19  ;;  %v224_v25 = vld [vmem:[%s3065_s1 + $0x40] sm:$0xff]  ;;  %v225_v26 = vld [vmem:[%s3065_s1 + $0x48] sm:$0xff] }
   0x7   :  { %v1452_v24 = vpack.c.bf16 %v255_v22, %v254_v21  ;;  %v256_v27 = vld [vmem:[%s3065_s1 + $0x140] sm:$0xff]  ;;  %v257_v28 = vld [vmem:[%s3065_s1 + $0x148] sm:$0xff]  ;;  %v1407_v29 = vpack.c.bf16 %v225_v26, %v224_v25  ;;  %v226_v31 = vld [vmem:[%s3065_s1 + $0x50] sm:$0xff] }
   0x8   :  { %1399 = vmatpush1.bf16.msra.mxu1 %v1398_v11  ;;  %v1455_v30 = vpack.c.bf16 %v257_v28, %v256_v27  ;;  %v227_v32 = vld [vmem:[%s3065_s1 + $0x58] sm:$0xff]  ;;  %v258_v33 = vld [vmem:[%s3065_s1 + $0x150] sm:$0xff]  ;;  %v228_v37 = vld [vmem:[%s3065_s1 + $0x60] sm:$0xff] }
   0x9   :  { %1447 = vmatpush1.bf16.msra.mxu0 %v1446_v12  ;;  %1400 = vmatprep.subr.bf16.mxu1 %v1592_v0  ;;  %v259_v34 = vld [vmem:[%s3065_s1 + $0x158] sm:$0xff]  ;;  %v1410_v35 = vpack.c.bf16 %v227_v32, %v226_v31  ;;  %v229_v38 = vld [vmem:[%s3065_s1 + $0x68] sm:$0xff]  ;;  %v260_v39 = vld [vmem:[%s3065_s1 + $0x160] sm:$0xff] }
   0xa   :  { %1448 = vmatprep.subr.bf16.mxu0 %v1592_v0  ;;  %v1458_v36 = vpack.c.bf16 %v259_v34, %v258_v33  ;;  %v261_v40 = vld [vmem:[%s3065_s1 + $0x168] sm:$0xff]  ;;  %v23_v42 = vld [vmem:[%s3066_s0 + $0x18] sm:$0xff]  ;;  %v1413_v43 = vpack.c.bf16 %v229_v38, %v228_v37  ;;  %v230_v45 = vld [vmem:[%s3065_s1 + $0x70] sm:$0xff] }
   0xb   :  { %v21_v41 = vld [vmem:[%s3066_s0 + $0x8] sm:$0xff]  ;;  %659 = vmatprep.mubr.f32.mxu0 %v23_v42  ;;  %v1461_v44 = vpack.c.bf16 %v261_v40, %v260_v39  ;;  %v231_v46 = vld [vmem:[%s3065_s1 + $0x78] sm:$0xff]  ;;  %v262_v47 = vld [vmem:[%s3065_s1 + $0x170] sm:$0xff] }
   0xc   :  { %1402 = vmatpush1.bf16.msra.mxu1 %v1401_v17  ;;  %349 = vmatprep.mubr.f32.mxu1 %v21_v41  ;;  %v263_v48 = vld [vmem:[%s3065_s1 + $0x178] sm:$0xff]  ;;  %v1416_v49 = vpack.c.bf16 %v231_v46, %v230_v45  ;;  %v232_v51 = vld [vmem:[%s3065_s1 + $0x80] sm:$0xff]  ;;  %v233_v52 = vld [vmem:[%s3065_s1 + $0x88] sm:$0xff] }
   0xd   :  { %1450 = vmatpush1.bf16.msra.mxu0 %v1449_v18  ;;  %1403 = vmatprep.subr.bf16.mxu1 %v1592_v0  ;;  %v1464_v50 = vpack.c.bf16 %v263_v48, %v262_v47  ;;  %v264_v53 = vld [vmem:[%s3065_s1 + $0x180] sm:$0xff]  ;;  %v265_v54 = vld [vmem:[%s3065_s1 + $0x188] sm:$0xff]  ;;  %v1419_v55 = vpack.c.bf16 %v233_v52, %v232_v51  ;;  %v234_v57 = vld [vmem:[%s3065_s1 + $0x90] sm:$0xff] }
   0xe   :  { %1451 = vmatprep.subr.bf16.mxu0 %v1592_v0  ;;  %v1467_v56 = vpack.c.bf16 %v265_v54, %v264_v53  ;;  %v235_v58 = vld [vmem:[%s3065_s1 + $0x98] sm:$0xff]  ;;  %v266_v59 = vld [vmem:[%s3065_s1 + $0x190] sm:$0xff]  ;;  %v236_v63 = vld [vmem:[%s3065_s1 + $0xa0] sm:$0xff] }
   0xf   :  { %v267_v60 = vld [vmem:[%s3065_s1 + $0x198] sm:$0xff]  ;;  %v1422_v61 = vpack.c.bf16 %v235_v58, %v234_v57  ;;  %v237_v1 = vld [vmem:[%s3065_s1 + $0xa8] sm:$0xff]  ;;  %v268_v2 = vld [vmem:[%s3065_s1 + $0x1a0] sm:$0xff] }
  0x10   :  { %1405 = vmatpush1.bf16.msra.mxu1 %v1404_v23  ;;  %v1470_v62 = vpack.c.bf16 %v267_v60, %v266_v59  ;;  %v269_v3 = vld [vmem:[%s3065_s1 + $0x1a8] sm:$0xff]  ;;  %v1425_v4 = vpack.c.bf16 %v237_v1, %v236_v63  ;;  %v238_v6 = vld [vmem:[%s3065_s1 + $0xb0] sm:$0xff]  ;;  %v239_v7 = vld [vmem:[%s3065_s1 + $0xb8] sm:$0xff] }
  0x11   :  { %1453 = vmatpush1.bf16.msra.mxu0 %v1452_v24  ;;  %1406 = vmatprep.subr.bf16.mxu1 %v1592_v0  ;;  %v1473_v5 = vpack.c.bf16 %v269_v3, %v268_v2  ;;  %v270_v8 = vld [vmem:[%s3065_s1 + $0x1b0] sm:$0xff]  ;;  %v271_v9 = vld [vmem:[%s3065_s1 + $0x1b8] sm:$0xff]  ;;  %v1428_v10 = vpack.c.bf16 %v239_v7, %v238_v6  ;;  %v240_v12 = vld [vmem:[%s3065_s1 + $0xc0] sm:$0xff] }
  0x12   :  { %1454 = vmatprep.subr.bf16.mxu0 %v1592_v0  ;;  %v1476_v11 = vpack.c.bf16 %v271_v9, %v270_v8  ;;  %v241_v13 = vld [vmem:[%s3065_s1 + $0xc8] sm:$0xff]  ;;  %v272_v14 = vld [vmem:[%s3065_s1 + $0x1c0] sm:$0xff]  ;;  %v242_v18 = vld [vmem:[%s3065_s1 + $0xd0] sm:$0xff] }
  0x13   :  { %v273_v15 = vld [vmem:[%s3065_s1 + $0x1c8] sm:$0xff]  ;;  %v1431_v16 = vpack.c.bf16 %v241_v13, %v240_v12  ;;  %v243_v19 = vld [vmem:[%s3065_s1 + $0xd8] sm:$0xff]  ;;  %v274_v20 = vld [vmem:[%s3065_s1 + $0x1d0] sm:$0xff] }
  0x14   :  { %1408 = vmatpush1.bf16.msra.mxu1 %v1407_v29  ;;  %v1479_v17 = vpack.c.bf16 %v273_v15, %v272_v14  ;;  %v275_v21 = vld [vmem:[%s3065_s1 + $0x1d8] sm:$0xff]  ;;  %v1434_v22 = vpack.c.bf16 %v243_v19, %v242_v18  ;;  %v244_v24 = vld [vmem:[%s3065_s1 + $0xe0] sm:$0xff]  ;;  %v245_v25 = vld [vmem:[%s3065_s1 + $0xe8] sm:$0xff] }
  0x15   :  { %1456 = vmatpush1.bf16.msra.mxu0 %v1455_v30  ;;  %1409 = vmatprep.subr.bf16.mxu1 %v1592_v0  ;;  %v1482_v23 = vpack.c.bf16 %v275_v21, %v274_v20  ;;  %v276_v26 = vld [vmem:[%s3065_s1 + $0x1e0] sm:$0xff]  ;;  %v277_v27 = vld [vmem:[%s3065_s1 + $0x1e8] sm:$0xff]  ;;  %v1437_v28 = vpack.c.bf16 %v245_v25, %v244_v24  ;;  %v246_v30 = vld [vmem:[%s3065_s1 + $0xf0] sm:$0xff] }
  0x16   :  { %1457 = vmatprep.subr.bf16.mxu0 %v1592_v0  ;;  %v1485_v29 = vpack.c.bf16 %v277_v27, %v276_v26  ;;  %v247_v31 = vld [vmem:[%s3065_s1 + $0xf8] sm:$0xff]  ;;  %v278_v32 = vld [vmem:[%s3065_s1 + $0x1f0] sm:$0xff]  ;;  %v25_v38 = vld [vmem:[%s3066_s0 + $0x28] sm:$0xff] }
  0x17   :  { %v279_v33 = vld [vmem:[%s3065_s1 + $0x1f8] sm:$0xff]  ;;  %v1440_v34 = vpack.c.bf16 %v247_v31, %v246_v30  ;;  %v22_v37 = vld [vmem:[%s3066_s0 + $0x10] sm:$0xff]  ;;  %v29_v41 = vld [vmem:[%s3066_s0 + $0x48] sm:$0xff] }
  0x18   :  { %1411 = vmatpush1.bf16.msra.mxu1 %v1410_v35  ;;  %v1488_v35 = vpack.c.bf16 %v279_v33, %v278_v32  ;;  %v27_v39 = vld [vmem:[%s3066_s0 + $0x38] sm:$0xff]  ;;  %v26_v40 = vld [vmem:[%s3066_s0 + $0x30] sm:$0xff]  ;;  %v33_v45 = vld [vmem:[%s3066_s0 + $0x68] sm:$0xff] }
  0x19   :  { %1459 = vmatpush1.bf16.msra.mxu0 %v1458_v36  ;;  %1412 = vmatprep.subr.bf16.mxu1 %v1592_v0  ;;  %v20_v36 = vld [vmem:[%s3066_s0] sm:$0xff]  ;;  %v31_v42 = vld [vmem:[%s3066_s0 + $0x58] sm:$0xff]  ;;  %v34_v48 = vld [vmem:[%s3066_s0 + $0x70] sm:$0xff] }
  0x1a   :  { %1460 = vmatprep.subr.bf16.mxu0 %v1592_v0  ;;  %v35_v46 = vld [vmem:[%s3066_s0 + $0x78] sm:$0xff]  ;;  %v32_v47 = vld [vmem:[%s3066_s0 + $0x60] sm:$0xff]  ;;  %v38_v52 = vld [vmem:[%s3066_s0 + $0x90] sm:$0xff] }
  0x1b   :  { %v36_v51 = vld [vmem:[%s3066_s0 + $0x80] sm:$0xff]  ;;  %v41_v53 = vld [vmem:[%s3066_s0 + $0xa8] sm:$0xff]  ;;  %v43_v54 = vld [vmem:[%s3066_s0 + $0xb8] sm:$0xff] }
  0x1c   :  { %1414 = vmatpush1.bf16.msra.mxu1 %v1413_v43  ;;  %v28_v43 = vld [vmem:[%s3066_s0 + $0x40] sm:$0xff]  ;;  %v45_v57 = vld [vmem:[%s3066_s0 + $0xc8] sm:$0xff]  ;;  %v47_v58 = vld [vmem:[%s3066_s0 + $0xd8] sm:$0xff] }
  0x1d   :  { %1462 = vmatpush1.bf16.msra.mxu0 %v1461_v44  ;;  %1415 = vmatprep.subr.bf16.mxu1 %v1592_v0  ;;  %v30_v44 = vld [vmem:[%s3066_s0 + $0x50] sm:$0xff]  ;;  %v44_v59 = vld [vmem:[%s3066_s0 + $0xc0] sm:$0xff]  ;;  %v53_v2 = vld [vmem:[%s3066_s0 + $0x108] sm:$0xff] }
  0x1e   :  { %1463 = vmatprep.subr.bf16.mxu0 %v1592_v0  ;;  %v46_v60 = vld [vmem:[%s3066_s0 + $0xd0] sm:$0xff]  ;;  %v48_v63 = vld [vmem:[%s3066_s0 + $0xe0] sm:$0xff]  ;;  %v55_v3 = vld [vmem:[%s3066_s0 + $0x118] sm:$0xff] }
  0x1f   :  { %v50_v1 = vld [vmem:[%s3066_s0 + $0xf0] sm:$0xff]  ;;  %v57_v6 = vld [vmem:[%s3066_s0 + $0x128] sm:$0xff]  ;;  %v59_v7 = vld [vmem:[%s3066_s0 + $0x138] sm:$0xff] }
  0x20   :  { %1417 = vmatpush1.bf16.msra.mxu1 %v1416_v49  ;;  %v37_v49 = vld [vmem:[%s3066_s0 + $0x88] sm:$0xff]  ;;  %v56_v8 = vld [vmem:[%s3066_s0 + $0x120] sm:$0xff]  ;;  %v58_v9 = vld [vmem:[%s3066_s0 + $0x130] sm:$0xff] }
  0x21   :  { %1465 = vmatpush1.bf16.msra.mxu0 %v1464_v50  ;;  %1418 = vmatprep.subr.bf16.mxu1 %v1592_v0  ;;  %v39_v50 = vld [vmem:[%s3066_s0 + $0x98] sm:$0xff]  ;;  %v60_v12 = vld [vmem:[%s3066_s0 + $0x140] sm:$0xff]  ;;  %v62_v13 = vld [vmem:[%s3066_s0 + $0x150] sm:$0xff] }
  0x22   :  { %1466 = vmatprep.subr.bf16.mxu0 %v1592_v0  ;;  %v65_v14 = vld [vmem:[%s3066_s0 + $0x168] sm:$0xff]  ;;  %v67_v15 = vld [vmem:[%s3066_s0 + $0x178] sm:$0xff]  ;;  %v68_v20 = vld [vmem:[%s3066_s0 + $0x180] sm:$0xff] }
  0x23   :  { %v69_v18 = vld [vmem:[%s3066_s0 + $0x188] sm:$0xff]  ;;  %v71_v19 = vld [vmem:[%s3066_s0 + $0x198] sm:$0xff]  ;;  %v70_v21 = vld [vmem:[%s3066_s0 + $0x190] sm:$0xff] }
  0x24   :  { %1420 = vmatpush1.bf16.msra.mxu1 %v1419_v55  ;;  %v40_v55 = vld [vmem:[%s3066_s0 + $0xa0] sm:$0xff]  ;;  %v74_v25 = vld [vmem:[%s3066_s0 + $0x1b0] sm:$0xff]  ;;  %v77_v26 = vld [vmem:[%s3066_s0 + $0x1c8] sm:$0xff] }
  0x25   :  { %1468 = vmatpush1.bf16.msra.mxu0 %v1467_v56  ;;  %1421 = vmatprep.subr.bf16.mxu1 %v1592_v0  ;;  %v42_v56 = vld [vmem:[%s3066_s0 + $0xb0] sm:$0xff]  ;;  %v72_v24 = vld [vmem:[%s3066_s0 + $0x1a0] sm:$0xff]  ;;  %v79_v27 = vld [vmem:[%s3066_s0 + $0x1d8] sm:$0xff] }
  0x26   :  { %1469 = vmatprep.subr.bf16.mxu0 %v1592_v0  ;;  %v81_v30 = vld [vmem:[%s3066_s0 + $0x1e8] sm:$0xff]  ;;  %v83_v31 = vld [vmem:[%s3066_s0 + $0x1f8] sm:$0xff]  ;;  %v80_v32 = vld [vmem:[%s3066_s0 + $0x1e0] sm:$0xff] }
  0x27   :  { %v82_v33 = vld [vmem:[%s3066_s0 + $0x1f0] sm:$0xff] }
  0x28   :  { %1423 = vmatpush1.bf16.msra.mxu1 %v1422_v61  ;;  %v49_v61 = vld [vmem:[%s3066_s0 + $0xe8] sm:$0xff] }
  0x29   :  { %1471 = vmatpush1.bf16.msra.mxu0 %v1470_v62  ;;  %1424 = vmatprep.subr.bf16.mxu1 %v1592_v0  ;;  %v51_v62 = vld [vmem:[%s3066_s0 + $0xf8] sm:$0xff] }
  0x2a   :  { %1472 = vmatprep.subr.bf16.mxu0 %v1592_v0 }
  0x2c   :  { %1426 = vmatpush1.bf16.msra.mxu1 %v1425_v4  ;;  %v52_v4 = vld [vmem:[%s3066_s0 + $0x100] sm:$0xff] }
  0x2d   :  { %1474 = vmatpush1.bf16.msra.mxu0 %v1473_v5  ;;  %1427 = vmatprep.subr.bf16.mxu1 %v1592_v0  ;;  %v54_v5 = vld [vmem:[%s3066_s0 + $0x110] sm:$0xff] }
  0x2e   :  { %1475 = vmatprep.subr.bf16.mxu0 %v1592_v0 }
  0x30   :  { %1429 = vmatpush1.bf16.msra.mxu1 %v1428_v10  ;;  %v61_v10 = vld [vmem:[%s3066_s0 + $0x148] sm:$0xff] }
  0x31   :  { %1477 = vmatpush1.bf16.msra.mxu0 %v1476_v11  ;;  %1430 = vmatprep.subr.bf16.mxu1 %v1592_v0  ;;  %v63_v11 = vld [vmem:[%s3066_s0 + $0x158] sm:$0xff] }
  0x32   :  { %1478 = vmatprep.subr.bf16.mxu0 %v1592_v0 }
  0x34   :  { %1432 = vmatpush1.bf16.msra.mxu1 %v1431_v16  ;;  %v64_v16 = vld [vmem:[%s3066_s0 + $0x160] sm:$0xff] }
  0x35   :  { %1480 = vmatpush1.bf16.msra.mxu0 %v1479_v17  ;;  %1433 = vmatprep.subr.bf16.mxu1 %v1592_v0  ;;  %v66_v17 = vld [vmem:[%s3066_s0 + $0x170] sm:$0xff] }
  0x36   :  { %1481 = vmatprep.subr.bf16.mxu0 %v1592_v0 }
  0x38   :  { %1435 = vmatpush1.bf16.msra.mxu1 %v1434_v22  ;;  %v73_v22 = vld [vmem:[%s3066_s0 + $0x1a8] sm:$0xff] }
  0x39   :  { %1483 = vmatpush1.bf16.msra.mxu0 %v1482_v23  ;;  %1436 = vmatprep.subr.bf16.mxu1 %v1592_v0  ;;  %v75_v23 = vld [vmem:[%s3066_s0 + $0x1b8] sm:$0xff] }
  0x3a   :  { %1484 = vmatprep.subr.bf16.mxu0 %v1592_v0 }
  0x3c   :  { %1438 = vmatpush1.bf16.msra.mxu1 %v1437_v28  ;;  %v76_v28 = vld [vmem:[%s3066_s0 + $0x1c0] sm:$0xff] }
  0x3d   :  { %1486 = vmatpush1.bf16.msra.mxu0 %v1485_v29  ;;  %1439 = vmatprep.subr.bf16.mxu1 %v1592_v0  ;;  %v78_v29 = vld [vmem:[%s3066_s0 + $0x1d0] sm:$0xff] }
  0x3e   :  { %1487 = vmatprep.subr.bf16.mxu0 %v1592_v0  ;;  %v24_v0 = vld [vmem:[%s3066_s0 + $0x20] sm:$0xff] }
  0x40   :  { %1441 = vmatpush1.bf16.msra.mxu1 %v1440_v34  ;;  %v85_v34 = vld [vmem:[%s3066_s0 + $0x208] sm:$0xff] }
  0x41   :  { %1489 = vmatpush1.bf16.msra.mxu0 %v1488_v35  ;;  %v87_v35 = vld [vmem:[%s3066_s0 + $0x218] sm:$0xff] }
  0x43   :  { %350 = vmatmul.mubr.f32.vlgmr.msra.gmra.mrb[0].mxu1 %v20_v36  ;;  %v84_v36 = vld [vmem:[%s3066_s0 + $0x200] sm:$0xff] }
  0x44   :  { %660 = vmatmul.mubr.f32.vlgmr.msra.gmra.mrb[0].mxu0 %v22_v37  ;;  %354 = vmatprep.mubr.f32.mxu1 %v25_v38  ;;  %v86_v37 = vld [vmem:[%s3066_s0 + $0x210] sm:$0xff]  ;;  %v89_v38 = vld [vmem:[%s3066_s0 + $0x228] sm:$0xff] }
  0x45   :  { %664 = vmatprep.mubr.f32.mxu0 %v27_v39  ;;  %v91_v39 = vld [vmem:[%s3066_s0 + $0x238] sm:$0xff] }
  0x47   :  { %355 = vmatmul.mubr.f32.gmra.mrb[2].mxu1 %v24_v0  ;;  %v88_v0 = vld [vmem:[%s3066_s0 + $0x220] sm:$0xff] }
  0x48   :  { %665 = vmatmul.mubr.f32.gmra.mrb[2].mxu0 %v26_v40  ;;  %359 = vmatprep.mubr.f32.mxu1 %v29_v41  ;;  %v90_v40 = vld [vmem:[%s3066_s0 + $0x230] sm:$0xff]  ;;  %v93_v41 = vld [vmem:[%s3066_s0 + $0x248] sm:$0xff] }
  0x49   :  { %669 = vmatprep.mubr.f32.mxu0 %v31_v42  ;;  %v95_v42 = vld [vmem:[%s3066_s0 + $0x258] sm:$0xff] }
  0x4b   :  { %360 = vmatmul.mubr.f32.gmra.mrb[4].mxu1 %v28_v43  ;;  %v92_v43 = vld [vmem:[%s3066_s0 + $0x240] sm:$0xff] }
  0x4c   :  { %670 = vmatmul.mubr.f32.gmra.mrb[4].mxu0 %v30_v44  ;;  %364 = vmatprep.mubr.f32.mxu1 %v33_v45  ;;  %v94_v44 = vld [vmem:[%s3066_s0 + $0x250] sm:$0xff]  ;;  %v97_v45 = vld [vmem:[%s3066_s0 + $0x268] sm:$0xff] }
  0x4d   :  { %674 = vmatprep.mubr.f32.mxu0 %v35_v46  ;;  %v99_v46 = vld [vmem:[%s3066_s0 + $0x278] sm:$0xff] }
  0x4f   :  { %365 = vmatmul.mubr.f32.gmra.mrb[6].mxu1 %v32_v47  ;;  %v96_v47 = vld [vmem:[%s3066_s0 + $0x260] sm:$0xff] }
  0x50   :  { %675 = vmatmul.mubr.f32.gmra.mrb[6].mxu0 %v34_v48  ;;  %369 = vmatprep.mubr.f32.mxu1 %v37_v49  ;;  %v98_v48 = vld [vmem:[%s3066_s0 + $0x270] sm:$0xff]  ;;  %v101_v49 = vld [vmem:[%s3066_s0 + $0x288] sm:$0xff] }
  0x51   :  { %679 = vmatprep.mubr.f32.mxu0 %v39_v50  ;;  %v103_v50 = vld [vmem:[%s3066_s0 + $0x298] sm:$0xff] }
  0x53   :  { %370 = vmatmul.mubr.f32.gmra.mrb[8].mxu1 %v36_v51  ;;  %v100_v51 = vld [vmem:[%s3066_s0 + $0x280] sm:$0xff] }
  0x54   :  { %680 = vmatmul.mubr.f32.gmra.mrb[8].mxu0 %v38_v52  ;;  %374 = vmatprep.mubr.f32.mxu1 %v41_v53  ;;  %v102_v52 = vld [vmem:[%s3066_s0 + $0x290] sm:$0xff]  ;;  %v105_v53 = vld [vmem:[%s3066_s0 + $0x2a8] sm:$0xff] }
  0x55   :  { %684 = vmatprep.mubr.f32.mxu0 %v43_v54  ;;  %v107_v54 = vld [vmem:[%s3066_s0 + $0x2b8] sm:$0xff] }
  0x57   :  { %375 = vmatmul.mubr.f32.gmra.mrb[10].mxu1 %v40_v55  ;;  %v104_v55 = vld [vmem:[%s3066_s0 + $0x2a0] sm:$0xff] }
  0x58   :  { %685 = vmatmul.mubr.f32.gmra.mrb[10].mxu0 %v42_v56  ;;  %379 = vmatprep.mubr.f32.mxu1 %v45_v57  ;;  %v106_v56 = vld [vmem:[%s3066_s0 + $0x2b0] sm:$0xff]  ;;  %v109_v57 = vld [vmem:[%s3066_s0 + $0x2c8] sm:$0xff] }
  0x59   :  { %689 = vmatprep.mubr.f32.mxu0 %v47_v58  ;;  %v111_v58 = vld [vmem:[%s3066_s0 + $0x2d8] sm:$0xff] }
  0x5b   :  { %380 = vmatmul.mubr.f32.gmra.mrb[12].mxu1 %v44_v59  ;;  %v108_v59 = vld [vmem:[%s3066_s0 + $0x2c0] sm:$0xff] }
  0x5c   :  { %690 = vmatmul.mubr.f32.gmra.mrb[12].mxu0 %v46_v60  ;;  %384 = vmatprep.mubr.f32.mxu1 %v49_v61  ;;  %v110_v60 = vld [vmem:[%s3066_s0 + $0x2d0] sm:$0xff]  ;;  %v113_v61 = vld [vmem:[%s3066_s0 + $0x2e8] sm:$0xff] }
  0x5d   :  { %694 = vmatprep.mubr.f32.mxu0 %v51_v62  ;;  %v115_v62 = vld [vmem:[%s3066_s0 + $0x2f8] sm:$0xff] }
  0x5f   :  { %385 = vmatmul.mubr.f32.gmra.mrb[14].mxu1 %v48_v63  ;;  %v112_v63 = vld [vmem:[%s3066_s0 + $0x2e0] sm:$0xff] }
  0x60   :  { %695 = vmatmul.mubr.f32.gmra.mrb[14].mxu0 %v50_v1  ;;  %389 = vmatprep.mubr.f32.mxu1 %v53_v2  ;;  %v114_v1 = vld [vmem:[%s3066_s0 + $0x2f0] sm:$0xff]  ;;  %v117_v2 = vld [vmem:[%s3066_s0 + $0x308] sm:$0xff] }
  0x61   :  { %699 = vmatprep.mubr.f32.mxu0 %v55_v3  ;;  %v119_v3 = vld [vmem:[%s3066_s0 + $0x318] sm:$0xff] }
  0x63   :  { %390 = vmatmul.mubr.f32.gmra.mrb[16].mxu1 %v52_v4  ;;  %v116_v4 = vld [vmem:[%s3066_s0 + $0x300] sm:$0xff] }
  0x64   :  { %700 = vmatmul.mubr.f32.gmra.mrb[16].mxu0 %v54_v5  ;;  %394 = vmatprep.mubr.f32.mxu1 %v57_v6  ;;  %v118_v5 = vld [vmem:[%s3066_s0 + $0x310] sm:$0xff]  ;;  %v121_v6 = vld [vmem:[%s3066_s0 + $0x328] sm:$0xff] }
  0x65   :  { %704 = vmatprep.mubr.f32.mxu0 %v59_v7  ;;  %v123_v7 = vld [vmem:[%s3066_s0 + $0x338] sm:$0xff] }
  0x67   :  { %395 = vmatmul.mubr.f32.gmra.mrb[18].mxu1 %v56_v8  ;;  %v120_v8 = vld [vmem:[%s3066_s0 + $0x320] sm:$0xff] }
  0x68   :  { %705 = vmatmul.mubr.f32.gmra.mrb[18].mxu0 %v58_v9  ;;  %399 = vmatprep.mubr.f32.mxu1 %v61_v10  ;;  %v122_v9 = vld [vmem:[%s3066_s0 + $0x330] sm:$0xff]  ;;  %v125_v10 = vld [vmem:[%s3066_s0 + $0x348] sm:$0xff] }
  0x69   :  { %709 = vmatprep.mubr.f32.mxu0 %v63_v11  ;;  %v127_v11 = vld [vmem:[%s3066_s0 + $0x358] sm:$0xff] }
  0x6b   :  { %400 = vmatmul.mubr.f32.gmra.mrb[20].mxu1 %v60_v12  ;;  %v124_v12 = vld [vmem:[%s3066_s0 + $0x340] sm:$0xff] }
  0x6c   :  { %710 = vmatmul.mubr.f32.gmra.mrb[20].mxu0 %v62_v13  ;;  %404 = vmatprep.mubr.f32.mxu1 %v65_v14  ;;  %v126_v13 = vld [vmem:[%s3066_s0 + $0x350] sm:$0xff]  ;;  %v129_v14 = vld [vmem:[%s3066_s0 + $0x368] sm:$0xff] }
  0x6d   :  { %714 = vmatprep.mubr.f32.mxu0 %v67_v15  ;;  %v131_v15 = vld [vmem:[%s3066_s0 + $0x378] sm:$0xff] }
  0x6f   :  { %405 = vmatmul.mubr.f32.gmra.mrb[22].mxu1 %v64_v16  ;;  %v128_v16 = vld [vmem:[%s3066_s0 + $0x360] sm:$0xff] }
  0x70   :  { %715 = vmatmul.mubr.f32.gmra.mrb[22].mxu0 %v66_v17  ;;  %409 = vmatprep.mubr.f32.mxu1 %v69_v18  ;;  %v130_v17 = vld [vmem:[%s3066_s0 + $0x370] sm:$0xff]  ;;  %v133_v18 = vld [vmem:[%s3066_s0 + $0x388] sm:$0xff] }
  0x71   :  { %719 = vmatprep.mubr.f32.mxu0 %v71_v19  ;;  %v135_v19 = vld [vmem:[%s3066_s0 + $0x398] sm:$0xff] }
  0x73   :  { %410 = vmatmul.mubr.f32.gmra.mrb[24].mxu1 %v68_v20  ;;  %v132_v20 = vld [vmem:[%s3066_s0 + $0x380] sm:$0xff] }
  0x74   :  { %720 = vmatmul.mubr.f32.gmra.mrb[24].mxu0 %v70_v21  ;;  %414 = vmatprep.mubr.f32.mxu1 %v73_v22  ;;  %v134_v21 = vld [vmem:[%s3066_s0 + $0x390] sm:$0xff]  ;;  %v137_v22 = vld [vmem:[%s3066_s0 + $0x3a8] sm:$0xff] }
  0x75   :  { %724 = vmatprep.mubr.f32.mxu0 %v75_v23  ;;  %v139_v23 = vld [vmem:[%s3066_s0 + $0x3b8] sm:$0xff] }
  0x77   :  { %415 = vmatmul.mubr.f32.gmra.mrb[26].mxu1 %v72_v24  ;;  %v136_v24 = vld [vmem:[%s3066_s0 + $0x3a0] sm:$0xff] }
  0x78   :  { %725 = vmatmul.mubr.f32.gmra.mrb[26].mxu0 %v74_v25  ;;  %419 = vmatprep.mubr.f32.mxu1 %v77_v26  ;;  %v138_v25 = vld [vmem:[%s3066_s0 + $0x3b0] sm:$0xff]  ;;  %v141_v26 = vld [vmem:[%s3066_s0 + $0x3c8] sm:$0xff] }
  0x79   :  { %729 = vmatprep.mubr.f32.mxu0 %v79_v27  ;;  %v143_v27 = vld [vmem:[%s3066_s0 + $0x3d8] sm:$0xff] }
  0x7b   :  { %420 = vmatmul.mubr.f32.gmra.mrb[28].mxu1 %v76_v28  ;;  %v140_v28 = vld [vmem:[%s3066_s0 + $0x3c0] sm:$0xff] }
  0x7c   :  { %730 = vmatmul.mubr.f32.gmra.mrb[28].mxu0 %v78_v29  ;;  %424 = vmatprep.mubr.f32.mxu1 %v81_v30  ;;  %v142_v29 = vld [vmem:[%s3066_s0 + $0x3d0] sm:$0xff]  ;;  %v145_v30 = vld [vmem:[%s3066_s0 + $0x3e8] sm:$0xff] }
  0x7d   :  { %734 = vmatprep.mubr.f32.mxu0 %v83_v31  ;;  %v147_v31 = vld [vmem:[%s3066_s0 + $0x3f8] sm:$0xff] }
  0x7f   :  { %425 = vmatmul.mubr.f32.gmra.mrb[30].mxu1 %v80_v32  ;;  %v144_v32 = vld [vmem:[%s3066_s0 + $0x3e0] sm:$0xff] }
  0x80   :  { %735 = vmatmul.mubr.f32.gmra.mrb[30].mxu0 %v82_v33  ;;  %429 = vmatprep.mubr.f32.mxu1 %v85_v34  ;;  %v146_v33 = vld [vmem:[%s3066_s0 + $0x3f0] sm:$0xff]  ;;  %v149_v34 = vld [vmem:[%s3066_s0 + $0x408] sm:$0xff] }
  0x81   :  { %739 = vmatprep.mubr.f32.mxu0 %v87_v35  ;;  %v151_v35 = vld [vmem:[%s3066_s0 + $0x418] sm:$0xff] }
  0x83   :  { %430 = vmatmul.mubr.f32.gmra.mrb[32].mxu1 %v84_v36  ;;  %v148_v36 = vld [vmem:[%s3066_s0 + $0x400] sm:$0xff] }
  0x84   :  { %740 = vmatmul.mubr.f32.gmra.mrb[32].mxu0 %v86_v37  ;;  %434 = vmatprep.mubr.f32.mxu1 %v89_v38  ;;  %v150_v37 = vld [vmem:[%s3066_s0 + $0x410] sm:$0xff]  ;;  %v153_v38 = vld [vmem:[%s3066_s0 + $0x428] sm:$0xff] }
  0x85   :  { %744 = vmatprep.mubr.f32.mxu0 %v91_v39  ;;  %v155_v39 = vld [vmem:[%s3066_s0 + $0x438] sm:$0xff] }
  0x87   :  { %435 = vmatmul.mubr.f32.gmra.mrb[34].mxu1 %v88_v0  ;;  %v152_v0 = vld [vmem:[%s3066_s0 + $0x420] sm:$0xff] }
  0x88   :  { %745 = vmatmul.mubr.f32.gmra.mrb[34].mxu0 %v90_v40  ;;  %439 = vmatprep.mubr.f32.mxu1 %v93_v41  ;;  %v154_v40 = vld [vmem:[%s3066_s0 + $0x430] sm:$0xff]  ;;  %v157_v41 = vld [vmem:[%s3066_s0 + $0x448] sm:$0xff] }
  0x89   :  { %749 = vmatprep.mubr.f32.mxu0 %v95_v42  ;;  %v159_v42 = vld [vmem:[%s3066_s0 + $0x458] sm:$0xff] }
  0x8b   :  { %440 = vmatmul.mubr.f32.gmra.mrb[36].mxu1 %v92_v43  ;;  %v156_v43 = vld [vmem:[%s3066_s0 + $0x440] sm:$0xff] }
  0x8c   :  { %750 = vmatmul.mubr.f32.gmra.mrb[36].mxu0 %v94_v44  ;;  %444 = vmatprep.mubr.f32.mxu1 %v97_v45  ;;  %v158_v44 = vld [vmem:[%s3066_s0 + $0x450] sm:$0xff]  ;;  %v161_v45 = vld [vmem:[%s3066_s0 + $0x468] sm:$0xff] }
  0x8d   :  { %754 = vmatprep.mubr.f32.mxu0 %v99_v46  ;;  %v163_v46 = vld [vmem:[%s3066_s0 + $0x478] sm:$0xff] }
  0x8f   :  { %445 = vmatmul.mubr.f32.gmra.mrb[38].mxu1 %v96_v47  ;;  %v160_v47 = vld [vmem:[%s3066_s0 + $0x460] sm:$0xff] }
  0x90   :  { %755 = vmatmul.mubr.f32.gmra.mrb[38].mxu0 %v98_v48  ;;  %449 = vmatprep.mubr.f32.mxu1 %v101_v49  ;;  %v162_v48 = vld [vmem:[%s3066_s0 + $0x470] sm:$0xff]  ;;  %v165_v49 = vld [vmem:[%s3066_s0 + $0x488] sm:$0xff] }
  0x91   :  { %759 = vmatprep.mubr.f32.mxu0 %v103_v50  ;;  %v167_v50 = vld [vmem:[%s3066_s0 + $0x498] sm:$0xff] }
  0x93   :  { %450 = vmatmul.mubr.f32.gmra.mrb[40].mxu1 %v100_v51  ;;  %v164_v51 = vld [vmem:[%s3066_s0 + $0x480] sm:$0xff] }
  0x94   :  { %760 = vmatmul.mubr.f32.gmra.mrb[40].mxu0 %v102_v52  ;;  %454 = vmatprep.mubr.f32.mxu1 %v105_v53  ;;  %v166_v52 = vld [vmem:[%s3066_s0 + $0x490] sm:$0xff]  ;;  %v169_v53 = vld [vmem:[%s3066_s0 + $0x4a8] sm:$0xff] }
  0x95   :  { %764 = vmatprep.mubr.f32.mxu0 %v107_v54  ;;  %v171_v54 = vld [vmem:[%s3066_s0 + $0x4b8] sm:$0xff] }
  0x97   :  { %455 = vmatmul.mubr.f32.gmra.mrb[42].mxu1 %v104_v55  ;;  %v168_v55 = vld [vmem:[%s3066_s0 + $0x4a0] sm:$0xff] }
  0x98   :  { %765 = vmatmul.mubr.f32.gmra.mrb[42].mxu0 %v106_v56  ;;  %459 = vmatprep.mubr.f32.mxu1 %v109_v57  ;;  %v170_v56 = vld [vmem:[%s3066_s0 + $0x4b0] sm:$0xff]  ;;  %v173_v57 = vld [vmem:[%s3066_s0 + $0x4c8] sm:$0xff] }
  0x99   :  { %769 = vmatprep.mubr.f32.mxu0 %v111_v58  ;;  %v175_v58 = vld [vmem:[%s3066_s0 + $0x4d8] sm:$0xff] }
  0x9b   :  { %460 = vmatmul.mubr.f32.gmra.mrb[44].mxu1 %v108_v59  ;;  %v172_v59 = vld [vmem:[%s3066_s0 + $0x4c0] sm:$0xff] }
  0x9c   :  { %770 = vmatmul.mubr.f32.gmra.mrb[44].mxu0 %v110_v60  ;;  %464 = vmatprep.mubr.f32.mxu1 %v113_v61  ;;  %v174_v60 = vld [vmem:[%s3066_s0 + $0x4d0] sm:$0xff]  ;;  %v177_v61 = vld [vmem:[%s3066_s0 + $0x4e8] sm:$0xff] }
  0x9d   :  { %774 = vmatprep.mubr.f32.mxu0 %v115_v62  ;;  %v179_v62 = vld [vmem:[%s3066_s0 + $0x4f8] sm:$0xff] }
  0x9f   :  { %465 = vmatmul.mubr.f32.gmra.mrb[46].mxu1 %v112_v63  ;;  %v176_v63 = vld [vmem:[%s3066_s0 + $0x4e0] sm:$0xff] }
  0xa0   :  { %775 = vmatmul.mubr.f32.gmra.mrb[46].mxu0 %v114_v1  ;;  %469 = vmatprep.mubr.f32.mxu1 %v117_v2  ;;  %v178_v1 = vld [vmem:[%s3066_s0 + $0x4f0] sm:$0xff]  ;;  %v181_v2 = vld [vmem:[%s3066_s0 + $0x508] sm:$0xff] }
  0xa1   :  { %779 = vmatprep.mubr.f32.mxu0 %v119_v3  ;;  %v183_v3 = vld [vmem:[%s3066_s0 + $0x518] sm:$0xff] }
  0xa3   :  { %470 = vmatmul.mubr.f32.gmra.mrb[48].mxu1 %v116_v4  ;;  %v180_v4 = vld [vmem:[%s3066_s0 + $0x500] sm:$0xff] }
  0xa4   :  { %780 = vmatmul.mubr.f32.gmra.mrb[48].mxu0 %v118_v5  ;;  %474 = vmatprep.mubr.f32.mxu1 %v121_v6  ;;  %v182_v5 = vld [vmem:[%s3066_s0 + $0x510] sm:$0xff]  ;;  %v185_v6 = vld [vmem:[%s3066_s0 + $0x528] sm:$0xff] }
  0xa5   :  { %784 = vmatprep.mubr.f32.mxu0 %v123_v7  ;;  %v187_v7 = vld [vmem:[%s3066_s0 + $0x538] sm:$0xff] }
  0xa7   :  { %475 = vmatmul.mubr.f32.gmra.mrb[50].mxu1 %v120_v8  ;;  %v184_v8 = vld [vmem:[%s3066_s0 + $0x520] sm:$0xff] }
  0xa8   :  { %785 = vmatmul.mubr.f32.gmra.mrb[50].mxu0 %v122_v9  ;;  %479 = vmatprep.mubr.f32.mxu1 %v125_v10  ;;  %v186_v9 = vld [vmem:[%s3066_s0 + $0x530] sm:$0xff]  ;;  %v189_v10 = vld [vmem:[%s3066_s0 + $0x548] sm:$0xff] }
  0xa9   :  { %789 = vmatprep.mubr.f32.mxu0 %v127_v11  ;;  %v191_v11 = vld [vmem:[%s3066_s0 + $0x558] sm:$0xff] }
  0xab   :  { %480 = vmatmul.mubr.f32.gmra.mrb[52].mxu1 %v124_v12  ;;  %v188_v12 = vld [vmem:[%s3066_s0 + $0x540] sm:$0xff] }
  0xac   :  { %790 = vmatmul.mubr.f32.gmra.mrb[52].mxu0 %v126_v13  ;;  %484 = vmatprep.mubr.f32.mxu1 %v129_v14  ;;  %v190_v13 = vld [vmem:[%s3066_s0 + $0x550] sm:$0xff]  ;;  %v193_v14 = vld [vmem:[%s3066_s0 + $0x568] sm:$0xff] }
  0xad   :  { %794 = vmatprep.mubr.f32.mxu0 %v131_v15  ;;  %v195_v15 = vld [vmem:[%s3066_s0 + $0x578] sm:$0xff] }
  0xaf   :  { %485 = vmatmul.mubr.f32.gmra.mrb[54].mxu1 %v128_v16  ;;  %v192_v16 = vld [vmem:[%s3066_s0 + $0x560] sm:$0xff] }
  0xb0   :  { %795 = vmatmul.mubr.f32.gmra.mrb[54].mxu0 %v130_v17  ;;  %489 = vmatprep.mubr.f32.mxu1 %v133_v18  ;;  %v194_v17 = vld [vmem:[%s3066_s0 + $0x570] sm:$0xff]  ;;  %v197_v18 = vld [vmem:[%s3066_s0 + $0x588] sm:$0xff] }
  0xb1   :  { %799 = vmatprep.mubr.f32.mxu0 %v135_v19  ;;  %v199_v19 = vld [vmem:[%s3066_s0 + $0x598] sm:$0xff] }
  0xb3   :  { %490 = vmatmul.mubr.f32.gmra.mrb[56].mxu1 %v132_v20  ;;  %v196_v20 = vld [vmem:[%s3066_s0 + $0x580] sm:$0xff] }
  0xb4   :  { %800 = vmatmul.mubr.f32.gmra.mrb[56].mxu0 %v134_v21  ;;  %494 = vmatprep.mubr.f32.mxu1 %v137_v22  ;;  %v198_v21 = vld [vmem:[%s3066_s0 + $0x590] sm:$0xff]  ;;  %v201_v22 = vld [vmem:[%s3066_s0 + $0x5a8] sm:$0xff] }
  0xb5   :  { %804 = vmatprep.mubr.f32.mxu0 %v139_v23  ;;  %v203_v23 = vld [vmem:[%s3066_s0 + $0x5b8] sm:$0xff] }
  0xb7   :  { %495 = vmatmul.mubr.f32.gmra.mrb[58].mxu1 %v136_v24  ;;  %v200_v24 = vld [vmem:[%s3066_s0 + $0x5a0] sm:$0xff] }
  0xb8   :  { %805 = vmatmul.mubr.f32.gmra.mrb[58].mxu0 %v138_v25  ;;  %499 = vmatprep.mubr.f32.mxu1 %v141_v26  ;;  %v202_v25 = vld [vmem:[%s3066_s0 + $0x5b0] sm:$0xff]  ;;  %v205_v26 = vld [vmem:[%s3066_s0 + $0x5c8] sm:$0xff] }
  0xb9   :  { %809 = vmatprep.mubr.f32.mxu0 %v143_v27  ;;  %v207_v27 = vld [vmem:[%s3066_s0 + $0x5d8] sm:$0xff] }
  0xbb   :  { %500 = vmatmul.mubr.f32.gmra.mrb[60].mxu1 %v140_v28  ;;  %v204_v28 = vld [vmem:[%s3066_s0 + $0x5c0] sm:$0xff] }
  0xbc   :  { %810 = vmatmul.mubr.f32.gmra.mrb[60].mxu0 %v142_v29  ;;  %504 = vmatprep.mubr.f32.mxu1 %v145_v30  ;;  %v206_v29 = vld [vmem:[%s3066_s0 + $0x5d0] sm:$0xff]  ;;  %v209_v30 = vld [vmem:[%s3066_s0 + $0x5e8] sm:$0xff] }
  0xbd   :  { %814 = vmatprep.mubr.f32.mxu0 %v147_v31  ;;  %v211_v31 = vld [vmem:[%s3066_s0 + $0x5f8] sm:$0xff] }
  0xbf   :  { %505 = vmatmul.mubr.f32.gmra.mrb[62].mxu1 %v144_v32  ;;  %v208_v32 = vld [vmem:[%s3066_s0 + $0x5e0] sm:$0xff] }
  0xc0   :  { %815 = vmatmul.mubr.f32.gmra.mrb[62].mxu0 %v146_v33  ;;  %509 = vmatprep.mubr.f32.mxu1 %v149_v34  ;;  %v210_v33 = vld [vmem:[%s3066_s0 + $0x5f0] sm:$0xff]  ;;  %v213_v34 = vld [vmem:[%s3066_s0 + $0x608] sm:$0xff] }
  0xc1   :  { %819 = vmatprep.mubr.f32.mxu0 %v151_v35  ;;  %v215_v35 = vld [vmem:[%s3066_s0 + $0x618] sm:$0xff] }
  0xc3   :  { %510 = vmatmul.mubr.f32.gmra.mrb[64].mxu1 %v148_v36  ;;  %v212_v36 = vld [vmem:[%s3066_s0 + $0x600] sm:$0xff] }
  0xc4   :  { %820 = vmatmul.mubr.f32.gmra.mrb[64].mxu0 %v150_v37  ;;  %514 = vmatprep.mubr.f32.mxu1 %v153_v38  ;;  %v214_v37 = vld [vmem:[%s3066_s0 + $0x610] sm:$0xff]  ;;  %v2429_v38 = vld [vmem:[%s3067_s2] ss:$0 sm:$0xff] }
  0xc5   :  { %824 = vmatprep.mubr.f32.mxu0 %v155_v39 }
  0xc7   :  { %515 = vmatmul.mubr.f32.gmra.mrb[66].mxu1 %v152_v0 }
  0xc8   :  { %825 = vmatmul.mubr.f32.gmra.mrb[66].mxu0 %v154_v40  ;;  %519 = vmatprep.mubr.f32.mxu1 %v157_v41 }
  0xc9   :  { %829 = vmatprep.mubr.f32.mxu0 %v159_v42 }
  0xcb   :  { %520 = vmatmul.mubr.f32.gmra.mrb[68].mxu1 %v156_v43 }
  0xcc   :  { %830 = vmatmul.mubr.f32.gmra.mrb[68].mxu0 %v158_v44  ;;  %524 = vmatprep.mubr.f32.mxu1 %v161_v45 }
  0xcd   :  { %834 = vmatprep.mubr.f32.mxu0 %v163_v46 }
  0xcf   :  { %525 = vmatmul.mubr.f32.gmra.mrb[70].mxu1 %v160_v47 }
  0xd0   :  { %835 = vmatmul.mubr.f32.gmra.mrb[70].mxu0 %v162_v48  ;;  %529 = vmatprep.mubr.f32.mxu1 %v165_v49 }
  0xd1   :  { %839 = vmatprep.mubr.f32.mxu0 %v167_v50 }
  0xd3   :  { %530 = vmatmul.mubr.f32.gmra.mrb[72].mxu1 %v164_v51 }
  0xd4   :  { %840 = vmatmul.mubr.f32.gmra.mrb[72].mxu0 %v166_v52  ;;  %534 = vmatprep.mubr.f32.mxu1 %v169_v53 }
  0xd5   :  { %844 = vmatprep.mubr.f32.mxu0 %v171_v54 }
  0xd7   :  { %535 = vmatmul.mubr.f32.gmra.mrb[74].mxu1 %v168_v55 }
  0xd8   :  { %845 = vmatmul.mubr.f32.gmra.mrb[74].mxu0 %v170_v56  ;;  %539 = vmatprep.mubr.f32.mxu1 %v173_v57 }
  0xd9   :  { %849 = vmatprep.mubr.f32.mxu0 %v175_v58 }
  0xdb   :  { %540 = vmatmul.mubr.f32.gmra.mrb[76].mxu1 %v172_v59 }
  0xdc   :  { %850 = vmatmul.mubr.f32.gmra.mrb[76].mxu0 %v174_v60  ;;  %544 = vmatprep.mubr.f32.mxu1 %v177_v61 }
  0xdd   :  { %854 = vmatprep.mubr.f32.mxu0 %v179_v62 }
  0xdf   :  { %545 = vmatmul.mubr.f32.gmra.mrb[78].mxu1 %v176_v63 }
  0xe0   :  { %855 = vmatmul.mubr.f32.gmra.mrb[78].mxu0 %v178_v1  ;;  %549 = vmatprep.mubr.f32.mxu1 %v181_v2 }
  0xe1   :  { %859 = vmatprep.mubr.f32.mxu0 %v183_v3 }
  0xe3   :  { %550 = vmatmul.mubr.f32.gmra.mrb[80].mxu1 %v180_v4 }
  0xe4   :  { %860 = vmatmul.mubr.f32.gmra.mrb[80].mxu0 %v182_v5  ;;  %554 = vmatprep.mubr.f32.mxu1 %v185_v6 }
  0xe5   :  { %864 = vmatprep.mubr.f32.mxu0 %v187_v7 }
  0xe7   :  { %555 = vmatmul.mubr.f32.gmra.mrb[82].mxu1 %v184_v8 }
  0xe8   :  { %865 = vmatmul.mubr.f32.gmra.mrb[82].mxu0 %v186_v9  ;;  %559 = vmatprep.mubr.f32.mxu1 %v189_v10 }
  0xe9   :  { %869 = vmatprep.mubr.f32.mxu0 %v191_v11 }
  0xeb   :  { %560 = vmatmul.mubr.f32.gmra.mrb[84].mxu1 %v188_v12 }
  0xec   :  { %870 = vmatmul.mubr.f32.gmra.mrb[84].mxu0 %v190_v13  ;;  %564 = vmatprep.mubr.f32.mxu1 %v193_v14 }
  0xed   :  { %874 = vmatprep.mubr.f32.mxu0 %v195_v15 }
  0xef   :  { %565 = vmatmul.mubr.f32.gmra.mrb[86].mxu1 %v192_v16 }
  0xf0   :  { %875 = vmatmul.mubr.f32.gmra.mrb[86].mxu0 %v194_v17  ;;  %569 = vmatprep.mubr.f32.mxu1 %v197_v18 }
  0xf1   :  { %879 = vmatprep.mubr.f32.mxu0 %v199_v19 }
  0xf3   :  { %570 = vmatmul.mubr.f32.gmra.mrb[88].mxu1 %v196_v20 }
  0xf4   :  { %880 = vmatmul.mubr.f32.gmra.mrb[88].mxu0 %v198_v21  ;;  %574 = vmatprep.mubr.f32.mxu1 %v201_v22 }
  0xf5   :  { %884 = vmatprep.mubr.f32.mxu0 %v203_v23 }
  0xf7   :  { %575 = vmatmul.mubr.f32.gmra.mrb[90].mxu1 %v200_v24 }
  0xf8   :  { %885 = vmatmul.mubr.f32.gmra.mrb[90].mxu0 %v202_v25  ;;  %579 = vmatprep.mubr.f32.mxu1 %v205_v26 }
  0xf9   :  { %889 = vmatprep.mubr.f32.mxu0 %v207_v27 }
  0xfb   :  { %580 = vmatmul.mubr.f32.gmra.mrb[92].mxu1 %v204_v28 }
  0xfc   :  { %890 = vmatmul.mubr.f32.gmra.mrb[92].mxu0 %v206_v29  ;;  %584 = vmatprep.mubr.f32.mxu1 %v209_v30 }
  0xfd   :  { %894 = vmatprep.mubr.f32.mxu0 %v211_v31 }
  0xff   :  { %585 = vmatmul.mubr.f32.gmra.mrb[94].mxu1 %v208_v32 }
 0x100   :  { %895 = vmatmul.mubr.f32.gmra.mrb[94].mxu0 %v210_v33  ;;  %589 = vmatprep.mubr.f32.mxu1 %v213_v34 }
 0x101   :  { %899 = vmatprep.mubr.f32.mxu0 %v215_v35 }
 0x103   :  { %590 = vmatmul.mubr.f32.gmra.mrb[96].mxu1 %v212_v36 }
 0x104   :  { %900 = vmatmul.mubr.f32.gmra.mrb[96].mxu0 %v214_v37 }
 0x116   :  { %v351_v39 = vpop.f32.mrb[0].mxu1 }
 0x117   :  { %v352_v0 = vadd.f32 %v2429_v38, %v351_v39  ;;  %v353_v40 = vpop.f32.mrb[1].mxu1  ;;  %v661_v41 = vpop.f32.mrb[0].mxu0 }
 0x118   :  { %v663_v42 = vpop.f32.mrb[1].mxu0 }
 0x119   :  { %v2432_v43 = vadd.f32 %v661_v41, %v352_v0 }
 0x11a   :  { %v356_v44 = vpop.f32.mrb[2].mxu1 }
 0x11b   :  { %v357_v45 = vadd.f32 %v2429_v38, %v356_v44  ;;  %v358_v46 = vpop.f32.mrb[3].mxu1  ;;  %v666_v47 = vpop.f32.mrb[2].mxu0 }
 0x11c   :  { %v668_v48 = vpop.f32.mrb[3].mxu0 }
 0x11d   :  { %v2435_v49 = vadd.f32 %v666_v47, %v357_v45 }
 0x11e   :  { %v361_v50 = vpop.f32.mrb[4].mxu1 }
 0x11f   :  { %v362_v51 = vadd.f32 %v2429_v38, %v361_v50  ;;  %v363_v52 = vpop.f32.mrb[5].mxu1  ;;  %v671_v53 = vpop.f32.mrb[4].mxu0 }
 0x120   :  { %v673_v54 = vpop.f32.mrb[5].mxu0 }
 0x121   :  { %v2438_v55 = vadd.f32 %v671_v53, %v362_v51 }
 0x122   :  { %v366_v56 = vpop.f32.mrb[6].mxu1 }
 0x123   :  { %v367_v57 = vadd.f32 %v2429_v38, %v366_v56  ;;  %v368_v58 = vpop.f32.mrb[7].mxu1  ;;  %v676_v59 = vpop.f32.mrb[6].mxu0 }
 0x124   :  { %v678_v60 = vpop.f32.mrb[7].mxu0 }
 0x125   :  { %v2441_v61 = vadd.f32 %v676_v59, %v367_v57 }
 0x126   :  { %v371_v62 = vpop.f32.mrb[8].mxu1 }
 0x127   :  { %v372_v63 = vadd.f32 %v2429_v38, %v371_v62  ;;  %v373_v1 = vpop.f32.mrb[9].mxu1  ;;  %v681_v2 = vpop.f32.mrb[8].mxu0 }
 0x128   :  { %v683_v3 = vpop.f32.mrb[9].mxu0 }
 0x129   :  { %v2444_v4 = vadd.f32 %v681_v2, %v372_v63 }
 0x12a   :  { %v376_v5 = vpop.f32.mrb[10].mxu1 }
 0x12b   :  { %v377_v6 = vadd.f32 %v2429_v38, %v376_v5  ;;  %v378_v7 = vpop.f32.mrb[11].mxu1  ;;  %v686_v8 = vpop.f32.mrb[10].mxu0 }
 0x12c   :  { %v688_v9 = vpop.f32.mrb[11].mxu0 }
 0x12d   :  { %v2447_v10 = vadd.f32 %v686_v8, %v377_v6 }
 0x12e   :  { %v381_v11 = vpop.f32.mrb[12].mxu1 }
 0x12f   :  { %v382_v12 = vadd.f32 %v2429_v38, %v381_v11  ;;  %v383_v13 = vpop.f32.mrb[13].mxu1  ;;  %v691_v14 = vpop.f32.mrb[12].mxu0 }
 0x130   :  { %v693_v15 = vpop.f32.mrb[13].mxu0 }
 0x131   :  { %v2450_v16 = vadd.f32 %v691_v14, %v382_v12 }
 0x132   :  { %v386_v17 = vpop.f32.mrb[14].mxu1 }
 0x133   :  { %v387_v18 = vadd.f32 %v2429_v38, %v386_v17  ;;  %v388_v19 = vpop.f32.mrb[15].mxu1  ;;  %v696_v20 = vpop.f32.mrb[14].mxu0 }
 0x134   :  { %v698_v21 = vpop.f32.mrb[15].mxu0 }
 0x135   :  { %v2453_v22 = vadd.f32 %v696_v20, %v387_v18 }
 0x136   :  { %v391_v23 = vpop.f32.mrb[16].mxu1 }
 0x137   :  { %v392_v24 = vadd.f32 %v2429_v38, %v391_v23  ;;  %v393_v25 = vpop.f32.mrb[17].mxu1  ;;  %v701_v26 = vpop.f32.mrb[16].mxu0  ;;  %v1593_v23 = vmov 0.0  }
 0x138   :  { %v703_v27 = vpop.f32.mrb[17].mxu0  ;;  %18 = vst [vmem:[#allocation2] sm:$0x1] %v1593_v23  ;;  %19 = vst [vmem:[#allocation3] sm:$0x1] %v1593_v23 }
 0x139   :  { %v2456_v28 = vadd.f32 %v701_v26, %v392_v24 }
 0x13a   :  { %v396_v29 = vpop.f32.mrb[18].mxu1 }
 0x13b   :  { %v397_v30 = vadd.f32 %v2429_v38, %v396_v29  ;;  %v398_v31 = vpop.f32.mrb[19].mxu1  ;;  %v706_v32 = vpop.f32.mrb[18].mxu0 }
 0x13c   :  { %v708_v33 = vpop.f32.mrb[19].mxu0 }
 0x13d   :  { %v2459_v34 = vadd.f32 %v706_v32, %v397_v30 }
 0x13e   :  { %v401_v35 = vpop.f32.mrb[20].mxu1 }
 0x13f   :  { %v402_v36 = vadd.f32 %v2429_v38, %v401_v35  ;;  %v403_v37 = vpop.f32.mrb[21].mxu1  ;;  %v711_v39 = vpop.f32.mrb[20].mxu0 }
 0x140   :  { %v713_v0 = vpop.f32.mrb[21].mxu0 }
 0x141   :  { %v2462_v40 = vadd.f32 %v711_v39, %v402_v36 }
 0x142   :  { %v406_v41 = vpop.f32.mrb[22].mxu1 }
 0x143   :  { %v407_v42 = vadd.f32 %v2429_v38, %v406_v41  ;;  %v408_v44 = vpop.f32.mrb[23].mxu1  ;;  %v716_v45 = vpop.f32.mrb[22].mxu0 }
 0x144   :  { %v718_v46 = vpop.f32.mrb[23].mxu0 }
 0x145   :  { %v2465_v47 = vadd.f32 %v716_v45, %v407_v42 }
 0x146   :  { %v411_v48 = vpop.f32.mrb[24].mxu1 }
 0x147   :  { %v412_v50 = vadd.f32 %v2429_v38, %v411_v48  ;;  %v413_v51 = vpop.f32.mrb[25].mxu1  ;;  %v721_v52 = vpop.f32.mrb[24].mxu0 }
 0x148   :  { %v723_v53 = vpop.f32.mrb[25].mxu0 }
 0x149   :  { %v2468_v54 = vadd.f32 %v721_v52, %v412_v50 }
 0x14a   :  { %v416_v56 = vpop.f32.mrb[26].mxu1 }
 0x14b   :  { %v417_v57 = vadd.f32 %v2429_v38, %v416_v56  ;;  %v418_v58 = vpop.f32.mrb[27].mxu1  ;;  %v726_v59 = vpop.f32.mrb[26].mxu0 }
 0x14c   :  { %v728_v60 = vpop.f32.mrb[27].mxu0 }
 0x14d   :  { %v2471_v62 = vadd.f32 %v726_v59, %v417_v57 }
 0x14e   :  { %v421_v63 = vpop.f32.mrb[28].mxu1 }
 0x14f   :  { %v422_v1 = vadd.f32 %v2429_v38, %v421_v63  ;;  %v423_v2 = vpop.f32.mrb[29].mxu1  ;;  %v731_v3 = vpop.f32.mrb[28].mxu0 }
 0x150   :  { %v733_v5 = vpop.f32.mrb[29].mxu0 }
 0x151   :  { %v2474_v6 = vadd.f32 %v731_v3, %v422_v1 }
 0x152   :  { %v426_v7 = vpop.f32.mrb[30].mxu1 }
 0x153   :  { %v427_v8 = vadd.f32 %v2429_v38, %v426_v7  ;;  %v428_v9 = vpop.f32.mrb[31].mxu1  ;;  %v736_v11 = vpop.f32.mrb[30].mxu0 }
 0x154   :  { %v738_v12 = vpop.f32.mrb[31].mxu0 }
 0x155   :  { %v2477_v13 = vadd.f32 %v736_v11, %v427_v8 }
 0x156   :  { %v431_v14 = vpop.f32.mrb[32].mxu1 }
 0x157   :  { %v432_v15 = vadd.f32 %v2429_v38, %v431_v14  ;;  %v433_v17 = vpop.f32.mrb[33].mxu1  ;;  %v741_v18 = vpop.f32.mrb[32].mxu0 }
 0x158   :  { %v743_v19 = vpop.f32.mrb[33].mxu0 }
 0x159   :  { %v2480_v20 = vadd.f32 %v741_v18, %v432_v15 }
 0x15a   :  { %v436_v21 = vpop.f32.mrb[34].mxu1 }
 0x15b   :  { %v437_v24 = vadd.f32 %v2429_v38, %v436_v21  ;;  %v438_v25 = vpop.f32.mrb[35].mxu1  ;;  %v746_v26 = vpop.f32.mrb[34].mxu0 }
 0x15c   :  { %v748_v27 = vpop.f32.mrb[35].mxu0 }
 0x15d   :  { %v2483_v29 = vadd.f32 %v746_v26, %v437_v24  ;;  %v1015_v26 = vmul.f32 %v2435_v49, %v2435_v49 }
 0x15e   :  { %v441_v30 = vpop.f32.mrb[36].mxu1 }
 0x15f   :  { %v442_v31 = vadd.f32 %v2429_v38, %v441_v30  ;;  %v443_v32 = vpop.f32.mrb[37].mxu1  ;;  %v751_v33 = vpop.f32.mrb[36].mxu0 }
 0x160   :  { %v753_v35 = vpop.f32.mrb[37].mxu0 }
 0x161   :  { %v2486_v36 = vadd.f32 %v751_v33, %v442_v31  ;;  %v1014_v33 = vmul.f32 %v2432_v43, %v2432_v43  ;;  %v957_v35 = vadd.f32 %v2435_v49, %v2432_v43 }
 0x162   :  { %v446_v37 = vpop.f32.mrb[38].mxu1 }
 0x163   :  { %v447_v39 = vadd.f32 %v2429_v38, %v446_v37  ;;  %v448_v0 = vpop.f32.mrb[39].mxu1  ;;  %v756_v41 = vpop.f32.mrb[38].mxu0  ;;  %v1016_v37 = vmul.f32 %v2438_v55, %v2438_v55 }
 0x164   :  { %v758_v42 = vpop.f32.mrb[39].mxu0 }
 0x165   :  { %v2489_v44 = vadd.f32 %v756_v41, %v447_v39  ;;  %v1063_v41 = vadd.f32 %v1015_v26, %v1014_v33  ;;  %v958_v42 = vadd.f32 %v957_v35, %v2438_v55  ;;  %v1022_v33 = vmul.f32 %v2456_v28, %v2456_v28 }
 0x166   :  { %v451_v45 = vpop.f32.mrb[40].mxu1 }
 0x167   :  { %v452_v46 = vadd.f32 %v2429_v38, %v451_v45  ;;  %v453_v48 = vpop.f32.mrb[41].mxu1  ;;  %v761_v50 = vpop.f32.mrb[40].mxu0  ;;  %v1017_v45 = vmul.f32 %v2441_v61, %v2441_v61 }
 0x168   :  { %v763_v51 = vpop.f32.mrb[41].mxu0 }
 0x169   :  { %v2492_v52 = vadd.f32 %v761_v50, %v452_v46 }
 0x16a   :  { %v456_v53 = vpop.f32.mrb[42].mxu1 }
 0x16b   :  { %v457_v56 = vadd.f32 %v2429_v38, %v456_v53  ;;  %v458_v57 = vpop.f32.mrb[43].mxu1  ;;  %v766_v58 = vpop.f32.mrb[42].mxu0  ;;  %v1064_v53 = vadd.f32 %v1063_v41, %v1016_v37 }
 0x16c   :  { %v768_v59 = vpop.f32.mrb[43].mxu0  ;;  %v1018_v57 = vmul.f32 %v2444_v4, %v2444_v4 }
 0x16d   :  { %v2495_v60 = vadd.f32 %v766_v58, %v457_v56  ;;  %v959_v56 = vadd.f32 %v958_v42, %v2441_v61  ;;  %v1023_v42 = vmul.f32 %v2459_v34, %v2459_v34 }
 0x16e   :  { %v461_v63 = vpop.f32.mrb[44].mxu1 }
 0x16f   :  { %v462_v1 = vadd.f32 %v2429_v38, %v461_v63  ;;  %v463_v2 = vpop.f32.mrb[45].mxu1  ;;  %v771_v3 = vpop.f32.mrb[44].mxu0  ;;  %v1065_v63 = vadd.f32 %v1064_v53, %v1017_v45 }
 0x170   :  { %v773_v5 = vpop.f32.mrb[45].mxu0  ;;  %v1019_v2 = vmul.f32 %v2447_v10, %v2447_v10 }
 0x171   :  { %v2498_v7 = vadd.f32 %v771_v3, %v462_v1  ;;  %v960_v1 = vadd.f32 %v959_v56, %v2444_v4  ;;  %v1024_v56 = vmul.f32 %v2462_v40, %v2462_v40 }
 0x172   :  { %v466_v8 = vpop.f32.mrb[46].mxu1 }
 0x173   :  { %v467_v9 = vadd.f32 %v2429_v38, %v466_v8  ;;  %v468_v11 = vpop.f32.mrb[47].mxu1  ;;  %v776_v12 = vpop.f32.mrb[46].mxu0 }
 0x174   :  { %v778_v14 = vpop.f32.mrb[47].mxu0  ;;  %v1066_v11 = vadd.f32 %v1065_v63, %v1018_v57 }
 0x175   :  { %v2501_v15 = vadd.f32 %v776_v12, %v467_v9  ;;  %v961_v12 = vadd.f32 %v960_v1, %v2447_v10  ;;  %v1020_v14 = vmul.f32 %v2450_v16, %v2450_v16 }
 0x176   :  { %v471_v17 = vpop.f32.mrb[48].mxu1 }
 0x177   :  { %v472_v18 = vadd.f32 %v2429_v38, %v471_v17  ;;  %v473_v19 = vpop.f32.mrb[49].mxu1  ;;  %v781_v21 = vpop.f32.mrb[48].mxu0 }
 0x178   :  { %v783_v23 = vpop.f32.mrb[49].mxu0  ;;  %v1067_v19 = vadd.f32 %v1066_v11, %v1019_v2  ;;  %v1025_v2 = vmul.f32 %v2465_v47, %v2465_v47 }
 0x179   :  { %v2504_v24 = vadd.f32 %v781_v21, %v472_v18  ;;  %v962_v21 = vadd.f32 %v961_v12, %v2450_v16  ;;  %v1021_v23 = vmul.f32 %v2453_v22, %v2453_v22 }
 0x17a   :  { %v476_v25 = vpop.f32.mrb[50].mxu1 }
 0x17b   :  { %v477_v27 = vadd.f32 %v2429_v38, %v476_v25  ;;  %v478_v30 = vpop.f32.mrb[51].mxu1  ;;  %v786_v31 = vpop.f32.mrb[50].mxu0 }
 0x17c   :  { %v788_v32 = vpop.f32.mrb[51].mxu0 }
 0x17d   :  { %v2515_v39 = vadd.f32 %v786_v31, %v477_v27  ;;  %v1068_v31 = vadd.f32 %v1067_v19, %v1020_v14  ;;  %v963_v32 = vadd.f32 %v962_v21, %v2453_v22  ;;  %v1026_v14 = vmul.f32 %v2468_v54, %v2468_v54 }
 0x17e   :  { %v481_v0 = vpop.f32.mrb[52].mxu1 }
 0x17f   :  { %v482_v46 = vadd.f32 %v2429_v38, %v481_v0  ;;  %v483_v48 = vpop.f32.mrb[53].mxu1  ;;  %v791_v50 = vpop.f32.mrb[52].mxu0  ;;  %v1069_v0 = vadd.f32 %v1068_v31, %v1021_v23  ;;  %v964_v41 = vadd.f32 %v963_v32, %v2456_v28 }
 0x180   :  { %v793_v51 = vpop.f32.mrb[53].mxu0 }
 0x181   :  { %v2524_v58 = vadd.f32 %v791_v50, %v482_v46  ;;  %v1070_v51 = vadd.f32 %v1069_v0, %v1022_v33  ;;  %v965_v53 = vadd.f32 %v964_v41, %v2459_v34 }
 0x182   :  { %v486_v59 = vpop.f32.mrb[54].mxu1 }
 0x183   :  { %v487_v3 = vadd.f32 %v2429_v38, %v486_v59  ;;  %v488_v5 = vpop.f32.mrb[55].mxu1  ;;  %v796_v8 = vpop.f32.mrb[54].mxu0  ;;  %v1071_v63 = vadd.f32 %v1070_v51, %v1023_v42  ;;  %v966_v1 = vadd.f32 %v965_v53, %v2462_v40 }
 0x184   :  { %v798_v9 = vpop.f32.mrb[55].mxu0 }
 0x185   :  { %v2533_v17 = vadd.f32 %v796_v8, %v487_v3  ;;  %v1072_v11 = vadd.f32 %v1071_v63, %v1024_v56  ;;  %v967_v12 = vadd.f32 %v966_v1, %v2465_v47  ;;  %v1030_v63 = vmul.f32 %v2480_v20, %v2480_v20 }
 0x186   :  { %v491_v18 = vpop.f32.mrb[56].mxu1 }
 0x187   :  { %v492_v25 = vadd.f32 %v2429_v38, %v491_v18  ;;  %v493_v26 = vpop.f32.mrb[57].mxu1  ;;  %v801_v27 = vpop.f32.mrb[56].mxu0  ;;  %v1073_v21 = vadd.f32 %v1072_v11, %v1025_v2  ;;  %v968_v23 = vadd.f32 %v967_v12, %v2468_v54 }
 0x188   :  { %v803_v30 = vpop.f32.mrb[57].mxu0 }
 0x189   :  { %v2542_v35 = vadd.f32 %v801_v27, %v492_v25  ;;  %v1027_v25 = vmul.f32 %v2471_v62, %v2471_v62  ;;  %v1074_v32 = vadd.f32 %v1073_v21, %v1026_v14  ;;  %v969_v33 = vadd.f32 %v968_v23, %v2471_v62 }
 0x18a   :  { %v496_v37 = vpop.f32.mrb[58].mxu1  ;;  %v1032_v23 = vmul.f32 %v2486_v36, %v2486_v36 }
 0x18b   :  { %v497_v45 = vadd.f32 %v2429_v38, %v496_v37  ;;  %v498_v46 = vpop.f32.mrb[59].mxu1  ;;  %v806_v48 = vpop.f32.mrb[58].mxu0  ;;  %v1028_v37 = vmul.f32 %v2474_v6, %v2474_v6  ;;  %v1075_v42 = vadd.f32 %v1074_v32, %v1027_v25 }
 0x18c   :  { %v808_v50 = vpop.f32.mrb[59].mxu0  ;;  %v1029_v46 = vmul.f32 %v2477_v13, %v2477_v13 }
 0x18d   :  { %v2551_v57 = vadd.f32 %v806_v48, %v497_v45  ;;  %v970_v45 = vadd.f32 %v969_v33, %v2474_v6  ;;  %v1076_v56 = vadd.f32 %v1075_v42, %v1028_v37 }
 0x18e   :  { %v501_v59 = vpop.f32.mrb[60].mxu1 }
 0x18f   :  { %v502_v3 = vadd.f32 %v2429_v38, %v501_v59  ;;  %v503_v5 = vpop.f32.mrb[61].mxu1  ;;  %v811_v8 = vpop.f32.mrb[60].mxu0  ;;  %v971_v59 = vadd.f32 %v970_v45, %v2477_v13 }
 0x190   :  { %v813_v9 = vpop.f32.mrb[61].mxu0 }
 0x191   :  { %v2560_v18 = vadd.f32 %v811_v8, %v502_v3  ;;  %v1077_v3 = vadd.f32 %v1076_v56, %v1029_v46  ;;  %v972_v5 = vadd.f32 %v971_v59, %v2480_v20  ;;  %v1031_v8 = vmul.f32 %v2483_v29, %v2483_v29 }
 0x192   :  { %v506_v19 = vpop.f32.mrb[62].mxu1  ;;  %v1034_v46 = vmul.f32 %v2492_v52, %v2492_v52  ;;  %v1035_v56 = vmul.f32 %v2495_v60, %v2495_v60 }
 0x193   :  { %v507_v26 = vadd.f32 %v2429_v38, %v506_v19  ;;  %v508_v27 = vpop.f32.mrb[63].mxu1  ;;  %v816_v30 = vpop.f32.mrb[62].mxu0  ;;  %v1078_v19 = vadd.f32 %v1077_v3, %v1030_v63  ;;  %v973_v21 = vadd.f32 %v972_v5, %v2483_v29 }
 0x194   :  { %v818_v31 = vpop.f32.mrb[63].mxu0 }
 0x195   :  { %v2569_v0 = vadd.f32 %v816_v30, %v507_v26  ;;  %v1079_v27 = vadd.f32 %v1078_v19, %v1031_v8  ;;  %v974_v30 = vadd.f32 %v973_v21, %v2486_v36  ;;  %v1033_v31 = vmul.f32 %v2489_v44, %v2489_v44 }
 0x196   :  { %v511_v41 = vpop.f32.mrb[64].mxu1  ;;  %v1037_v21 = vmul.f32 %v2501_v15, %v2501_v15 }
 0x197   :  { %v512_v48 = vadd.f32 %v2429_v38, %v511_v41  ;;  %v513_v50 = vpop.f32.mrb[65].mxu1  ;;  %v821_v51 = vpop.f32.mrb[64].mxu0  ;;  %v1080_v42 = vadd.f32 %v1079_v27, %v1032_v23  ;;  %v975_v45 = vadd.f32 %v974_v30, %v2489_v44 }
 0x198   :  { %v823_v53 = vpop.f32.mrb[65].mxu0 }
 0x199   :  { %v2578_v1 = vadd.f32 %v821_v51, %v512_v48  ;;  %v1081_v51 = vadd.f32 %v1080_v42, %v1033_v31  ;;  %v976_v53 = vadd.f32 %v975_v45, %v2492_v52 }
 0x19a   :  { %v516_v2 = vpop.f32.mrb[66].mxu1 }
 0x19b   :  { %v517_v9 = vadd.f32 %v2429_v38, %v516_v2  ;;  %v518_v11 = vpop.f32.mrb[67].mxu1  ;;  %v826_v12 = vpop.f32.mrb[66].mxu0  ;;  %v1082_v5 = vadd.f32 %v1081_v51, %v1034_v46  ;;  %v977_v8 = vadd.f32 %v976_v53, %v2495_v60  ;;  %v1039_v46 = vmul.f32 %v2515_v39, %v2515_v39 }
 0x19c   :  { %v828_v14 = vpop.f32.mrb[67].mxu0 }
 0x19d   :  { %v2587_v25 = vadd.f32 %v826_v12, %v517_v9  ;;  %v1036_v9 = vmul.f32 %v2498_v7, %v2498_v7  ;;  %v1083_v14 = vadd.f32 %v1082_v5, %v1035_v56  ;;  %v978_v19 = vadd.f32 %v977_v8, %v2498_v7 }
 0x19e   :  { %v521_v26 = vpop.f32.mrb[68].mxu1 }
 0x19f   :  { %v522_v32 = vadd.f32 %v2429_v38, %v521_v26  ;;  %v523_v33 = vpop.f32.mrb[69].mxu1  ;;  %v831_v37 = vpop.f32.mrb[68].mxu0  ;;  %v1084_v31 = vadd.f32 %v1083_v14, %v1036_v9 }
 0x1a0   :  { %v833_v41 = vpop.f32.mrb[69].mxu0  ;;  %v1038_v33 = vmul.f32 %v2504_v24, %v2504_v24 }
 0x1a1   :  { %v2596_v48 = vadd.f32 %v831_v37, %v522_v32  ;;  %v979_v32 = vadd.f32 %v978_v19, %v2501_v15  ;;  %v1085_v42 = vadd.f32 %v1084_v31, %v1037_v21 }
 0x1a2   :  { %v526_v50 = vpop.f32.mrb[70].mxu1 }
 0x1a3   :  { %v527_v59 = vadd.f32 %v2429_v38, %v526_v50  ;;  %v528_v63 = vpop.f32.mrb[71].mxu1  ;;  %v836_v2 = vpop.f32.mrb[70].mxu0  ;;  %v980_v45 = vadd.f32 %v979_v32, %v2504_v24 }
 0x1a4   :  { %v838_v3 = vpop.f32.mrb[71].mxu0 }
 0x1a5   :  { %v2605_v11 = vadd.f32 %v836_v2, %v527_v59  ;;  %v1086_v59 = vadd.f32 %v1085_v42, %v1038_v33  ;;  %v981_v63 = vadd.f32 %v980_v45, %v2515_v39  ;;  %v1040_v2 = vmul.f32 %v2524_v58, %v2524_v58 }
 0x1a6   :  { %v531_v12 = vpop.f32.mrb[72].mxu1  ;;  %v1043_v42 = vmul.f32 %v2551_v57, %v2551_v57 }
 0x1a7   :  { %v532_v23 = vadd.f32 %v2429_v38, %v531_v12  ;;  %v533_v26 = vpop.f32.mrb[73].mxu1  ;;  %v841_v27 = vpop.f32.mrb[72].mxu0  ;;  %v1087_v8 = vadd.f32 %v1086_v59, %v1039_v46  ;;  %v982_v9 = vadd.f32 %v981_v63, %v2524_v58  ;;  %v1041_v12 = vmul.f32 %v2533_v17, %v2533_v17 }
 0x1a8   :  { %v843_v30 = vpop.f32.mrb[73].mxu0  ;;  %v1044_v59 = vmul.f32 %v2560_v18, %v2560_v18 }
 0x1a9   :  { %v2614_v37 = vadd.f32 %v841_v27, %v532_v23  ;;  %v1088_v26 = vadd.f32 %v1087_v8, %v1040_v2  ;;  %v983_v27 = vadd.f32 %v982_v9, %v2533_v17  ;;  %v1042_v30 = vmul.f32 %v2542_v35, %v2542_v35 }
 0x1aa   :  { %v536_v41 = vpop.f32.mrb[74].mxu1  ;;  %v1045_v9 = vmul.f32 %v2569_v0, %v2569_v0 }
 0x1ab   :  { %v537_v50 = vadd.f32 %v2429_v38, %v536_v41  ;;  %v538_v51 = vpop.f32.mrb[75].mxu1  ;;  %v846_v53 = vpop.f32.mrb[74].mxu0  ;;  %v1089_v33 = vadd.f32 %v1088_v26, %v1041_v12  ;;  %v984_v41 = vadd.f32 %v983_v27, %v2542_v35  ;;  %v1046_v27 = vmul.f32 %v2578_v1, %v2578_v1 }
 0x1ac   :  { %v848_v56 = vpop.f32.mrb[75].mxu0 }
 0x1ad   :  { %v2623_v3 = vadd.f32 %v846_v53, %v537_v50  ;;  %v1090_v53 = vadd.f32 %v1089_v33, %v1042_v30  ;;  %v985_v56 = vadd.f32 %v984_v41, %v2551_v57 }
 0x1ae   :  { %v541_v5 = vpop.f32.mrb[76].mxu1 }
 0x1af   :  { %v542_v14 = vadd.f32 %v2429_v38, %v541_v5  ;;  %v543_v19 = vpop.f32.mrb[77].mxu1  ;;  %v851_v21 = vpop.f32.mrb[76].mxu0  ;;  %v1091_v5 = vadd.f32 %v1090_v53, %v1043_v42  ;;  %v986_v8 = vadd.f32 %v985_v56, %v2560_v18  ;;  %v1047_v42 = vmul.f32 %v2587_v25, %v2587_v25 }
 0x1b0   :  { %v853_v23 = vpop.f32.mrb[77].mxu0 }
 0x1b1   :  { %v2632_v31 = vadd.f32 %v851_v21, %v542_v14  ;;  %v1092_v23 = vadd.f32 %v1091_v5, %v1044_v59  ;;  %v987_v26 = vadd.f32 %v986_v8, %v2569_v0  ;;  %v1048_v59 = vmul.f32 %v2596_v48, %v2596_v48 }
 0x1b2   :  { %v546_v32 = vpop.f32.mrb[78].mxu1 }
 0x1b3   :  { %v547_v45 = vadd.f32 %v2429_v38, %v546_v32  ;;  %v548_v46 = vpop.f32.mrb[79].mxu1  ;;  %v856_v50 = vpop.f32.mrb[78].mxu0  ;;  %v1093_v33 = vadd.f32 %v1092_v23, %v1045_v9  ;;  %v988_v41 = vadd.f32 %v987_v26, %v2578_v1 }
 0x1b4   :  { %v858_v51 = vpop.f32.mrb[79].mxu0 }
 0x1b5   :  { %v2641_v63 = vadd.f32 %v856_v50, %v547_v45  ;;  %v1094_v53 = vadd.f32 %v1093_v33, %v1046_v27  ;;  %v989_v56 = vadd.f32 %v988_v41, %v2587_v25 }
 0x1b6   :  { %v551_v2 = vpop.f32.mrb[80].mxu1 }
 0x1b7   :  { %v552_v12 = vadd.f32 %v2429_v38, %v551_v2  ;;  %v553_v14 = vpop.f32.mrb[81].mxu1  ;;  %v861_v19 = vpop.f32.mrb[80].mxu0  ;;  %v1095_v8 = vadd.f32 %v1094_v53, %v1047_v42  ;;  %v990_v9 = vadd.f32 %v989_v56, %v2596_v48 }
 0x1b8   :  { %v863_v21 = vpop.f32.mrb[81].mxu0 }
 0x1b9   :  { %v2650_v30 = vadd.f32 %v861_v19, %v552_v12  ;;  %v1049_v12 = vmul.f32 %v2605_v11, %v2605_v11  ;;  %v1096_v26 = vadd.f32 %v1095_v8, %v1048_v59  ;;  %v991_v27 = vadd.f32 %v990_v9, %v2605_v11 }
 0x1ba   :  { %v556_v32 = vpop.f32.mrb[82].mxu1  ;;  %v1052_v8 = vmul.f32 %v2632_v31, %v2632_v31 }
 0x1bb   :  { %v557_v45 = vadd.f32 %v2429_v38, %v556_v32  ;;  %v558_v46 = vpop.f32.mrb[83].mxu1  ;;  %v866_v50 = vpop.f32.mrb[82].mxu0  ;;  %v1050_v32 = vmul.f32 %v2614_v37, %v2614_v37  ;;  %v1097_v42 = vadd.f32 %v1096_v26, %v1049_v12 }
 0x1bc   :  { %v868_v51 = vpop.f32.mrb[83].mxu0  ;;  %v1051_v46 = vmul.f32 %v2623_v3, %v2623_v3 }
 0x1bd   :  { %v2659_v2 = vadd.f32 %v866_v50, %v557_v45  ;;  %v992_v45 = vadd.f32 %v991_v27, %v2614_v37  ;;  %v1098_v59 = vadd.f32 %v1097_v42, %v1050_v32 }
 0x1be   :  { %v561_v5 = vpop.f32.mrb[84].mxu1 }
 0x1bf   :  { %v562_v14 = vadd.f32 %v2429_v38, %v561_v5  ;;  %v563_v19 = vpop.f32.mrb[85].mxu1  ;;  %v871_v21 = vpop.f32.mrb[84].mxu0  ;;  %v993_v5 = vadd.f32 %v992_v45, %v2623_v3  ;;  %v1099_v12 = vadd.f32 %v1098_v59, %v1051_v46  ;;  %v1054_v45 = vmul.f32 %v2650_v30, %v2650_v30 }
 0x1c0   :  { %v873_v23 = vpop.f32.mrb[85].mxu0 }
 0x1c1   :  { %v2668_v33 = vadd.f32 %v871_v21, %v562_v14  ;;  %v994_v19 = vadd.f32 %v993_v5, %v2632_v31  ;;  %v1053_v21 = vmul.f32 %v2641_v63, %v2641_v63  ;;  %v1100_v32 = vadd.f32 %v1099_v12, %v1052_v8 }
 0x1c2   :  { %v566_v41 = vpop.f32.mrb[86].mxu1 }
 0x1c3   :  { %3076 = vst [vmem:[#allocation4_spill] sm:$0xff] %v2668_v33  ;;  %v567_v50 = vadd.f32 %v2429_v38, %v566_v41  ;;  %v568_v51 = vpop.f32.mrb[87].mxu1  ;;  %v876_v53 = vpop.f32.mrb[86].mxu0  ;;  %v995_v42 = vadd.f32 %v994_v19, %v2641_v63  ;;  %v1101_v46 = vadd.f32 %v1100_v32, %v1053_v21  ;;  %v1056_v19 = vmul.f32 %v2668_v33, %v2668_v33 }
 0x1c4   :  { %v878_v56 = vpop.f32.mrb[87].mxu0 }
 0x1c5   :  { %v2677_v9 = vadd.f32 %v876_v53, %v567_v50  ;;  %v996_v53 = vadd.f32 %v995_v42, %v2650_v30  ;;  %v1055_v56 = vmul.f32 %v2659_v2, %v2659_v2  ;;  %v1102_v8 = vadd.f32 %v1101_v46, %v1054_v45 }
 0x1c6   :  { %v571_v14 = vpop.f32.mrb[88].mxu1 }
 0x1c7   :  { %3077 = vst [vmem:[#allocation5_spill] sm:$0xff] %v2677_v9  ;;  %v572_v23 = vadd.f32 %v2429_v38, %v571_v14  ;;  %v573_v26 = vpop.f32.mrb[89].mxu1  ;;  %v881_v27 = vpop.f32.mrb[88].mxu0  ;;  %v997_v12 = vadd.f32 %v996_v53, %v2659_v2  ;;  %v1103_v21 = vadd.f32 %v1102_v8, %v1055_v56  ;;  %v1057_v32 = vmul.f32 %v2677_v9, %v2677_v9 }
 0x1c8   :  { %v883_v41 = vpop.f32.mrb[89].mxu0 }
 0x1c9   :  { %v2686_v50 = vadd.f32 %v881_v27, %v572_v23  ;;  %v998_v41 = vadd.f32 %v997_v12, %v2668_v33  ;;  %v1104_v45 = vadd.f32 %v1103_v21, %v1056_v19 }
 0x1ca   :  { %v576_v51 = vpop.f32.mrb[90].mxu1 }
 0x1cb   :  { %3078 = vst [vmem:[#allocation6_spill] sm:$0xff] %v2686_v50  ;;  %v577_v59 = vadd.f32 %v2429_v38, %v576_v51  ;;  %v578_v5 = vpop.f32.mrb[91].mxu1  ;;  %v886_v14 = vpop.f32.mrb[90].mxu0  ;;  %v999_v46 = vadd.f32 %v998_v41, %v2677_v9  ;;  %v1058_v53 = vmul.f32 %v2686_v50, %v2686_v50  ;;  %v1105_v56 = vadd.f32 %v1104_v45, %v1057_v32 }
 0x1cc   :  { %v888_v26 = vpop.f32.mrb[91].mxu0 }
 0x1cd   :  { %v2695_v23 = vadd.f32 %v886_v14, %v577_v59  ;;  %v1000_v8 = vadd.f32 %v999_v46, %v2686_v50  ;;  %v1106_v19 = vadd.f32 %v1105_v56, %v1058_v53 }
 0x1ce   :  { %v581_v27 = vpop.f32.mrb[92].mxu1 }
 0x1cf   :  { %3079 = vst [vmem:[#allocation7_spill] sm:$0xff] %v2695_v23  ;;  %v582_v42 = vadd.f32 %v2429_v38, %v581_v27  ;;  %v583_v51 = vpop.f32.mrb[93].mxu1  ;;  %v891_v5 = vpop.f32.mrb[92].mxu0  ;;  %v1059_v12 = vmul.f32 %v2695_v23, %v2695_v23  ;;  %v1001_v21 = vadd.f32 %v1000_v8, %v2695_v23 }
 0x1d0   :  { %v893_v26 = vpop.f32.mrb[93].mxu0 }
 0x1d1   :  { %v2704_v59 = vadd.f32 %v891_v5, %v582_v42  ;;  %v1107_v32 = vadd.f32 %v1106_v19, %v1059_v12 }
 0x1d2   :  { %v586_v14 = vpop.f32.mrb[94].mxu1 }
 0x1d3   :  { %3080 = vst [vmem:[#allocation8_spill] sm:$0xff] %v2704_v59  ;;  %v587_v27 = vadd.f32 %v2429_v38, %v586_v14  ;;  %v588_v51 = vpop.f32.mrb[95].mxu1  ;;  %v896_v33 = vpop.f32.mrb[94].mxu0  ;;  %v1060_v41 = vmul.f32 %v2704_v59, %v2704_v59  ;;  %v1002_v45 = vadd.f32 %v1001_v21, %v2704_v59 }
 0x1d4   :  { %v898_v26 = vpop.f32.mrb[95].mxu0 }
 0x1d5   :  { %v2713_v42 = vadd.f32 %v896_v33, %v587_v27  ;;  %v1108_v53 = vadd.f32 %v1107_v32, %v1060_v41  ;;  %v956_v32 = vld [vmem:[#allocation2] sm:$0x1] }
 0x1d6   :  { %v591_v5 = vpop.f32.mrb[96].mxu1 }
 0x1d7   :  { %3081 = vst [vmem:[#allocation9_spill] sm:$0xff] %v2713_v42  ;;  %v1061_v46 = vmul.f32 %v2713_v42, %v2713_v42  ;;  %v592_v14 = vadd.f32 %v2429_v38, %v591_v5  ;;  %v593_v51 = vpop.f32.mrb[97].mxu1  ;;  %v901_v50 = vpop.f32.mrb[96].mxu0  ;;  %v1003_v56 = vadd.f32 %v1002_v45, %v2713_v42 }
 0x1d8   :  { %v903_v26 = vpop.f32.mrb[97].mxu0 }
 0x1d9   :  { %v2720_v8 = vadd.f32 %v901_v50, %v592_v14  ;;  %v1109_v23 = vadd.f32 %v1108_v53, %v1061_v46  ;;  %v1013_v14 = vld [vmem:[#allocation3] sm:$0x1] }
 0x1db   :  { %3082 = vst [vmem:[#allocation10_spill] sm:$0xff] %v2720_v8  ;;  %v1004_v33 = vadd.f32 %v1003_v56, %v2720_v8  ;;  %v1062_v12 = vmul.f32 %v2720_v8, %v2720_v8 }
 0x1dd   :  { %v1005_v27 = vrot.slane %v1004_v33, 4  ;;  %v1110_v19 = vadd.f32 %v1109_v23, %v1062_v12 }
 0x1df   :  { %v1006_v21 = vadd.f32 %v1005_v27, %v1004_v33  ;;  %v1111_v59 = vrot.slane %v1110_v19, 4 }
 0x1e1   :  { %v1007_v9 = vrot.slane %v1006_v21, 2  ;;  %v1112_v38 = vadd.f32 %v1111_v59, %v1110_v19  ;;  %v1185_v19 = vlaneseq }
 0x1e3   :  { %v1008_v5 = vadd.f32 %v1007_v9, %v1006_v21  ;;  %v1113_v51 = vrot.slane %v1112_v38, 2  ;;  %v1186_v21 = vshrl.u32 %v1185_v19, 7  ;;  %v3085_v19 = vld [vmem:[#allocation6_spill] sm:$0xff] }
 0x1e5   :  { %v1009_v26 = vrot.slane %v1008_v5, 1  ;;  %v1114_v41 = vadd.f32 %v1113_v51, %v1112_v38  ;;  %v1129_v38 = vld [vmem:[%s3067_s2 + $0x1] sm:$0x1] }
 0x1e7   :  { %v1010_v45 = vadd.f32 %v1009_v26, %v1008_v5  ;;  %v1115_v50 = vrot.slane %v1114_v41, 1  ;;  %v1187_v5 = vsub.s32 0, %v1186_v21 }
 0x1e9   :  { %v1011_v46 = vadd.f32 %v1010_v45, %v956_v32  ;;  %v1116_v53 = vadd.f32 %v1115_v50, %v1114_v41 }
 0x1eb   :  { %1012 = vst [vmem:[#allocation2] sm:$0x1] %v1011_v46  ;;  %v1117_v56 = vadd.f32 %v1116_v53, %v1013_v14 }
 0x1ed   :  { %1118 = vst [vmem:[#allocation3] sm:$0x1] %v1117_v56 }
 0x1f2   :  { %v1122_v8 = vld [vmem:[#allocation2] sm:$0x1] }
 0x1f3   :  { %v1123_v42 = vmul.f32 0.0025510204, %v1122_v8  ;;  %v1133_v8 = vld [vmem:[%s3067_s2 + $0x2] sm:$0x1] }
 0x1f4   :  { %v1124_v23 = vld [vmem:[#allocation3] sm:$0x1] }
 0x1f5   :  { %v1125_v33 = vmul.f32 0.0025510204, %v1124_v23  ;;  %v1126_v12 = vmul.f32 %v1123_v42, %v1123_v42 }
 0x1f7   :  { %v1127_v27 = vsub.f32 %v1125_v33, %v1126_v12 }
 0x1f9   :  { %v1128_v59 = vmax.f32 %v1127_v27, 0.0 }
 0x1fb   :  { %v1130_v9 = vadd.f32 1e-05, %v1128_v59  ;;  %v3083_v59 = vld [vmem:[#allocation4_spill] sm:$0xff] }
 0x1fd   :  { %1590 = vrsqrt.f32 %v1130_v9  ;;  %v3084_v9 = vld [vmem:[#allocation5_spill] sm:$0xff] }
 0x207   :  { %v1591_v51 = vpop.eup %1590 }
 0x208   :  { %v1132_v26 = vmul.f32 %v1591_v51, %v1129_v38 }
 0x20a   :  { %v1134_v41 = vmul.f32 %v1132_v26, %v1123_v42  ;;  %v1188_v32 = vrot.slane %v1132_v26, %v1187_v5 }
 0x20c   :  { %v1135_v45 = vsub.f32 %v1133_v8, %v1134_v41  ;;  %v1189_v50 = vmul.f32 %v1188_v32, %v2432_v43  ;;  %v1190_v14 = vmul.f32 %v1188_v32, %v2435_v49  ;;  %v1191_v46 = vmul.f32 %v1188_v32, %v2438_v55 }
 0x20d   :  { %v1192_v53 = vmul.f32 %v1188_v32, %v2441_v61  ;;  %v1193_v56 = vmul.f32 %v1188_v32, %v2444_v4  ;;  %v1194_v23 = vmul.f32 %v1188_v32, %v2447_v10  ;;  %v1195_v33 = vmul.f32 %v1188_v32, %v2450_v16 }
 0x20e   :  { %v1196_v12 = vmul.f32 %v1188_v32, %v2453_v22  ;;  %v1197_v42 = vmul.f32 %v1188_v32, %v2456_v28  ;;  %v1198_v27 = vmul.f32 %v1188_v32, %v2459_v34  ;;  %v1199_v43 = vmul.f32 %v1188_v32, %v2462_v40 }
 0x20f   :  { %v1200_v49 = vmul.f32 %v1188_v32, %v2465_v47  ;;  %v1201_v55 = vmul.f32 %v1188_v32, %v2468_v54  ;;  %v1202_v61 = vmul.f32 %v1188_v32, %v2471_v62  ;;  %v1203_v4 = vmul.f32 %v1188_v32, %v2474_v6 }
 0x210   :  { %v1204_v10 = vmul.f32 %v1188_v32, %v2477_v13  ;;  %v1205_v16 = vmul.f32 %v1188_v32, %v2480_v20  ;;  %v1206_v22 = vmul.f32 %v1188_v32, %v2483_v29  ;;  %v1207_v28 = vmul.f32 %v1188_v32, %v2486_v36 }
 0x211   :  { %v1208_v34 = vmul.f32 %v1188_v32, %v2489_v44  ;;  %v1209_v40 = vmul.f32 %v1188_v32, %v2492_v52  ;;  %v1210_v47 = vmul.f32 %v1188_v32, %v2495_v60  ;;  %v1211_v54 = vmul.f32 %v1188_v32, %v2498_v7 }
 0x212   :  { %v1212_v62 = vmul.f32 %v1188_v32, %v2501_v15  ;;  %v1213_v6 = vmul.f32 %v1188_v32, %v2504_v24  ;;  %v1214_v13 = vmul.f32 %v1188_v32, %v2515_v39  ;;  %v1215_v20 = vmul.f32 %v1188_v32, %v2524_v58 }
 0x213   :  { %v1216_v29 = vmul.f32 %v1188_v32, %v2533_v17  ;;  %v1217_v36 = vmul.f32 %v1188_v32, %v2542_v35  ;;  %v1218_v44 = vmul.f32 %v1188_v32, %v2551_v57  ;;  %v1219_v52 = vmul.f32 %v1188_v32, %v2560_v18 }
 0x214   :  { %v1220_v60 = vmul.f32 %v1188_v32, %v2569_v0  ;;  %v1221_v7 = vmul.f32 %v1188_v32, %v2578_v1  ;;  %v1222_v15 = vmul.f32 %v1188_v32, %v2587_v25  ;;  %v1223_v24 = vmul.f32 %v1188_v32, %v2596_v48 }
 0x215   :  { %v1224_v39 = vmul.f32 %v1188_v32, %v2605_v11  ;;  %v1225_v58 = vmul.f32 %v1188_v32, %v2614_v37  ;;  %v1226_v17 = vmul.f32 %v1188_v32, %v2623_v3  ;;  %v1227_v35 = vmul.f32 %v1188_v32, %v2632_v31  ;;  %v3086_v11 = vld [vmem:[#allocation7_spill] sm:$0xff]  ;;  %v3087_v37 = vld [vmem:[#allocation8_spill] sm:$0xff]  ;;  %v3088_v3 = vld [vmem:[#allocation9_spill] sm:$0xff] }
 0x216   :  { %v1228_v57 = vmul.f32 %v1188_v32, %v2641_v63  ;;  %v1229_v18 = vmul.f32 %v1188_v32, %v2650_v30  ;;  %v1230_v0 = vmul.f32 %v1188_v32, %v2659_v2  ;;  %v1231_v1 = vmul.f32 %v1188_v32, %v3083_v59  ;;  %v3089_v31 = vld [vmem:[#allocation10_spill] sm:$0xff] }
 0x217   :  { %v1232_v25 = vmul.f32 %v1188_v32, %v3084_v9  ;;  %v1233_v48 = vmul.f32 %v1188_v32, %v3085_v19  ;;  %v1241_v21 = vrot.slane %v1135_v45, %v1187_v5  ;;  %v1234_v38 = vmul.f32 %v1188_v32, %v3086_v11 }
 0x218   :  { %v1235_v51 = vmul.f32 %v1188_v32, %v3087_v37  ;;  %v1236_v26 = vmul.f32 %v1188_v32, %v3088_v3  ;;  %v1237_v8 = vmul.f32 %v1188_v32, %v3089_v31 }
 0x219   :  { %v1242_v63 = vadd.f32 %v1241_v21, %v1189_v50  ;;  %v1243_v41 = vadd.f32 %v1241_v21, %v1190_v14  ;;  %v1244_v30 = vadd.f32 %v1241_v21, %v1191_v46  ;;  %v2780_v2 = vadd.f32 %v1241_v21, %v1192_v53 }
 0x21a   :  { %v2782_v59 = vadd.f32 %v1241_v21, %v1193_v56  ;;  %v2784_v9 = vadd.f32 %v1241_v21, %v1194_v23  ;;  %v2786_v19 = vadd.f32 %v1241_v21, %v1195_v33  ;;  %v2788_v5 = vadd.f32 %v1241_v21, %v1196_v12 }
 0x21b   :  { %v2790_v45 = vadd.f32 %v1241_v21, %v1197_v42  ;;  %v2792_v11 = vadd.f32 %v1241_v21, %v1198_v27  ;;  %v2794_v37 = vadd.f32 %v1241_v21, %v1199_v43  ;;  %v2796_v32 = vadd.f32 %v1241_v21, %v1200_v49 }
 0x21c   :  { %v2798_v50 = vadd.f32 %v1241_v21, %v1201_v55  ;;  %v2800_v14 = vadd.f32 %v1241_v21, %v1202_v61  ;;  %v2802_v46 = vadd.f32 %v1241_v21, %v1203_v4  ;;  %v2804_v53 = vadd.f32 %v1241_v21, %v1204_v10 }
 0x21d   :  { %v2806_v56 = vadd.f32 %v1241_v21, %v1205_v16  ;;  %v2808_v23 = vadd.f32 %v1241_v21, %v1206_v22  ;;  %v2810_v33 = vadd.f32 %v1241_v21, %v1207_v28  ;;  %v2812_v12 = vadd.f32 %v1241_v21, %v1208_v34 }
 0x21e   :  { %v2814_v42 = vadd.f32 %v1241_v21, %v1209_v40  ;;  %v2816_v27 = vadd.f32 %v1241_v21, %v1210_v47  ;;  %v2818_v43 = vadd.f32 %v1241_v21, %v1211_v54  ;;  %v2820_v49 = vadd.f32 %v1241_v21, %v1212_v62 }
 0x21f   :  { %v2822_v55 = vadd.f32 %v1241_v21, %v1213_v6  ;;  %v2824_v61 = vadd.f32 %v1241_v21, %v1214_v13  ;;  %v2826_v4 = vadd.f32 %v1241_v21, %v1215_v20  ;;  %v2828_v10 = vadd.f32 %v1241_v21, %v1216_v29 }
 0x220   :  { %v2830_v16 = vadd.f32 %v1241_v21, %v1217_v36  ;;  %v2832_v22 = vadd.f32 %v1241_v21, %v1218_v44  ;;  %v2834_v28 = vadd.f32 %v1241_v21, %v1219_v52  ;;  %v2836_v34 = vadd.f32 %v1241_v21, %v1220_v60 }
 0x221   :  { %v2838_v40 = vadd.f32 %v1241_v21, %v1221_v7  ;;  %v2840_v47 = vadd.f32 %v1241_v21, %v1222_v15  ;;  %v2842_v54 = vadd.f32 %v1241_v21, %v1223_v24  ;;  %v2844_v62 = vadd.f32 %v1241_v21, %v1224_v39 }
 0x222   :  { %v2846_v6 = vadd.f32 %v1241_v21, %v1225_v58  ;;  %v2848_v13 = vadd.f32 %v1241_v21, %v1226_v17  ;;  %v2850_v20 = vadd.f32 %v1241_v21, %v1227_v35  ;;  %v2852_v29 = vadd.f32 %v1241_v21, %v1228_v57 }
 0x223   :  { %v2854_v36 = vadd.f32 %v1241_v21, %v1229_v18  ;;  %v2856_v44 = vadd.f32 %v1241_v21, %v1230_v0  ;;  %v2858_v52 = vadd.f32 %v1241_v21, %v1231_v1  ;;  %v2860_v60 = vadd.f32 %v1241_v21, %v1232_v25 }
 0x224   :  { %v2862_v7 = vadd.f32 %v1241_v21, %v1233_v48  ;;  %v2864_v15 = vadd.f32 %v1241_v21, %v1234_v38  ;;  %v2866_v24 = vadd.f32 %v1241_v21, %v1235_v51  ;;  %v2868_v39 = vadd.f32 %v1241_v21, %v1236_v26 }
 0x225   :  { %v2870_v58 = vadd.f32 %v1241_v21, %v1237_v8  ;;  %v1291_v17 = vmax.f32 %v1242_v63, 0.0  ;;  %v1292_v35 = vmax.f32 %v1243_v41, 0.0  ;;  %v1293_v57 = vmax.f32 %v1244_v30, 0.0 }
 0x226   :  { %v1294_v18 = vmax.f32 %v2780_v2, 0.0  ;;  %v1295_v0 = vmax.f32 %v2782_v59, 0.0  ;;  %v1296_v1 = vmax.f32 %v2784_v9, 0.0  ;;  %v1297_v25 = vmax.f32 %v2786_v19, 0.0 }
 0x227   :  { %v1298_v48 = vmax.f32 %v2788_v5, 0.0  ;;  %v1299_v38 = vmax.f32 %v2790_v45, 0.0  ;;  %v1300_v51 = vmax.f32 %v2792_v11, 0.0  ;;  %v1301_v21 = vmax.f32 %v2794_v37, 0.0  ;;  %1340 = vst [vmem:[%s3068_s3] sm:$0xff] %v1291_v17  ;;  %1341 = vst [vmem:[%s3068_s3 + $0x8] sm:$0xff] %v1292_v35 }
 0x228   :  { %1342 = vst [vmem:[%s3068_s3 + $0x10] sm:$0xff] %v1293_v57  ;;  %v1302_v3 = vmax.f32 %v2796_v32, 0.0  ;;  %v1303_v26 = vmax.f32 %v2798_v50, 0.0  ;;  %v1304_v31 = vmax.f32 %v2800_v14, 0.0  ;;  %v1305_v8 = vmax.f32 %v2802_v46, 0.0  ;;  %1343 = vst [vmem:[%s3068_s3 + $0x18] sm:$0xff] %v1294_v18 }
 0x229   :  { %1344 = vst [vmem:[%s3068_s3 + $0x20] sm:$0xff] %v1295_v0  ;;  %1345 = vst [vmem:[%s3068_s3 + $0x28] sm:$0xff] %v1296_v1  ;;  %v1306_v63 = vmax.f32 %v2804_v53, 0.0  ;;  %v1307_v41 = vmax.f32 %v2806_v56, 0.0  ;;  %v1308_v30 = vmax.f32 %v2808_v23, 0.0  ;;  %v1309_v2 = vmax.f32 %v2810_v33, 0.0 }
 0x22a   :  { %1346 = vst [vmem:[%s3068_s3 + $0x30] sm:$0xff] %v1297_v25  ;;  %1347 = vst [vmem:[%s3068_s3 + $0x38] sm:$0xff] %v1298_v48  ;;  %v1310_v59 = vmax.f32 %v2812_v12, 0.0  ;;  %v1311_v9 = vmax.f32 %v2814_v42, 0.0  ;;  %v1312_v19 = vmax.f32 %v2816_v27, 0.0  ;;  %v1313_v5 = vmax.f32 %v2818_v43, 0.0 }
 0x22b   :  { %1348 = vst [vmem:[%s3068_s3 + $0x40] sm:$0xff] %v1299_v38  ;;  %1349 = vst [vmem:[%s3068_s3 + $0x48] sm:$0xff] %v1300_v51  ;;  %v1314_v45 = vmax.f32 %v2820_v49, 0.0  ;;  %v1315_v11 = vmax.f32 %v2822_v55, 0.0  ;;  %v1316_v37 = vmax.f32 %v2824_v61, 0.0  ;;  %v1317_v32 = vmax.f32 %v2826_v4, 0.0 }
 0x22c   :  { %1350 = vst [vmem:[%s3068_s3 + $0x50] sm:$0xff] %v1301_v21  ;;  %1351 = vst [vmem:[%s3068_s3 + $0x58] sm:$0xff] %v1302_v3  ;;  %v1318_v50 = vmax.f32 %v2828_v10, 0.0  ;;  %v1319_v14 = vmax.f32 %v2830_v16, 0.0  ;;  %v1320_v46 = vmax.f32 %v2832_v22, 0.0  ;;  %v1321_v53 = vmax.f32 %v2834_v28, 0.0 }
 0x22d   :  { %1352 = vst [vmem:[%s3068_s3 + $0x60] sm:$0xff] %v1303_v26  ;;  %1353 = vst [vmem:[%s3068_s3 + $0x68] sm:$0xff] %v1304_v31  ;;  %v1322_v56 = vmax.f32 %v2836_v34, 0.0  ;;  %v1323_v23 = vmax.f32 %v2838_v40, 0.0  ;;  %v1324_v33 = vmax.f32 %v2840_v47, 0.0  ;;  %v1325_v12 = vmax.f32 %v2842_v54, 0.0 }
 0x22e   :  { %1354 = vst [vmem:[%s3068_s3 + $0x70] sm:$0xff] %v1305_v8  ;;  %1355 = vst [vmem:[%s3068_s3 + $0x78] sm:$0xff] %v1306_v63  ;;  %v1326_v42 = vmax.f32 %v2844_v62, 0.0  ;;  %v1327_v27 = vmax.f32 %v2846_v6, 0.0  ;;  %v1328_v43 = vmax.f32 %v2848_v13, 0.0  ;;  %v1329_v49 = vmax.f32 %v2850_v20, 0.0 }
 0x22f   :  { %1356 = vst [vmem:[%s3068_s3 + $0x80] sm:$0xff] %v1307_v41  ;;  %1357 = vst [vmem:[%s3068_s3 + $0x88] sm:$0xff] %v1308_v30  ;;  %v1330_v55 = vmax.f32 %v2852_v29, 0.0  ;;  %v1331_v61 = vmax.f32 %v2854_v36, 0.0  ;;  %v1332_v4 = vmax.f32 %v2856_v44, 0.0  ;;  %v1333_v10 = vmax.f32 %v2858_v52, 0.0 }
 0x230   :  { %1358 = vst [vmem:[%s3068_s3 + $0x90] sm:$0xff] %v1309_v2  ;;  %1359 = vst [vmem:[%s3068_s3 + $0x98] sm:$0xff] %v1310_v59  ;;  %v1334_v16 = vmax.f32 %v2860_v60, 0.0  ;;  %v1335_v22 = vmax.f32 %v2862_v7, 0.0  ;;  %v1336_v28 = vmax.f32 %v2864_v15, 0.0  ;;  %v1337_v34 = vmax.f32 %v2866_v24, 0.0 }
 0x231   :  { %1360 = vst [vmem:[%s3068_s3 + $0xa0] sm:$0xff] %v1311_v9  ;;  %1361 = vst [vmem:[%s3068_s3 + $0xa8] sm:$0xff] %v1312_v19  ;;  %v1338_v40 = vmax.f32 %v2868_v39, 0.0  ;;  %v1339_v47 = vmax.f32 %v2870_v58, 0.0 }
 0x232   :  { %1362 = vst [vmem:[%s3068_s3 + $0xb0] sm:$0xff] %v1313_v5  ;;  %1363 = vst [vmem:[%s3068_s3 + $0xb8] sm:$0xff] %v1314_v45 }
 0x233   :  { %1364 = vst [vmem:[%s3068_s3 + $0xc0] sm:$0xff] %v1315_v11  ;;  %1365 = vst [vmem:[%s3068_s3 + $0xc8] sm:$0xff] %v1316_v37 }
 0x234   :  { %1366 = vst [vmem:[%s3068_s3 + $0xd0] sm:$0xff] %v1317_v32  ;;  %1367 = vst [vmem:[%s3068_s3 + $0xd8] sm:$0xff] %v1318_v50 }
 0x235   :  { %1368 = vst [vmem:[%s3068_s3 + $0xe0] sm:$0xff] %v1319_v14  ;;  %1369 = vst [vmem:[%s3068_s3 + $0xe8] sm:$0xff] %v1320_v46 }
 0x236   :  { %1370 = vst [vmem:[%s3068_s3 + $0xf0] sm:$0xff] %v1321_v53  ;;  %1371 = vst [vmem:[%s3068_s3 + $0xf8] sm:$0xff] %v1322_v56 }
 0x237   :  { %1372 = vst [vmem:[%s3068_s3 + $0x100] sm:$0xff] %v1323_v23  ;;  %1373 = vst [vmem:[%s3068_s3 + $0x108] sm:$0xff] %v1324_v33 }
 0x238   :  { %1374 = vst [vmem:[%s3068_s3 + $0x110] sm:$0xff] %v1325_v12  ;;  %1375 = vst [vmem:[%s3068_s3 + $0x118] sm:$0xff] %v1326_v42 }
 0x239   :  { %1376 = vst [vmem:[%s3068_s3 + $0x120] sm:$0xff] %v1327_v27  ;;  %1377 = vst [vmem:[%s3068_s3 + $0x128] sm:$0xff] %v1328_v43 }
 0x23a   :  { %1378 = vst [vmem:[%s3068_s3 + $0x130] sm:$0xff] %v1329_v49  ;;  %1379 = vst [vmem:[%s3068_s3 + $0x138] sm:$0xff] %v1330_v55 }
 0x23b   :  { %1380 = vst [vmem:[%s3068_s3 + $0x140] sm:$0xff] %v1331_v61  ;;  %1381 = vst [vmem:[%s3068_s3 + $0x148] sm:$0xff] %v1332_v4 }
 0x23c   :  { %1382 = vst [vmem:[%s3068_s3 + $0x150] sm:$0xff] %v1333_v10  ;;  %1383 = vst [vmem:[%s3068_s3 + $0x158] sm:$0xff] %v1334_v16 }
 0x23d   :  { %1384 = vst [vmem:[%s3068_s3 + $0x160] sm:$0xff] %v1335_v22  ;;  %1385 = vst [vmem:[%s3068_s3 + $0x168] sm:$0xff] %v1336_v28 }
 0x23e   :  { %1386 = vst [vmem:[%s3068_s3 + $0x170] sm:$0xff] %v1337_v34  ;;  %1387 = vst [vmem:[%s3068_s3 + $0x178] sm:$0xff] %v1338_v40 }
 0x23f   :  { %1388 = vst [vmem:[%s3068_s3 + $0x180] sm:$0xff] %v1339_v47 }

// kernel: dfqi_forward.6
= control target key start
LH: loop header
LB: loop body
LE: loop exit
PB: predicated region body
PF: predicated region fallthrough
CT: control target
= control target key end

     0   :  { %v1872_v0 = vmov 0.0|0.0   ;;  %vm277_vm0 = vcmask 523264   ;;  %s3343_s1 = inlined_call_operand.vmem [shape: f32[576,128], index: 1, kind: input, shape index: {}]   ;;  %s3344_s0 = inlined_call_operand.vmem [shape: f32[288,576], index: 0, kind: input, shape index: {}]   ;;  %s3345_s2 = inlined_call_operand.vmem [shape: f32[8,128], index: 2, kind: input, shape index: {}]   ;;  %s3346_s3 = inlined_call_operand.vmem [shape: f32[288,128], index: 3, kind: output, shape index: {}]  }
   0x1   :  { %1643 = vmatprep.subr.bf16.mxu0 %v1872_v0  ;;  %1755 = vmatprep.subr.bf16.mxu1 %v1872_v0  ;;  %v200_v1 = vld [vmem:[%s3343_s1] sm:$0xff]  ;;  %v201_v2 = vld [vmem:[%s3343_s1 + $0x8] sm:$0xff]  ;;  %v202_v6 = vld [vmem:[%s3343_s1 + $0x10] sm:$0xff] }
   0x2   :  { %v232_v3 = vld [vmem:[%s3343_s1 + $0x100] sm:$0xff]  ;;  %v1644_v4 = vpack.c.bf16 %v201_v2, %v200_v1  ;;  %v233_v5 = vld [vmem:[%s3343_s1 + $0x108] sm:$0xff]  ;;  %v203_v7 = vld [vmem:[%s3343_s1 + $0x18] sm:$0xff] }
   0x3   :  { %v1914_v8 = vpack.c.bf16 %v233_v5, %v232_v3  ;;  %v234_v9 = vld [vmem:[%s3343_s1 + $0x110] sm:$0xff]  ;;  %v235_v10 = vld [vmem:[%s3343_s1 + $0x118] sm:$0xff]  ;;  %v1647_v11 = vpack.c.bf16 %v203_v7, %v202_v6  ;;  %v204_v13 = vld [vmem:[%s3343_s1 + $0x20] sm:$0xff] }
   0x4   :  { %1645 = vmatpush1.bf16.msra.mxu0 %v1644_v4  ;;  %v1924_v12 = vpack.c.bf16 %v235_v10, %v234_v9  ;;  %v205_v14 = vld [vmem:[%s3343_s1 + $0x28] sm:$0xff]  ;;  %v236_v15 = vld [vmem:[%s3343_s1 + $0x120] sm:$0xff]  ;;  %v206_v19 = vld [vmem:[%s3343_s1 + $0x30] sm:$0xff] }
   0x5   :  { %1771 = vmatpush1.bf16.msra.mxu1 %v1914_v8  ;;  %1646 = vmatprep.subr.bf16.mxu0 %v1872_v0  ;;  %v237_v16 = vld [vmem:[%s3343_s1 + $0x128] sm:$0xff]  ;;  %v1650_v17 = vpack.c.bf16 %v205_v14, %v204_v13  ;;  %v207_v20 = vld [vmem:[%s3343_s1 + $0x38] sm:$0xff]  ;;  %v238_v21 = vld [vmem:[%s3343_s1 + $0x130] sm:$0xff] }
   0x6   :  { %1756 = vmatprep.subr.bf16.mxu1 %v1872_v0  ;;  %v1941_v18 = vpack.c.bf16 %v237_v16, %v236_v15  ;;  %v239_v22 = vld [vmem:[%s3343_s1 + $0x138] sm:$0xff]  ;;  %v1653_v23 = vpack.c.bf16 %v207_v20, %v206_v19  ;;  %v208_v25 = vld [vmem:[%s3343_s1 + $0x40] sm:$0xff]  ;;  %v209_v26 = vld [vmem:[%s3343_s1 + $0x48] sm:$0xff] }
   0x7   :  { %v1958_v24 = vpack.c.bf16 %v239_v22, %v238_v21  ;;  %v240_v27 = vld [vmem:[%s3343_s1 + $0x140] sm:$0xff]  ;;  %v241_v28 = vld [vmem:[%s3343_s1 + $0x148] sm:$0xff]  ;;  %v1656_v29 = vpack.c.bf16 %v209_v26, %v208_v25  ;;  %v210_v31 = vld [vmem:[%s3343_s1 + $0x50] sm:$0xff] }
   0x8   :  { %1648 = vmatpush1.bf16.msra.mxu0 %v1647_v11  ;;  %v1975_v30 = vpack.c.bf16 %v241_v28, %v240_v27  ;;  %v211_v32 = vld [vmem:[%s3343_s1 + $0x58] sm:$0xff]  ;;  %v242_v33 = vld [vmem:[%s3343_s1 + $0x150] sm:$0xff]  ;;  %v212_v37 = vld [vmem:[%s3343_s1 + $0x60] sm:$0xff] }
   0x9   :  { %1772 = vmatpush1.bf16.msra.mxu1 %v1924_v12  ;;  %1649 = vmatprep.subr.bf16.mxu0 %v1872_v0  ;;  %v243_v34 = vld [vmem:[%s3343_s1 + $0x158] sm:$0xff]  ;;  %v1659_v35 = vpack.c.bf16 %v211_v32, %v210_v31  ;;  %v213_v38 = vld [vmem:[%s3343_s1 + $0x68] sm:$0xff]  ;;  %v244_v39 = vld [vmem:[%s3343_s1 + $0x160] sm:$0xff] }
   0xa   :  { %1757 = vmatprep.subr.bf16.mxu1 %v1872_v0  ;;  %v1992_v36 = vpack.c.bf16 %v243_v34, %v242_v33  ;;  %v245_v40 = vld [vmem:[%s3343_s1 + $0x168] sm:$0xff]  ;;  %v68_v42 = vld [vmem:[%s3344_s0 + $0x180] sm:$0xff]  ;;  %v1662_v43 = vpack.c.bf16 %v213_v38, %v212_v37  ;;  %v214_v45 = vld [vmem:[%s3343_s1 + $0x70] sm:$0xff] }
   0xb   :  { %v21_v41 = vld [vmem:[%s3344_s0 + $0x8] sm:$0xff]  ;;  %740 = vmatprep.mubr.f32.mxu1 %v68_v42  ;;  %v2015_v44 = vpack.c.bf16 %v245_v40, %v244_v39  ;;  %v215_v46 = vld [vmem:[%s3343_s1 + $0x78] sm:$0xff]  ;;  %v246_v47 = vld [vmem:[%s3343_s1 + $0x170] sm:$0xff] }
   0xc   :  { %1651 = vmatpush1.bf16.msra.mxu0 %v1650_v17  ;;  %450 = vmatprep.mubr.f32.mxu0 %v21_v41  ;;  %v247_v48 = vld [vmem:[%s3343_s1 + $0x178] sm:$0xff]  ;;  %v1665_v49 = vpack.c.bf16 %v215_v46, %v214_v45  ;;  %v216_v51 = vld [vmem:[%s3343_s1 + $0x80] sm:$0xff]  ;;  %v217_v52 = vld [vmem:[%s3343_s1 + $0x88] sm:$0xff] }
   0xd   :  { %1773 = vmatpush1.bf16.msra.mxu1 %v1941_v18  ;;  %1652 = vmatprep.subr.bf16.mxu0 %v1872_v0  ;;  %v2032_v50 = vpack.c.bf16 %v247_v48, %v246_v47  ;;  %v248_v53 = vld [vmem:[%s3343_s1 + $0x180] sm:$0xff]  ;;  %v249_v54 = vld [vmem:[%s3343_s1 + $0x188] sm:$0xff]  ;;  %v1668_v55 = vpack.c.bf16 %v217_v52, %v216_v51  ;;  %v218_v57 = vld [vmem:[%s3343_s1 + $0x90] sm:$0xff] }
   0xe   :  { %1758 = vmatprep.subr.bf16.mxu1 %v1872_v0  ;;  %v2049_v56 = vpack.c.bf16 %v249_v54, %v248_v53  ;;  %v219_v58 = vld [vmem:[%s3343_s1 + $0x98] sm:$0xff]  ;;  %v250_v59 = vld [vmem:[%s3343_s1 + $0x190] sm:$0xff]  ;;  %v220_v63 = vld [vmem:[%s3343_s1 + $0xa0] sm:$0xff] }
   0xf   :  { %v251_v60 = vld [vmem:[%s3343_s1 + $0x198] sm:$0xff]  ;;  %v1671_v61 = vpack.c.bf16 %v219_v58, %v218_v57  ;;  %v221_v1 = vld [vmem:[%s3343_s1 + $0xa8] sm:$0xff]  ;;  %v252_v2 = vld [vmem:[%s3343_s1 + $0x1a0] sm:$0xff] }
  0x10   :  { %1654 = vmatpush1.bf16.msra.mxu0 %v1653_v23  ;;  %v2066_v62 = vpack.c.bf16 %v251_v60, %v250_v59  ;;  %v253_v3 = vld [vmem:[%s3343_s1 + $0x1a8] sm:$0xff]  ;;  %v1674_v4 = vpack.c.bf16 %v221_v1, %v220_v63  ;;  %v222_v6 = vld [vmem:[%s3343_s1 + $0xb0] sm:$0xff]  ;;  %v223_v7 = vld [vmem:[%s3343_s1 + $0xb8] sm:$0xff] }
  0x11   :  { %1774 = vmatpush1.bf16.msra.mxu1 %v1958_v24  ;;  %1655 = vmatprep.subr.bf16.mxu0 %v1872_v0  ;;  %v2083_v5 = vpack.c.bf16 %v253_v3, %v252_v2  ;;  %v254_v9 = vld [vmem:[%s3343_s1 + $0x1b0] sm:$0xff]  ;;  %v255_v10 = vld [vmem:[%s3343_s1 + $0x1b8] sm:$0xff]  ;;  %v1677_v11 = vpack.c.bf16 %v223_v7, %v222_v6  ;;  %v224_v14 = vld [vmem:[%s3343_s1 + $0xc0] sm:$0xff] }
  0x12   :  { %1759 = vmatprep.subr.bf16.mxu1 %v1872_v0  ;;  %v2100_v13 = vpack.c.bf16 %v255_v10, %v254_v9  ;;  %v225_v15 = vld [vmem:[%s3343_s1 + $0xc8] sm:$0xff]  ;;  %v256_v16 = vld [vmem:[%s3343_s1 + $0x1c0] sm:$0xff]  ;;  %v226_v21 = vld [vmem:[%s3343_s1 + $0xd0] sm:$0xff] }
  0x13   :  { %v257_v17 = vld [vmem:[%s3343_s1 + $0x1c8] sm:$0xff]  ;;  %v1680_v19 = vpack.c.bf16 %v225_v15, %v224_v14  ;;  %v227_v22 = vld [vmem:[%s3343_s1 + $0xd8] sm:$0xff]  ;;  %v258_v23 = vld [vmem:[%s3343_s1 + $0x1d0] sm:$0xff] }
  0x14   :  { %1657 = vmatpush1.bf16.msra.mxu0 %v1656_v29  ;;  %v2117_v20 = vpack.c.bf16 %v257_v17, %v256_v16  ;;  %v259_v25 = vld [vmem:[%s3343_s1 + $0x1d8] sm:$0xff]  ;;  %v1683_v26 = vpack.c.bf16 %v227_v22, %v226_v21  ;;  %v228_v28 = vld [vmem:[%s3343_s1 + $0xe0] sm:$0xff]  ;;  %v229_v29 = vld [vmem:[%s3343_s1 + $0xe8] sm:$0xff] }
  0x15   :  { %1775 = vmatpush1.bf16.msra.mxu1 %v1975_v30  ;;  %1658 = vmatprep.subr.bf16.mxu0 %v1872_v0  ;;  %v2134_v27 = vpack.c.bf16 %v259_v25, %v258_v23  ;;  %v260_v31 = vld [vmem:[%s3343_s1 + $0x1e0] sm:$0xff]  ;;  %v261_v32 = vld [vmem:[%s3343_s1 + $0x1e8] sm:$0xff]  ;;  %v1686_v33 = vpack.c.bf16 %v229_v29, %v228_v28  ;;  %v231_v37 = vld [vmem:[%s3343_s1 + $0xf8] sm:$0xff] }
  0x16   :  { %1760 = vmatprep.subr.bf16.mxu1 %v1872_v0  ;;  %v2151_v34 = vpack.c.bf16 %v261_v32, %v260_v31  ;;  %v262_v38 = vld [vmem:[%s3343_s1 + $0x1f0] sm:$0xff]  ;;  %v263_v39 = vld [vmem:[%s3343_s1 + $0x1f8] sm:$0xff]  ;;  %v264_v40 = vld [vmem:[%s3343_s1 + $0x200] sm:$0xff] }
  0x17   :  { %v265_v41 = vld [vmem:[%s3343_s1 + $0x208] sm:$0xff]  ;;  %v20_v46 = vld [vmem:[%s3344_s0] sm:$0xff]  ;;  %v266_v47 = vld [vmem:[%s3343_s1 + $0x210] sm:$0xff] }
  0x18   :  { %1660 = vmatpush1.bf16.msra.mxu0 %v1659_v35  ;;  %v230_v35 = vld [vmem:[%s3343_s1 + $0xf0] sm:$0xff]  ;;  %v1739_v45 = vpack.c.bf16 %v265_v41, %v264_v40  ;;  %v267_v48 = vld [vmem:[%s3343_s1 + $0x218] sm:$0xff]  ;;  %v73_v52 = vld [vmem:[%s3344_s0 + $0x1a8] sm:$0xff] }
  0x19   :  { %1776 = vmatpush1.bf16.msra.mxu1 %v1992_v36  ;;  %1661 = vmatprep.subr.bf16.mxu0 %v1872_v0  ;;  %v1689_v42 = vpack.c.bf16 %v231_v37, %v230_v35  ;;  %v26_v51 = vld [vmem:[%s3344_s0 + $0x30] sm:$0xff]  ;;  %v1743_v53 = vpack.c.bf16 %v267_v48, %v266_v47  ;;  %v25_v54 = vld [vmem:[%s3344_s0 + $0x28] sm:$0xff]  ;;  %v72_v58 = vld [vmem:[%s3344_s0 + $0x1a0] sm:$0xff] }
  0x1a   :  { %1761 = vmatprep.subr.bf16.mxu1 %v1872_v0  ;;  %v269_v57 = vld [vmem:[%s3343_s1 + $0x228] sm:$0xff]  ;;  %v78_v59 = vld [vmem:[%s3344_s0 + $0x1d0] sm:$0xff]  ;;  %v271_v1 = vld [vmem:[%s3343_s1 + $0x238] sm:$0xff] }
  0x1b   :  { %v270_v63 = vld [vmem:[%s3343_s1 + $0x230] sm:$0xff]  ;;  %v77_v2 = vld [vmem:[%s3344_s0 + $0x1c8] sm:$0xff]  ;;  %v36_v3 = vld [vmem:[%s3344_s0 + $0x80] sm:$0xff] }
  0x1c   :  { %1663 = vmatpush1.bf16.msra.mxu0 %v1662_v43  ;;  %v2174_v43 = vpack.c.bf16 %v263_v39, %v262_v38  ;;  %v1751_v6 = vpack.c.bf16 %v271_v1, %v270_v63  ;;  %v82_v7 = vld [vmem:[%s3344_s0 + $0x1f0] sm:$0xff]  ;;  %v41_v9 = vld [vmem:[%s3344_s0 + $0xa8] sm:$0xff]  ;;  %v88_v10 = vld [vmem:[%s3344_s0 + $0x220] sm:$0xff] }
  0x1d   :  { %1777 = vmatpush1.bf16.msra.mxu1 %v2015_v44  ;;  %1664 = vmatprep.subr.bf16.mxu0 %v1872_v0  ;;  %v46_v14 = vld [vmem:[%s3344_s0 + $0xd0] sm:$0xff]  ;;  %v93_v15 = vld [vmem:[%s3344_s0 + $0x248] sm:$0xff]  ;;  %v92_v17 = vld [vmem:[%s3344_s0 + $0x240] sm:$0xff] }
  0x1e   :  { %1762 = vmatprep.subr.bf16.mxu1 %v1872_v0  ;;  %v45_v16 = vld [vmem:[%s3344_s0 + $0xc8] sm:$0xff]  ;;  %v50_v21 = vld [vmem:[%s3344_s0 + $0xf0] sm:$0xff]  ;;  %v103_v23 = vld [vmem:[%s3344_s0 + $0x298] sm:$0xff] }
  0x1f   :  { %v97_v22 = vld [vmem:[%s3344_s0 + $0x268] sm:$0xff]  ;;  %v55_v25 = vld [vmem:[%s3344_s0 + $0x118] sm:$0xff]  ;;  %v108_v28 = vld [vmem:[%s3344_s0 + $0x2c0] sm:$0xff] }
  0x20   :  { %1666 = vmatpush1.bf16.msra.mxu0 %v1665_v49  ;;  %v67_v49 = vld [vmem:[%s3344_s0 + $0x178] sm:$0xff]  ;;  %v60_v29 = vld [vmem:[%s3344_s0 + $0x140] sm:$0xff]  ;;  %v113_v32 = vld [vmem:[%s3344_s0 + $0x2e8] sm:$0xff] }
  0x21   :  { %1778 = vmatpush1.bf16.msra.mxu1 %v2032_v50  ;;  %1667 = vmatprep.subr.bf16.mxu0 %v1872_v0  ;;  %v107_v31 = vld [vmem:[%s3344_s0 + $0x2b8] sm:$0xff]  ;;  %v112_v35 = vld [vmem:[%s3344_s0 + $0x2e0] sm:$0xff]  ;;  %v118_v37 = vld [vmem:[%s3344_s0 + $0x310] sm:$0xff] }
  0x22   :  { %1763 = vmatprep.subr.bf16.mxu1 %v1872_v0  ;;  %v70_v38 = vld [vmem:[%s3344_s0 + $0x190] sm:$0xff]  ;;  %v117_v39 = vld [vmem:[%s3344_s0 + $0x308] sm:$0xff]  ;;  %v123_v40 = vld [vmem:[%s3344_s0 + $0x338] sm:$0xff] }
  0x23   :  { %v75_v41 = vld [vmem:[%s3344_s0 + $0x1b8] sm:$0xff]  ;;  %v133_v48 = vld [vmem:[%s3344_s0 + $0x388] sm:$0xff]  ;;  %v152_v63 = vld [vmem:[%s3344_s0 + $0x420] sm:$0xff] }
  0x24   :  { %1669 = vmatpush1.bf16.msra.mxu0 %v1668_v55  ;;  %v268_v55 = vld [vmem:[%s3343_s1 + $0x220] sm:$0xff]  ;;  %v127_v47 = vld [vmem:[%s3344_s0 + $0x358] sm:$0xff]  ;;  %v158_v1 = vld [vmem:[%s3344_s0 + $0x450] sm:$0xff] }
  0x25   :  { %1779 = vmatpush1.bf16.msra.mxu1 %v2049_v56  ;;  %1670 = vmatprep.subr.bf16.mxu0 %v1872_v0  ;;  %v1747_v60 = vpack.c.bf16 %v269_v57, %v268_v55  ;;  %v143_v55 = vld [vmem:[%s3344_s0 + $0x3d8] sm:$0xff] }
  0x26   :  { %1764 = vmatprep.subr.bf16.mxu1 %v1872_v0  ;;  %v95_v57 = vld [vmem:[%s3344_s0 + $0x258] sm:$0xff] }
  0x28   :  { %1672 = vmatpush1.bf16.msra.mxu0 %v1671_v61  ;;  %v30_v61 = vld [vmem:[%s3344_s0 + $0x50] sm:$0xff] }
  0x29   :  { %1780 = vmatpush1.bf16.msra.mxu1 %v2066_v62  ;;  %1673 = vmatprep.subr.bf16.mxu0 %v1872_v0 }
  0x2a   :  { %1765 = vmatprep.subr.bf16.mxu1 %v1872_v0 }
  0x2c   :  { %1675 = vmatpush1.bf16.msra.mxu0 %v1674_v4  ;;  %v83_v4 = vld [vmem:[%s3344_s0 + $0x1f8] sm:$0xff] }
  0x2d   :  { %1781 = vmatpush1.bf16.msra.mxu1 %v2083_v5  ;;  %1676 = vmatprep.subr.bf16.mxu0 %v1872_v0 }
  0x2e   :  { %1766 = vmatprep.subr.bf16.mxu1 %v1872_v0 }
  0x30   :  { %1678 = vmatpush1.bf16.msra.mxu0 %v1677_v11  ;;  %v40_v11 = vld [vmem:[%s3344_s0 + $0xa0] sm:$0xff] }
  0x31   :  { %1782 = vmatpush1.bf16.msra.mxu1 %v2100_v13  ;;  %1679 = vmatprep.subr.bf16.mxu0 %v1872_v0 }
  0x32   :  { %1767 = vmatprep.subr.bf16.mxu1 %v1872_v0 }
  0x34   :  { %1681 = vmatpush1.bf16.msra.mxu0 %v1680_v19  ;;  %v98_v19 = vld [vmem:[%s3344_s0 + $0x270] sm:$0xff] }
  0x35   :  { %1783 = vmatpush1.bf16.msra.mxu1 %v2117_v20  ;;  %1682 = vmatprep.subr.bf16.mxu0 %v1872_v0 }
  0x36   :  { %1768 = vmatprep.subr.bf16.mxu1 %v1872_v0 }
  0x38   :  { %1684 = vmatpush1.bf16.msra.mxu0 %v1683_v26  ;;  %v102_v26 = vld [vmem:[%s3344_s0 + $0x290] sm:$0xff] }
  0x39   :  { %1784 = vmatpush1.bf16.msra.mxu1 %v2134_v27  ;;  %1685 = vmatprep.subr.bf16.mxu0 %v1872_v0 }
  0x3a   :  { %1769 = vmatprep.subr.bf16.mxu1 %v1872_v0 }
  0x3c   :  { %1687 = vmatpush1.bf16.msra.mxu0 %v1686_v33  ;;  %v65_v33 = vld [vmem:[%s3344_s0 + $0x168] sm:$0xff] }
  0x3d   :  { %1785 = vmatpush1.bf16.msra.mxu1 %v2151_v34  ;;  %1688 = vmatprep.subr.bf16.mxu0 %v1872_v0 }
  0x3e   :  { %1770 = vmatprep.subr.bf16.mxu1 %v1872_v0 }
  0x40   :  { %1690 = vmatpush1.bf16.msra.mxu0 %v1689_v42  ;;  %v122_v42 = vld [vmem:[%s3344_s0 + $0x330] sm:$0xff] }
  0x41   :  { %1786 = vmatpush1.bf16.msra.mxu1 %v2174_v43  ;;  %1691 = vmatprep.subr.bf16.mxu0 %v1872_v0 }
  0x42   :  { %1740 = vmatprep.subr.bf16.mxu1 %v1739_v45 }
  0x43   :  { %451 = vmatmul.mubr.f32.vlgmr.msra.gmra.mrb[0].mxu0 %v20_v46  ;;  %v80_v46 = vld [vmem:[%s3344_s0 + $0x1e0] sm:$0xff] }
  0x44   :  { %741 = vmatmul.mubr.f32.vlgmr.msra.gmra.mrb[0].mxu1 %v67_v49  ;;  %1693 = vmatpush1.bf16.msra.mxu0 %v1914_v8  ;;  %v31_v8 = vld [vmem:[%s3344_s0 + $0x58] sm:$0xff]  ;;  %v85_v49 = vld [vmem:[%s3344_s0 + $0x208] sm:$0xff] }
  0x45   :  { %455 = vmatprep.mubr.f32.mxu0 %v26_v51  ;;  %745 = vmatprep.mubr.f32.mxu1 %v73_v52  ;;  %v132_v51 = vld [vmem:[%s3344_s0 + $0x380] sm:$0xff]  ;;  %v138_v52 = vld [vmem:[%s3344_s0 + $0x3b0] sm:$0xff] }
  0x46   :  { %1694 = vmatprep.subr.bf16.mxu0 %v1872_v0  ;;  %1742 = vmatpush3.bf16.msra.mxu1 %v1739_v45  ;;  %v128_v45 = vld [vmem:[%s3344_s0 + $0x360] sm:$0xff] }
  0x47   :  { %456 = vmatmul.mubr.f32.gmra.mrb[2].mxu0 %v25_v54  ;;  %1744 = vmatprep.subr.bf16.mxu1 %v1743_v53  ;;  %v137_v54 = vld [vmem:[%s3344_s0 + $0x3a8] sm:$0xff] }
  0x48   :  { %746 = vmatmul.mubr.f32.gmra.mrb[2].mxu1 %v72_v58  ;;  %460 = vmatprep.mubr.f32.mxu0 %v31_v8  ;;  %v142_v58 = vld [vmem:[%s3344_s0 + $0x3d0] sm:$0xff]  ;;  %v148_v8 = vld [vmem:[%s3344_s0 + $0x400] sm:$0xff] }
  0x49   :  { %750 = vmatprep.mubr.f32.mxu1 %v78_v59  ;;  %1696 = vmatpush1.bf16.msra.mxu0 %v1924_v12  ;;  %v35_v12 = vld [vmem:[%s3344_s0 + $0x78] sm:$0xff]  ;;  %v100_v59 = vld [vmem:[%s3344_s0 + $0x280] sm:$0xff] }
  0x4a   :  { %1697 = vmatprep.subr.bf16.mxu0 %v1872_v0  ;;  %1746 = vmatpush3.bf16.msra.mxu1 %v1743_v53  ;;  %v90_v53 = vld [vmem:[%s3344_s0 + $0x230] sm:$0xff] }
  0x4b   :  { %461 = vmatmul.mubr.f32.gmra.mrb[4].mxu0 %v30_v61  ;;  %1748 = vmatprep.subr.bf16.mxu1 %v1747_v60  ;;  %v105_v61 = vld [vmem:[%s3344_s0 + $0x2a8] sm:$0xff] }
  0x4c   :  { %751 = vmatmul.mubr.f32.gmra.mrb[4].mxu1 %v77_v2  ;;  %465 = vmatprep.mubr.f32.mxu0 %v36_v3  ;;  %v110_v2 = vld [vmem:[%s3344_s0 + $0x2d0] sm:$0xff]  ;;  %v157_v3 = vld [vmem:[%s3344_s0 + $0x448] sm:$0xff] }
  0x4d   :  { %755 = vmatprep.mubr.f32.mxu1 %v83_v4  ;;  %1699 = vmatpush1.bf16.msra.mxu0 %v1941_v18  ;;  %v87_v18 = vld [vmem:[%s3344_s0 + $0x218] sm:$0xff]  ;;  %v116_v4 = vld [vmem:[%s3344_s0 + $0x300] sm:$0xff] }
  0x4e   :  { %1700 = vmatprep.subr.bf16.mxu0 %v1872_v0  ;;  %1750 = vmatpush3.bf16.msra.mxu1 %v1747_v60  ;;  %v147_v60 = vld [vmem:[%s3344_s0 + $0x3f8] sm:$0xff] }
  0x4f   :  { %466 = vmatmul.mubr.f32.gmra.mrb[6].mxu0 %v35_v12  ;;  %1752 = vmatprep.subr.bf16.mxu1 %v1751_v6  ;;  %v115_v12 = vld [vmem:[%s3344_s0 + $0x2f8] sm:$0xff] }
  0x50   :  { %756 = vmatmul.mubr.f32.gmra.mrb[6].mxu1 %v82_v7  ;;  %470 = vmatprep.mubr.f32.mxu0 %v41_v9  ;;  %v162_v7 = vld [vmem:[%s3344_s0 + $0x470] sm:$0xff]  ;;  %v121_v9 = vld [vmem:[%s3344_s0 + $0x328] sm:$0xff] }
  0x51   :  { %760 = vmatprep.mubr.f32.mxu1 %v88_v10  ;;  %1702 = vmatpush1.bf16.msra.mxu0 %v1958_v24  ;;  %v51_v24 = vld [vmem:[%s3344_s0 + $0xf8] sm:$0xff]  ;;  %v168_v10 = vld [vmem:[%s3344_s0 + $0x4a0] sm:$0xff] }
  0x52   :  { %1703 = vmatprep.subr.bf16.mxu0 %v1872_v0  ;;  %1754 = vmatpush3.bf16.msra.mxu1 %v1751_v6  ;;  %v163_v6 = vld [vmem:[%s3344_s0 + $0x478] sm:$0xff] }
  0x53   :  { %471 = vmatmul.mubr.f32.gmra.mrb[8].mxu0 %v40_v11  ;;  %v120_v11 = vld [vmem:[%s3344_s0 + $0x320] sm:$0xff] }
  0x54   :  { %761 = vmatmul.mubr.f32.gmra.mrb[8].mxu1 %v87_v18  ;;  %475 = vmatprep.mubr.f32.mxu0 %v46_v14  ;;  %v167_v18 = vld [vmem:[%s3344_s0 + $0x498] sm:$0xff]  ;;  %v126_v14 = vld [vmem:[%s3344_s0 + $0x350] sm:$0xff] }
  0x55   :  { %765 = vmatprep.mubr.f32.mxu1 %v93_v15  ;;  %1705 = vmatpush1.bf16.msra.mxu0 %v1975_v30  ;;  %v56_v30 = vld [vmem:[%s3344_s0 + $0x120] sm:$0xff]  ;;  %v173_v15 = vld [vmem:[%s3344_s0 + $0x4c8] sm:$0xff] }
  0x56   :  { %1706 = vmatprep.subr.bf16.mxu0 %v1872_v0 }
  0x57   :  { %476 = vmatmul.mubr.f32.gmra.mrb[10].mxu0 %v45_v16  ;;  %v125_v16 = vld [vmem:[%s3344_s0 + $0x348] sm:$0xff] }
  0x58   :  { %766 = vmatmul.mubr.f32.gmra.mrb[10].mxu1 %v92_v17  ;;  %480 = vmatprep.mubr.f32.mxu0 %v51_v24  ;;  %v172_v17 = vld [vmem:[%s3344_s0 + $0x4c0] sm:$0xff]  ;;  %v131_v24 = vld [vmem:[%s3344_s0 + $0x378] sm:$0xff] }
  0x59   :  { %770 = vmatprep.mubr.f32.mxu1 %v98_v19  ;;  %1708 = vmatpush1.bf16.msra.mxu0 %v1992_v36  ;;  %v61_v36 = vld [vmem:[%s3344_s0 + $0x148] sm:$0xff]  ;;  %v178_v19 = vld [vmem:[%s3344_s0 + $0x4f0] sm:$0xff] }
  0x5a   :  { %1709 = vmatprep.subr.bf16.mxu0 %v1872_v0 }
  0x5b   :  { %481 = vmatmul.mubr.f32.gmra.mrb[12].mxu0 %v50_v21  ;;  %v130_v21 = vld [vmem:[%s3344_s0 + $0x370] sm:$0xff] }
  0x5c   :  { %771 = vmatmul.mubr.f32.gmra.mrb[12].mxu1 %v97_v22  ;;  %485 = vmatprep.mubr.f32.mxu0 %v56_v30  ;;  %v177_v22 = vld [vmem:[%s3344_s0 + $0x4e8] sm:$0xff]  ;;  %v136_v30 = vld [vmem:[%s3344_s0 + $0x3a0] sm:$0xff] }
  0x5d   :  { %775 = vmatprep.mubr.f32.mxu1 %v103_v23  ;;  %1711 = vmatpush1.bf16.msra.mxu0 %v2015_v44  ;;  %v66_v44 = vld [vmem:[%s3344_s0 + $0x170] sm:$0xff]  ;;  %v183_v23 = vld [vmem:[%s3344_s0 + $0x518] sm:$0xff] }
  0x5e   :  { %1712 = vmatprep.subr.bf16.mxu0 %v1872_v0 }
  0x5f   :  { %486 = vmatmul.mubr.f32.gmra.mrb[14].mxu0 %v55_v25  ;;  %v135_v25 = vld [vmem:[%s3344_s0 + $0x398] sm:$0xff] }
  0x60   :  { %776 = vmatmul.mubr.f32.gmra.mrb[14].mxu1 %v102_v26  ;;  %490 = vmatprep.mubr.f32.mxu0 %v61_v36  ;;  %v182_v26 = vld [vmem:[%s3344_s0 + $0x510] sm:$0xff]  ;;  %v141_v36 = vld [vmem:[%s3344_s0 + $0x3c8] sm:$0xff] }
  0x61   :  { %780 = vmatprep.mubr.f32.mxu1 %v108_v28  ;;  %1714 = vmatpush1.bf16.msra.mxu0 %v2032_v50  ;;  %v71_v50 = vld [vmem:[%s3344_s0 + $0x198] sm:$0xff]  ;;  %v188_v28 = vld [vmem:[%s3344_s0 + $0x540] sm:$0xff] }
  0x62   :  { %1715 = vmatprep.subr.bf16.mxu0 %v1872_v0 }
  0x63   :  { %491 = vmatmul.mubr.f32.gmra.mrb[16].mxu0 %v60_v29  ;;  %v140_v29 = vld [vmem:[%s3344_s0 + $0x3c0] sm:$0xff] }
  0x64   :  { %781 = vmatmul.mubr.f32.gmra.mrb[16].mxu1 %v107_v31  ;;  %495 = vmatprep.mubr.f32.mxu0 %v66_v44  ;;  %v187_v31 = vld [vmem:[%s3344_s0 + $0x538] sm:$0xff]  ;;  %v146_v44 = vld [vmem:[%s3344_s0 + $0x3f0] sm:$0xff] }
  0x65   :  { %785 = vmatprep.mubr.f32.mxu1 %v113_v32  ;;  %1717 = vmatpush1.bf16.msra.mxu0 %v2049_v56  ;;  %v76_v56 = vld [vmem:[%s3344_s0 + $0x1c0] sm:$0xff]  ;;  %v193_v32 = vld [vmem:[%s3344_s0 + $0x568] sm:$0xff] }
  0x66   :  { %1718 = vmatprep.subr.bf16.mxu0 %v1872_v0 }
  0x67   :  { %496 = vmatmul.mubr.f32.gmra.mrb[18].mxu0 %v65_v33  ;;  %v145_v33 = vld [vmem:[%s3344_s0 + $0x3e8] sm:$0xff] }
  0x68   :  { %786 = vmatmul.mubr.f32.gmra.mrb[18].mxu1 %v112_v35  ;;  %500 = vmatprep.mubr.f32.mxu0 %v71_v50  ;;  %v192_v35 = vld [vmem:[%s3344_s0 + $0x560] sm:$0xff]  ;;  %v151_v50 = vld [vmem:[%s3344_s0 + $0x418] sm:$0xff] }
  0x69   :  { %790 = vmatprep.mubr.f32.mxu1 %v118_v37  ;;  %1720 = vmatpush1.bf16.msra.mxu0 %v2066_v62  ;;  %v81_v62 = vld [vmem:[%s3344_s0 + $0x1e8] sm:$0xff]  ;;  %v198_v37 = vld [vmem:[%s3344_s0 + $0x590] sm:$0xff] }
  0x6a   :  { %1721 = vmatprep.subr.bf16.mxu0 %v1872_v0 }
  0x6b   :  { %501 = vmatmul.mubr.f32.gmra.mrb[20].mxu0 %v70_v38  ;;  %v150_v38 = vld [vmem:[%s3344_s0 + $0x410] sm:$0xff] }
  0x6c   :  { %791 = vmatmul.mubr.f32.gmra.mrb[20].mxu1 %v117_v39  ;;  %505 = vmatprep.mubr.f32.mxu0 %v76_v56  ;;  %v197_v39 = vld [vmem:[%s3344_s0 + $0x588] sm:$0xff]  ;;  %v156_v56 = vld [vmem:[%s3344_s0 + $0x440] sm:$0xff] }
  0x6d   :  { %795 = vmatprep.mubr.f32.mxu1 %v123_v40  ;;  %1723 = vmatpush1.bf16.msra.mxu0 %v2083_v5  ;;  %v86_v5 = vld [vmem:[%s3344_s0 + $0x210] sm:$0xff]  ;;  %v24_v40 = vld [vmem:[%s3344_s0 + $0x20] sm:$0xff] }
  0x6e   :  { %1724 = vmatprep.subr.bf16.mxu0 %v1872_v0 }
  0x6f   :  { %506 = vmatmul.mubr.f32.gmra.mrb[22].mxu0 %v75_v41  ;;  %v155_v41 = vld [vmem:[%s3344_s0 + $0x438] sm:$0xff] }
  0x70   :  { %796 = vmatmul.mubr.f32.gmra.mrb[22].mxu1 %v122_v42  ;;  %510 = vmatprep.mubr.f32.mxu0 %v81_v62  ;;  %v29_v42 = vld [vmem:[%s3344_s0 + $0x48] sm:$0xff] }
  0x71   :  { %800 = vmatprep.mubr.f32.mxu1 %v128_v45  ;;  %1726 = vmatpush1.bf16.msra.mxu0 %v2100_v13  ;;  %v91_v13 = vld [vmem:[%s3344_s0 + $0x238] sm:$0xff]  ;;  %v161_v62 = vld [vmem:[%s3344_s0 + $0x468] sm:$0xff]  ;;  %v34_v45 = vld [vmem:[%s3344_s0 + $0x70] sm:$0xff] }
  0x72   :  { %1727 = vmatprep.subr.bf16.mxu0 %v1872_v0 }
  0x73   :  { %511 = vmatmul.mubr.f32.gmra.mrb[24].mxu0 %v80_v46  ;;  %v160_v46 = vld [vmem:[%s3344_s0 + $0x460] sm:$0xff] }
  0x74   :  { %801 = vmatmul.mubr.f32.gmra.mrb[24].mxu1 %v127_v47  ;;  %515 = vmatprep.mubr.f32.mxu0 %v86_v5  ;;  %v39_v47 = vld [vmem:[%s3344_s0 + $0x98] sm:$0xff]  ;;  %v166_v5 = vld [vmem:[%s3344_s0 + $0x490] sm:$0xff] }
  0x75   :  { %805 = vmatprep.mubr.f32.mxu1 %v133_v48  ;;  %1729 = vmatpush1.bf16.msra.mxu0 %v2117_v20  ;;  %v96_v20 = vld [vmem:[%s3344_s0 + $0x260] sm:$0xff] }
  0x76   :  { %1730 = vmatprep.subr.bf16.mxu0 %v1872_v0  ;;  %v44_v48 = vld [vmem:[%s3344_s0 + $0xc0] sm:$0xff] }
  0x77   :  { %516 = vmatmul.mubr.f32.gmra.mrb[26].mxu0 %v85_v49  ;;  %v165_v49 = vld [vmem:[%s3344_s0 + $0x488] sm:$0xff] }
  0x78   :  { %806 = vmatmul.mubr.f32.gmra.mrb[26].mxu1 %v132_v51  ;;  %520 = vmatprep.mubr.f32.mxu0 %v91_v13  ;;  %v49_v51 = vld [vmem:[%s3344_s0 + $0xe8] sm:$0xff]  ;;  %v171_v13 = vld [vmem:[%s3344_s0 + $0x4b8] sm:$0xff] }
  0x79   :  { %810 = vmatprep.mubr.f32.mxu1 %v138_v52  ;;  %1732 = vmatpush1.bf16.msra.mxu0 %v2134_v27  ;;  %v101_v27 = vld [vmem:[%s3344_s0 + $0x288] sm:$0xff]  ;;  %v54_v52 = vld [vmem:[%s3344_s0 + $0x110] sm:$0xff] }
  0x7a   :  { %1733 = vmatprep.subr.bf16.mxu0 %v1872_v0 }
  0x7b   :  { %521 = vmatmul.mubr.f32.gmra.mrb[28].mxu0 %v90_v53  ;;  %v170_v53 = vld [vmem:[%s3344_s0 + $0x4b0] sm:$0xff] }
  0x7c   :  { %811 = vmatmul.mubr.f32.gmra.mrb[28].mxu1 %v137_v54  ;;  %525 = vmatprep.mubr.f32.mxu0 %v96_v20  ;;  %v59_v54 = vld [vmem:[%s3344_s0 + $0x138] sm:$0xff]  ;;  %v176_v20 = vld [vmem:[%s3344_s0 + $0x4e0] sm:$0xff] }
  0x7d   :  { %815 = vmatprep.mubr.f32.mxu1 %v143_v55  ;;  %1735 = vmatpush1.bf16.msra.mxu0 %v2151_v34  ;;  %v106_v34 = vld [vmem:[%s3344_s0 + $0x2b0] sm:$0xff]  ;;  %v64_v55 = vld [vmem:[%s3344_s0 + $0x160] sm:$0xff] }
  0x7e   :  { %1736 = vmatprep.subr.bf16.mxu0 %v1872_v0  ;;  %v153_v0 = vld [vmem:[%s3344_s0 + $0x428] sm:$0xff] }
  0x7f   :  { %526 = vmatmul.mubr.f32.gmra.mrb[30].mxu0 %v95_v57  ;;  %v175_v57 = vld [vmem:[%s3344_s0 + $0x4d8] sm:$0xff] }
  0x80   :  { %816 = vmatmul.mubr.f32.gmra.mrb[30].mxu1 %v142_v58  ;;  %530 = vmatprep.mubr.f32.mxu0 %v101_v27  ;;  %v69_v58 = vld [vmem:[%s3344_s0 + $0x188] sm:$0xff] }
  0x81   :  { %820 = vmatprep.mubr.f32.mxu1 %v148_v8  ;;  %1738 = vmatpush1.bf16.msra.mxu0 %v2174_v43  ;;  %v111_v43 = vld [vmem:[%s3344_s0 + $0x2d8] sm:$0xff]  ;;  %v181_v27 = vld [vmem:[%s3344_s0 + $0x508] sm:$0xff]  ;;  %v74_v8 = vld [vmem:[%s3344_s0 + $0x1b0] sm:$0xff] }
  0x83   :  { %531 = vmatmul.mubr.f32.gmra.mrb[32].mxu0 %v100_v59  ;;  %v180_v59 = vld [vmem:[%s3344_s0 + $0x500] sm:$0xff] }
  0x84   :  { %821 = vmatmul.mubr.f32.gmra.mrb[32].mxu1 %v147_v60  ;;  %535 = vmatprep.mubr.f32.mxu0 %v106_v34  ;;  %v79_v60 = vld [vmem:[%s3344_s0 + $0x1d8] sm:$0xff]  ;;  %v186_v34 = vld [vmem:[%s3344_s0 + $0x530] sm:$0xff] }
  0x85   :  { %825 = vmatprep.mubr.f32.mxu1 %v153_v0  ;;  %v84_v0 = vld [vmem:[%s3344_s0 + $0x200] sm:$0xff] }
  0x87   :  { %536 = vmatmul.mubr.f32.gmra.mrb[34].mxu0 %v105_v61  ;;  %v185_v61 = vld [vmem:[%s3344_s0 + $0x528] sm:$0xff] }
  0x88   :  { %826 = vmatmul.mubr.f32.gmra.mrb[34].mxu1 %v152_v63  ;;  %540 = vmatprep.mubr.f32.mxu0 %v111_v43  ;;  %v89_v63 = vld [vmem:[%s3344_s0 + $0x228] sm:$0xff]  ;;  %v191_v43 = vld [vmem:[%s3344_s0 + $0x558] sm:$0xff] }
  0x89   :  { %830 = vmatprep.mubr.f32.mxu1 %v158_v1  ;;  %v94_v1 = vld [vmem:[%s3344_s0 + $0x250] sm:$0xff] }
  0x8b   :  { %541 = vmatmul.mubr.f32.gmra.mrb[36].mxu0 %v110_v2  ;;  %v190_v2 = vld [vmem:[%s3344_s0 + $0x550] sm:$0xff] }
  0x8c   :  { %831 = vmatmul.mubr.f32.gmra.mrb[36].mxu1 %v157_v3  ;;  %545 = vmatprep.mubr.f32.mxu0 %v116_v4  ;;  %v99_v3 = vld [vmem:[%s3344_s0 + $0x278] sm:$0xff]  ;;  %v196_v4 = vld [vmem:[%s3344_s0 + $0x580] sm:$0xff] }
  0x8d   :  { %835 = vmatprep.mubr.f32.mxu1 %v163_v6  ;;  %v104_v6 = vld [vmem:[%s3344_s0 + $0x2a0] sm:$0xff] }
  0x8f   :  { %546 = vmatmul.mubr.f32.gmra.mrb[38].mxu0 %v115_v12  ;;  %v195_v12 = vld [vmem:[%s3344_s0 + $0x578] sm:$0xff] }
  0x90   :  { %836 = vmatmul.mubr.f32.gmra.mrb[38].mxu1 %v162_v7  ;;  %550 = vmatprep.mubr.f32.mxu0 %v121_v9  ;;  %v109_v7 = vld [vmem:[%s3344_s0 + $0x2c8] sm:$0xff]  ;;  %v23_v9 = vld [vmem:[%s3344_s0 + $0x18] sm:$0xff] }
  0x91   :  { %840 = vmatprep.mubr.f32.mxu1 %v168_v10  ;;  %v114_v10 = vld [vmem:[%s3344_s0 + $0x2f0] sm:$0xff] }
  0x93   :  { %551 = vmatmul.mubr.f32.gmra.mrb[40].mxu0 %v120_v11  ;;  %v22_v11 = vld [vmem:[%s3344_s0 + $0x10] sm:$0xff] }
  0x94   :  { %841 = vmatmul.mubr.f32.gmra.mrb[40].mxu1 %v167_v18  ;;  %555 = vmatprep.mubr.f32.mxu0 %v126_v14  ;;  %v119_v18 = vld [vmem:[%s3344_s0 + $0x318] sm:$0xff]  ;;  %v28_v14 = vld [vmem:[%s3344_s0 + $0x40] sm:$0xff] }
  0x95   :  { %845 = vmatprep.mubr.f32.mxu1 %v173_v15  ;;  %v124_v15 = vld [vmem:[%s3344_s0 + $0x340] sm:$0xff] }
  0x97   :  { %556 = vmatmul.mubr.f32.gmra.mrb[42].mxu0 %v125_v16  ;;  %v27_v16 = vld [vmem:[%s3344_s0 + $0x38] sm:$0xff] }
  0x98   :  { %846 = vmatmul.mubr.f32.gmra.mrb[42].mxu1 %v172_v17  ;;  %560 = vmatprep.mubr.f32.mxu0 %v131_v24  ;;  %v129_v17 = vld [vmem:[%s3344_s0 + $0x368] sm:$0xff] }
  0x99   :  { %850 = vmatprep.mubr.f32.mxu1 %v178_v19  ;;  %v33_v24 = vld [vmem:[%s3344_s0 + $0x68] sm:$0xff]  ;;  %v134_v19 = vld [vmem:[%s3344_s0 + $0x390] sm:$0xff] }
  0x9b   :  { %561 = vmatmul.mubr.f32.gmra.mrb[44].mxu0 %v130_v21  ;;  %v32_v21 = vld [vmem:[%s3344_s0 + $0x60] sm:$0xff] }
  0x9c   :  { %851 = vmatmul.mubr.f32.gmra.mrb[44].mxu1 %v177_v22  ;;  %565 = vmatprep.mubr.f32.mxu0 %v136_v30  ;;  %v139_v22 = vld [vmem:[%s3344_s0 + $0x3b8] sm:$0xff]  ;;  %v38_v30 = vld [vmem:[%s3344_s0 + $0x90] sm:$0xff] }
  0x9d   :  { %855 = vmatprep.mubr.f32.mxu1 %v183_v23  ;;  %v144_v23 = vld [vmem:[%s3344_s0 + $0x3e0] sm:$0xff] }
  0x9f   :  { %566 = vmatmul.mubr.f32.gmra.mrb[46].mxu0 %v135_v25  ;;  %v37_v25 = vld [vmem:[%s3344_s0 + $0x88] sm:$0xff] }
  0xa0   :  { %856 = vmatmul.mubr.f32.gmra.mrb[46].mxu1 %v182_v26  ;;  %570 = vmatprep.mubr.f32.mxu0 %v141_v36  ;;  %v149_v26 = vld [vmem:[%s3344_s0 + $0x408] sm:$0xff]  ;;  %v43_v36 = vld [vmem:[%s3344_s0 + $0xb8] sm:$0xff] }
  0xa1   :  { %860 = vmatprep.mubr.f32.mxu1 %v188_v28  ;;  %v154_v28 = vld [vmem:[%s3344_s0 + $0x430] sm:$0xff] }
  0xa3   :  { %571 = vmatmul.mubr.f32.gmra.mrb[48].mxu0 %v140_v29  ;;  %v42_v29 = vld [vmem:[%s3344_s0 + $0xb0] sm:$0xff] }
  0xa4   :  { %861 = vmatmul.mubr.f32.gmra.mrb[48].mxu1 %v187_v31  ;;  %575 = vmatprep.mubr.f32.mxu0 %v146_v44  ;;  %v159_v31 = vld [vmem:[%s3344_s0 + $0x458] sm:$0xff]  ;;  %v48_v44 = vld [vmem:[%s3344_s0 + $0xe0] sm:$0xff] }
  0xa5   :  { %865 = vmatprep.mubr.f32.mxu1 %v193_v32  ;;  %v164_v32 = vld [vmem:[%s3344_s0 + $0x480] sm:$0xff] }
  0xa7   :  { %576 = vmatmul.mubr.f32.gmra.mrb[50].mxu0 %v145_v33  ;;  %v47_v33 = vld [vmem:[%s3344_s0 + $0xd8] sm:$0xff] }
  0xa8   :  { %866 = vmatmul.mubr.f32.gmra.mrb[50].mxu1 %v192_v35  ;;  %580 = vmatprep.mubr.f32.mxu0 %v151_v50  ;;  %v169_v35 = vld [vmem:[%s3344_s0 + $0x4a8] sm:$0xff] }
  0xa9   :  { %870 = vmatprep.mubr.f32.mxu1 %v198_v37  ;;  %v53_v50 = vld [vmem:[%s3344_s0 + $0x108] sm:$0xff]  ;;  %v174_v37 = vld [vmem:[%s3344_s0 + $0x4d0] sm:$0xff] }
  0xab   :  { %581 = vmatmul.mubr.f32.gmra.mrb[52].mxu0 %v150_v38  ;;  %v52_v38 = vld [vmem:[%s3344_s0 + $0x100] sm:$0xff] }
  0xac   :  { %871 = vmatmul.mubr.f32.gmra.mrb[52].mxu1 %v197_v39  ;;  %585 = vmatprep.mubr.f32.mxu0 %v156_v56  ;;  %v179_v39 = vld [vmem:[%s3344_s0 + $0x4f8] sm:$0xff]  ;;  %v58_v56 = vld [vmem:[%s3344_s0 + $0x130] sm:$0xff] }
  0xad   :  { %1589 = vmatprep.mubr.msk.f32.mxu1 %vm277_vm0, %v24_v40  ;;  %v184_v40 = vld [vmem:[%s3344_s0 + $0x520] sm:$0xff] }
  0xaf   :  { %586 = vmatmul.mubr.f32.gmra.mrb[54].mxu0 %v155_v41  ;;  %v57_v41 = vld [vmem:[%s3344_s0 + $0x128] sm:$0xff] }
  0xb0   :  { %1590 = vmatmul.mubr.msk.f32.vlgmr.msra.gmra.mrb[54].mxu1 %vm277_vm0, %v29_v42  ;;  %590 = vmatprep.mubr.f32.mxu0 %v161_v62  ;;  %v189_v42 = vld [vmem:[%s3344_s0 + $0x548] sm:$0xff]  ;;  %v63_v62 = vld [vmem:[%s3344_s0 + $0x158] sm:$0xff] }
  0xb1   :  { %1592 = vmatprep.mubr.msk.f32.mxu1 %vm277_vm0, %v34_v45  ;;  %v194_v45 = vld [vmem:[%s3344_s0 + $0x570] sm:$0xff] }
  0xb3   :  { %591 = vmatmul.mubr.f32.gmra.mrb[56].mxu0 %v160_v46  ;;  %v62_v46 = vld [vmem:[%s3344_s0 + $0x150] sm:$0xff] }
  0xb4   :  { %1593 = vmatmul.mubr.msk.f32.gmra.mrb[56].mxu1 %vm277_vm0, %v39_v47  ;;  %595 = vmatprep.mubr.f32.mxu0 %v166_v5  ;;  %v199_v47 = vld [vmem:[%s3344_s0 + $0x598] sm:$0xff] }
  0xb5   :  { %1595 = vmatprep.mubr.msk.f32.mxu1 %vm277_vm0, %v44_v48 }
  0xb7   :  { %596 = vmatmul.mubr.f32.gmra.mrb[58].mxu0 %v165_v49 }
  0xb8   :  { %1596 = vmatmul.mubr.msk.f32.gmra.mrb[58].mxu1 %vm277_vm0, %v49_v51  ;;  %600 = vmatprep.mubr.f32.mxu0 %v171_v13 }
  0xb9   :  { %1598 = vmatprep.mubr.msk.f32.mxu1 %vm277_vm0, %v54_v52 }
  0xbb   :  { %601 = vmatmul.mubr.f32.gmra.mrb[60].mxu0 %v170_v53 }
  0xbc   :  { %1599 = vmatmul.mubr.msk.f32.gmra.mrb[60].mxu1 %vm277_vm0, %v59_v54  ;;  %605 = vmatprep.mubr.f32.mxu0 %v176_v20 }
  0xbd   :  { %1601 = vmatprep.mubr.msk.f32.mxu1 %vm277_vm0, %v64_v55 }
  0xbf   :  { %606 = vmatmul.mubr.f32.gmra.mrb[62].mxu0 %v175_v57 }
  0xc0   :  { %1602 = vmatmul.mubr.msk.f32.gmra.mrb[62].mxu1 %vm277_vm0, %v69_v58  ;;  %610 = vmatprep.mubr.f32.mxu0 %v181_v27 }
  0xc1   :  { %1604 = vmatprep.mubr.msk.f32.mxu1 %vm277_vm0, %v74_v8 }
  0xc3   :  { %611 = vmatmul.mubr.f32.gmra.mrb[64].mxu0 %v180_v59 }
  0xc4   :  { %1605 = vmatmul.mubr.msk.f32.gmra.mrb[64].mxu1 %vm277_vm0, %v79_v60  ;;  %615 = vmatprep.mubr.f32.mxu0 %v186_v34 }
  0xc5   :  { %1607 = vmatprep.mubr.msk.f32.mxu1 %vm277_vm0, %v84_v0  ;;  %v2801_v0 = vld [vmem:[%s3345_s2] ss:$0 sm:$0xff] }
  0xc7   :  { %616 = vmatmul.mubr.f32.gmra.mrb[66].mxu0 %v185_v61 }
  0xc8   :  { %1608 = vmatmul.mubr.msk.f32.gmra.mrb[66].mxu1 %vm277_vm0, %v89_v63  ;;  %620 = vmatprep.mubr.f32.mxu0 %v191_v43 }
  0xc9   :  { %1610 = vmatprep.mubr.msk.f32.mxu1 %vm277_vm0, %v94_v1 }
  0xcb   :  { %621 = vmatmul.mubr.f32.gmra.mrb[68].mxu0 %v190_v2 }
  0xcc   :  { %1611 = vmatmul.mubr.msk.f32.gmra.mrb[68].mxu1 %vm277_vm0, %v99_v3  ;;  %625 = vmatprep.mubr.f32.mxu0 %v196_v4 }
  0xcd   :  { %1613 = vmatprep.mubr.msk.f32.mxu1 %vm277_vm0, %v104_v6 }
  0xcf   :  { %626 = vmatmul.mubr.f32.gmra.mrb[70].mxu0 %v195_v12 }
  0xd0   :  { %1614 = vmatmul.mubr.msk.f32.gmra.mrb[70].mxu1 %vm277_vm0, %v109_v7  ;;  %695 = vmatprep.mubr.f32.mxu0 %v23_v9 }
  0xd1   :  { %1616 = vmatprep.mubr.msk.f32.mxu1 %vm277_vm0, %v114_v10 }
  0xd3   :  { %696 = vmatmul.mubr.f32.vlgmr.msra.gmra.mrb[0].mxu0 %v22_v11 }
  0xd4   :  { %1617 = vmatmul.mubr.msk.f32.gmra.mrb[72].mxu1 %vm277_vm0, %v119_v18  ;;  %700 = vmatprep.mubr.f32.mxu0 %v28_v14 }
  0xd5   :  { %1619 = vmatprep.mubr.msk.f32.mxu1 %vm277_vm0, %v124_v15 }
  0xd7   :  { %701 = vmatmul.mubr.f32.gmra.mrb[2].mxu0 %v27_v16 }
  0xd8   :  { %1620 = vmatmul.mubr.msk.f32.gmra.mrb[74].mxu1 %vm277_vm0, %v129_v17  ;;  %705 = vmatprep.mubr.f32.mxu0 %v33_v24 }
  0xd9   :  { %1622 = vmatprep.mubr.msk.f32.mxu1 %vm277_vm0, %v134_v19 }
  0xdb   :  { %706 = vmatmul.mubr.f32.gmra.mrb[4].mxu0 %v32_v21 }
  0xdc   :  { %1623 = vmatmul.mubr.msk.f32.gmra.mrb[76].mxu1 %vm277_vm0, %v139_v22  ;;  %710 = vmatprep.mubr.f32.mxu0 %v38_v30 }
  0xdd   :  { %1625 = vmatprep.mubr.msk.f32.mxu1 %vm277_vm0, %v144_v23 }
  0xdf   :  { %711 = vmatmul.mubr.f32.gmra.mrb[6].mxu0 %v37_v25 }
  0xe0   :  { %1626 = vmatmul.mubr.msk.f32.gmra.mrb[78].mxu1 %vm277_vm0, %v149_v26  ;;  %715 = vmatprep.mubr.f32.mxu0 %v43_v36 }
  0xe1   :  { %1628 = vmatprep.mubr.msk.f32.mxu1 %vm277_vm0, %v154_v28 }
  0xe3   :  { %716 = vmatmul.mubr.f32.gmra.mrb[8].mxu0 %v42_v29 }
  0xe4   :  { %1629 = vmatmul.mubr.msk.f32.gmra.mrb[80].mxu1 %vm277_vm0, %v159_v31  ;;  %720 = vmatprep.mubr.f32.mxu0 %v48_v44 }
  0xe5   :  { %1631 = vmatprep.mubr.msk.f32.mxu1 %vm277_vm0, %v164_v32 }
  0xe7   :  { %721 = vmatmul.mubr.f32.gmra.mrb[10].mxu0 %v47_v33 }
  0xe8   :  { %1632 = vmatmul.mubr.msk.f32.gmra.mrb[82].mxu1 %vm277_vm0, %v169_v35  ;;  %725 = vmatprep.mubr.f32.mxu0 %v53_v50 }
  0xe9   :  { %1634 = vmatprep.mubr.msk.f32.mxu1 %vm277_vm0, %v174_v37 }
  0xeb   :  { %726 = vmatmul.mubr.f32.gmra.mrb[12].mxu0 %v52_v38 }
  0xec   :  { %1635 = vmatmul.mubr.msk.f32.gmra.mrb[84].mxu1 %vm277_vm0, %v179_v39  ;;  %730 = vmatprep.mubr.f32.mxu0 %v58_v56 }
  0xed   :  { %1637 = vmatprep.mubr.msk.f32.mxu1 %vm277_vm0, %v184_v40 }
  0xef   :  { %731 = vmatmul.mubr.f32.gmra.mrb[14].mxu0 %v57_v41 }
  0xf0   :  { %1638 = vmatmul.mubr.msk.f32.gmra.mrb[86].mxu1 %vm277_vm0, %v189_v42  ;;  %735 = vmatprep.mubr.f32.mxu0 %v63_v62 }
  0xf1   :  { %1640 = vmatprep.mubr.msk.f32.mxu1 %vm277_vm0, %v194_v45 }
  0xf3   :  { %736 = vmatmul.mubr.f32.gmra.mrb[16].mxu0 %v62_v46 }
  0xf4   :  { %1641 = vmatmul.mubr.msk.f32.gmra.mrb[88].mxu1 %vm277_vm0, %v199_v47 }
 0x117   :  { %v742_v5 = vpop.f32.mrb[0].mxu1 }
 0x118   :  { %v744_v48 = vpop.f32.mrb[1].mxu1 }
 0x11b   :  { %v747_v49 = vpop.f32.mrb[2].mxu1 }
 0x11c   :  { %v749_v51 = vpop.f32.mrb[3].mxu1 }
 0x11f   :  { %v752_v13 = vpop.f32.mrb[4].mxu1 }
 0x120   :  { %v754_v52 = vpop.f32.mrb[5].mxu1 }
 0x123   :  { %v757_v53 = vpop.f32.mrb[6].mxu1 }
 0x124   :  { %v759_v54 = vpop.f32.mrb[7].mxu1 }
 0x127   :  { %v762_v20 = vpop.f32.mrb[8].mxu1 }
 0x128   :  { %v764_v55 = vpop.f32.mrb[9].mxu1 }
 0x12b   :  { %v767_v57 = vpop.f32.mrb[10].mxu1 }
 0x12c   :  { %v769_v58 = vpop.f32.mrb[11].mxu1 }
 0x12f   :  { %v772_v27 = vpop.f32.mrb[12].mxu1 }
 0x130   :  { %v774_v8 = vpop.f32.mrb[13].mxu1 }
 0x133   :  { %v777_v59 = vpop.f32.mrb[14].mxu1 }
 0x134   :  { %v779_v60 = vpop.f32.mrb[15].mxu1 }
 0x137   :  { %v782_v34 = vpop.f32.mrb[16].mxu1 }
 0x138   :  { %v784_v61 = vpop.f32.mrb[17].mxu1 }
 0x13a   :  { %v497_v63 = vpop.f32.mrb[18].mxu0 }
 0x13b   :  { %v498_v43 = vadd.f32 %v2801_v0, %v497_v63  ;;  %v499_v1 = vpop.f32.mrb[19].mxu0  ;;  %v787_v2 = vpop.f32.mrb[18].mxu1 }
 0x13c   :  { %v789_v3 = vpop.f32.mrb[19].mxu1 }
 0x13d   :  { %v2804_v4 = vadd.f32 %v742_v5, %v498_v43 }
 0x13e   :  { %v502_v6 = vpop.f32.mrb[20].mxu0 }
 0x13f   :  { %v503_v12 = vadd.f32 %v2801_v0, %v502_v6  ;;  %v504_v7 = vpop.f32.mrb[21].mxu0  ;;  %v792_v9 = vpop.f32.mrb[20].mxu1 }
 0x140   :  { %v794_v10 = vpop.f32.mrb[21].mxu1 }
 0x141   :  { %v2807_v11 = vadd.f32 %v747_v49, %v503_v12  ;;  %v1873_v12 = vmov 0.0  }
 0x142   :  { %v507_v18 = vpop.f32.mrb[22].mxu0  ;;  %18 = vst [vmem:[#allocation2] sm:$0x1] %v1873_v12  ;;  %19 = vst [vmem:[#allocation3] sm:$0x1] %v1873_v12 }
 0x143   :  { %v508_v14 = vadd.f32 %v2801_v0, %v507_v18  ;;  %v509_v15 = vpop.f32.mrb[23].mxu0  ;;  %v797_v16 = vpop.f32.mrb[22].mxu1 }
 0x144   :  { %v799_v17 = vpop.f32.mrb[23].mxu1 }
 0x145   :  { %v2810_v24 = vadd.f32 %v752_v13, %v508_v14 }
 0x146   :  { %v512_v19 = vpop.f32.mrb[24].mxu0 }
 0x147   :  { %v513_v21 = vadd.f32 %v2801_v0, %v512_v19  ;;  %v514_v22 = vpop.f32.mrb[25].mxu0  ;;  %v802_v30 = vpop.f32.mrb[24].mxu1 }
 0x148   :  { %v804_v23 = vpop.f32.mrb[25].mxu1 }
 0x149   :  { %v2813_v25 = vadd.f32 %v757_v53, %v513_v21 }
 0x14a   :  { %v517_v26 = vpop.f32.mrb[26].mxu0 }
 0x14b   :  { %v518_v36 = vadd.f32 %v2801_v0, %v517_v26  ;;  %v519_v28 = vpop.f32.mrb[27].mxu0  ;;  %v807_v29 = vpop.f32.mrb[26].mxu1 }
 0x14c   :  { %v809_v31 = vpop.f32.mrb[27].mxu1 }
 0x14d   :  { %v2816_v44 = vadd.f32 %v762_v20, %v518_v36 }
 0x14e   :  { %v522_v32 = vpop.f32.mrb[28].mxu0 }
 0x14f   :  { %v523_v33 = vadd.f32 %v2801_v0, %v522_v32  ;;  %v524_v35 = vpop.f32.mrb[29].mxu0  ;;  %v812_v50 = vpop.f32.mrb[28].mxu1 }
 0x150   :  { %v814_v37 = vpop.f32.mrb[29].mxu1 }
 0x151   :  { %v2819_v38 = vadd.f32 %v767_v57, %v523_v33 }
 0x152   :  { %v527_v39 = vpop.f32.mrb[30].mxu0 }
 0x153   :  { %v528_v56 = vadd.f32 %v2801_v0, %v527_v39  ;;  %v529_v40 = vpop.f32.mrb[31].mxu0  ;;  %v817_v41 = vpop.f32.mrb[30].mxu1 }
 0x154   :  { %v819_v42 = vpop.f32.mrb[31].mxu1 }
 0x155   :  { %v2822_v62 = vadd.f32 %v772_v27, %v528_v56 }
 0x156   :  { %v532_v45 = vpop.f32.mrb[32].mxu0 }
 0x157   :  { %v533_v46 = vadd.f32 %v2801_v0, %v532_v45  ;;  %v534_v47 = vpop.f32.mrb[33].mxu0  ;;  %v822_v5 = vpop.f32.mrb[32].mxu1 }
 0x158   :  { %v824_v48 = vpop.f32.mrb[33].mxu1 }
 0x159   :  { %v2825_v49 = vadd.f32 %v777_v59, %v533_v46 }
 0x15a   :  { %v537_v51 = vpop.f32.mrb[34].mxu0 }
 0x15b   :  { %v538_v13 = vadd.f32 %v2801_v0, %v537_v51  ;;  %v539_v52 = vpop.f32.mrb[35].mxu0  ;;  %v827_v53 = vpop.f32.mrb[34].mxu1 }
 0x15c   :  { %v829_v54 = vpop.f32.mrb[35].mxu1 }
 0x15d   :  { %v2828_v20 = vadd.f32 %v782_v34, %v538_v13 }
 0x15e   :  { %v542_v55 = vpop.f32.mrb[36].mxu0 }
 0x15f   :  { %v543_v57 = vadd.f32 %v2801_v0, %v542_v55  ;;  %v544_v58 = vpop.f32.mrb[37].mxu0  ;;  %v832_v27 = vpop.f32.mrb[36].mxu1 }
 0x160   :  { %v834_v8 = vpop.f32.mrb[37].mxu1 }
 0x161   :  { %v2831_v60 = vadd.f32 %v787_v2, %v543_v57 }
 0x162   :  { %v547_v61 = vpop.f32.mrb[38].mxu0 }
 0x163   :  { %v548_v59 = vadd.f32 %v2801_v0, %v547_v61  ;;  %v549_v63 = vpop.f32.mrb[39].mxu0  ;;  %v837_v43 = vpop.f32.mrb[38].mxu1 }
 0x164   :  { %v839_v1 = vpop.f32.mrb[39].mxu1 }
 0x165   :  { %v2834_v3 = vadd.f32 %v792_v9, %v548_v59 }
 0x166   :  { %v552_v6 = vpop.f32.mrb[40].mxu0 }
 0x167   :  { %v553_v34 = vadd.f32 %v2801_v0, %v552_v6  ;;  %v554_v7 = vpop.f32.mrb[41].mxu0  ;;  %v842_v10 = vpop.f32.mrb[40].mxu1 }
 0x168   :  { %v844_v18 = vpop.f32.mrb[41].mxu1 }
 0x169   :  { %v2837_v14 = vadd.f32 %v797_v16, %v553_v34 }
 0x16a   :  { %v557_v2 = vpop.f32.mrb[42].mxu0 }
 0x16b   :  { %v558_v15 = vadd.f32 %v2801_v0, %v557_v2  ;;  %v559_v17 = vpop.f32.mrb[43].mxu0  ;;  %v847_v19 = vpop.f32.mrb[42].mxu1 }
 0x16c   :  { %v849_v21 = vpop.f32.mrb[43].mxu1 }
 0x16d   :  { %v2840_v22 = vadd.f32 %v802_v30, %v558_v15 }
 0x16e   :  { %v562_v9 = vpop.f32.mrb[44].mxu0 }
 0x16f   :  { %v563_v23 = vadd.f32 %v2801_v0, %v562_v9  ;;  %v564_v26 = vpop.f32.mrb[45].mxu0  ;;  %v852_v36 = vpop.f32.mrb[44].mxu1 }
 0x170   :  { %v854_v28 = vpop.f32.mrb[45].mxu1 }
 0x171   :  { %v2843_v31 = vadd.f32 %v807_v29, %v563_v23 }
 0x172   :  { %v567_v32 = vpop.f32.mrb[46].mxu0 }
 0x173   :  { %v568_v16 = vadd.f32 %v2801_v0, %v567_v32  ;;  %v569_v33 = vpop.f32.mrb[47].mxu0  ;;  %v857_v35 = vpop.f32.mrb[46].mxu1 }
 0x174   :  { %v859_v37 = vpop.f32.mrb[47].mxu1 }
 0x175   :  { %v2846_v39 = vadd.f32 %v812_v50, %v568_v16 }
 0x176   :  { %v572_v56 = vpop.f32.mrb[48].mxu0 }
 0x177   :  { %v573_v30 = vadd.f32 %v2801_v0, %v572_v56  ;;  %v574_v40 = vpop.f32.mrb[49].mxu0  ;;  %v862_v42 = vpop.f32.mrb[48].mxu1 }
 0x178   :  { %v864_v45 = vpop.f32.mrb[49].mxu1 }
 0x179   :  { %v2849_v46 = vadd.f32 %v817_v41, %v573_v30 }
 0x17a   :  { %v577_v47 = vpop.f32.mrb[50].mxu0 }
 0x17b   :  { %v578_v29 = vadd.f32 %v2801_v0, %v577_v47  ;;  %v579_v48 = vpop.f32.mrb[51].mxu0  ;;  %v2852_v51 = vpop.f32.mrb[50].mxu1 }
 0x17c   :  { %v869_v13 = vpop.f32.mrb[51].mxu1 }
 0x17d   :  { %v2854_v52 = vadd.f32 %v822_v5, %v578_v29 }
 0x17e   :  { %v582_v54 = vpop.f32.mrb[52].mxu0 }
 0x17f   :  { %v583_v50 = vadd.f32 %v2801_v0, %v582_v54  ;;  %v584_v55 = vpop.f32.mrb[53].mxu0  ;;  %v2857_v57 = vpop.f32.mrb[52].mxu1 }
 0x180   :  { %v874_v58 = vpop.f32.mrb[53].mxu1 }
 0x181   :  { %v2859_v8 = vadd.f32 %v827_v53, %v583_v50 }
 0x182   :  { %v587_v41 = vpop.f32.mrb[54].mxu0 }
 0x183   :  { %v588_v61 = vadd.f32 %v2801_v0, %v587_v41  ;;  %v589_v59 = vpop.f32.mrb[55].mxu0  ;;  %v2862_v63 = vpop.f32.mrb[54].mxu1 }
 0x184   :  { %v2864_v1 = vpop.f32.mrb[55].mxu1 }
 0x185   :  { %v2866_v6 = vadd.f32 %v832_v27, %v588_v61 }
 0x186   :  { %v592_v5 = vpop.f32.mrb[56].mxu0 }
 0x187   :  { %v593_v12 = vadd.f32 %v2801_v0, %v592_v5  ;;  %v594_v34 = vpop.f32.mrb[57].mxu0  ;;  %v2869_v7 = vpop.f32.mrb[56].mxu1 }
 0x188   :  { %v2871_v18 = vpop.f32.mrb[57].mxu1 }
 0x189   :  { %v2873_v53 = vadd.f32 %v837_v43, %v593_v12 }
 0x18a   :  { %v597_v2 = vpop.f32.mrb[58].mxu0 }
 0x18b   :  { %v598_v15 = vadd.f32 %v2801_v0, %v597_v2  ;;  %v599_v17 = vpop.f32.mrb[59].mxu0  ;;  %v2876_v21 = vpop.f32.mrb[58].mxu1 }
 0x18c   :  { %v2878_v9 = vpop.f32.mrb[59].mxu1 }
 0x18d   :  { %v2880_v27 = vadd.f32 %v842_v10, %v598_v15 }
 0x18e   :  { %v602_v23 = vpop.f32.mrb[60].mxu0 }
 0x18f   :  { %v603_v26 = vadd.f32 %v2801_v0, %v602_v23  ;;  %v604_v28 = vpop.f32.mrb[61].mxu0  ;;  %v2883_v32 = vpop.f32.mrb[60].mxu1 }
 0x190   :  { %v2885_v16 = vpop.f32.mrb[61].mxu1 }
 0x191   :  { %v2887_v43 = vadd.f32 %v847_v19, %v603_v26 }
 0x192   :  { %v607_v33 = vpop.f32.mrb[62].mxu0 }
 0x193   :  { %v608_v37 = vadd.f32 %v2801_v0, %v607_v33  ;;  %v1603_v56 = vpop.f32.mrb[62].mxu1  ;;  %v609_v30 = vpop.f32.mrb[63].mxu0 }
 0x194   :  { %v2891_v40 = vadd.f32 %v1603_v56, %v2804_v4  ;;  %v2893_v10 = vpop.f32.mrb[63].mxu1 }
 0x195   :  { %v2895_v45 = vadd.f32 %v852_v36, %v608_v37 }
 0x196   :  { %v612_v47 = vpop.f32.mrb[64].mxu0 }
 0x197   :  { %v613_v29 = vadd.f32 %v2801_v0, %v612_v47  ;;  %v1606_v48 = vpop.f32.mrb[64].mxu1  ;;  %v614_v13 = vpop.f32.mrb[65].mxu0 }
 0x198   :  { %v2899_v19 = vadd.f32 %v1606_v48, %v2810_v24  ;;  %v992_v54 = vpop.f32.mrb[65].mxu1 }
 0x199   :  { %v2902_v50 = vadd.f32 %v992_v54, %v2807_v11  ;;  %v2904_v55 = vadd.f32 %v857_v35, %v613_v29 }
 0x19a   :  { %v617_v4 = vpop.f32.mrb[66].mxu0 }
 0x19b   :  { %v618_v58 = vadd.f32 %v2801_v0, %v617_v4  ;;  %v1609_v41 = vpop.f32.mrb[66].mxu1  ;;  %v619_v36 = vpop.f32.mrb[67].mxu0 }
 0x19c   :  { %v2908_v61 = vadd.f32 %v1609_v41, %v2816_v44  ;;  %v1002_v59 = vpop.f32.mrb[67].mxu1 }
 0x19d   :  { %v2911_v5 = vadd.f32 %v1002_v59, %v2813_v25  ;;  %v2913_v24 = vadd.f32 %v862_v42, %v618_v58 }
 0x19e   :  { %v622_v12 = vpop.f32.mrb[68].mxu0 }
 0x19f   :  { %v623_v11 = vadd.f32 %v2801_v0, %v622_v12  ;;  %v1612_v34 = vpop.f32.mrb[68].mxu1  ;;  %v624_v35 = vpop.f32.mrb[69].mxu0 }
 0x1a0   :  { %v2917_v2 = vadd.f32 %v1612_v34, %v2822_v62  ;;  %v1012_v15 = vpop.f32.mrb[69].mxu1 }
 0x1a1   :  { %v2920_v17 = vadd.f32 %v1012_v15, %v2819_v38  ;;  %v2923_v44 = vadd.f32 %v2852_v51, %v623_v11 }
 0x1a2   :  { %v627_v23 = vpop.f32.mrb[70].mxu0 }
 0x1a3   :  { %v628_v25 = vadd.f32 %v2801_v0, %v627_v23  ;;  %v1615_v42 = vpop.f32.mrb[70].mxu1  ;;  %v629_v26 = vpop.f32.mrb[71].mxu0 }
 0x1a4   :  { %v2927_v28 = vadd.f32 %v1615_v42, %v2828_v20  ;;  %v1022_v33 = vpop.f32.mrb[71].mxu1 }
 0x1a5   :  { %v2930_v37 = vadd.f32 %v1022_v33, %v2825_v49  ;;  %v2933_v62 = vadd.f32 %v2857_v57, %v628_v25 }
 0x1a6   :  { %v697_v38 = vpop.f32.mrb[0].mxu0 }
 0x1a7   :  { %v1787_v56 = vadd.f32 %v2801_v0, %v697_v38  ;;  %v1618_v51 = vpop.f32.mrb[72].mxu1  ;;  %v699_v30 = vpop.f32.mrb[1].mxu0 }
 0x1a8   :  { %v2937_v47 = vadd.f32 %v1618_v51, %v2834_v3  ;;  %v1032_v29 = vpop.f32.mrb[73].mxu1 }
 0x1a9   :  { %v2940_v48 = vadd.f32 %v1787_v56, %v2864_v1  ;;  %v2943_v20 = vadd.f32 %v1032_v29, %v2831_v60 }
 0x1aa   :  { %v702_v49 = vpop.f32.mrb[2].mxu0 }
 0x1ab   :  { %v1788_v13 = vadd.f32 %v2801_v0, %v702_v49  ;;  %v1621_v57 = vpop.f32.mrb[74].mxu1  ;;  %v704_v54 = vpop.f32.mrb[3].mxu0 }
 0x1ac   :  { %v2947_v4 = vadd.f32 %v1621_v57, %v2840_v22  ;;  %v1042_v58 = vpop.f32.mrb[75].mxu1 }
 0x1ad   :  { %v2950_v41 = vadd.f32 %v1788_v13, %v2862_v63  ;;  %v2953_v3 = vadd.f32 %v1042_v58, %v2837_v14  ;;  %v1204_v13 = vmul.f32 %v2940_v48, %v2940_v48 }
 0x1ae   :  { %v707_v1 = vpop.f32.mrb[4].mxu0 }
 0x1af   :  { %v1789_v36 = vadd.f32 %v2801_v0, %v707_v1  ;;  %v1624_v60 = vpop.f32.mrb[76].mxu1  ;;  %v709_v59 = vpop.f32.mrb[5].mxu0 }
 0x1b0   :  { %v2957_v12 = vadd.f32 %v1624_v60, %v2846_v39  ;;  %v1052_v11 = vpop.f32.mrb[77].mxu1 }
 0x1b1   :  { %v2960_v34 = vadd.f32 %v1789_v36, %v2871_v18  ;;  %v2963_v22 = vadd.f32 %v1052_v11, %v2843_v31 }
 0x1b2   :  { %v712_v63 = vpop.f32.mrb[6].mxu0 }
 0x1b3   :  { %v1790_v35 = vadd.f32 %v2801_v0, %v712_v63  ;;  %v1627_v14 = vpop.f32.mrb[78].mxu1  ;;  %v714_v15 = vpop.f32.mrb[7].mxu0 }
 0x1b4   :  { %v2967_v23 = vadd.f32 %v1627_v14, %v2854_v52  ;;  %v1062_v25 = vpop.f32.mrb[79].mxu1 }
 0x1b5   :  { %v2970_v42 = vadd.f32 %v1790_v35, %v2869_v7  ;;  %v2973_v39 = vadd.f32 %v1062_v25, %v2849_v46  ;;  %v1205_v7 = vmul.f32 %v2950_v41, %v2950_v41 }
 0x1b6   :  { %v717_v18 = vpop.f32.mrb[8].mxu0 }
 0x1b7   :  { %v1791_v26 = vadd.f32 %v2801_v0, %v717_v18  ;;  %v1630_v31 = vpop.f32.mrb[80].mxu1  ;;  %v719_v33 = vpop.f32.mrb[9].mxu0  ;;  %v1240_v1 = vadd.f32 %v1205_v7, %v1204_v13  ;;  %v1207_v36 = vmul.f32 %v2970_v42, %v2970_v42 }
 0x1b8   :  { %v2977_v38 = vadd.f32 %v1630_v31, %v2866_v6  ;;  %v1072_v56 = vpop.f32.mrb[81].mxu1  ;;  %v1206_v6 = vmul.f32 %v2960_v34, %v2960_v34 }
 0x1b9   :  { %v2980_v51 = vadd.f32 %v1791_v26, %v2878_v9  ;;  %v2983_v52 = vadd.f32 %v1072_v56, %v2859_v8  ;;  %v1160_v8 = vadd.f32 %v2950_v41, %v2940_v48 }
 0x1ba   :  { %v722_v46 = vpop.f32.mrb[10].mxu0  ;;  %v1241_v35 = vadd.f32 %v1240_v1, %v1206_v6 }
 0x1bb   :  { %v1792_v30 = vadd.f32 %v2801_v0, %v722_v46  ;;  %v1633_v29 = vpop.f32.mrb[82].mxu1  ;;  %v724_v49 = vpop.f32.mrb[11].mxu0  ;;  %v1161_v59 = vadd.f32 %v1160_v8, %v2960_v34  ;;  %v1208_v14 = vmul.f32 %v2980_v51, %v2980_v51 }
 0x1bc   :  { %v2993_v9 = vadd.f32 %v1633_v29, %v2880_v27  ;;  %v1082_v57 = vpop.f32.mrb[83].mxu1  ;;  %v1242_v26 = vadd.f32 %v1241_v35, %v1207_v36 }
 0x1bd   :  { %v2998_v54 = vadd.f32 %v1792_v30, %v2876_v21  ;;  %v3001_v58 = vadd.f32 %v1082_v57, %v2873_v53  ;;  %v1162_v15 = vadd.f32 %v1161_v59, %v2970_v42 }
 0x1be   :  { %v727_v60 = vpop.f32.mrb[12].mxu0  ;;  %v1243_v30 = vadd.f32 %v1242_v26, %v1208_v14 }
 0x1bf   :  { %v1793_v27 = vadd.f32 %v2801_v0, %v727_v60  ;;  %v1636_v11 = vpop.f32.mrb[84].mxu1  ;;  %v729_v63 = vpop.f32.mrb[13].mxu0  ;;  %v1163_v33 = vadd.f32 %v1162_v15, %v2980_v51  ;;  %v1209_v56 = vmul.f32 %v2998_v54, %v2998_v54 }
 0x1c0   :  { %v3010_v21 = vadd.f32 %v1636_v11, %v2895_v45  ;;  %v1092_v53 = vpop.f32.mrb[85].mxu1 }
 0x1c1   :  { %v3014_v25 = vadd.f32 %v1793_v27, %v2885_v16  ;;  %v3017_v18 = vadd.f32 %v1092_v53, %v2887_v43  ;;  %v1164_v49 = vadd.f32 %v1163_v33, %v2998_v54  ;;  %v1244_v8 = vadd.f32 %v1243_v30, %v1209_v56 }
 0x1c2   :  { %v732_v31 = vpop.f32.mrb[14].mxu0 }
 0x1c3   :  { %v1794_v7 = vadd.f32 %v2801_v0, %v732_v31  ;;  %v1639_v45 = vpop.f32.mrb[86].mxu1  ;;  %v734_v46 = vpop.f32.mrb[15].mxu0  ;;  %v1210_v43 = vmul.f32 %v3014_v25, %v3014_v25  ;;  %v1165_v1 = vadd.f32 %v1164_v49, %v3014_v25  ;;  %v1214_v31 = vmul.f32 %v2902_v50, %v2902_v50 }
 0x1c4   :  { %v3024_v29 = vadd.f32 %v1639_v45, %v2913_v24  ;;  %v1102_v16 = vpop.f32.mrb[87].mxu1  ;;  %v1216_v45 = vmul.f32 %v2911_v5, %v2911_v5 }
 0x1c5   :  { %v3030_v13 = vadd.f32 %v1794_v7, %v2883_v32  ;;  %v3033_v6 = vadd.f32 %v1102_v16, %v2904_v55  ;;  %v1245_v32 = vadd.f32 %v1244_v8, %v1210_v43  ;;  %v1217_v16 = vmul.f32 %v2908_v61, %v2908_v61 }
 0x1c6   :  { %v737_v57 = vpop.f32.mrb[16].mxu0 }
 0x1c7   :  { %v1211_v24 = vmul.f32 %v3030_v13, %v3030_v13  ;;  %v1795_v36 = vadd.f32 %v2801_v0, %v737_v57  ;;  %v1642_v60 = vpop.f32.mrb[88].mxu1  ;;  %v739_v59 = vpop.f32.mrb[17].mxu0  ;;  %v1166_v63 = vadd.f32 %v1165_v1, %v3030_v13  ;;  %v1218_v57 = vmul.f32 %v2920_v17, %v2920_v17 }
 0x1c8   :  { %v3040_v27 = vadd.f32 %v1642_v60, %v2933_v62  ;;  %v1112_v11 = vpop.f32.mrb[89].mxu1  ;;  %v1213_v62 = vmul.f32 %v2891_v40, %v2891_v40  ;;  %v1220_v59 = vmul.f32 %v2930_v37, %v2930_v37 }
 0x1c9   :  { %v3044_v55 = vadd.f32 %v1795_v36, %v2893_v10  ;;  %v3047_v35 = vadd.f32 %v1112_v11, %v2923_v44  ;;  %v1246_v14 = vadd.f32 %v1245_v32, %v1211_v24  ;;  %v1215_v44 = vmul.f32 %v2899_v19, %v2899_v19 }
 0x1ca   :  { %v1219_v24 = vmul.f32 %v2917_v2, %v2917_v2 }
 0x1cb   :  { %v1167_v53 = vadd.f32 %v1166_v63, %v3044_v55  ;;  %v1212_v0 = vmul.f32 %v3044_v55, %v3044_v55  ;;  %v1221_v63 = vmul.f32 %v2927_v28, %v2927_v28 }
 0x1cd   :  { %v1168_v15 = vadd.f32 %v1167_v53, %v2891_v40  ;;  %v1247_v26 = vadd.f32 %v1246_v14, %v1212_v0  ;;  %v1222_v0 = vmul.f32 %v2943_v20, %v2943_v20 }
 0x1cf   :  { %v1169_v10 = vadd.f32 %v1168_v15, %v2902_v50  ;;  %v1248_v33 = vadd.f32 %v1247_v26, %v1213_v62  ;;  %v1223_v26 = vmul.f32 %v2937_v47, %v2937_v47 }
 0x1d1   :  { %v1170_v56 = vadd.f32 %v1169_v10, %v2899_v19  ;;  %v1249_v7 = vadd.f32 %v1248_v33, %v1214_v31  ;;  %v1224_v33 = vmul.f32 %v2953_v3, %v2953_v3 }
 0x1d3   :  { %v1171_v46 = vadd.f32 %v1170_v56, %v2911_v5  ;;  %v1250_v30 = vadd.f32 %v1249_v7, %v1215_v44  ;;  %v1225_v7 = vmul.f32 %v2947_v4, %v2947_v4 }
 0x1d5   :  { %v1172_v49 = vadd.f32 %v1171_v46, %v2908_v61  ;;  %v1251_v43 = vadd.f32 %v1250_v30, %v1216_v45  ;;  %v1226_v30 = vmul.f32 %v2963_v22, %v2963_v22 }
 0x1d7   :  { %v1173_v8 = vadd.f32 %v1172_v49, %v2920_v17  ;;  %v1252_v1 = vadd.f32 %v1251_v43, %v1217_v16  ;;  %v1227_v43 = vmul.f32 %v2957_v12, %v2957_v12 }
 0x1d9   :  { %v1174_v36 = vadd.f32 %v1173_v8, %v2917_v2  ;;  %v1253_v60 = vadd.f32 %v1252_v1, %v1218_v57  ;;  %v1228_v1 = vmul.f32 %v2973_v39, %v2973_v39 }
 0x1db   :  { %v1175_v11 = vadd.f32 %v1174_v36, %v2930_v37  ;;  %v1254_v32 = vadd.f32 %v1253_v60, %v1219_v24  ;;  %v1229_v60 = vmul.f32 %v2967_v23, %v2967_v23 }
 0x1dd   :  { %v1176_v14 = vadd.f32 %v1175_v11, %v2927_v28  ;;  %v1255_v53 = vadd.f32 %v1254_v32, %v1220_v59  ;;  %v1230_v32 = vmul.f32 %v2983_v52, %v2983_v52 }
 0x1df   :  { %v1177_v62 = vadd.f32 %v1176_v14, %v2943_v20  ;;  %v1256_v15 = vadd.f32 %v1255_v53, %v1221_v63  ;;  %v1231_v53 = vmul.f32 %v2977_v38, %v2977_v38 }
 0x1e1   :  { %v1178_v31 = vadd.f32 %v1177_v62, %v2937_v47  ;;  %v1257_v10 = vadd.f32 %v1256_v15, %v1222_v0  ;;  %v1232_v15 = vmul.f32 %v3001_v58, %v3001_v58 }
 0x1e3   :  { %v1179_v44 = vadd.f32 %v1178_v31, %v2953_v3  ;;  %v1258_v56 = vadd.f32 %v1257_v10, %v1223_v26  ;;  %v1233_v10 = vmul.f32 %v2993_v9, %v2993_v9 }
 0x1e5   :  { %v1259_v45 = vadd.f32 %v1258_v56, %v1224_v33  ;;  %v1180_v46 = vadd.f32 %v1179_v44, %v2947_v4  ;;  %v1234_v56 = vmul.f32 %v3017_v18, %v3017_v18 }
 0x1e7   :  { %v1181_v16 = vadd.f32 %v1180_v46, %v2963_v22  ;;  %v1260_v49 = vadd.f32 %v1259_v45, %v1225_v7  ;;  %v1235_v46 = vmul.f32 %v3010_v21, %v3010_v21 }
 0x1e9   :  { %v1182_v57 = vadd.f32 %v1181_v16, %v2957_v12  ;;  %v1261_v8 = vadd.f32 %v1260_v49, %v1226_v30  ;;  %v1236_v49 = vmul.f32 %v3033_v6, %v3033_v6 }
 0x1eb   :  { %v1183_v24 = vadd.f32 %v1182_v57, %v2973_v39  ;;  %v1262_v36 = vadd.f32 %v1261_v8, %v1227_v43  ;;  %v1237_v8 = vmul.f32 %v3024_v29, %v3024_v29 }
 0x1ed   :  { %v1184_v59 = vadd.f32 %v1183_v24, %v2967_v23  ;;  %v1263_v11 = vadd.f32 %v1262_v36, %v1228_v1 }
 0x1ef   :  { %v1185_v63 = vadd.f32 %v1184_v59, %v2983_v52  ;;  %v1264_v14 = vadd.f32 %v1263_v11, %v1229_v60  ;;  %v1238_v60 = vmul.f32 %v3047_v35, %v3047_v35  ;;  %v1239_v11 = vmul.f32 %v3040_v27, %v3040_v27 }
 0x1f1   :  { %v1186_v0 = vadd.f32 %v1185_v63, %v2977_v38  ;;  %v1265_v62 = vadd.f32 %v1264_v14, %v1230_v32 }
 0x1f3   :  { %v1187_v26 = vadd.f32 %v1186_v0, %v3001_v58  ;;  %v1266_v31 = vadd.f32 %v1265_v62, %v1231_v53 }
 0x1f5   :  { %v1188_v33 = vadd.f32 %v1187_v26, %v2993_v9  ;;  %v1267_v44 = vadd.f32 %v1266_v31, %v1232_v15 }
 0x1f7   :  { %v1189_v7 = vadd.f32 %v1188_v33, %v3017_v18  ;;  %v1268_v45 = vadd.f32 %v1267_v44, %v1233_v10 }
 0x1f9   :  { %v1190_v30 = vadd.f32 %v1189_v7, %v3010_v21  ;;  %v1269_v16 = vadd.f32 %v1268_v45, %v1234_v56  ;;  %v1159_v56 = vld [vmem:[#allocation2] sm:$0x1] }
 0x1fb   :  { %v1191_v43 = vadd.f32 %v1190_v30, %v3033_v6  ;;  %v1270_v57 = vadd.f32 %v1269_v16, %v1235_v46  ;;  %v1203_v46 = vld [vmem:[#allocation3] sm:$0x1] }
 0x1fd   :  { %v1192_v1 = vadd.f32 %v1191_v43, %v3024_v29  ;;  %v1271_v24 = vadd.f32 %v1270_v57, %v1236_v49 }
 0x1ff   :  { %v1193_v36 = vadd.f32 %v1192_v1, %v3047_v35  ;;  %v1272_v59 = vadd.f32 %v1271_v24, %v1237_v8 }
 0x201   :  { %v1194_v32 = vadd.f32 %v1193_v36, %v3040_v27  ;;  %v1273_v63 = vadd.f32 %v1272_v59, %v1238_v60 }
 0x203   :  { %v1195_v14 = vrot.slane %v1194_v32, 4  ;;  %v1274_v53 = vadd.f32 %v1273_v63, %v1239_v11  ;;  %v1336_v11 = vlaneseq  ;;  %v1293_v63 = vld [vmem:[%s3345_s2 + $0x1] sm:$0x1] }
 0x205   :  { %v1196_v0 = vadd.f32 %v1195_v14, %v1194_v32  ;;  %v1275_v62 = vrot.slane %v1274_v53, 4  ;;  %v1337_v32 = vshrl.u32 %v1336_v11, 7 }
 0x207   :  { %v1197_v15 = vrot.slane %v1196_v0, 2  ;;  %v1276_v26 = vadd.f32 %v1275_v62, %v1274_v53  ;;  %v1338_v14 = vsub.s32 0, %v1337_v32  ;;  %v1297_v62 = vld [vmem:[%s3345_s2 + $0x2] sm:$0x1] }
 0x209   :  { %v1198_v31 = vadd.f32 %v1197_v15, %v1196_v0  ;;  %v1277_v10 = vrot.slane %v1276_v26, 2 }
 0x20b   :  { %v1199_v33 = vrot.slane %v1198_v31, 1  ;;  %v1278_v44 = vadd.f32 %v1277_v10, %v1276_v26 }
 0x20d   :  { %v1200_v7 = vadd.f32 %v1199_v33, %v1198_v31  ;;  %v1279_v45 = vrot.slane %v1278_v44, 1 }
 0x20f   :  { %v1201_v30 = vadd.f32 %v1200_v7, %v1159_v56  ;;  %v1280_v16 = vadd.f32 %v1279_v45, %v1278_v44 }
 0x211   :  { %1202 = vst [vmem:[#allocation2] sm:$0x1] %v1201_v30  ;;  %v1281_v49 = vadd.f32 %v1280_v16, %v1203_v46 }
 0x213   :  { %1282 = vst [vmem:[#allocation3] sm:$0x1] %v1281_v49 }
 0x218   :  { %v1286_v43 = vld [vmem:[#allocation2] sm:$0x1] }
 0x219   :  { %v1287_v57 = vmul.f32 0.0034722222, %v1286_v43 }
 0x21a   :  { %v1288_v8 = vld [vmem:[#allocation3] sm:$0x1] }
 0x21b   :  { %v1289_v1 = vmul.f32 0.0034722222, %v1288_v8  ;;  %v1290_v24 = vmul.f32 %v1287_v57, %v1287_v57 }
 0x21d   :  { %v1291_v36 = vsub.f32 %v1289_v1, %v1290_v24 }
 0x21f   :  { %v1292_v60 = vmax.f32 %v1291_v36, 0.0 }
 0x221   :  { %v1294_v59 = vadd.f32 1e-05, %v1292_v60 }
 0x223   :  { %1870 = vrsqrt.f32 %v1294_v59 }
 0x22d   :  { %v1871_v53 = vpop.eup %1870 }
 0x22e   :  { %v1296_v0 = vmul.f32 %v1871_v53, %v1293_v63 }
 0x230   :  { %v1298_v15 = vmul.f32 %v1296_v0, %v1287_v57  ;;  %v1339_v26 = vrot.slane %v1296_v0, %v1338_v14 }
 0x232   :  { %v1299_v31 = vsub.f32 %v1297_v62, %v1298_v15  ;;  %v1340_v10 = vmul.f32 %v1339_v26, %v2940_v48  ;;  %v1341_v33 = vmul.f32 %v1339_v26, %v2950_v41  ;;  %v1342_v44 = vmul.f32 %v1339_v26, %v2960_v34 }
 0x233   :  { %v1343_v56 = vmul.f32 %v1339_v26, %v2970_v42  ;;  %v1344_v7 = vmul.f32 %v1339_v26, %v2980_v51  ;;  %v1345_v45 = vmul.f32 %v1339_v26, %v2998_v54  ;;  %v1346_v46 = vmul.f32 %v1339_v26, %v3014_v25 }
 0x234   :  { %v1347_v30 = vmul.f32 %v1339_v26, %v3030_v13  ;;  %v1348_v16 = vmul.f32 %v1339_v26, %v3044_v55  ;;  %v1349_v49 = vmul.f32 %v1339_v26, %v2891_v40  ;;  %v1350_v48 = vmul.f32 %v1339_v26, %v2902_v50 }
 0x235   :  { %v1351_v41 = vmul.f32 %v1339_v26, %v2899_v19  ;;  %v1352_v34 = vmul.f32 %v1339_v26, %v2911_v5  ;;  %v1353_v42 = vmul.f32 %v1339_v26, %v2908_v61  ;;  %v1354_v51 = vmul.f32 %v1339_v26, %v2920_v17 }
 0x236   :  { %v1355_v54 = vmul.f32 %v1339_v26, %v2917_v2  ;;  %v1356_v25 = vmul.f32 %v1339_v26, %v2930_v37  ;;  %v1357_v13 = vmul.f32 %v1339_v26, %v2927_v28  ;;  %v1358_v55 = vmul.f32 %v1339_v26, %v2943_v20 }
 0x237   :  { %v1359_v40 = vmul.f32 %v1339_v26, %v2937_v47  ;;  %v1360_v50 = vmul.f32 %v1339_v26, %v2953_v3  ;;  %v1361_v19 = vmul.f32 %v1339_v26, %v2947_v4  ;;  %v1362_v5 = vmul.f32 %v1339_v26, %v2963_v22 }
 0x238   :  { %v1363_v61 = vmul.f32 %v1339_v26, %v2957_v12  ;;  %v1364_v17 = vmul.f32 %v1339_v26, %v2973_v39  ;;  %v1365_v2 = vmul.f32 %v1339_v26, %v2967_v23  ;;  %v1366_v37 = vmul.f32 %v1339_v26, %v2983_v52 }
 0x239   :  { %v1367_v28 = vmul.f32 %v1339_v26, %v2977_v38  ;;  %v1368_v20 = vmul.f32 %v1339_v26, %v3001_v58  ;;  %v1369_v47 = vmul.f32 %v1339_v26, %v2993_v9  ;;  %v1370_v3 = vmul.f32 %v1339_v26, %v3017_v18 }
 0x23a   :  { %v1371_v4 = vmul.f32 %v1339_v26, %v3010_v21  ;;  %v1379_v43 = vrot.slane %v1299_v31, %v1338_v14  ;;  %v1372_v22 = vmul.f32 %v1339_v26, %v3033_v6  ;;  %v1373_v12 = vmul.f32 %v1339_v26, %v3024_v29 }
 0x23b   :  { %v1374_v39 = vmul.f32 %v1339_v26, %v3047_v35  ;;  %v1375_v23 = vmul.f32 %v1339_v26, %v3040_v27 }
 0x23c   :  { %v1380_v52 = vadd.f32 %v1379_v43, %v1340_v10  ;;  %v1381_v57 = vadd.f32 %v1379_v43, %v1341_v33  ;;  %v1382_v38 = vadd.f32 %v1379_v43, %v1342_v44  ;;  %v1383_v8 = vadd.f32 %v1379_v43, %v1343_v56 }
 0x23d   :  { %v1384_v58 = vadd.f32 %v1379_v43, %v1344_v7  ;;  %v1385_v1 = vadd.f32 %v1379_v43, %v1345_v45  ;;  %v1386_v9 = vadd.f32 %v1379_v43, %v1346_v46  ;;  %v1387_v24 = vadd.f32 %v1379_v43, %v1347_v30 }
 0x23e   :  { %v1388_v18 = vadd.f32 %v1379_v43, %v1348_v16  ;;  %v1389_v36 = vadd.f32 %v1379_v43, %v1349_v49  ;;  %v1390_v21 = vadd.f32 %v1379_v43, %v1350_v48  ;;  %v1391_v60 = vadd.f32 %v1379_v43, %v1351_v41 }
 0x23f   :  { %v1392_v59 = vadd.f32 %v1379_v43, %v1352_v34  ;;  %v1393_v6 = vadd.f32 %v1379_v43, %v1353_v42  ;;  %v1394_v11 = vadd.f32 %v1379_v43, %v1354_v51  ;;  %v1395_v29 = vadd.f32 %v1379_v43, %v1355_v54 }
 0x240   :  { %v3175_v32 = vadd.f32 %v1379_v43, %v1356_v25  ;;  %v3177_v35 = vadd.f32 %v1379_v43, %v1357_v13  ;;  %v3179_v27 = vadd.f32 %v1379_v43, %v1358_v55  ;;  %v3181_v63 = vadd.f32 %v1379_v43, %v1359_v40 }
 0x241   :  { %v3183_v14 = vadd.f32 %v1379_v43, %v1360_v50  ;;  %v3185_v53 = vadd.f32 %v1379_v43, %v1361_v19  ;;  %v3187_v0 = vadd.f32 %v1379_v43, %v1362_v5  ;;  %v3189_v62 = vadd.f32 %v1379_v43, %v1363_v61 }
 0x242   :  { %v3191_v15 = vadd.f32 %v1379_v43, %v1364_v17  ;;  %v3193_v26 = vadd.f32 %v1379_v43, %v1365_v2  ;;  %v3195_v31 = vadd.f32 %v1379_v43, %v1366_v37  ;;  %v3197_v10 = vadd.f32 %v1379_v43, %v1367_v28 }
 0x243   :  { %v3199_v33 = vadd.f32 %v1379_v43, %v1368_v20  ;;  %v3201_v44 = vadd.f32 %v1379_v43, %v1369_v47  ;;  %v3203_v56 = vadd.f32 %v1379_v43, %v1370_v3  ;;  %v3205_v7 = vadd.f32 %v1379_v43, %v1371_v4 }
 0x244   :  { %v3207_v45 = vadd.f32 %v1379_v43, %v1372_v22  ;;  %v3209_v46 = vadd.f32 %v1379_v43, %v1373_v12  ;;  %v3211_v30 = vadd.f32 %v1379_v43, %v1374_v39  ;;  %v3213_v16 = vadd.f32 %v1379_v43, %v1375_v23 }
 0x245   :  { %v1416_v49 = vmax.f32 %v1380_v52, 0.0  ;;  %v1417_v48 = vmax.f32 %v1381_v57, 0.0  ;;  %v1418_v41 = vmax.f32 %v1382_v38, 0.0  ;;  %v1419_v34 = vmax.f32 %v1383_v8, 0.0 }
 0x246   :  { %v1420_v42 = vmax.f32 %v1384_v58, 0.0  ;;  %v1421_v51 = vmax.f32 %v1385_v1, 0.0  ;;  %v1422_v54 = vmax.f32 %v1386_v9, 0.0  ;;  %v1423_v25 = vmax.f32 %v1387_v24, 0.0 }
 0x247   :  { %v1424_v13 = vmax.f32 %v1388_v18, 0.0  ;;  %v1425_v55 = vmax.f32 %v1389_v36, 0.0  ;;  %v1426_v40 = vmax.f32 %v1390_v21, 0.0  ;;  %v1427_v50 = vmax.f32 %v1391_v60, 0.0  ;;  %1452 = vst [vmem:[%s3346_s3] sm:$0xff] %v1416_v49  ;;  %1453 = vst [vmem:[%s3346_s3 + $0x8] sm:$0xff] %v1417_v48 }
 0x248   :  { %1454 = vst [vmem:[%s3346_s3 + $0x10] sm:$0xff] %v1418_v41  ;;  %1455 = vst [vmem:[%s3346_s3 + $0x18] sm:$0xff] %v1419_v34  ;;  %v1428_v19 = vmax.f32 %v1392_v59, 0.0  ;;  %v1429_v5 = vmax.f32 %v1393_v6, 0.0  ;;  %v1430_v61 = vmax.f32 %v1394_v11, 0.0  ;;  %v1431_v17 = vmax.f32 %v1395_v29, 0.0 }
 0x249   :  { %1456 = vst [vmem:[%s3346_s3 + $0x20] sm:$0xff] %v1420_v42  ;;  %1457 = vst [vmem:[%s3346_s3 + $0x28] sm:$0xff] %v1421_v51  ;;  %v1432_v2 = vmax.f32 %v3175_v32, 0.0  ;;  %v1433_v37 = vmax.f32 %v3177_v35, 0.0  ;;  %v1434_v28 = vmax.f32 %v3179_v27, 0.0  ;;  %v1435_v20 = vmax.f32 %v3181_v63, 0.0 }
 0x24a   :  { %1458 = vst [vmem:[%s3346_s3 + $0x30] sm:$0xff] %v1422_v54  ;;  %1459 = vst [vmem:[%s3346_s3 + $0x38] sm:$0xff] %v1423_v25  ;;  %v1436_v47 = vmax.f32 %v3183_v14, 0.0  ;;  %v1437_v3 = vmax.f32 %v3185_v53, 0.0  ;;  %v1438_v4 = vmax.f32 %v3187_v0, 0.0  ;;  %v1439_v43 = vmax.f32 %v3189_v62, 0.0 }
 0x24b   :  { %1460 = vst [vmem:[%s3346_s3 + $0x40] sm:$0xff] %v1424_v13  ;;  %1461 = vst [vmem:[%s3346_s3 + $0x48] sm:$0xff] %v1425_v55  ;;  %v1440_v22 = vmax.f32 %v3191_v15, 0.0  ;;  %v1441_v12 = vmax.f32 %v3193_v26, 0.0  ;;  %v1442_v39 = vmax.f32 %v3195_v31, 0.0  ;;  %v1443_v23 = vmax.f32 %v3197_v10, 0.0 }
 0x24c   :  { %1462 = vst [vmem:[%s3346_s3 + $0x50] sm:$0xff] %v1426_v40  ;;  %1463 = vst [vmem:[%s3346_s3 + $0x58] sm:$0xff] %v1427_v50  ;;  %v1444_v52 = vmax.f32 %v3199_v33, 0.0  ;;  %v1445_v57 = vmax.f32 %v3201_v44, 0.0  ;;  %v1446_v38 = vmax.f32 %v3203_v56, 0.0  ;;  %v1447_v8 = vmax.f32 %v3205_v7, 0.0 }
 0x24d   :  { %1464 = vst [vmem:[%s3346_s3 + $0x60] sm:$0xff] %v1428_v19  ;;  %1465 = vst [vmem:[%s3346_s3 + $0x68] sm:$0xff] %v1429_v5  ;;  %v1448_v58 = vmax.f32 %v3207_v45, 0.0  ;;  %v1449_v1 = vmax.f32 %v3209_v46, 0.0  ;;  %v1450_v9 = vmax.f32 %v3211_v30, 0.0  ;;  %v1451_v24 = vmax.f32 %v3213_v16, 0.0 }
 0x24e   :  { %1466 = vst [vmem:[%s3346_s3 + $0x70] sm:$0xff] %v1430_v61  ;;  %1467 = vst [vmem:[%s3346_s3 + $0x78] sm:$0xff] %v1431_v17 }
 0x24f   :  { %1468 = vst [vmem:[%s3346_s3 + $0x80] sm:$0xff] %v1432_v2  ;;  %1469 = vst [vmem:[%s3346_s3 + $0x88] sm:$0xff] %v1433_v37 }
 0x250   :  { %1470 = vst [vmem:[%s3346_s3 + $0x90] sm:$0xff] %v1434_v28  ;;  %1471 = vst [vmem:[%s3346_s3 + $0x98] sm:$0xff] %v1435_v20 }
 0x251   :  { %1472 = vst [vmem:[%s3346_s3 + $0xa0] sm:$0xff] %v1436_v47  ;;  %1473 = vst [vmem:[%s3346_s3 + $0xa8] sm:$0xff] %v1437_v3 }
 0x252   :  { %1474 = vst [vmem:[%s3346_s3 + $0xb0] sm:$0xff] %v1438_v4  ;;  %1475 = vst [vmem:[%s3346_s3 + $0xb8] sm:$0xff] %v1439_v43 }
 0x253   :  { %1476 = vst [vmem:[%s3346_s3 + $0xc0] sm:$0xff] %v1440_v22  ;;  %1477 = vst [vmem:[%s3346_s3 + $0xc8] sm:$0xff] %v1441_v12 }
 0x254   :  { %1478 = vst [vmem:[%s3346_s3 + $0xd0] sm:$0xff] %v1442_v39  ;;  %1479 = vst [vmem:[%s3346_s3 + $0xd8] sm:$0xff] %v1443_v23 }
 0x255   :  { %1480 = vst [vmem:[%s3346_s3 + $0xe0] sm:$0xff] %v1444_v52  ;;  %1481 = vst [vmem:[%s3346_s3 + $0xe8] sm:$0xff] %v1445_v57 }
 0x256   :  { %1482 = vst [vmem:[%s3346_s3 + $0xf0] sm:$0xff] %v1446_v38  ;;  %1483 = vst [vmem:[%s3346_s3 + $0xf8] sm:$0xff] %v1447_v8 }
 0x257   :  { %1484 = vst [vmem:[%s3346_s3 + $0x100] sm:$0xff] %v1448_v58  ;;  %1485 = vst [vmem:[%s3346_s3 + $0x108] sm:$0xff] %v1449_v1 }
 0x258   :  { %1486 = vst [vmem:[%s3346_s3 + $0x110] sm:$0xff] %v1450_v9  ;;  %1487 = vst [vmem:[%s3346_s3 + $0x118] sm:$0xff] %v1451_v24 }

// kernel: dfqi_forward.7
= control target key start
LH: loop header
LB: loop body
LE: loop exit
PB: predicated region body
PF: predicated region fallthrough
CT: control target
= control target key end

     0   :  { %s6413_s18 = smov 0   ;;  %s7337_s0 = inlined_call_operand.vmem [shape: f32[8,9216], index: 0, kind: input, shape index: {}]   ;;  %s7338_s1 = inlined_call_operand.vmem [shape: bf16[9216,512], index: 1, kind: input, shape index: {}]   ;;  %s7339_s2 = inlined_call_operand.vmem [shape: f32[1,512], index: 2, kind: input, shape index: {}]   ;;  %s7340_s3 = inlined_call_operand.vmem [shape: f32[512,128], index: 3, kind: input, shape index: {}]   ;;  %s7341_s4 = inlined_call_operand.vmem [shape: f32[1,128], index: 4, kind: input, shape index: {}]   ;;  %s7342_s5 = inlined_call_operand.vmem [shape: f32[8,128], index: 5, kind: output, shape index: {}]  }
   0x1 LB: > { %s6419_s19 = sadd.s32 4294967295, %s6380_s18   ;;  %p4781_p0 = scmp.ge.s32.totalorder %s6380_s18, 1  ;;  %s6380_s18 = sphi %s6413_s18, %s15_s18  }
   0x2   : > { %p195_p1 = scmp.lt.s32.totalorder %s6380_s18, 5 }
   0x4   : > { %p196_p2 = pnand %p4781_p0, %p195_p1 }
   0x5   : > { %s224_s20 = smul.u32 (!%p196_p2), 18, %s6419_s19  ;;  %p4785_p5 = scmp.ne.s32.totalorder (!%p196_p2), %s6419_s19, 0 }
   0x6   : > { %199 = sbr.rel (%p196_p2) target bundleno = 1057 (0x421), region = 40 }
   0x7   : > { %s230_s21 = smul.u32 (!%p196_p2), 288, %s6419_s19  ;;  %p225_p3 = scmp.lt.s32.totalorder (!%p196_p2), %s224_s20, 71 }
   0x9   : > { %p231_p4 = scmp.lt.s32.totalorder (!%p196_p2), %s230_s21, 1151 }
   0xd   : > { %s7344_s20 = smov (!%p225_p3, %s224_s20), 71  ;;  %s7346_s21 = smov (!%p231_p4, %s230_s21), 1151 }
   0xe   : > { %s4782_s22 = sshll.u32 %s7344_s20, 3  ;;  %s5366_s26 = sshll.u32 %s7346_s21, 4  ;;  %v6382_v0 = vmov (!%p4785_p5), 0.0  }
   0xf   : > { %s6428_s25 = scalar_lea.vmem %s7337_s0, %s4782_s22  ;;  %s6433_s29 = scalar_lea.vmem %s7338_s1, %s5366_s26  ;;  %241 = vst [vmem:[#allocation2] sm:$0xff] (!%p4785_p5), %v6382_v0  ;;  %242 = vst [vmem:[#allocation2 + $0x8] sm:$0xff] (!%p4785_p5), %v6382_v0 }
  0x10   : > { %240 = sbr.rel (%p4785_p5) target bundleno = 23 (0x17), region = 44  ;;  %243 = vst [vmem:[#allocation2 + $0x10] sm:$0xff] (!%p4785_p5), %v6382_v0  ;;  %244 = vst [vmem:[#allocation2 + $0x18] sm:$0xff] (!%p4785_p5), %v6382_v0 }
  0x17 PF: > { %v5510_v1 = vld [vmem:[%s6433_s29 + $0x4] ss:$16 sps:$4 sm:$0xff]   ;;  %v5514_v3 = vld [vmem:[%s6433_s29] ss:$16 sps:$4 sm:$0xff]   ;;  %v250_v47 = vld [vmem:[%s6428_s25 + $0x8] sm:$0xff]  ;;  %p5362_p6 = scmp.ne.s32.totalorder %s6419_s19, 3 }
  0x18   : > { %v5512_v2 = vld [vmem:[%s6433_s29 + $0x204] ss:$16 sps:$4 sm:$0xff]   ;;  %3741 = vmatprep.subr.bf16.mxu0 %v5510_v1  ;;  %v5515_v4 = vld [vmem:[%s6433_s29 + $0x200] ss:$16 sps:$4 sm:$0xff]   ;;  %v6485_v50 = vpack.c.bf16 %v250_v47, %v250_v47  ;;  %v252_v51 = vld [vmem:[%s6428_s25 + $0x18] sm:$0xff] }
  0x19   : > { %3782 = vmatprep.subr.bf16.mxu1 %v5512_v2  ;;  %v5516_v5 = vld [vmem:[%s6433_s29 + $0x24] ss:$16 sps:$4 sm:$0xff]   ;;  %3742 = vmatpush1.bf16.msra.mxu0 %v5514_v3  ;;  %v5520_v7 = vld [vmem:[%s6433_s29 + $0x20] ss:$16 sps:$4 sm:$0xff]   ;;  %v6489_v53 = vpack.c.bf16 %v252_v51, %v252_v51 }
  0x1a   : > { %3783 = vmatpush1.bf16.msra.mxu1 %v5515_v4  ;;  %v5518_v6 = vld [vmem:[%s6433_s29 + $0x224] ss:$16 sps:$4 sm:$0xff]   ;;  %3743 = vmatprep.subr.bf16.mxu0 %v5516_v5  ;;  %v5521_v8 = vld [vmem:[%s6433_s29 + $0x220] ss:$16 sps:$4 sm:$0xff]  }
  0x1b   : > { %3784 = vmatprep.subr.bf16.mxu1 %v5518_v6  ;;  %v5522_v9 = vld [vmem:[%s6433_s29 + $0x44] ss:$16 sps:$4 sm:$0xff]   ;;  %v5526_v11 = vld [vmem:[%s6433_s29 + $0x40] ss:$16 sps:$4 sm:$0xff]   ;;  %3773 = vmatprep.mubr.bf16.mxu0 %v6485_v50 }
  0x1c   : > { %v5524_v10 = vld [vmem:[%s6433_s29 + $0x244] ss:$16 sps:$4 sm:$0xff]   ;;  %v5527_v12 = vld [vmem:[%s6433_s29 + $0x240] ss:$16 sps:$4 sm:$0xff]   ;;  %3814 = vmatprep.mubr.bf16.mxu1 %v6489_v53 }
  0x1d   : > { %3744 = vmatpush1.bf16.msra.mxu0 %v5520_v7  ;;  %v5528_v13 = vld [vmem:[%s6433_s29 + $0x64] ss:$16 sps:$4 sm:$0xff]   ;;  %v5532_v15 = vld [vmem:[%s6433_s29 + $0x60] ss:$16 sps:$4 sm:$0xff]  }
  0x1e   : > { %3785 = vmatpush1.bf16.msra.mxu1 %v5521_v8  ;;  %3745 = vmatprep.subr.bf16.mxu0 %v5522_v9  ;;  %v5530_v14 = vld [vmem:[%s6433_s29 + $0x264] ss:$16 sps:$4 sm:$0xff]   ;;  %v5533_v16 = vld [vmem:[%s6433_s29 + $0x260] ss:$16 sps:$4 sm:$0xff]  }
  0x1f   : > { %3786 = vmatprep.subr.bf16.mxu1 %v5524_v10  ;;  %v5534_v17 = vld [vmem:[%s6433_s29 + $0x84] ss:$16 sps:$4 sm:$0xff]   ;;  %v5538_v19 = vld [vmem:[%s6433_s29 + $0x80] ss:$16 sps:$4 sm:$0xff]  }
  0x20   : > { %v5536_v18 = vld [vmem:[%s6433_s29 + $0x284] ss:$16 sps:$4 sm:$0xff]   ;;  %v5539_v20 = vld [vmem:[%s6433_s29 + $0x280] ss:$16 sps:$4 sm:$0xff]  }
  0x21   : > { %3746 = vmatpush1.bf16.msra.mxu0 %v5526_v11  ;;  %v5540_v21 = vld [vmem:[%s6433_s29 + $0xa4] ss:$16 sps:$4 sm:$0xff]   ;;  %v5544_v23 = vld [vmem:[%s6433_s29 + $0xa0] ss:$16 sps:$4 sm:$0xff]  }
  0x22   : > { %3787 = vmatpush1.bf16.msra.mxu1 %v5527_v12  ;;  %3747 = vmatprep.subr.bf16.mxu0 %v5528_v13  ;;  %v5542_v22 = vld [vmem:[%s6433_s29 + $0x2a4] ss:$16 sps:$4 sm:$0xff]   ;;  %v5545_v24 = vld [vmem:[%s6433_s29 + $0x2a0] ss:$16 sps:$4 sm:$0xff]  }
  0x23   : > { %3788 = vmatprep.subr.bf16.mxu1 %v5530_v14  ;;  %v5546_v25 = vld [vmem:[%s6433_s29 + $0xc4] ss:$16 sps:$4 sm:$0xff]   ;;  %v5550_v27 = vld [vmem:[%s6433_s29 + $0xc0] ss:$16 sps:$4 sm:$0xff]  }
  0x24   : > { %v5548_v26 = vld [vmem:[%s6433_s29 + $0x2c4] ss:$16 sps:$4 sm:$0xff]   ;;  %v5551_v28 = vld [vmem:[%s6433_s29 + $0x2c0] ss:$16 sps:$4 sm:$0xff]  }
  0x25   : > { %3748 = vmatpush1.bf16.msra.mxu0 %v5532_v15  ;;  %v5552_v29 = vld [vmem:[%s6433_s29 + $0xe4] ss:$16 sps:$4 sm:$0xff]   ;;  %v5556_v31 = vld [vmem:[%s6433_s29 + $0xe0] ss:$16 sps:$4 sm:$0xff]  }
  0x26   : > { %3789 = vmatpush1.bf16.msra.mxu1 %v5533_v16  ;;  %3749 = vmatprep.subr.bf16.mxu0 %v5534_v17  ;;  %v5554_v30 = vld [vmem:[%s6433_s29 + $0x2e4] ss:$16 sps:$4 sm:$0xff]   ;;  %v5557_v32 = vld [vmem:[%s6433_s29 + $0x2e0] ss:$16 sps:$4 sm:$0xff]  }
  0x27   : > { %3790 = vmatprep.subr.bf16.mxu1 %v5536_v18  ;;  %v5558_v33 = vld [vmem:[%s6433_s29 + $0x104] ss:$16 sps:$4 sm:$0xff]   ;;  %v5562_v35 = vld [vmem:[%s6433_s29 + $0x100] ss:$16 sps:$4 sm:$0xff]  }
  0x28   : > { %v5560_v34 = vld [vmem:[%s6433_s29 + $0x304] ss:$16 sps:$4 sm:$0xff]   ;;  %v5563_v36 = vld [vmem:[%s6433_s29 + $0x300] ss:$16 sps:$4 sm:$0xff]  }
  0x29   : > { %3750 = vmatpush1.bf16.msra.mxu0 %v5538_v19  ;;  %v5564_v37 = vld [vmem:[%s6433_s29 + $0x124] ss:$16 sps:$4 sm:$0xff]   ;;  %v5568_v39 = vld [vmem:[%s6433_s29 + $0x120] ss:$16 sps:$4 sm:$0xff]  }
  0x2a   : > { %3791 = vmatpush1.bf16.msra.mxu1 %v5539_v20  ;;  %3751 = vmatprep.subr.bf16.mxu0 %v5540_v21  ;;  %v5566_v38 = vld [vmem:[%s6433_s29 + $0x324] ss:$16 sps:$4 sm:$0xff]   ;;  %v5569_v40 = vld [vmem:[%s6433_s29 + $0x320] ss:$16 sps:$4 sm:$0xff]  }
  0x2b   : > { %3792 = vmatprep.subr.bf16.mxu1 %v5542_v22  ;;  %v5570_v41 = vld [vmem:[%s6433_s29 + $0x144] ss:$16 sps:$4 sm:$0xff]   ;;  %v5574_v43 = vld [vmem:[%s6433_s29 + $0x140] ss:$16 sps:$4 sm:$0xff]  }
  0x2c   : > { %v5572_v42 = vld [vmem:[%s6433_s29 + $0x344] ss:$16 sps:$4 sm:$0xff]   ;;  %v5575_v44 = vld [vmem:[%s6433_s29 + $0x340] ss:$16 sps:$4 sm:$0xff]  }
  0x2d   : > { %3752 = vmatpush1.bf16.msra.mxu0 %v5544_v23  ;;  %v5576_v45 = vld [vmem:[%s6433_s29 + $0x164] ss:$16 sps:$4 sm:$0xff]   ;;  %v5580_v48 = vld [vmem:[%s6433_s29 + $0x160] ss:$16 sps:$4 sm:$0xff]  }
  0x2e   : > { %3793 = vmatpush1.bf16.msra.mxu1 %v5545_v24  ;;  %3753 = vmatprep.subr.bf16.mxu0 %v5546_v25  ;;  %v5578_v46 = vld [vmem:[%s6433_s29 + $0x364] ss:$16 sps:$4 sm:$0xff]   ;;  %v5581_v49 = vld [vmem:[%s6433_s29 + $0x360] ss:$16 sps:$4 sm:$0xff]  }
  0x2f   : > { %3794 = vmatprep.subr.bf16.mxu1 %v5548_v26  ;;  %v5582_v52 = vld [vmem:[%s6433_s29 + $0x184] ss:$16 sps:$4 sm:$0xff]   ;;  %v5586_v55 = vld [vmem:[%s6433_s29 + $0x180] ss:$16 sps:$4 sm:$0xff]  }
  0x30   : > { %v5584_v54 = vld [vmem:[%s6433_s29 + $0x384] ss:$16 sps:$4 sm:$0xff]   ;;  %v5587_v56 = vld [vmem:[%s6433_s29 + $0x380] ss:$16 sps:$4 sm:$0xff]  }
  0x31   : > { %3754 = vmatpush1.bf16.msra.mxu0 %v5550_v27  ;;  %v5588_v57 = vld [vmem:[%s6433_s29 + $0x1a4] ss:$16 sps:$4 sm:$0xff]   ;;  %v5592_v59 = vld [vmem:[%s6433_s29 + $0x1a0] ss:$16 sps:$4 sm:$0xff]  }
  0x32   : > { %3795 = vmatpush1.bf16.msra.mxu1 %v5551_v28  ;;  %3755 = vmatprep.subr.bf16.mxu0 %v5552_v29  ;;  %v5590_v58 = vld [vmem:[%s6433_s29 + $0x3a4] ss:$16 sps:$4 sm:$0xff]   ;;  %v5593_v60 = vld [vmem:[%s6433_s29 + $0x3a0] ss:$16 sps:$4 sm:$0xff]  }
  0x33   : > { %3796 = vmatprep.subr.bf16.mxu1 %v5554_v30  ;;  %v5594_v61 = vld [vmem:[%s6433_s29 + $0x1c4] ss:$16 sps:$4 sm:$0xff]   ;;  %v5598_v63 = vld [vmem:[%s6433_s29 + $0x1c0] ss:$16 sps:$4 sm:$0xff]  }
  0x34   : > { %v5596_v62 = vld [vmem:[%s6433_s29 + $0x3c4] ss:$16 sps:$4 sm:$0xff]   ;;  %v5599_v0 = vld [vmem:[%s6433_s29 + $0x3c0] ss:$16 sps:$4 sm:$0xff]  }
  0x35   : > { %3756 = vmatpush1.bf16.msra.mxu0 %v5556_v31  ;;  %v5600_v1 = vld [vmem:[%s6433_s29 + $0x1e4] ss:$16 sps:$4 sm:$0xff]   ;;  %v5604_v3 = vld [vmem:[%s6433_s29 + $0x1e0] ss:$16 sps:$4 sm:$0xff]  }
  0x36   : > { %3797 = vmatpush1.bf16.msra.mxu1 %v5557_v32  ;;  %3757 = vmatprep.subr.bf16.mxu0 %v5558_v33  ;;  %v5602_v2 = vld [vmem:[%s6433_s29 + $0x3e4] ss:$16 sps:$4 sm:$0xff]   ;;  %v5605_v4 = vld [vmem:[%s6433_s29 + $0x3e0] ss:$16 sps:$4 sm:$0xff]  }
  0x37   : > { %3798 = vmatprep.subr.bf16.mxu1 %v5560_v34  ;;  %v249_v5 = vld [vmem:[%s6428_s25] sm:$0xff]  ;;  %v251_v6 = vld [vmem:[%s6428_s25 + $0x10] sm:$0xff] }
  0x38   : > { %v5608_v7 = vld [vmem:[%s6433_s29 + $0x404] ss:$16 sps:$4 sm:$0xff]   ;;  %v6512_v9 = vpack.c.bf16 %v249_v5, %v249_v5  ;;  %v6514_v10 = vpack.c.bf16 %v251_v6, %v251_v6  ;;  %v5606_v11 = vld [vmem:[%s6433_s29 + $0x400] ss:$16 sps:$4 sm:$0xff]  }
  0x39   : > { %3758 = vmatpush1.bf16.msra.mxu0 %v5562_v35  ;;  %v5611_v8 = vld [vmem:[%s6433_s29 + $0x604] ss:$16 sps:$4 sm:$0xff]   ;;  %v5609_v12 = vld [vmem:[%s6433_s29 + $0x600] ss:$16 sps:$4 sm:$0xff]   ;;  %v254_v35 = vld [vmem:[%s6428_s25 + $0x28] sm:$0xff] }
  0x3a   : > { %3799 = vmatpush1.bf16.msra.mxu1 %v5563_v36  ;;  %3759 = vmatprep.subr.bf16.mxu0 %v5564_v37  ;;  %v5614_v13 = vld [vmem:[%s6433_s29 + $0x424] ss:$16 sps:$4 sm:$0xff]   ;;  %v5612_v15 = vld [vmem:[%s6433_s29 + $0x420] ss:$16 sps:$4 sm:$0xff]  }
  0x3b   : > { %3800 = vmatprep.subr.bf16.mxu1 %v5566_v38  ;;  %v5617_v14 = vld [vmem:[%s6433_s29 + $0x624] ss:$16 sps:$4 sm:$0xff]   ;;  %v5615_v16 = vld [vmem:[%s6433_s29 + $0x620] ss:$16 sps:$4 sm:$0xff]   ;;  %v6545_v38 = vpack.c.bf16 %v254_v35, %v254_v35 }
  0x3c   : > { %v5620_v17 = vld [vmem:[%s6433_s29 + $0x444] ss:$16 sps:$4 sm:$0xff]   ;;  %v5618_v19 = vld [vmem:[%s6433_s29 + $0x440] ss:$16 sps:$4 sm:$0xff]  }
  0x3d   : > { %3760 = vmatpush1.bf16.msra.mxu0 %v5568_v39  ;;  %v5623_v18 = vld [vmem:[%s6433_s29 + $0x644] ss:$16 sps:$4 sm:$0xff]   ;;  %v5621_v20 = vld [vmem:[%s6433_s29 + $0x640] ss:$16 sps:$4 sm:$0xff]   ;;  %v256_v39 = vld [vmem:[%s6428_s25 + $0x38] sm:$0xff] }
  0x3e   : > { %3801 = vmatpush1.bf16.msra.mxu1 %v5569_v40  ;;  %3761 = vmatprep.subr.bf16.mxu0 %v5570_v41  ;;  %v5626_v21 = vld [vmem:[%s6433_s29 + $0x464] ss:$16 sps:$4 sm:$0xff]   ;;  %v5624_v23 = vld [vmem:[%s6433_s29 + $0x460] ss:$16 sps:$4 sm:$0xff]   ;;  %v6549_v41 = vpack.c.bf16 %v256_v39, %v256_v39 }
  0x3f   : > { %3802 = vmatprep.subr.bf16.mxu1 %v5572_v42  ;;  %v5629_v22 = vld [vmem:[%s6433_s29 + $0x664] ss:$16 sps:$4 sm:$0xff]   ;;  %v5627_v24 = vld [vmem:[%s6433_s29 + $0x660] ss:$16 sps:$4 sm:$0xff]  }
  0x40   : > { %v5632_v25 = vld [vmem:[%s6433_s29 + $0x484] ss:$16 sps:$4 sm:$0xff]   ;;  %v5630_v27 = vld [vmem:[%s6433_s29 + $0x480] ss:$16 sps:$4 sm:$0xff]  }
  0x41   : > { %3762 = vmatpush1.bf16.msra.mxu0 %v5574_v43  ;;  %v5635_v26 = vld [vmem:[%s6433_s29 + $0x684] ss:$16 sps:$4 sm:$0xff]   ;;  %v5633_v28 = vld [vmem:[%s6433_s29 + $0x680] ss:$16 sps:$4 sm:$0xff]  }
  0x42   : > { %3803 = vmatpush1.bf16.msra.mxu1 %v5575_v44  ;;  %3763 = vmatprep.subr.bf16.mxu0 %v5576_v45  ;;  %v5638_v29 = vld [vmem:[%s6433_s29 + $0x4a4] ss:$16 sps:$4 sm:$0xff]   ;;  %v5636_v31 = vld [vmem:[%s6433_s29 + $0x4a0] ss:$16 sps:$4 sm:$0xff]  }
  0x43   : > { %3804 = vmatprep.subr.bf16.mxu1 %v5578_v46  ;;  %v5641_v30 = vld [vmem:[%s6433_s29 + $0x6a4] ss:$16 sps:$4 sm:$0xff]   ;;  %v5639_v32 = vld [vmem:[%s6433_s29 + $0x6a0] ss:$16 sps:$4 sm:$0xff]  }
  0x44   : > { %v5644_v33 = vld [vmem:[%s6433_s29 + $0x4c4] ss:$16 sps:$4 sm:$0xff]   ;;  %v5642_v36 = vld [vmem:[%s6433_s29 + $0x4c0] ss:$16 sps:$4 sm:$0xff]  }
  0x45   : > { %3764 = vmatpush1.bf16.msra.mxu0 %v5580_v48  ;;  %v5647_v34 = vld [vmem:[%s6433_s29 + $0x6c4] ss:$16 sps:$4 sm:$0xff]   ;;  %v5645_v37 = vld [vmem:[%s6433_s29 + $0x6c0] ss:$16 sps:$4 sm:$0xff]  }
  0x46   : > { %3805 = vmatpush1.bf16.msra.mxu1 %v5581_v49  ;;  %3765 = vmatprep.subr.bf16.mxu0 %v5582_v52  ;;  %v5650_v40 = vld [vmem:[%s6433_s29 + $0x4e4] ss:$16 sps:$4 sm:$0xff]   ;;  %v5648_v43 = vld [vmem:[%s6433_s29 + $0x4e0] ss:$16 sps:$4 sm:$0xff]  }
  0x47   : > { %3806 = vmatprep.subr.bf16.mxu1 %v5584_v54  ;;  %v5653_v42 = vld [vmem:[%s6433_s29 + $0x6e4] ss:$16 sps:$4 sm:$0xff]   ;;  %v5651_v44 = vld [vmem:[%s6433_s29 + $0x6e0] ss:$16 sps:$4 sm:$0xff]  }
  0x48   : > { %v5656_v45 = vld [vmem:[%s6433_s29 + $0x504] ss:$16 sps:$4 sm:$0xff]   ;;  %v5654_v47 = vld [vmem:[%s6433_s29 + $0x500] ss:$16 sps:$4 sm:$0xff]  }
  0x49   : > { %3766 = vmatpush1.bf16.msra.mxu0 %v5586_v55  ;;  %v5659_v46 = vld [vmem:[%s6433_s29 + $0x704] ss:$16 sps:$4 sm:$0xff]   ;;  %v5657_v48 = vld [vmem:[%s6433_s29 + $0x700] ss:$16 sps:$4 sm:$0xff]  }
  0x4a   : > { %3807 = vmatpush1.bf16.msra.mxu1 %v5587_v56  ;;  %3767 = vmatprep.subr.bf16.mxu0 %v5588_v57  ;;  %v5662_v49 = vld [vmem:[%s6433_s29 + $0x524] ss:$16 sps:$4 sm:$0xff]   ;;  %v5660_v52 = vld [vmem:[%s6433_s29 + $0x520] ss:$16 sps:$4 sm:$0xff]  }
  0x4b   : > { %3808 = vmatprep.subr.bf16.mxu1 %v5590_v58  ;;  %v5665_v51 = vld [vmem:[%s6433_s29 + $0x724] ss:$16 sps:$4 sm:$0xff]   ;;  %v5663_v54 = vld [vmem:[%s6433_s29 + $0x720] ss:$16 sps:$4 sm:$0xff]  }
  0x4c   : > { %v5668_v55 = vld [vmem:[%s6433_s29 + $0x544] ss:$16 sps:$4 sm:$0xff]   ;;  %v5666_v57 = vld [vmem:[%s6433_s29 + $0x540] ss:$16 sps:$4 sm:$0xff]  }
  0x4d   : > { %3768 = vmatpush1.bf16.msra.mxu0 %v5592_v59  ;;  %v5671_v56 = vld [vmem:[%s6433_s29 + $0x744] ss:$16 sps:$4 sm:$0xff]   ;;  %v5669_v58 = vld [vmem:[%s6433_s29 + $0x740] ss:$16 sps:$4 sm:$0xff]  }
  0x4e   : > { %3809 = vmatpush1.bf16.msra.mxu1 %v5593_v60  ;;  %3769 = vmatprep.subr.bf16.mxu0 %v5594_v61  ;;  %v5674_v59 = vld [vmem:[%s6433_s29 + $0x564] ss:$16 sps:$4 sm:$0xff]   ;;  %v5672_v61 = vld [vmem:[%s6433_s29 + $0x560] ss:$16 sps:$4 sm:$0xff]  }
  0x4f   : > { %3810 = vmatprep.subr.bf16.mxu1 %v5596_v62  ;;  %v5677_v60 = vld [vmem:[%s6433_s29 + $0x764] ss:$16 sps:$4 sm:$0xff]   ;;  %v5675_v62 = vld [vmem:[%s6433_s29 + $0x760] ss:$16 sps:$4 sm:$0xff]  }
  0x50   : > { %v5684_v5 = vld [vmem:[%s6433_s29 + $0x5a0] ss:$16 sps:$4 sm:$0xff]   ;;  %v5725_v39 = vld [vmem:[%s6433_s29 + $0xa64] ss:$16 sps:$4 sm:$0xff]  }
  0x51   : > { %3770 = vmatpush1.bf16.msra.mxu0 %v5598_v63  ;;  %v5680_v63 = vld [vmem:[%s6433_s29 + $0x584] ss:$16 sps:$4 sm:$0xff]   ;;  %v5687_v6 = vld [vmem:[%s6433_s29 + $0x7a0] ss:$16 sps:$4 sm:$0xff]  }
  0x52   : > { %3811 = vmatpush1.bf16.msra.mxu1 %v5599_v0  ;;  %3771 = vmatprep.subr.bf16.mxu0 %v5600_v1  ;;  %v5683_v0 = vld [vmem:[%s6433_s29 + $0x784] ss:$16 sps:$4 sm:$0xff]   ;;  %v5678_v1 = vld [vmem:[%s6433_s29 + $0x580] ss:$16 sps:$4 sm:$0xff]  }
  0x53   : > { %3812 = vmatprep.subr.bf16.mxu1 %v5602_v2  ;;  %v5681_v2 = vld [vmem:[%s6433_s29 + $0x780] ss:$16 sps:$4 sm:$0xff]  }
  0x54   : > { %v5714_v35 = vld [vmem:[%s6433_s29 + $0x840] ss:$16 sps:$4 sm:$0xff]  }
  0x55   : > { %3772 = vmatpush1.bf16.msra.mxu0 %v5604_v3  ;;  %v5686_v3 = vld [vmem:[%s6433_s29 + $0x5a4] ss:$16 sps:$4 sm:$0xff]  }
  0x56   : > { %3813 = vmatpush1.bf16.msra.mxu1 %v5605_v4  ;;  %3823 = vmatprep.subr.bf16.mxu0 %v5608_v7  ;;  %v5689_v4 = vld [vmem:[%s6433_s29 + $0x7a4] ss:$16 sps:$4 sm:$0xff]  }
  0x57   : > { %3864 = vmatprep.subr.bf16.mxu1 %v5611_v8  ;;  %v5692_v7 = vld [vmem:[%s6433_s29 + $0x5c4] ss:$16 sps:$4 sm:$0xff]  }
  0x58   : > { %3774 = vmatmul.mubr.bf16.vlgmr.msra.gmra.mrb[0].mxu0 %v6512_v9  ;;  %v5695_v8 = vld [vmem:[%s6433_s29 + $0x7c4] ss:$16 sps:$4 sm:$0xff]  }
  0x59   : > { %3815 = vmatmul.mubr.bf16.vlgmr.msra.gmra.mrb[0].mxu1 %v6514_v10  ;;  %3824 = vmatpush1.bf16.msra.mxu0 %v5606_v11  ;;  %v5690_v11 = vld [vmem:[%s6433_s29 + $0x5c0] ss:$16 sps:$4 sm:$0xff]  }
  0x5a   : > { %3865 = vmatpush1.bf16.msra.mxu1 %v5609_v12  ;;  %3825 = vmatprep.subr.bf16.mxu0 %v5614_v13  ;;  %v5693_v12 = vld [vmem:[%s6433_s29 + $0x7c0] ss:$16 sps:$4 sm:$0xff]   ;;  %v5698_v13 = vld [vmem:[%s6433_s29 + $0x5e4] ss:$16 sps:$4 sm:$0xff]  }
  0x5b   : > { %3866 = vmatprep.subr.bf16.mxu1 %v5617_v14  ;;  %3855 = vmatprep.mubr.bf16.mxu0 %v6545_v38  ;;  %v5701_v14 = vld [vmem:[%s6433_s29 + $0x7e4] ss:$16 sps:$4 sm:$0xff]  }
  0x5c   : > { %3896 = vmatprep.mubr.bf16.mxu1 %v6549_v41 }
  0x5d   : > { %3826 = vmatpush1.bf16.msra.mxu0 %v5612_v15  ;;  %v5696_v15 = vld [vmem:[%s6433_s29 + $0x5e0] ss:$16 sps:$4 sm:$0xff]  }
  0x5e   : > { %3867 = vmatpush1.bf16.msra.mxu1 %v5615_v16  ;;  %3827 = vmatprep.subr.bf16.mxu0 %v5620_v17  ;;  %v5699_v16 = vld [vmem:[%s6433_s29 + $0x7e0] ss:$16 sps:$4 sm:$0xff]  }
  0x5f   : > { %3868 = vmatprep.subr.bf16.mxu1 %v5623_v18  ;;  %v253_v17 = vld [vmem:[%s6428_s25 + $0x20] sm:$0xff]  ;;  %v255_v18 = vld [vmem:[%s6428_s25 + $0x30] sm:$0xff] }
  0x61   : > { %3828 = vmatpush1.bf16.msra.mxu0 %v5618_v19  ;;  %v5704_v19 = vld [vmem:[%s6433_s29 + $0x804] ss:$16 sps:$4 sm:$0xff]  }
  0x62   : > { %3869 = vmatpush1.bf16.msra.mxu1 %v5621_v20  ;;  %3829 = vmatprep.subr.bf16.mxu0 %v5626_v21  ;;  %v5707_v20 = vld [vmem:[%s6433_s29 + $0xa04] ss:$16 sps:$4 sm:$0xff]   ;;  %v6592_v21 = vpack.c.bf16 %v253_v17, %v253_v17  ;;  %v5774_v17 = vld [vmem:[%s6433_s29 + $0x980] ss:$16 sps:$4 sm:$0xff]  }
  0x63   : > { %3870 = vmatprep.subr.bf16.mxu1 %v5629_v22  ;;  %v6594_v22 = vpack.c.bf16 %v255_v18, %v255_v18  ;;  %v5777_v18 = vld [vmem:[%s6433_s29 + $0xb80] ss:$16 sps:$4 sm:$0xff]  }
  0x65   : > { %3830 = vmatpush1.bf16.msra.mxu0 %v5624_v23  ;;  %v5702_v23 = vld [vmem:[%s6433_s29 + $0x800] ss:$16 sps:$4 sm:$0xff]  }
  0x66   : > { %3871 = vmatpush1.bf16.msra.mxu1 %v5627_v24  ;;  %3831 = vmatprep.subr.bf16.mxu0 %v5632_v25  ;;  %v5705_v24 = vld [vmem:[%s6433_s29 + $0xa00] ss:$16 sps:$4 sm:$0xff]   ;;  %v5710_v25 = vld [vmem:[%s6433_s29 + $0x824] ss:$16 sps:$4 sm:$0xff]  }
  0x67   : > { %3872 = vmatprep.subr.bf16.mxu1 %v5635_v26  ;;  %v5713_v26 = vld [vmem:[%s6433_s29 + $0xa24] ss:$16 sps:$4 sm:$0xff]  }
  0x69   : > { %3832 = vmatpush1.bf16.msra.mxu0 %v5630_v27  ;;  %v258_v27 = vld [vmem:[%s6428_s25 + $0x48] sm:$0xff] }
  0x6a   : > { %3873 = vmatpush1.bf16.msra.mxu1 %v5633_v28  ;;  %3833 = vmatprep.subr.bf16.mxu0 %v5638_v29  ;;  %v5708_v28 = vld [vmem:[%s6433_s29 + $0x820] ss:$16 sps:$4 sm:$0xff]  }
  0x6b   : > { %3874 = vmatprep.subr.bf16.mxu1 %v5641_v30  ;;  %v5711_v29 = vld [vmem:[%s6433_s29 + $0xa20] ss:$16 sps:$4 sm:$0xff]   ;;  %v6605_v30 = vpack.c.bf16 %v258_v27, %v258_v27 }
  0x6c   : > { %v5786_v27 = vld [vmem:[%s6433_s29 + $0x9c0] ss:$16 sps:$4 sm:$0xff]  }
  0x6d   : > { %3834 = vmatpush1.bf16.msra.mxu0 %v5636_v31  ;;  %v260_v31 = vld [vmem:[%s6428_s25 + $0x58] sm:$0xff] }
  0x6e   : > { %3875 = vmatpush1.bf16.msra.mxu1 %v5639_v32  ;;  %3835 = vmatprep.subr.bf16.mxu0 %v5644_v33  ;;  %v5716_v32 = vld [vmem:[%s6433_s29 + $0x844] ss:$16 sps:$4 sm:$0xff]   ;;  %v6609_v33 = vpack.c.bf16 %v260_v31, %v260_v31 }
  0x6f   : > { %3876 = vmatprep.subr.bf16.mxu1 %v5647_v34  ;;  %v5719_v34 = vld [vmem:[%s6433_s29 + $0xa44] ss:$16 sps:$4 sm:$0xff]  }
  0x70   : > { %v5797_v31 = vld [vmem:[%s6433_s29 + $0xbe4] ss:$16 sps:$4 sm:$0xff]  }
  0x71   : > { %3836 = vmatpush1.bf16.msra.mxu0 %v5642_v36  ;;  %v5717_v36 = vld [vmem:[%s6433_s29 + $0xa40] ss:$16 sps:$4 sm:$0xff]  }
  0x72   : > { %3877 = vmatpush1.bf16.msra.mxu1 %v5645_v37  ;;  %3837 = vmatprep.subr.bf16.mxu0 %v5650_v40  ;;  %v5722_v37 = vld [vmem:[%s6433_s29 + $0x864] ss:$16 sps:$4 sm:$0xff]   ;;  %v5720_v40 = vld [vmem:[%s6433_s29 + $0x860] ss:$16 sps:$4 sm:$0xff]  }
  0x73   : > { %3878 = vmatprep.subr.bf16.mxu1 %v5653_v42  ;;  %v5723_v42 = vld [vmem:[%s6433_s29 + $0xa60] ss:$16 sps:$4 sm:$0xff]  }
  0x75   : > { %3838 = vmatpush1.bf16.msra.mxu0 %v5648_v43  ;;  %v5728_v43 = vld [vmem:[%s6433_s29 + $0x884] ss:$16 sps:$4 sm:$0xff]  }
  0x76   : > { %3879 = vmatpush1.bf16.msra.mxu1 %v5651_v44  ;;  %3839 = vmatprep.subr.bf16.mxu0 %v5656_v45  ;;  %v5731_v44 = vld [vmem:[%s6433_s29 + $0xa84] ss:$16 sps:$4 sm:$0xff]   ;;  %v5726_v45 = vld [vmem:[%s6433_s29 + $0x880] ss:$16 sps:$4 sm:$0xff]  }
  0x77   : > { %3880 = vmatprep.subr.bf16.mxu1 %v5659_v46  ;;  %v5729_v46 = vld [vmem:[%s6433_s29 + $0xa80] ss:$16 sps:$4 sm:$0xff]  }
  0x79   : > { %3840 = vmatpush1.bf16.msra.mxu0 %v5654_v47  ;;  %v5734_v47 = vld [vmem:[%s6433_s29 + $0x8a4] ss:$16 sps:$4 sm:$0xff]  }
  0x7a   : > { %3881 = vmatpush1.bf16.msra.mxu1 %v5657_v48  ;;  %3841 = vmatprep.subr.bf16.mxu0 %v5662_v49  ;;  %v5737_v48 = vld [vmem:[%s6433_s29 + $0xaa4] ss:$16 sps:$4 sm:$0xff]   ;;  %v5732_v49 = vld [vmem:[%s6433_s29 + $0x8a0] ss:$16 sps:$4 sm:$0xff]  }
  0x7b   : > { %3882 = vmatprep.subr.bf16.mxu1 %v5665_v51  ;;  %v5735_v51 = vld [vmem:[%s6433_s29 + $0xaa0] ss:$16 sps:$4 sm:$0xff]  }
  0x7d   : > { %3842 = vmatpush1.bf16.msra.mxu0 %v5660_v52  ;;  %v5740_v52 = vld [vmem:[%s6433_s29 + $0x8c4] ss:$16 sps:$4 sm:$0xff]  }
  0x7e   : > { %3883 = vmatpush1.bf16.msra.mxu1 %v5663_v54  ;;  %3843 = vmatprep.subr.bf16.mxu0 %v5668_v55  ;;  %v5743_v54 = vld [vmem:[%s6433_s29 + $0xac4] ss:$16 sps:$4 sm:$0xff]   ;;  %v5738_v55 = vld [vmem:[%s6433_s29 + $0x8c0] ss:$16 sps:$4 sm:$0xff]  }
  0x7f   : > { %3884 = vmatprep.subr.bf16.mxu1 %v5671_v56  ;;  %v5741_v56 = vld [vmem:[%s6433_s29 + $0xac0] ss:$16 sps:$4 sm:$0xff]  }
  0x81   : > { %3844 = vmatpush1.bf16.msra.mxu0 %v5666_v57  ;;  %v5746_v57 = vld [vmem:[%s6433_s29 + $0x8e4] ss:$16 sps:$4 sm:$0xff]  }
  0x82   : > { %3885 = vmatpush1.bf16.msra.mxu1 %v5669_v58  ;;  %3845 = vmatprep.subr.bf16.mxu0 %v5674_v59  ;;  %v5749_v58 = vld [vmem:[%s6433_s29 + $0xae4] ss:$16 sps:$4 sm:$0xff]   ;;  %v5744_v59 = vld [vmem:[%s6433_s29 + $0x8e0] ss:$16 sps:$4 sm:$0xff]  }
  0x83   : > { %3886 = vmatprep.subr.bf16.mxu1 %v5677_v60  ;;  %v5747_v60 = vld [vmem:[%s6433_s29 + $0xae0] ss:$16 sps:$4 sm:$0xff]  }
  0x85   : > { %3846 = vmatpush1.bf16.msra.mxu0 %v5672_v61  ;;  %v5752_v61 = vld [vmem:[%s6433_s29 + $0x904] ss:$16 sps:$4 sm:$0xff]  }
  0x86   : > { %3887 = vmatpush1.bf16.msra.mxu1 %v5675_v62  ;;  %3847 = vmatprep.subr.bf16.mxu0 %v5680_v63  ;;  %v5755_v62 = vld [vmem:[%s6433_s29 + $0xb04] ss:$16 sps:$4 sm:$0xff]   ;;  %v5750_v63 = vld [vmem:[%s6433_s29 + $0x900] ss:$16 sps:$4 sm:$0xff]  }
  0x87   : > { %3888 = vmatprep.subr.bf16.mxu1 %v5683_v0  ;;  %v5753_v0 = vld [vmem:[%s6433_s29 + $0xb00] ss:$16 sps:$4 sm:$0xff]  }
  0x89   : > { %3848 = vmatpush1.bf16.msra.mxu0 %v5678_v1  ;;  %v5758_v1 = vld [vmem:[%s6433_s29 + $0x924] ss:$16 sps:$4 sm:$0xff]  }
  0x8a   : > { %3889 = vmatpush1.bf16.msra.mxu1 %v5681_v2  ;;  %3849 = vmatprep.subr.bf16.mxu0 %v5686_v3  ;;  %v5761_v2 = vld [vmem:[%s6433_s29 + $0xb24] ss:$16 sps:$4 sm:$0xff]   ;;  %v5756_v3 = vld [vmem:[%s6433_s29 + $0x920] ss:$16 sps:$4 sm:$0xff]  }
  0x8b   : > { %3890 = vmatprep.subr.bf16.mxu1 %v5689_v4  ;;  %v5759_v4 = vld [vmem:[%s6433_s29 + $0xb20] ss:$16 sps:$4 sm:$0xff]  }
  0x8d   : > { %3850 = vmatpush1.bf16.msra.mxu0 %v5684_v5  ;;  %v5764_v5 = vld [vmem:[%s6433_s29 + $0x944] ss:$16 sps:$4 sm:$0xff]  }
  0x8e   : > { %3891 = vmatpush1.bf16.msra.mxu1 %v5687_v6  ;;  %3851 = vmatprep.subr.bf16.mxu0 %v5692_v7  ;;  %v5767_v6 = vld [vmem:[%s6433_s29 + $0xb44] ss:$16 sps:$4 sm:$0xff]   ;;  %v5762_v7 = vld [vmem:[%s6433_s29 + $0x940] ss:$16 sps:$4 sm:$0xff]  }
  0x8f   : > { %3892 = vmatprep.subr.bf16.mxu1 %v5695_v8  ;;  %v5765_v8 = vld [vmem:[%s6433_s29 + $0xb40] ss:$16 sps:$4 sm:$0xff]  }
  0x91   : > { %3852 = vmatpush1.bf16.msra.mxu0 %v5690_v11  ;;  %v5770_v11 = vld [vmem:[%s6433_s29 + $0x964] ss:$16 sps:$4 sm:$0xff]  }
  0x92   : > { %3893 = vmatpush1.bf16.msra.mxu1 %v5693_v12  ;;  %3853 = vmatprep.subr.bf16.mxu0 %v5698_v13  ;;  %v5773_v12 = vld [vmem:[%s6433_s29 + $0xb64] ss:$16 sps:$4 sm:$0xff]   ;;  %v5768_v13 = vld [vmem:[%s6433_s29 + $0x960] ss:$16 sps:$4 sm:$0xff]  }
  0x93   : > { %3894 = vmatprep.subr.bf16.mxu1 %v5701_v14  ;;  %v5771_v14 = vld [vmem:[%s6433_s29 + $0xb60] ss:$16 sps:$4 sm:$0xff]  }
  0x95   : > { %3854 = vmatpush1.bf16.msra.mxu0 %v5696_v15  ;;  %v5776_v15 = vld [vmem:[%s6433_s29 + $0x984] ss:$16 sps:$4 sm:$0xff]  }
  0x96   : > { %3895 = vmatpush1.bf16.msra.mxu1 %v5699_v16  ;;  %3905 = vmatprep.subr.bf16.mxu0 %v5704_v19  ;;  %v5779_v16 = vld [vmem:[%s6433_s29 + $0xb84] ss:$16 sps:$4 sm:$0xff]  }
  0x97   : > { %3946 = vmatprep.subr.bf16.mxu1 %v5707_v20  ;;  %v5782_v19 = vld [vmem:[%s6433_s29 + $0x9a4] ss:$16 sps:$4 sm:$0xff]  }
  0x98   : > { %3856 = vmatmul.mubr.bf16.vlgmr.msra.gmra.mrb[4].mxu0 %v6592_v21  ;;  %v5785_v20 = vld [vmem:[%s6433_s29 + $0xba4] ss:$16 sps:$4 sm:$0xff]  }
  0x99   : > { %3897 = vmatmul.mubr.bf16.vlgmr.msra.gmra.mrb[4].mxu1 %v6594_v22  ;;  %3906 = vmatpush1.bf16.msra.mxu0 %v5702_v23  ;;  %v5780_v23 = vld [vmem:[%s6433_s29 + $0x9a0] ss:$16 sps:$4 sm:$0xff]  }
  0x9a   : > { %3947 = vmatpush1.bf16.msra.mxu1 %v5705_v24  ;;  %3907 = vmatprep.subr.bf16.mxu0 %v5710_v25  ;;  %v5783_v24 = vld [vmem:[%s6433_s29 + $0xba0] ss:$16 sps:$4 sm:$0xff]   ;;  %v5788_v25 = vld [vmem:[%s6433_s29 + $0x9c4] ss:$16 sps:$4 sm:$0xff]  }
  0x9b   : > { %3948 = vmatprep.subr.bf16.mxu1 %v5713_v26  ;;  %3937 = vmatprep.mubr.bf16.mxu0 %v6605_v30  ;;  %v5791_v26 = vld [vmem:[%s6433_s29 + $0xbc4] ss:$16 sps:$4 sm:$0xff]  }
  0x9c   : > { %3978 = vmatprep.mubr.bf16.mxu1 %v6609_v33 }
  0x9d   : > { %3908 = vmatpush1.bf16.msra.mxu0 %v5708_v28  ;;  %v5789_v28 = vld [vmem:[%s6433_s29 + $0xbc0] ss:$16 sps:$4 sm:$0xff]  }
  0x9e   : > { %3949 = vmatpush1.bf16.msra.mxu1 %v5711_v29  ;;  %3909 = vmatprep.subr.bf16.mxu0 %v5716_v32  ;;  %v5794_v29 = vld [vmem:[%s6433_s29 + $0x9e4] ss:$16 sps:$4 sm:$0xff]   ;;  %v5792_v32 = vld [vmem:[%s6433_s29 + $0x9e0] ss:$16 sps:$4 sm:$0xff]  }
  0x9f   : > { %3950 = vmatprep.subr.bf16.mxu1 %v5719_v34  ;;  %v5795_v34 = vld [vmem:[%s6433_s29 + $0xbe0] ss:$16 sps:$4 sm:$0xff]  }
  0xa1   : > { %3910 = vmatpush1.bf16.msra.mxu0 %v5714_v35  ;;  %v257_v35 = vld [vmem:[%s6428_s25 + $0x40] sm:$0xff] }
  0xa2   : > { %3951 = vmatpush1.bf16.msra.mxu1 %v5717_v36  ;;  %3911 = vmatprep.subr.bf16.mxu0 %v5722_v37  ;;  %v259_v36 = vld [vmem:[%s6428_s25 + $0x50] sm:$0xff] }
  0xa3   : > { %3952 = vmatprep.subr.bf16.mxu1 %v5725_v39  ;;  %v5800_v37 = vld [vmem:[%s6433_s29 + $0xc04] ss:$16 sps:$4 sm:$0xff]  }
  0xa4   : > { %v5803_v39 = vld [vmem:[%s6433_s29 + $0xe04] ss:$16 sps:$4 sm:$0xff]  }
  0xa5   : > { %3912 = vmatpush1.bf16.msra.mxu0 %v5720_v40  ;;  %v5798_v40 = vld [vmem:[%s6433_s29 + $0xc00] ss:$16 sps:$4 sm:$0xff]  }
  0xa6   : > { %3953 = vmatpush1.bf16.msra.mxu1 %v5723_v42  ;;  %3913 = vmatprep.subr.bf16.mxu0 %v5728_v43  ;;  %v5801_v42 = vld [vmem:[%s6433_s29 + $0xe00] ss:$16 sps:$4 sm:$0xff]   ;;  %v6674_v43 = vpack.c.bf16 %v257_v35, %v257_v35 }
  0xa7   : > { %3954 = vmatprep.subr.bf16.mxu1 %v5731_v44  ;;  %v6676_v44 = vpack.c.bf16 %v259_v36, %v259_v36  ;;  %v5864_v35 = vld [vmem:[%s6433_s29 + $0xd60] ss:$16 sps:$4 sm:$0xff]  }
  0xa8   : > { %v5867_v36 = vld [vmem:[%s6433_s29 + $0xf60] ss:$16 sps:$4 sm:$0xff]  }
  0xa9   : > { %3914 = vmatpush1.bf16.msra.mxu0 %v5726_v45  ;;  %v262_v45 = vld [vmem:[%s6428_s25 + $0x68] sm:$0xff] }
  0xaa   : > { %3955 = vmatpush1.bf16.msra.mxu1 %v5729_v46  ;;  %3915 = vmatprep.subr.bf16.mxu0 %v5734_v47  ;;  %v264_v46 = vld [vmem:[%s6428_s25 + $0x78] sm:$0xff]  ;;  %v5806_v47 = vld [vmem:[%s6433_s29 + $0xc24] ss:$16 sps:$4 sm:$0xff]  }
  0xab   : > { %3956 = vmatprep.subr.bf16.mxu1 %v5737_v48  ;;  %v5809_v48 = vld [vmem:[%s6433_s29 + $0xe24] ss:$16 sps:$4 sm:$0xff]  }
  0xad   : > { %3916 = vmatpush1.bf16.msra.mxu0 %v5732_v49  ;;  %v6682_v49 = vpack.c.bf16 %v262_v45, %v262_v45  ;;  %v5878_v45 = vld [vmem:[%s6433_s29 + $0xda4] ss:$16 sps:$4 sm:$0xff]  }
  0xae   : > { %3957 = vmatpush1.bf16.msra.mxu1 %v5735_v51  ;;  %3917 = vmatprep.subr.bf16.mxu0 %v5740_v52  ;;  %v6684_v51 = vpack.c.bf16 %v264_v46, %v264_v46  ;;  %v5804_v52 = vld [vmem:[%s6433_s29 + $0xc20] ss:$16 sps:$4 sm:$0xff]   ;;  %v5881_v46 = vld [vmem:[%s6433_s29 + $0xfa4] ss:$16 sps:$4 sm:$0xff]  }
  0xaf   : > { %3958 = vmatprep.subr.bf16.mxu1 %v5743_v54  ;;  %v5807_v54 = vld [vmem:[%s6433_s29 + $0xe20] ss:$16 sps:$4 sm:$0xff]  }
  0xb1   : > { %3918 = vmatpush1.bf16.msra.mxu0 %v5738_v55  ;;  %v5812_v55 = vld [vmem:[%s6433_s29 + $0xc44] ss:$16 sps:$4 sm:$0xff]  }
  0xb2   : > { %3959 = vmatpush1.bf16.msra.mxu1 %v5741_v56  ;;  %3919 = vmatprep.subr.bf16.mxu0 %v5746_v57  ;;  %v5815_v56 = vld [vmem:[%s6433_s29 + $0xe44] ss:$16 sps:$4 sm:$0xff]   ;;  %v5810_v57 = vld [vmem:[%s6433_s29 + $0xc40] ss:$16 sps:$4 sm:$0xff]  }
  0xb3   : > { %3960 = vmatprep.subr.bf16.mxu1 %v5749_v58  ;;  %v5813_v58 = vld [vmem:[%s6433_s29 + $0xe40] ss:$16 sps:$4 sm:$0xff]  }
  0xb5   : > { %3920 = vmatpush1.bf16.msra.mxu0 %v5744_v59  ;;  %v5818_v59 = vld [vmem:[%s6433_s29 + $0xc64] ss:$16 sps:$4 sm:$0xff]  }
  0xb6   : > { %3961 = vmatpush1.bf16.msra.mxu1 %v5747_v60  ;;  %3921 = vmatprep.subr.bf16.mxu0 %v5752_v61  ;;  %v5821_v60 = vld [vmem:[%s6433_s29 + $0xe64] ss:$16 sps:$4 sm:$0xff]   ;;  %v5816_v61 = vld [vmem:[%s6433_s29 + $0xc60] ss:$16 sps:$4 sm:$0xff]  }
  0xb7   : > { %3962 = vmatprep.subr.bf16.mxu1 %v5755_v62  ;;  %v5819_v62 = vld [vmem:[%s6433_s29 + $0xe60] ss:$16 sps:$4 sm:$0xff]  }
  0xb9   : > { %3922 = vmatpush1.bf16.msra.mxu0 %v5750_v63  ;;  %v5824_v63 = vld [vmem:[%s6433_s29 + $0xc84] ss:$16 sps:$4 sm:$0xff]  }
  0xba   : > { %3963 = vmatpush1.bf16.msra.mxu1 %v5753_v0  ;;  %3923 = vmatprep.subr.bf16.mxu0 %v5758_v1  ;;  %v5827_v0 = vld [vmem:[%s6433_s29 + $0xe84] ss:$16 sps:$4 sm:$0xff]   ;;  %v5822_v1 = vld [vmem:[%s6433_s29 + $0xc80] ss:$16 sps:$4 sm:$0xff]  }
  0xbb   : > { %3964 = vmatprep.subr.bf16.mxu1 %v5761_v2  ;;  %v5825_v2 = vld [vmem:[%s6433_s29 + $0xe80] ss:$16 sps:$4 sm:$0xff]  }
  0xbd   : > { %3924 = vmatpush1.bf16.msra.mxu0 %v5756_v3  ;;  %v5830_v3 = vld [vmem:[%s6433_s29 + $0xca4] ss:$16 sps:$4 sm:$0xff]  }
  0xbe   : > { %3965 = vmatpush1.bf16.msra.mxu1 %v5759_v4  ;;  %3925 = vmatprep.subr.bf16.mxu0 %v5764_v5  ;;  %v5833_v4 = vld [vmem:[%s6433_s29 + $0xea4] ss:$16 sps:$4 sm:$0xff]   ;;  %v5828_v5 = vld [vmem:[%s6433_s29 + $0xca0] ss:$16 sps:$4 sm:$0xff]  }
  0xbf   : > { %3966 = vmatprep.subr.bf16.mxu1 %v5767_v6  ;;  %v5831_v6 = vld [vmem:[%s6433_s29 + $0xea0] ss:$16 sps:$4 sm:$0xff]  }
  0xc1   : > { %3926 = vmatpush1.bf16.msra.mxu0 %v5762_v7  ;;  %v5836_v7 = vld [vmem:[%s6433_s29 + $0xcc4] ss:$16 sps:$4 sm:$0xff]  }
  0xc2   : > { %3967 = vmatpush1.bf16.msra.mxu1 %v5765_v8  ;;  %3927 = vmatprep.subr.bf16.mxu0 %v5770_v11  ;;  %v5839_v8 = vld [vmem:[%s6433_s29 + $0xec4] ss:$16 sps:$4 sm:$0xff]   ;;  %v5834_v11 = vld [vmem:[%s6433_s29 + $0xcc0] ss:$16 sps:$4 sm:$0xff]  }
  0xc3   : > { %3968 = vmatprep.subr.bf16.mxu1 %v5773_v12  ;;  %v5837_v12 = vld [vmem:[%s6433_s29 + $0xec0] ss:$16 sps:$4 sm:$0xff]  }
  0xc5   : > { %3928 = vmatpush1.bf16.msra.mxu0 %v5768_v13  ;;  %v5842_v13 = vld [vmem:[%s6433_s29 + $0xce4] ss:$16 sps:$4 sm:$0xff]  }
  0xc6   : > { %3969 = vmatpush1.bf16.msra.mxu1 %v5771_v14  ;;  %3929 = vmatprep.subr.bf16.mxu0 %v5776_v15  ;;  %v5845_v14 = vld [vmem:[%s6433_s29 + $0xee4] ss:$16 sps:$4 sm:$0xff]   ;;  %v5840_v15 = vld [vmem:[%s6433_s29 + $0xce0] ss:$16 sps:$4 sm:$0xff]  }
  0xc7   : > { %3970 = vmatprep.subr.bf16.mxu1 %v5779_v16  ;;  %v5843_v16 = vld [vmem:[%s6433_s29 + $0xee0] ss:$16 sps:$4 sm:$0xff]  }
  0xc9   : > { %3930 = vmatpush1.bf16.msra.mxu0 %v5774_v17  ;;  %v5848_v17 = vld [vmem:[%s6433_s29 + $0xd04] ss:$16 sps:$4 sm:$0xff]  }
  0xca   : > { %3971 = vmatpush1.bf16.msra.mxu1 %v5777_v18  ;;  %3931 = vmatprep.subr.bf16.mxu0 %v5782_v19  ;;  %v5851_v18 = vld [vmem:[%s6433_s29 + $0xf04] ss:$16 sps:$4 sm:$0xff]   ;;  %v5846_v19 = vld [vmem:[%s6433_s29 + $0xd00] ss:$16 sps:$4 sm:$0xff]  }
  0xcb   : > { %3972 = vmatprep.subr.bf16.mxu1 %v5785_v20  ;;  %v5849_v20 = vld [vmem:[%s6433_s29 + $0xf00] ss:$16 sps:$4 sm:$0xff]  }
  0xcd   : > { %3932 = vmatpush1.bf16.msra.mxu0 %v5780_v23  ;;  %v5854_v23 = vld [vmem:[%s6433_s29 + $0xd24] ss:$16 sps:$4 sm:$0xff]  }
  0xce   : > { %3973 = vmatpush1.bf16.msra.mxu1 %v5783_v24  ;;  %3933 = vmatprep.subr.bf16.mxu0 %v5788_v25  ;;  %v5857_v24 = vld [vmem:[%s6433_s29 + $0xf24] ss:$16 sps:$4 sm:$0xff]   ;;  %v5852_v25 = vld [vmem:[%s6433_s29 + $0xd20] ss:$16 sps:$4 sm:$0xff]  }
  0xcf   : > { %3974 = vmatprep.subr.bf16.mxu1 %v5791_v26  ;;  %v5855_v26 = vld [vmem:[%s6433_s29 + $0xf20] ss:$16 sps:$4 sm:$0xff]  }
  0xd1   : > { %3934 = vmatpush1.bf16.msra.mxu0 %v5786_v27  ;;  %v5860_v27 = vld [vmem:[%s6433_s29 + $0xd44] ss:$16 sps:$4 sm:$0xff]  }
  0xd2   : > { %3975 = vmatpush1.bf16.msra.mxu1 %v5789_v28  ;;  %3935 = vmatprep.subr.bf16.mxu0 %v5794_v29  ;;  %v5863_v28 = vld [vmem:[%s6433_s29 + $0xf44] ss:$16 sps:$4 sm:$0xff]   ;;  %v5858_v29 = vld [vmem:[%s6433_s29 + $0xd40] ss:$16 sps:$4 sm:$0xff]  }
  0xd3   : > { %3976 = vmatprep.subr.bf16.mxu1 %v5797_v31  ;;  %v5861_v31 = vld [vmem:[%s6433_s29 + $0xf40] ss:$16 sps:$4 sm:$0xff]  }
  0xd5   : > { %3936 = vmatpush1.bf16.msra.mxu0 %v5792_v32  ;;  %v5866_v32 = vld [vmem:[%s6433_s29 + $0xd64] ss:$16 sps:$4 sm:$0xff]  }
  0xd6   : > { %3977 = vmatpush1.bf16.msra.mxu1 %v5795_v34  ;;  %3987 = vmatprep.subr.bf16.mxu0 %v5800_v37  ;;  %v5869_v34 = vld [vmem:[%s6433_s29 + $0xf64] ss:$16 sps:$4 sm:$0xff]  }
  0xd7   : > { %4028 = vmatprep.subr.bf16.mxu1 %v5803_v39  ;;  %v5872_v37 = vld [vmem:[%s6433_s29 + $0xd84] ss:$16 sps:$4 sm:$0xff]  }
  0xd8   : > { %3938 = vmatmul.mubr.bf16.vlgmr.msra.gmra.mrb[8].mxu0 %v6674_v43  ;;  %v5875_v39 = vld [vmem:[%s6433_s29 + $0xf84] ss:$16 sps:$4 sm:$0xff]  }
  0xd9   : > { %3979 = vmatmul.mubr.bf16.vlgmr.msra.gmra.mrb[8].mxu1 %v6676_v44  ;;  %3988 = vmatpush1.bf16.msra.mxu0 %v5798_v40  ;;  %v5870_v40 = vld [vmem:[%s6433_s29 + $0xd80] ss:$16 sps:$4 sm:$0xff]  }
  0xda   : > { %4029 = vmatpush1.bf16.msra.mxu1 %v5801_v42  ;;  %3989 = vmatprep.subr.bf16.mxu0 %v5806_v47  ;;  %v5873_v42 = vld [vmem:[%s6433_s29 + $0xf80] ss:$16 sps:$4 sm:$0xff]  }
  0xdb   : > { %4030 = vmatprep.subr.bf16.mxu1 %v5809_v48  ;;  %4019 = vmatprep.mubr.bf16.mxu0 %v6682_v49  ;;  %v5876_v47 = vld [vmem:[%s6433_s29 + $0xda0] ss:$16 sps:$4 sm:$0xff]  }
  0xdc   : > { %4060 = vmatprep.mubr.bf16.mxu1 %v6684_v51  ;;  %v5879_v48 = vld [vmem:[%s6433_s29 + $0xfa0] ss:$16 sps:$4 sm:$0xff]  }
  0xdd   : > { %3990 = vmatpush1.bf16.msra.mxu0 %v5804_v52  ;;  %v5884_v52 = vld [vmem:[%s6433_s29 + $0xdc4] ss:$16 sps:$4 sm:$0xff]  }
  0xde   : > { %4031 = vmatpush1.bf16.msra.mxu1 %v5807_v54  ;;  %3991 = vmatprep.subr.bf16.mxu0 %v5812_v55  ;;  %v5887_v54 = vld [vmem:[%s6433_s29 + $0xfc4] ss:$16 sps:$4 sm:$0xff]   ;;  %v5882_v55 = vld [vmem:[%s6433_s29 + $0xdc0] ss:$16 sps:$4 sm:$0xff]  }
  0xdf   : > { %4032 = vmatprep.subr.bf16.mxu1 %v5815_v56  ;;  %v5885_v56 = vld [vmem:[%s6433_s29 + $0xfc0] ss:$16 sps:$4 sm:$0xff]  }
  0xe1   : > { %3992 = vmatpush1.bf16.msra.mxu0 %v5810_v57  ;;  %v5890_v57 = vld [vmem:[%s6433_s29 + $0xde4] ss:$16 sps:$4 sm:$0xff]  }
  0xe2   : > { %4033 = vmatpush1.bf16.msra.mxu1 %v5813_v58  ;;  %3993 = vmatprep.subr.bf16.mxu0 %v5818_v59  ;;  %v5893_v58 = vld [vmem:[%s6433_s29 + $0xfe4] ss:$16 sps:$4 sm:$0xff]   ;;  %v5888_v59 = vld [vmem:[%s6433_s29 + $0xde0] ss:$16 sps:$4 sm:$0xff]  }
  0xe3   : > { %4034 = vmatprep.subr.bf16.mxu1 %v5821_v60  ;;  %v5891_v60 = vld [vmem:[%s6433_s29 + $0xfe0] ss:$16 sps:$4 sm:$0xff]  }
  0xe5   : > { %3994 = vmatpush1.bf16.msra.mxu0 %v5816_v61  ;;  %v261_v61 = vld [vmem:[%s6428_s25 + $0x60] sm:$0xff] }
  0xe6   : > { %4035 = vmatpush1.bf16.msra.mxu1 %v5819_v62  ;;  %3995 = vmatprep.subr.bf16.mxu0 %v5824_v63  ;;  %v263_v62 = vld [vmem:[%s6428_s25 + $0x70] sm:$0xff] }
  0xe7   : > { %4036 = vmatprep.subr.bf16.mxu1 %v5827_v0  ;;  %v5896_v63 = vld [vmem:[%s6433_s29 + $0x1004] ss:$16 sps:$4 sm:$0xff]   ;;  %v5899_v0 = vld [vmem:[%s6433_s29 + $0xc] ss:$16 sps:$4 sm:$0xff]  }
  0xe9   : > { %3996 = vmatpush1.bf16.msra.mxu0 %v5822_v1  ;;  %v6752_v1 = vpack.c.bf16 %v261_v61, %v261_v61  ;;  %v5945_v61 = vld [vmem:[%s6433_s29 + $0x108] ss:$16 sps:$4 sm:$0xff]  }
  0xea   : > { %4037 = vmatpush1.bf16.msra.mxu1 %v5825_v2  ;;  %3997 = vmatprep.subr.bf16.mxu0 %v5830_v3  ;;  %v6754_v2 = vpack.c.bf16 %v263_v62, %v263_v62  ;;  %v266_v3 = vld [vmem:[%s6428_s25 + $0x88] sm:$0xff]  ;;  %v5950_v62 = vld [vmem:[%s6433_s29 + $0x1124] ss:$16 sps:$4 sm:$0xff]  }
  0xeb   : > { %4038 = vmatprep.subr.bf16.mxu1 %v5833_v4  ;;  %v5894_v4 = vld [vmem:[%s6433_s29 + $0x1000] ss:$16 sps:$4 sm:$0xff]  }
  0xed   : > { %3998 = vmatpush1.bf16.msra.mxu0 %v5828_v5  ;;  %v5897_v5 = vld [vmem:[%s6433_s29 + $0x8] ss:$16 sps:$4 sm:$0xff]  }
  0xee   : > { %4039 = vmatpush1.bf16.msra.mxu1 %v5831_v6  ;;  %3999 = vmatprep.subr.bf16.mxu0 %v5836_v7  ;;  %v5902_v6 = vld [vmem:[%s6433_s29 + $0x1024] ss:$16 sps:$4 sm:$0xff]   ;;  %v5905_v7 = vld [vmem:[%s6433_s29 + $0x2c] ss:$16 sps:$4 sm:$0xff]  }
  0xef   : > { %4040 = vmatprep.subr.bf16.mxu1 %v5839_v8  ;;  %v6761_v8 = vpack.c.bf16 %v266_v3, %v266_v3  ;;  %v5951_v3 = vld [vmem:[%s6433_s29 + $0x128] ss:$16 sps:$4 sm:$0xff]  }
  0xf1   : > { %4000 = vmatpush1.bf16.msra.mxu0 %v5834_v11  ;;  %v5900_v11 = vld [vmem:[%s6433_s29 + $0x1020] ss:$16 sps:$4 sm:$0xff]  }
  0xf2   : > { %4041 = vmatpush1.bf16.msra.mxu1 %v5837_v12  ;;  %4001 = vmatprep.subr.bf16.mxu0 %v5842_v13  ;;  %v5903_v12 = vld [vmem:[%s6433_s29 + $0x28] ss:$16 sps:$4 sm:$0xff]   ;;  %v5908_v13 = vld [vmem:[%s6433_s29 + $0x1044] ss:$16 sps:$4 sm:$0xff]  }
  0xf3   : > { %4042 = vmatprep.subr.bf16.mxu1 %v5845_v14  ;;  %v5911_v14 = vld [vmem:[%s6433_s29 + $0x4c] ss:$16 sps:$4 sm:$0xff]  }
  0xf5   : > { %4002 = vmatpush1.bf16.msra.mxu0 %v5840_v15  ;;  %v5906_v15 = vld [vmem:[%s6433_s29 + $0x1040] ss:$16 sps:$4 sm:$0xff]  }
  0xf6   : > { %4043 = vmatpush1.bf16.msra.mxu1 %v5843_v16  ;;  %4003 = vmatprep.subr.bf16.mxu0 %v5848_v17  ;;  %v5909_v16 = vld [vmem:[%s6433_s29 + $0x48] ss:$16 sps:$4 sm:$0xff]   ;;  %v5914_v17 = vld [vmem:[%s6433_s29 + $0x1064] ss:$16 sps:$4 sm:$0xff]  }
  0xf7   : > { %4044 = vmatprep.subr.bf16.mxu1 %v5851_v18  ;;  %v5917_v18 = vld [vmem:[%s6433_s29 + $0x6c] ss:$16 sps:$4 sm:$0xff]  }
  0xf9   : > { %4004 = vmatpush1.bf16.msra.mxu0 %v5846_v19  ;;  %v5912_v19 = vld [vmem:[%s6433_s29 + $0x1060] ss:$16 sps:$4 sm:$0xff]  }
  0xfa   : > { %4045 = vmatpush1.bf16.msra.mxu1 %v5849_v20  ;;  %4005 = vmatprep.subr.bf16.mxu0 %v5854_v23  ;;  %v5915_v20 = vld [vmem:[%s6433_s29 + $0x68] ss:$16 sps:$4 sm:$0xff]   ;;  %v5923_v23 = vld [vmem:[%s6433_s29 + $0x8c] ss:$16 sps:$4 sm:$0xff]  }
  0xfb   : > { %4046 = vmatprep.subr.bf16.mxu1 %v5857_v24  ;;  %v5918_v24 = vld [vmem:[%s6433_s29 + $0x1080] ss:$16 sps:$4 sm:$0xff]  }
  0xfd   : > { %4006 = vmatpush1.bf16.msra.mxu0 %v5852_v25  ;;  %v5921_v25 = vld [vmem:[%s6433_s29 + $0x88] ss:$16 sps:$4 sm:$0xff]  }
  0xfe   : > { %4047 = vmatpush1.bf16.msra.mxu1 %v5855_v26  ;;  %4007 = vmatprep.subr.bf16.mxu0 %v5860_v27  ;;  %v5926_v26 = vld [vmem:[%s6433_s29 + $0x10a4] ss:$16 sps:$4 sm:$0xff]   ;;  %v5929_v27 = vld [vmem:[%s6433_s29 + $0xac] ss:$16 sps:$4 sm:$0xff]  }
  0xff   : > { %4048 = vmatprep.subr.bf16.mxu1 %v5863_v28  ;;  %v5924_v28 = vld [vmem:[%s6433_s29 + $0x10a0] ss:$16 sps:$4 sm:$0xff]  }
 0x101   : > { %4008 = vmatpush1.bf16.msra.mxu0 %v5858_v29  ;;  %v5927_v29 = vld [vmem:[%s6433_s29 + $0xa8] ss:$16 sps:$4 sm:$0xff]  }
 0x102   : > { %4049 = vmatpush1.bf16.msra.mxu1 %v5861_v31  ;;  %4009 = vmatprep.subr.bf16.mxu0 %v5866_v32  ;;  %v5932_v31 = vld [vmem:[%s6433_s29 + $0x10c4] ss:$16 sps:$4 sm:$0xff]   ;;  %v5935_v32 = vld [vmem:[%s6433_s29 + $0xcc] ss:$16 sps:$4 sm:$0xff]  }
 0x103   : > { %4050 = vmatprep.subr.bf16.mxu1 %v5869_v34 }
 0x105   : > { %4010 = vmatpush1.bf16.msra.mxu0 %v5864_v35 }
 0x106   : > { %4051 = vmatpush1.bf16.msra.mxu1 %v5867_v36  ;;  %4011 = vmatprep.subr.bf16.mxu0 %v5872_v37  ;;  %v5930_v36 = vld [vmem:[%s6433_s29 + $0x10c0] ss:$16 sps:$4 sm:$0xff]   ;;  %v5933_v37 = vld [vmem:[%s6433_s29 + $0xc8] ss:$16 sps:$4 sm:$0xff]  }
 0x107   : > { %4052 = vmatprep.subr.bf16.mxu1 %v5875_v39 }
 0x109   : > { %4012 = vmatpush1.bf16.msra.mxu0 %v5870_v40 }
 0x10a   : > { %4053 = vmatpush1.bf16.msra.mxu1 %v5873_v42  ;;  %4013 = vmatprep.subr.bf16.mxu0 %v5878_v45 }
 0x10b   : > { %4054 = vmatprep.subr.bf16.mxu1 %v5881_v46 }
 0x10d   : > { %4014 = vmatpush1.bf16.msra.mxu0 %v5876_v47 }
 0x10e   : > { %4055 = vmatpush1.bf16.msra.mxu1 %v5879_v48  ;;  %4015 = vmatprep.subr.bf16.mxu0 %v5884_v52 }
 0x10f   : > { %4056 = vmatprep.subr.bf16.mxu1 %v5887_v54  ;;  %v5938_v54 = vld [vmem:[%s6433_s29 + $0x10e4] ss:$16 sps:$4 sm:$0xff]  }
 0x111   : > { %4016 = vmatpush1.bf16.msra.mxu0 %v5882_v55  ;;  %v5941_v55 = vld [vmem:[%s6433_s29 + $0xec] ss:$16 sps:$4 sm:$0xff]  }
 0x112   : > { %4057 = vmatpush1.bf16.msra.mxu1 %v5885_v56  ;;  %4017 = vmatprep.subr.bf16.mxu0 %v5890_v57  ;;  %v5936_v56 = vld [vmem:[%s6433_s29 + $0x10e0] ss:$16 sps:$4 sm:$0xff]   ;;  %v5939_v57 = vld [vmem:[%s6433_s29 + $0xe8] ss:$16 sps:$4 sm:$0xff]  }
 0x113   : > { %4058 = vmatprep.subr.bf16.mxu1 %v5893_v58  ;;  %v5944_v58 = vld [vmem:[%s6433_s29 + $0x1104] ss:$16 sps:$4 sm:$0xff]  }
 0x115   : > { %4018 = vmatpush1.bf16.msra.mxu0 %v5888_v59  ;;  %v5947_v59 = vld [vmem:[%s6433_s29 + $0x10c] ss:$16 sps:$4 sm:$0xff]  }
 0x116   : > { %4059 = vmatpush1.bf16.msra.mxu1 %v5891_v60  ;;  %4069 = vmatprep.subr.bf16.mxu0 %v5896_v63  ;;  %v5942_v60 = vld [vmem:[%s6433_s29 + $0x1100] ss:$16 sps:$4 sm:$0xff]   ;;  %v5953_v63 = vld [vmem:[%s6433_s29 + $0x12c] ss:$16 sps:$4 sm:$0xff]  }
 0x117   : > { %4110 = vmatprep.subr.bf16.mxu1 %v5899_v0  ;;  %v5948_v0 = vld [vmem:[%s6433_s29 + $0x1120] ss:$16 sps:$4 sm:$0xff]  }
 0x118   : > { %4020 = vmatmul.mubr.bf16.vlgmr.msra.gmra.mrb[12].mxu0 %v6752_v1 }
 0x119   : > { %4061 = vmatmul.mubr.bf16.vlgmr.msra.gmra.mrb[12].mxu1 %v6754_v2  ;;  %4070 = vmatpush1.bf16.msra.mxu0 %v5894_v4  ;;  %v5956_v4 = vld [vmem:[%s6433_s29 + $0x1144] ss:$16 sps:$4 sm:$0xff]  }
 0x11a   : > { %4111 = vmatpush1.bf16.msra.mxu1 %v5897_v5  ;;  %4071 = vmatprep.subr.bf16.mxu0 %v5902_v6  ;;  %v5959_v5 = vld [vmem:[%s6433_s29 + $0x14c] ss:$16 sps:$4 sm:$0xff]   ;;  %v5954_v6 = vld [vmem:[%s6433_s29 + $0x1140] ss:$16 sps:$4 sm:$0xff]  }
 0x11b   : > { %4112 = vmatprep.subr.bf16.mxu1 %v5905_v7  ;;  %4101 = vmatprep.mubr.bf16.mxu0 %v6761_v8  ;;  %v5957_v7 = vld [vmem:[%s6433_s29 + $0x148] ss:$16 sps:$4 sm:$0xff]  }
 0x11c   : > { %4142 = vmatprep.mubr.bf16.mxu1 %v6485_v50  ;;  %v5920_v50 = vld [vmem:[%s6433_s29 + $0x1084] ss:$16 sps:$4 sm:$0xff]  }
 0x11d   : > { %4072 = vmatpush1.bf16.msra.mxu0 %v5900_v11  ;;  %v5962_v11 = vld [vmem:[%s6433_s29 + $0x1164] ss:$16 sps:$4 sm:$0xff]  }
 0x11e   : > { %4113 = vmatpush1.bf16.msra.mxu1 %v5903_v12  ;;  %4073 = vmatprep.subr.bf16.mxu0 %v5908_v13  ;;  %v5965_v12 = vld [vmem:[%s6433_s29 + $0x16c] ss:$16 sps:$4 sm:$0xff]   ;;  %v5960_v13 = vld [vmem:[%s6433_s29 + $0x1160] ss:$16 sps:$4 sm:$0xff]  }
 0x11f   : > { %4114 = vmatprep.subr.bf16.mxu1 %v5911_v14  ;;  %v5963_v14 = vld [vmem:[%s6433_s29 + $0x168] ss:$16 sps:$4 sm:$0xff]  }
 0x121   : > { %4074 = vmatpush1.bf16.msra.mxu0 %v5906_v15  ;;  %v5968_v15 = vld [vmem:[%s6433_s29 + $0x1184] ss:$16 sps:$4 sm:$0xff]  }
 0x122   : > { %4115 = vmatpush1.bf16.msra.mxu1 %v5909_v16  ;;  %4075 = vmatprep.subr.bf16.mxu0 %v5914_v17  ;;  %v5971_v16 = vld [vmem:[%s6433_s29 + $0x18c] ss:$16 sps:$4 sm:$0xff]   ;;  %v5966_v17 = vld [vmem:[%s6433_s29 + $0x1180] ss:$16 sps:$4 sm:$0xff]  }
 0x123   : > { %4116 = vmatprep.subr.bf16.mxu1 %v5917_v18  ;;  %v5969_v18 = vld [vmem:[%s6433_s29 + $0x188] ss:$16 sps:$4 sm:$0xff]  }
 0x125   : > { %4076 = vmatpush1.bf16.msra.mxu0 %v5912_v19  ;;  %v5974_v19 = vld [vmem:[%s6433_s29 + $0x11a4] ss:$16 sps:$4 sm:$0xff]  }
 0x126   : > { %4117 = vmatpush1.bf16.msra.mxu1 %v5915_v20  ;;  %4077 = vmatprep.subr.bf16.mxu0 %v5920_v50  ;;  %v5977_v20 = vld [vmem:[%s6433_s29 + $0x1ac] ss:$16 sps:$4 sm:$0xff]   ;;  %v5972_v50 = vld [vmem:[%s6433_s29 + $0x11a0] ss:$16 sps:$4 sm:$0xff]  }
 0x127   : > { %4118 = vmatprep.subr.bf16.mxu1 %v5923_v23  ;;  %v5975_v23 = vld [vmem:[%s6433_s29 + $0x1a8] ss:$16 sps:$4 sm:$0xff]  }
 0x129   : > { %4078 = vmatpush1.bf16.msra.mxu0 %v5918_v24  ;;  %v5980_v24 = vld [vmem:[%s6433_s29 + $0x11c4] ss:$16 sps:$4 sm:$0xff]  }
 0x12a   : > { %4119 = vmatpush1.bf16.msra.mxu1 %v5921_v25  ;;  %4079 = vmatprep.subr.bf16.mxu0 %v5926_v26  ;;  %v5983_v25 = vld [vmem:[%s6433_s29 + $0x1cc] ss:$16 sps:$4 sm:$0xff]   ;;  %v5978_v26 = vld [vmem:[%s6433_s29 + $0x11c0] ss:$16 sps:$4 sm:$0xff]  }
 0x12b   : > { %4120 = vmatprep.subr.bf16.mxu1 %v5929_v27  ;;  %v3775_v34 = vpop.f32.mrb[0].mxu0  ;;  %v5981_v27 = vld [vmem:[%s6433_s29 + $0x1c8] ss:$16 sps:$4 sm:$0xff]  }
 0x12c   : > { %v3816_v35 = vpop.f32.mrb[0].mxu1  ;;  %v3777_v40 = vpop.f32.mrb[1].mxu0 }
 0x12d   : > { %v6789_v39 = vadd.f32 %v3816_v35, %v3775_v34  ;;  %v3818_v42 = vpop.f32.mrb[1].mxu1  ;;  %v3779_v46 = vpop.f32.mrb[2].mxu0  ;;  %4080 = vmatpush1.bf16.msra.mxu0 %v5924_v28  ;;  %v5986_v28 = vld [vmem:[%s6433_s29 + $0x11e4] ss:$16 sps:$4 sm:$0xff]   ;;  %v5992_v35 = vld [vmem:[%s6433_s29 + $0x20c] ss:$16 sps:$4 sm:$0xff]  }
 0x12e   : > { %v6791_v45 = vadd.f32 %v3818_v42, %v3777_v40  ;;  %v3820_v47 = vpop.f32.mrb[2].mxu1  ;;  %4121 = vmatpush1.bf16.msra.mxu1 %v5927_v29  ;;  %v3780_v48 = vpop.f32.mrb[3].mxu0  ;;  %4081 = vmatprep.subr.bf16.mxu0 %v5932_v31  ;;  %v5989_v29 = vld [vmem:[%s6433_s29 + $0x1ec] ss:$16 sps:$4 sm:$0xff]   ;;  %v5984_v31 = vld [vmem:[%s6433_s29 + $0x11e0] ss:$16 sps:$4 sm:$0xff]  }
 0x12f   : > { %v3821_v52 = vpop.f32.mrb[3].mxu1  ;;  %4122 = vmatprep.subr.bf16.mxu1 %v5935_v32  ;;  %v5987_v32 = vld [vmem:[%s6433_s29 + $0x1e8] ss:$16 sps:$4 sm:$0xff]   ;;  %v265_v34 = vld [vmem:[%s6428_s25 + $0x80] sm:$0xff]  ;;  %v5998_v46 = vld [vmem:[%s6433_s29 + $0x22c] ss:$16 sps:$4 sm:$0xff]  }
 0x130   : > { %v5993_v40 = vld [vmem:[%s6433_s29 + $0x408] ss:$16 sps:$4 sm:$0xff]   ;;  %v6834_v42 = vpack.c.bf16 %v265_v34, %v265_v34  ;;  %v6001_v47 = vld [vmem:[%s6433_s29 + $0x42c] ss:$16 sps:$4 sm:$0xff]  }
 0x131   : > { %4082 = vmatpush1.bf16.msra.mxu0 %v5930_v36  ;;  %v5995_v36 = vld [vmem:[%s6433_s29 + $0x40c] ss:$16 sps:$4 sm:$0xff]   ;;  %v5996_v48 = vld [vmem:[%s6433_s29 + $0x228] ss:$16 sps:$4 sm:$0xff]  }
 0x132   : > { %4123 = vmatpush1.bf16.msra.mxu1 %v5933_v37  ;;  %4083 = vmatprep.subr.bf16.mxu0 %v5938_v54  ;;  %v5990_v37 = vld [vmem:[%s6433_s29 + $0x208] ss:$16 sps:$4 sm:$0xff]   ;;  %v6004_v54 = vld [vmem:[%s6433_s29 + $0x24c] ss:$16 sps:$4 sm:$0xff]  }
 0x133   : > { %4124 = vmatprep.subr.bf16.mxu1 %v5941_v55  ;;  %v5999_v52 = vld [vmem:[%s6433_s29 + $0x428] ss:$16 sps:$4 sm:$0xff]   ;;  %v6007_v55 = vld [vmem:[%s6433_s29 + $0x44c] ss:$16 sps:$4 sm:$0xff]  }
 0x134   : > { %v6049_v34 = vld [vmem:[%s6433_s29 + $0x52c] ss:$16 sps:$4 sm:$0xff]  }
 0x135   : > { %4084 = vmatpush1.bf16.msra.mxu0 %v5936_v56  ;;  %v6005_v56 = vld [vmem:[%s6433_s29 + $0x448] ss:$16 sps:$4 sm:$0xff]  }
 0x136   : > { %4125 = vmatpush1.bf16.msra.mxu1 %v5939_v57  ;;  %4085 = vmatprep.subr.bf16.mxu0 %v5944_v58  ;;  %v6010_v57 = vld [vmem:[%s6433_s29 + $0x26c] ss:$16 sps:$4 sm:$0xff]  }
 0x137   : > { %4126 = vmatprep.subr.bf16.mxu1 %v5947_v59  ;;  %v6013_v58 = vld [vmem:[%s6433_s29 + $0x46c] ss:$16 sps:$4 sm:$0xff]   ;;  %v6011_v59 = vld [vmem:[%s6433_s29 + $0x468] ss:$16 sps:$4 sm:$0xff]  }
 0x139   : > { %4086 = vmatpush1.bf16.msra.mxu0 %v5942_v60  ;;  %v6019_v60 = vld [vmem:[%s6433_s29 + $0x48c] ss:$16 sps:$4 sm:$0xff]  }
 0x13a   : > { %4127 = vmatpush1.bf16.msra.mxu1 %v5945_v61  ;;  %4087 = vmatprep.subr.bf16.mxu0 %v5950_v62  ;;  %v6014_v61 = vld [vmem:[%s6433_s29 + $0x288] ss:$16 sps:$4 sm:$0xff]  }
 0x13b   : > { %4128 = vmatprep.subr.bf16.mxu1 %v5953_v63  ;;  %v6017_v62 = vld [vmem:[%s6433_s29 + $0x488] ss:$16 sps:$4 sm:$0xff]   ;;  %v6022_v63 = vld [vmem:[%s6433_s29 + $0x2ac] ss:$16 sps:$4 sm:$0xff]  }
 0x13d   : > { %4088 = vmatpush1.bf16.msra.mxu0 %v5948_v0  ;;  %v6025_v0 = vld [vmem:[%s6433_s29 + $0x4ac] ss:$16 sps:$4 sm:$0xff]  }
 0x13e   : > { %4129 = vmatpush1.bf16.msra.mxu1 %v5951_v3  ;;  %4089 = vmatprep.subr.bf16.mxu0 %v5956_v4  ;;  %v6020_v3 = vld [vmem:[%s6433_s29 + $0x2a8] ss:$16 sps:$4 sm:$0xff]  }
 0x13f   : > { %4130 = vmatprep.subr.bf16.mxu1 %v5959_v5  ;;  %v6023_v4 = vld [vmem:[%s6433_s29 + $0x4a8] ss:$16 sps:$4 sm:$0xff]   ;;  %v6028_v5 = vld [vmem:[%s6433_s29 + $0x2cc] ss:$16 sps:$4 sm:$0xff]  }
 0x141   : > { %4090 = vmatpush1.bf16.msra.mxu0 %v5954_v6  ;;  %v6031_v6 = vld [vmem:[%s6433_s29 + $0x4cc] ss:$16 sps:$4 sm:$0xff]  }
 0x142   : > { %4131 = vmatpush1.bf16.msra.mxu1 %v5957_v7  ;;  %4091 = vmatprep.subr.bf16.mxu0 %v5962_v11 }
 0x143   : > { %4132 = vmatprep.subr.bf16.mxu1 %v5965_v12  ;;  %v6026_v12 = vld [vmem:[%s6433_s29 + $0x2c8] ss:$16 sps:$4 sm:$0xff]  }
 0x145   : > { %4092 = vmatpush1.bf16.msra.mxu0 %v5960_v13  ;;  %v6029_v13 = vld [vmem:[%s6433_s29 + $0x4c8] ss:$16 sps:$4 sm:$0xff]  }
 0x146   : > { %4133 = vmatpush1.bf16.msra.mxu1 %v5963_v14  ;;  %4093 = vmatprep.subr.bf16.mxu0 %v5968_v15 }
 0x147   : > { %4134 = vmatprep.subr.bf16.mxu1 %v5971_v16 }
 0x149   : > { %4094 = vmatpush1.bf16.msra.mxu0 %v5966_v17 }
 0x14a   : > { %4135 = vmatpush1.bf16.msra.mxu1 %v5969_v18  ;;  %4095 = vmatprep.subr.bf16.mxu0 %v5974_v19 }
 0x14b   : > { %4136 = vmatprep.subr.bf16.mxu1 %v5977_v20 }
 0x14d   : > { %4096 = vmatpush1.bf16.msra.mxu0 %v5972_v50 }
 0x14e   : > { %4137 = vmatpush1.bf16.msra.mxu1 %v5975_v23  ;;  %4097 = vmatprep.subr.bf16.mxu0 %v5980_v24  ;;  %v6037_v24 = vld [vmem:[%s6433_s29 + $0x4ec] ss:$16 sps:$4 sm:$0xff]  }
 0x14f   : > { %4138 = vmatprep.subr.bf16.mxu1 %v5983_v25 }
 0x151   : > { %4098 = vmatpush1.bf16.msra.mxu0 %v5978_v26  ;;  %v6035_v26 = vld [vmem:[%s6433_s29 + $0x4e8] ss:$16 sps:$4 sm:$0xff]  }
 0x152   : > { %4139 = vmatpush1.bf16.msra.mxu1 %v5981_v27  ;;  %4099 = vmatprep.subr.bf16.mxu0 %v5986_v28  ;;  %v6040_v27 = vld [vmem:[%s6433_s29 + $0x30c] ss:$16 sps:$4 sm:$0xff]  }
 0x153   : > { %4140 = vmatprep.subr.bf16.mxu1 %v5989_v29  ;;  %v6043_v28 = vld [vmem:[%s6433_s29 + $0x50c] ss:$16 sps:$4 sm:$0xff]   ;;  %v6038_v29 = vld [vmem:[%s6433_s29 + $0x308] ss:$16 sps:$4 sm:$0xff]  }
 0x155   : > { %4100 = vmatpush1.bf16.msra.mxu0 %v5984_v31  ;;  %v6041_v31 = vld [vmem:[%s6433_s29 + $0x508] ss:$16 sps:$4 sm:$0xff]  }
 0x156   : > { %4141 = vmatpush1.bf16.msra.mxu1 %v5987_v32  ;;  %4151 = vmatprep.subr.bf16.mxu0 %v5992_v35  ;;  %v6046_v32 = vld [vmem:[%s6433_s29 + $0x32c] ss:$16 sps:$4 sm:$0xff]   ;;  %v6044_v35 = vld [vmem:[%s6433_s29 + $0x328] ss:$16 sps:$4 sm:$0xff]  }
 0x157   : > { %4192 = vmatprep.subr.bf16.mxu1 %v5995_v36  ;;  %v6047_v36 = vld [vmem:[%s6433_s29 + $0x528] ss:$16 sps:$4 sm:$0xff]  }
 0x158   : > { %4102 = vmatmul.mubr.bf16.vlgmr.msra.gmra.mrb[16].mxu0 %v6834_v42 }
 0x159   : > { %4143 = vmatmul.mubr.bf16.vlgmr.msra.gmra.mrb[16].mxu1 %v6512_v9  ;;  %4152 = vmatpush1.bf16.msra.mxu0 %v5990_v37  ;;  %v6002_v9 = vld [vmem:[%s6433_s29 + $0x248] ss:$16 sps:$4 sm:$0xff]   ;;  %v6052_v37 = vld [vmem:[%s6433_s29 + $0x34c] ss:$16 sps:$4 sm:$0xff]  }
 0x15a   : > { %4193 = vmatpush1.bf16.msra.mxu1 %v5993_v40  ;;  %4153 = vmatprep.subr.bf16.mxu0 %v5998_v46  ;;  %v6055_v40 = vld [vmem:[%s6433_s29 + $0x54c] ss:$16 sps:$4 sm:$0xff]   ;;  %v6050_v46 = vld [vmem:[%s6433_s29 + $0x348] ss:$16 sps:$4 sm:$0xff]  }
 0x15b   : > { %4194 = vmatprep.subr.bf16.mxu1 %v6001_v47  ;;  %4183 = vmatprep.mubr.bf16.mxu0 %v6489_v53  ;;  %v6008_v53 = vld [vmem:[%s6433_s29 + $0x268] ss:$16 sps:$4 sm:$0xff]  }
 0x15c   : > { %4224 = vmatprep.mubr.bf16.mxu1 %v6545_v38  ;;  %v6016_v38 = vld [vmem:[%s6433_s29 + $0x28c] ss:$16 sps:$4 sm:$0xff]   ;;  %v6053_v47 = vld [vmem:[%s6433_s29 + $0x548] ss:$16 sps:$4 sm:$0xff]  }
 0x15d   : > { %4154 = vmatpush1.bf16.msra.mxu0 %v5996_v48  ;;  %v6058_v48 = vld [vmem:[%s6433_s29 + $0x36c] ss:$16 sps:$4 sm:$0xff]  }
 0x15e   : > { %4195 = vmatpush1.bf16.msra.mxu1 %v5999_v52  ;;  %4155 = vmatprep.subr.bf16.mxu0 %v6004_v54  ;;  %v6061_v52 = vld [vmem:[%s6433_s29 + $0x56c] ss:$16 sps:$4 sm:$0xff]   ;;  %v6056_v54 = vld [vmem:[%s6433_s29 + $0x368] ss:$16 sps:$4 sm:$0xff]  }
 0x15f   : > { %4196 = vmatprep.subr.bf16.mxu1 %v6007_v55  ;;  %v6059_v55 = vld [vmem:[%s6433_s29 + $0x568] ss:$16 sps:$4 sm:$0xff]  }
 0x161   : > { %4156 = vmatpush1.bf16.msra.mxu0 %v6002_v9  ;;  %v6064_v9 = vld [vmem:[%s6433_s29 + $0x38c] ss:$16 sps:$4 sm:$0xff]  }
 0x162   : > { %4197 = vmatpush1.bf16.msra.mxu1 %v6005_v56  ;;  %4157 = vmatprep.subr.bf16.mxu0 %v6010_v57  ;;  %v6067_v56 = vld [vmem:[%s6433_s29 + $0x58c] ss:$16 sps:$4 sm:$0xff]   ;;  %v6062_v57 = vld [vmem:[%s6433_s29 + $0x388] ss:$16 sps:$4 sm:$0xff]  }
 0x163   : > { %4198 = vmatprep.subr.bf16.mxu1 %v6013_v58  ;;  %v6065_v58 = vld [vmem:[%s6433_s29 + $0x588] ss:$16 sps:$4 sm:$0xff]  }
 0x165   : > { %4158 = vmatpush1.bf16.msra.mxu0 %v6008_v53  ;;  %v6070_v53 = vld [vmem:[%s6433_s29 + $0x3ac] ss:$16 sps:$4 sm:$0xff]  }
 0x166   : > { %4199 = vmatpush1.bf16.msra.mxu1 %v6011_v59  ;;  %4159 = vmatprep.subr.bf16.mxu0 %v6016_v38  ;;  %v6073_v59 = vld [vmem:[%s6433_s29 + $0x5ac] ss:$16 sps:$4 sm:$0xff]   ;;  %v6068_v38 = vld [vmem:[%s6433_s29 + $0x3a8] ss:$16 sps:$4 sm:$0xff]  }
 0x167   : > { %4200 = vmatprep.subr.bf16.mxu1 %v6019_v60  ;;  %v6071_v60 = vld [vmem:[%s6433_s29 + $0x5a8] ss:$16 sps:$4 sm:$0xff]  }
 0x169   : > { %4160 = vmatpush1.bf16.msra.mxu0 %v6014_v61  ;;  %v6076_v61 = vld [vmem:[%s6433_s29 + $0x3cc] ss:$16 sps:$4 sm:$0xff]  }
 0x16a   : > { %4201 = vmatpush1.bf16.msra.mxu1 %v6017_v62  ;;  %4161 = vmatprep.subr.bf16.mxu0 %v6022_v63  ;;  %v6079_v62 = vld [vmem:[%s6433_s29 + $0x5cc] ss:$16 sps:$4 sm:$0xff]   ;;  %v6074_v63 = vld [vmem:[%s6433_s29 + $0x3c8] ss:$16 sps:$4 sm:$0xff]  }
 0x16b   : > { %4202 = vmatprep.subr.bf16.mxu1 %v6025_v0  ;;  %v3857_v7 = vpop.f32.mrb[4].mxu0  ;;  %v6077_v0 = vld [vmem:[%s6433_s29 + $0x5c8] ss:$16 sps:$4 sm:$0xff]  }
 0x16c   : > { %v3898_v11 = vpop.f32.mrb[4].mxu1  ;;  %v3858_v14 = vadd.f32 %v3857_v7, %v6789_v39  ;;  %v3859_v15 = vpop.f32.mrb[5].mxu0  ;;  %v6034_v39 = vld [vmem:[%s6433_s29 + $0x2ec] ss:$16 sps:$4 sm:$0xff]  }
 0x16d   : > { %v3900_v16 = vpop.f32.mrb[5].mxu1  ;;  %v3860_v17 = vadd.f32 %v3859_v15, %v6791_v45  ;;  %v3861_v18 = vpop.f32.mrb[6].mxu0  ;;  %4162 = vmatpush1.bf16.msra.mxu0 %v6020_v3  ;;  %v6032_v45 = vld [vmem:[%s6433_s29 + $0x2e8] ss:$16 sps:$4 sm:$0xff]   ;;  %v6082_v3 = vld [vmem:[%s6433_s29 + $0x3ec] ss:$16 sps:$4 sm:$0xff]  }
 0x16e   : > { %v3902_v19 = vpop.f32.mrb[6].mxu1  ;;  %4203 = vmatpush1.bf16.msra.mxu1 %v6023_v4  ;;  %v6866_v20 = vadd.f32 %v3898_v11, %v3858_v14  ;;  %v3862_v50 = vpop.f32.mrb[7].mxu0  ;;  %4163 = vmatprep.subr.bf16.mxu0 %v6028_v5  ;;  %v6085_v4 = vld [vmem:[%s6433_s29 + $0x5ec] ss:$16 sps:$4 sm:$0xff]   ;;  %v6080_v5 = vld [vmem:[%s6433_s29 + $0x3e8] ss:$16 sps:$4 sm:$0xff]  }
 0x16f   : > { %v3903_v23 = vpop.f32.mrb[7].mxu1  ;;  %4204 = vmatprep.subr.bf16.mxu1 %v6031_v6  ;;  %v6870_v25 = vadd.f32 %v3900_v16, %v3860_v17  ;;  %v6083_v6 = vld [vmem:[%s6433_s29 + $0x5e8] ss:$16 sps:$4 sm:$0xff]   ;;  %v6088_v7 = vld [vmem:[%s6433_s29 + $0x60c] ss:$16 sps:$4 sm:$0xff]  }
 0x170   : > { %v6091_v11 = vld [vmem:[%s6433_s29 + $0x80c] ss:$16 sps:$4 sm:$0xff]   ;;  %v6092_v16 = vld [vmem:[%s6433_s29 + $0x628] ss:$16 sps:$4 sm:$0xff]  }
 0x171   : > { %4164 = vmatpush1.bf16.msra.mxu0 %v6026_v12  ;;  %v6086_v12 = vld [vmem:[%s6433_s29 + $0x608] ss:$16 sps:$4 sm:$0xff]   ;;  %v6094_v14 = vld [vmem:[%s6433_s29 + $0x62c] ss:$16 sps:$4 sm:$0xff]  }
 0x172   : > { %4205 = vmatpush1.bf16.msra.mxu1 %v6029_v13  ;;  %4165 = vmatprep.subr.bf16.mxu0 %v6034_v39  ;;  %v6089_v13 = vld [vmem:[%s6433_s29 + $0x808] ss:$16 sps:$4 sm:$0xff]   ;;  %v6097_v15 = vld [vmem:[%s6433_s29 + $0x82c] ss:$16 sps:$4 sm:$0xff]  }
 0x173   : > { %4206 = vmatprep.subr.bf16.mxu1 %v6037_v24  ;;  %v6095_v17 = vld [vmem:[%s6433_s29 + $0x828] ss:$16 sps:$4 sm:$0xff]   ;;  %v6100_v18 = vld [vmem:[%s6433_s29 + $0x64c] ss:$16 sps:$4 sm:$0xff]  }
 0x174   : > { %v6103_v19 = vld [vmem:[%s6433_s29 + $0x84c] ss:$16 sps:$4 sm:$0xff]   ;;  %v6104_v39 = vld [vmem:[%s6433_s29 + $0x668] ss:$16 sps:$4 sm:$0xff]  }
 0x175   : > { %4166 = vmatpush1.bf16.msra.mxu0 %v6032_v45  ;;  %v6106_v50 = vld [vmem:[%s6433_s29 + $0x66c] ss:$16 sps:$4 sm:$0xff]   ;;  %v6110_v45 = vld [vmem:[%s6433_s29 + $0x688] ss:$16 sps:$4 sm:$0xff]  }
 0x176   : > { %4207 = vmatpush1.bf16.msra.mxu1 %v6035_v26  ;;  %4167 = vmatprep.subr.bf16.mxu0 %v6040_v27  ;;  %v6109_v23 = vld [vmem:[%s6433_s29 + $0x86c] ss:$16 sps:$4 sm:$0xff]   ;;  %v6113_v26 = vld [vmem:[%s6433_s29 + $0x888] ss:$16 sps:$4 sm:$0xff]  }
 0x177   : > { %4208 = vmatprep.subr.bf16.mxu1 %v6043_v28  ;;  %v6115_v24 = vld [vmem:[%s6433_s29 + $0x88c] ss:$16 sps:$4 sm:$0xff]  }
 0x178   : > { %v6118_v27 = vld [vmem:[%s6433_s29 + $0x6ac] ss:$16 sps:$4 sm:$0xff]  }
 0x179   : > { %4168 = vmatpush1.bf16.msra.mxu0 %v6038_v29  ;;  %v6121_v28 = vld [vmem:[%s6433_s29 + $0x8ac] ss:$16 sps:$4 sm:$0xff]   ;;  %v6116_v29 = vld [vmem:[%s6433_s29 + $0x6a8] ss:$16 sps:$4 sm:$0xff]  }
 0x17a   : > { %4209 = vmatpush1.bf16.msra.mxu1 %v6041_v31  ;;  %4169 = vmatprep.subr.bf16.mxu0 %v6046_v32  ;;  %v6119_v31 = vld [vmem:[%s6433_s29 + $0x8a8] ss:$16 sps:$4 sm:$0xff]   ;;  %v6124_v32 = vld [vmem:[%s6433_s29 + $0x6cc] ss:$16 sps:$4 sm:$0xff]  }
 0x17b   : > { %4210 = vmatprep.subr.bf16.mxu1 %v6049_v34  ;;  %v6127_v34 = vld [vmem:[%s6433_s29 + $0x8cc] ss:$16 sps:$4 sm:$0xff]  }
 0x17d   : > { %4170 = vmatpush1.bf16.msra.mxu0 %v6044_v35 }
 0x17e   : > { %4211 = vmatpush1.bf16.msra.mxu1 %v6047_v36  ;;  %4171 = vmatprep.subr.bf16.mxu0 %v6052_v37 }
 0x17f   : > { %4212 = vmatprep.subr.bf16.mxu1 %v6055_v40 }
 0x181   : > { %4172 = vmatpush1.bf16.msra.mxu0 %v6050_v46 }
 0x182   : > { %4213 = vmatpush1.bf16.msra.mxu1 %v6053_v47  ;;  %4173 = vmatprep.subr.bf16.mxu0 %v6058_v48 }
 0x183   : > { %4214 = vmatprep.subr.bf16.mxu1 %v6061_v52 }
 0x185   : > { %4174 = vmatpush1.bf16.msra.mxu0 %v6056_v54  ;;  %v6122_v54 = vld [vmem:[%s6433_s29 + $0x6c8] ss:$16 sps:$4 sm:$0xff]  }
 0x186   : > { %4215 = vmatpush1.bf16.msra.mxu1 %v6059_v55  ;;  %4175 = vmatprep.subr.bf16.mxu0 %v6064_v9  ;;  %v6125_v55 = vld [vmem:[%s6433_s29 + $0x8c8] ss:$16 sps:$4 sm:$0xff]  }
 0x187   : > { %4216 = vmatprep.subr.bf16.mxu1 %v6067_v56 }
 0x189   : > { %4176 = vmatpush1.bf16.msra.mxu0 %v6062_v57 }
 0x18a   : > { %4217 = vmatpush1.bf16.msra.mxu1 %v6065_v58  ;;  %4177 = vmatprep.subr.bf16.mxu0 %v6070_v53  ;;  %v6128_v53 = vld [vmem:[%s6433_s29 + $0x6e8] ss:$16 sps:$4 sm:$0xff]  }
 0x18b   : > { %4218 = vmatprep.subr.bf16.mxu1 %v6073_v59  ;;  %v6131_v59 = vld [vmem:[%s6433_s29 + $0x8e8] ss:$16 sps:$4 sm:$0xff]  }
 0x18d   : > { %4178 = vmatpush1.bf16.msra.mxu0 %v6068_v38  ;;  %v6136_v38 = vld [vmem:[%s6433_s29 + $0x70c] ss:$16 sps:$4 sm:$0xff]  }
 0x18e   : > { %4219 = vmatpush1.bf16.msra.mxu1 %v6071_v60  ;;  %4179 = vmatprep.subr.bf16.mxu0 %v6076_v61  ;;  %v6139_v60 = vld [vmem:[%s6433_s29 + $0x90c] ss:$16 sps:$4 sm:$0xff]   ;;  %v6134_v61 = vld [vmem:[%s6433_s29 + $0x708] ss:$16 sps:$4 sm:$0xff]  }
 0x18f   : > { %4220 = vmatprep.subr.bf16.mxu1 %v6079_v62  ;;  %v6137_v62 = vld [vmem:[%s6433_s29 + $0x908] ss:$16 sps:$4 sm:$0xff]  }
 0x191   : > { %4180 = vmatpush1.bf16.msra.mxu0 %v6074_v63  ;;  %v6142_v63 = vld [vmem:[%s6433_s29 + $0x72c] ss:$16 sps:$4 sm:$0xff]  }
 0x192   : > { %4221 = vmatpush1.bf16.msra.mxu1 %v6077_v0  ;;  %4181 = vmatprep.subr.bf16.mxu0 %v6082_v3  ;;  %v6145_v0 = vld [vmem:[%s6433_s29 + $0x92c] ss:$16 sps:$4 sm:$0xff]   ;;  %v6140_v3 = vld [vmem:[%s6433_s29 + $0x728] ss:$16 sps:$4 sm:$0xff]  }
 0x193   : > { %4222 = vmatprep.subr.bf16.mxu1 %v6085_v4  ;;  %v6143_v4 = vld [vmem:[%s6433_s29 + $0x928] ss:$16 sps:$4 sm:$0xff]  }
 0x195   : > { %4182 = vmatpush1.bf16.msra.mxu0 %v6080_v5  ;;  %v6148_v5 = vld [vmem:[%s6433_s29 + $0x74c] ss:$16 sps:$4 sm:$0xff]  }
 0x196   : > { %4223 = vmatpush1.bf16.msra.mxu1 %v6083_v6  ;;  %4233 = vmatprep.subr.bf16.mxu0 %v6088_v7  ;;  %v6151_v6 = vld [vmem:[%s6433_s29 + $0x94c] ss:$16 sps:$4 sm:$0xff]   ;;  %v6146_v7 = vld [vmem:[%s6433_s29 + $0x748] ss:$16 sps:$4 sm:$0xff]  }
 0x197   : > { %4274 = vmatprep.subr.bf16.mxu1 %v6091_v11  ;;  %v6149_v11 = vld [vmem:[%s6433_s29 + $0x948] ss:$16 sps:$4 sm:$0xff]  }
 0x198   : > { %4184 = vmatmul.mubr.bf16.vlgmr.msra.gmra.mrb[20].mxu0 %v6514_v10  ;;  %v6098_v10 = vld [vmem:[%s6433_s29 + $0x648] ss:$16 sps:$4 sm:$0xff]  }
 0x199   : > { %4225 = vmatmul.mubr.bf16.vlgmr.msra.gmra.mrb[20].mxu1 %v6592_v21  ;;  %4234 = vmatpush1.bf16.msra.mxu0 %v6086_v12  ;;  %v6101_v21 = vld [vmem:[%s6433_s29 + $0x848] ss:$16 sps:$4 sm:$0xff]   ;;  %v6154_v12 = vld [vmem:[%s6433_s29 + $0x76c] ss:$16 sps:$4 sm:$0xff]  }
 0x19a   : > { %4275 = vmatpush1.bf16.msra.mxu1 %v6089_v13  ;;  %4235 = vmatprep.subr.bf16.mxu0 %v6094_v14  ;;  %v6157_v13 = vld [vmem:[%s6433_s29 + $0x96c] ss:$16 sps:$4 sm:$0xff]   ;;  %v6152_v14 = vld [vmem:[%s6433_s29 + $0x768] ss:$16 sps:$4 sm:$0xff]  }
 0x19b   : > { %4276 = vmatprep.subr.bf16.mxu1 %v6097_v15  ;;  %4265 = vmatprep.mubr.bf16.mxu0 %v6549_v41  ;;  %v6107_v41 = vld [vmem:[%s6433_s29 + $0x868] ss:$16 sps:$4 sm:$0xff]  }
 0x19c   : > { %4306 = vmatprep.mubr.bf16.mxu1 %v6605_v30  ;;  %v6112_v30 = vld [vmem:[%s6433_s29 + $0x68c] ss:$16 sps:$4 sm:$0xff]   ;;  %v6155_v15 = vld [vmem:[%s6433_s29 + $0x968] ss:$16 sps:$4 sm:$0xff]  }
 0x19d   : > { %4236 = vmatpush1.bf16.msra.mxu0 %v6092_v16  ;;  %v6160_v16 = vld [vmem:[%s6433_s29 + $0x78c] ss:$16 sps:$4 sm:$0xff]  }
 0x19e   : > { %4277 = vmatpush1.bf16.msra.mxu1 %v6095_v17  ;;  %4237 = vmatprep.subr.bf16.mxu0 %v6100_v18  ;;  %v6163_v17 = vld [vmem:[%s6433_s29 + $0x98c] ss:$16 sps:$4 sm:$0xff]   ;;  %v6158_v18 = vld [vmem:[%s6433_s29 + $0x788] ss:$16 sps:$4 sm:$0xff]  }
 0x19f   : > { %4278 = vmatprep.subr.bf16.mxu1 %v6103_v19  ;;  %v6161_v19 = vld [vmem:[%s6433_s29 + $0x988] ss:$16 sps:$4 sm:$0xff]  }
 0x1a1   : > { %4238 = vmatpush1.bf16.msra.mxu0 %v6098_v10  ;;  %v6166_v10 = vld [vmem:[%s6433_s29 + $0x7ac] ss:$16 sps:$4 sm:$0xff]  }
 0x1a2   : > { %4279 = vmatpush1.bf16.msra.mxu1 %v6101_v21  ;;  %4239 = vmatprep.subr.bf16.mxu0 %v6106_v50  ;;  %v6169_v21 = vld [vmem:[%s6433_s29 + $0x9ac] ss:$16 sps:$4 sm:$0xff]   ;;  %v6164_v50 = vld [vmem:[%s6433_s29 + $0x7a8] ss:$16 sps:$4 sm:$0xff]  }
 0x1a3   : > { %4280 = vmatprep.subr.bf16.mxu1 %v6109_v23  ;;  %v6167_v23 = vld [vmem:[%s6433_s29 + $0x9a8] ss:$16 sps:$4 sm:$0xff]  }
 0x1a5   : > { %4240 = vmatpush1.bf16.msra.mxu0 %v6104_v39  ;;  %v6172_v39 = vld [vmem:[%s6433_s29 + $0x7cc] ss:$16 sps:$4 sm:$0xff]  }
 0x1a6   : > { %4281 = vmatpush1.bf16.msra.mxu1 %v6107_v41  ;;  %4241 = vmatprep.subr.bf16.mxu0 %v6112_v30  ;;  %v6175_v41 = vld [vmem:[%s6433_s29 + $0x9cc] ss:$16 sps:$4 sm:$0xff]   ;;  %v6170_v30 = vld [vmem:[%s6433_s29 + $0x7c8] ss:$16 sps:$4 sm:$0xff]  }
 0x1a7   : > { %4282 = vmatprep.subr.bf16.mxu1 %v6115_v24  ;;  %v6173_v24 = vld [vmem:[%s6433_s29 + $0x9c8] ss:$16 sps:$4 sm:$0xff]  }
 0x1a9   : > { %4242 = vmatpush1.bf16.msra.mxu0 %v6110_v45  ;;  %v6178_v45 = vld [vmem:[%s6433_s29 + $0x7ec] ss:$16 sps:$4 sm:$0xff]  }
 0x1aa   : > { %4283 = vmatpush1.bf16.msra.mxu1 %v6113_v26  ;;  %4243 = vmatprep.subr.bf16.mxu0 %v6118_v27  ;;  %v6181_v26 = vld [vmem:[%s6433_s29 + $0x9ec] ss:$16 sps:$4 sm:$0xff]   ;;  %v6176_v27 = vld [vmem:[%s6433_s29 + $0x7e8] ss:$16 sps:$4 sm:$0xff]  }
 0x1ab   : > { %4284 = vmatprep.subr.bf16.mxu1 %v6121_v28  ;;  %v3939_v35 = vpop.f32.mrb[8].mxu0  ;;  %v6179_v28 = vld [vmem:[%s6433_s29 + $0x9e8] ss:$16 sps:$4 sm:$0xff]  }
 0x1ac   : > { %v3980_v36 = vpop.f32.mrb[8].mxu1  ;;  %v3940_v37 = vadd.f32 %v3939_v35, %v6866_v20  ;;  %v3941_v40 = vpop.f32.mrb[9].mxu0  ;;  %v6130_v20 = vld [vmem:[%s6433_s29 + $0x6ec] ss:$16 sps:$4 sm:$0xff]  }
 0x1ad   : > { %v3982_v46 = vpop.f32.mrb[9].mxu1  ;;  %v3942_v47 = vadd.f32 %v3941_v40, %v6870_v25  ;;  %v3943_v48 = vpop.f32.mrb[10].mxu0  ;;  %4244 = vmatpush1.bf16.msra.mxu0 %v6116_v29  ;;  %v6133_v25 = vld [vmem:[%s6433_s29 + $0x8ec] ss:$16 sps:$4 sm:$0xff]   ;;  %v6191_v40 = vld [vmem:[%s6433_s29 + $0xc28] ss:$16 sps:$4 sm:$0xff]  }
 0x1ae   : > { %v3984_v52 = vpop.f32.mrb[10].mxu1  ;;  %4285 = vmatpush1.bf16.msra.mxu1 %v6119_v31  ;;  %v6940_v9 = vadd.f32 %v3980_v36, %v3940_v37  ;;  %v3944_v56 = vpop.f32.mrb[11].mxu0  ;;  %4245 = vmatprep.subr.bf16.mxu0 %v6124_v32  ;;  %v6184_v29 = vld [vmem:[%s6433_s29 + $0xa0c] ss:$16 sps:$4 sm:$0xff]   ;;  %v6182_v32 = vld [vmem:[%s6433_s29 + $0xa08] ss:$16 sps:$4 sm:$0xff]  }
 0x1af   : > { %v3985_v57 = vpop.f32.mrb[11].mxu1  ;;  %4286 = vmatprep.subr.bf16.mxu1 %v6127_v34  ;;  %v6944_v58 = vadd.f32 %v3982_v46, %v3942_v47  ;;  %v6187_v31 = vld [vmem:[%s6433_s29 + $0xc0c] ss:$16 sps:$4 sm:$0xff]   ;;  %v6185_v34 = vld [vmem:[%s6433_s29 + $0xc08] ss:$16 sps:$4 sm:$0xff]  }
 0x1b0   : > { %v6190_v35 = vld [vmem:[%s6433_s29 + $0xa2c] ss:$16 sps:$4 sm:$0xff]   ;;  %v6188_v37 = vld [vmem:[%s6433_s29 + $0xa28] ss:$16 sps:$4 sm:$0xff]  }
 0x1b1   : > { %4246 = vmatpush1.bf16.msra.mxu0 %v6122_v54  ;;  %v6193_v36 = vld [vmem:[%s6433_s29 + $0xc2c] ss:$16 sps:$4 sm:$0xff]   ;;  %v6200_v54 = vld [vmem:[%s6433_s29 + $0xa68] ss:$16 sps:$4 sm:$0xff]  }
 0x1b2   : > { %4287 = vmatpush1.bf16.msra.mxu1 %v6125_v55  ;;  %4247 = vmatprep.subr.bf16.mxu0 %v6130_v20  ;;  %v6196_v46 = vld [vmem:[%s6433_s29 + $0xa4c] ss:$16 sps:$4 sm:$0xff]   ;;  %v6206_v56 = vld [vmem:[%s6433_s29 + $0xa88] ss:$16 sps:$4 sm:$0xff]  }
 0x1b3   : > { %4288 = vmatprep.subr.bf16.mxu1 %v6133_v25  ;;  %v6199_v47 = vld [vmem:[%s6433_s29 + $0xc4c] ss:$16 sps:$4 sm:$0xff]   ;;  %v6209_v57 = vld [vmem:[%s6433_s29 + $0xc88] ss:$16 sps:$4 sm:$0xff]  }
 0x1b4   : > { %v6202_v48 = vld [vmem:[%s6433_s29 + $0xa6c] ss:$16 sps:$4 sm:$0xff]  }
 0x1b5   : > { %4248 = vmatpush1.bf16.msra.mxu0 %v6128_v53  ;;  %v6205_v52 = vld [vmem:[%s6433_s29 + $0xc6c] ss:$16 sps:$4 sm:$0xff]   ;;  %v6212_v53 = vld [vmem:[%s6433_s29 + $0xaa8] ss:$16 sps:$4 sm:$0xff]  }
 0x1b6   : > { %4289 = vmatpush1.bf16.msra.mxu1 %v6131_v59  ;;  %4249 = vmatprep.subr.bf16.mxu0 %v6136_v38  ;;  %v6211_v55 = vld [vmem:[%s6433_s29 + $0xc8c] ss:$16 sps:$4 sm:$0xff]   ;;  %v6215_v59 = vld [vmem:[%s6433_s29 + $0xca8] ss:$16 sps:$4 sm:$0xff]  }
 0x1b7   : > { %4290 = vmatprep.subr.bf16.mxu1 %v6139_v60  ;;  %v6214_v20 = vld [vmem:[%s6433_s29 + $0xaac] ss:$16 sps:$4 sm:$0xff]  }
 0x1b8   : > { %v6217_v25 = vld [vmem:[%s6433_s29 + $0xcac] ss:$16 sps:$4 sm:$0xff]  }
 0x1b9   : > { %4250 = vmatpush1.bf16.msra.mxu0 %v6134_v61  ;;  %v6220_v38 = vld [vmem:[%s6433_s29 + $0xacc] ss:$16 sps:$4 sm:$0xff]  }
 0x1ba   : > { %4291 = vmatpush1.bf16.msra.mxu1 %v6137_v62  ;;  %4251 = vmatprep.subr.bf16.mxu0 %v6142_v63  ;;  %v6223_v60 = vld [vmem:[%s6433_s29 + $0xccc] ss:$16 sps:$4 sm:$0xff]  }
 0x1bb   : > { %4292 = vmatprep.subr.bf16.mxu1 %v6145_v0 }
 0x1bd   : > { %4252 = vmatpush1.bf16.msra.mxu0 %v6140_v3 }
 0x1be   : > { %4293 = vmatpush1.bf16.msra.mxu1 %v6143_v4  ;;  %4253 = vmatprep.subr.bf16.mxu0 %v6148_v5 }
 0x1bf   : > { %4294 = vmatprep.subr.bf16.mxu1 %v6151_v6 }
 0x1c1   : > { %4254 = vmatpush1.bf16.msra.mxu0 %v6146_v7  ;;  %v6218_v7 = vld [vmem:[%s6433_s29 + $0xac8] ss:$16 sps:$4 sm:$0xff]  }
 0x1c2   : > { %4295 = vmatpush1.bf16.msra.mxu1 %v6149_v11  ;;  %4255 = vmatprep.subr.bf16.mxu0 %v6154_v12  ;;  %v6221_v11 = vld [vmem:[%s6433_s29 + $0xcc8] ss:$16 sps:$4 sm:$0xff]  }
 0x1c3   : > { %4296 = vmatprep.subr.bf16.mxu1 %v6157_v13 }
 0x1c5   : > { %4256 = vmatpush1.bf16.msra.mxu0 %v6152_v14 }
 0x1c6   : > { %4297 = vmatpush1.bf16.msra.mxu1 %v6155_v15  ;;  %4257 = vmatprep.subr.bf16.mxu0 %v6160_v16  ;;  %v6224_v16 = vld [vmem:[%s6433_s29 + $0xae8] ss:$16 sps:$4 sm:$0xff]  }
 0x1c7   : > { %4298 = vmatprep.subr.bf16.mxu1 %v6163_v17  ;;  %v6227_v17 = vld [vmem:[%s6433_s29 + $0xce8] ss:$16 sps:$4 sm:$0xff]  }
 0x1c9   : > { %4258 = vmatpush1.bf16.msra.mxu0 %v6158_v18  ;;  %v6232_v18 = vld [vmem:[%s6433_s29 + $0xb0c] ss:$16 sps:$4 sm:$0xff]  }
 0x1ca   : > { %4299 = vmatpush1.bf16.msra.mxu1 %v6161_v19  ;;  %4259 = vmatprep.subr.bf16.mxu0 %v6166_v10  ;;  %v6235_v19 = vld [vmem:[%s6433_s29 + $0xd0c] ss:$16 sps:$4 sm:$0xff]   ;;  %v6230_v10 = vld [vmem:[%s6433_s29 + $0xb08] ss:$16 sps:$4 sm:$0xff]  }
 0x1cb   : > { %4300 = vmatprep.subr.bf16.mxu1 %v6169_v21  ;;  %v6233_v21 = vld [vmem:[%s6433_s29 + $0xd08] ss:$16 sps:$4 sm:$0xff]  }
 0x1cd   : > { %4260 = vmatpush1.bf16.msra.mxu0 %v6164_v50  ;;  %v6238_v50 = vld [vmem:[%s6433_s29 + $0xb2c] ss:$16 sps:$4 sm:$0xff]  }
 0x1ce   : > { %4301 = vmatpush1.bf16.msra.mxu1 %v6167_v23  ;;  %4261 = vmatprep.subr.bf16.mxu0 %v6172_v39  ;;  %v6241_v23 = vld [vmem:[%s6433_s29 + $0xd2c] ss:$16 sps:$4 sm:$0xff]   ;;  %v6236_v39 = vld [vmem:[%s6433_s29 + $0xb28] ss:$16 sps:$4 sm:$0xff]  }
 0x1cf   : > { %4302 = vmatprep.subr.bf16.mxu1 %v6175_v41  ;;  %v6239_v41 = vld [vmem:[%s6433_s29 + $0xd28] ss:$16 sps:$4 sm:$0xff]  }
 0x1d1   : > { %4262 = vmatpush1.bf16.msra.mxu0 %v6170_v30  ;;  %v6244_v30 = vld [vmem:[%s6433_s29 + $0xb4c] ss:$16 sps:$4 sm:$0xff]  }
 0x1d2   : > { %4303 = vmatpush1.bf16.msra.mxu1 %v6173_v24  ;;  %4263 = vmatprep.subr.bf16.mxu0 %v6178_v45  ;;  %v6247_v24 = vld [vmem:[%s6433_s29 + $0xd4c] ss:$16 sps:$4 sm:$0xff]   ;;  %v6242_v45 = vld [vmem:[%s6433_s29 + $0xb48] ss:$16 sps:$4 sm:$0xff]  }
 0x1d3   : > { %4304 = vmatprep.subr.bf16.mxu1 %v6181_v26  ;;  %v6245_v26 = vld [vmem:[%s6433_s29 + $0xd48] ss:$16 sps:$4 sm:$0xff]  }
 0x1d5   : > { %4264 = vmatpush1.bf16.msra.mxu0 %v6176_v27  ;;  %v6250_v27 = vld [vmem:[%s6433_s29 + $0xb6c] ss:$16 sps:$4 sm:$0xff]  }
 0x1d6   : > { %4305 = vmatpush1.bf16.msra.mxu1 %v6179_v28  ;;  %4315 = vmatprep.subr.bf16.mxu0 %v6184_v29  ;;  %v6253_v28 = vld [vmem:[%s6433_s29 + $0xd6c] ss:$16 sps:$4 sm:$0xff]   ;;  %v6248_v29 = vld [vmem:[%s6433_s29 + $0xb68] ss:$16 sps:$4 sm:$0xff]  }
 0x1d7   : > { %4356 = vmatprep.subr.bf16.mxu1 %v6187_v31  ;;  %v6251_v31 = vld [vmem:[%s6433_s29 + $0xd68] ss:$16 sps:$4 sm:$0xff]  }
 0x1d8   : > { %4266 = vmatmul.mubr.bf16.vlgmr.msra.gmra.mrb[24].mxu0 %v6594_v22  ;;  %v6194_v22 = vld [vmem:[%s6433_s29 + $0xa48] ss:$16 sps:$4 sm:$0xff]  }
 0x1d9   : > { %4307 = vmatmul.mubr.bf16.vlgmr.msra.gmra.mrb[24].mxu1 %v6674_v43  ;;  %4316 = vmatpush1.bf16.msra.mxu0 %v6182_v32  ;;  %v6197_v43 = vld [vmem:[%s6433_s29 + $0xc48] ss:$16 sps:$4 sm:$0xff]   ;;  %v6256_v32 = vld [vmem:[%s6433_s29 + $0xb8c] ss:$16 sps:$4 sm:$0xff]  }
 0x1da   : > { %4357 = vmatpush1.bf16.msra.mxu1 %v6185_v34  ;;  %4317 = vmatprep.subr.bf16.mxu0 %v6190_v35  ;;  %v6259_v34 = vld [vmem:[%s6433_s29 + $0xd8c] ss:$16 sps:$4 sm:$0xff]   ;;  %v6254_v35 = vld [vmem:[%s6433_s29 + $0xb88] ss:$16 sps:$4 sm:$0xff]  }
 0x1db   : > { %4358 = vmatprep.subr.bf16.mxu1 %v6193_v36  ;;  %4347 = vmatprep.mubr.bf16.mxu0 %v6609_v33  ;;  %v6203_v33 = vld [vmem:[%s6433_s29 + $0xc68] ss:$16 sps:$4 sm:$0xff]  }
 0x1dc   : > { %4388 = vmatprep.mubr.bf16.mxu1 %v6682_v49  ;;  %v6208_v49 = vld [vmem:[%s6433_s29 + $0xa8c] ss:$16 sps:$4 sm:$0xff]   ;;  %v6257_v36 = vld [vmem:[%s6433_s29 + $0xd88] ss:$16 sps:$4 sm:$0xff]  }
 0x1dd   : > { %4318 = vmatpush1.bf16.msra.mxu0 %v6188_v37  ;;  %v6262_v37 = vld [vmem:[%s6433_s29 + $0xbac] ss:$16 sps:$4 sm:$0xff]  }
 0x1de   : > { %4359 = vmatpush1.bf16.msra.mxu1 %v6191_v40  ;;  %4319 = vmatprep.subr.bf16.mxu0 %v6196_v46  ;;  %v6265_v40 = vld [vmem:[%s6433_s29 + $0xdac] ss:$16 sps:$4 sm:$0xff]   ;;  %v6260_v46 = vld [vmem:[%s6433_s29 + $0xba8] ss:$16 sps:$4 sm:$0xff]  }
 0x1df   : > { %4360 = vmatprep.subr.bf16.mxu1 %v6199_v47  ;;  %v6263_v47 = vld [vmem:[%s6433_s29 + $0xda8] ss:$16 sps:$4 sm:$0xff]  }
 0x1e1   : > { %4320 = vmatpush1.bf16.msra.mxu0 %v6194_v22  ;;  %v6268_v22 = vld [vmem:[%s6433_s29 + $0xbcc] ss:$16 sps:$4 sm:$0xff]  }
 0x1e2   : > { %4361 = vmatpush1.bf16.msra.mxu1 %v6197_v43  ;;  %4321 = vmatprep.subr.bf16.mxu0 %v6202_v48  ;;  %v6271_v43 = vld [vmem:[%s6433_s29 + $0xdcc] ss:$16 sps:$4 sm:$0xff]   ;;  %v6266_v48 = vld [vmem:[%s6433_s29 + $0xbc8] ss:$16 sps:$4 sm:$0xff]  }
 0x1e3   : > { %4362 = vmatprep.subr.bf16.mxu1 %v6205_v52  ;;  %v6269_v52 = vld [vmem:[%s6433_s29 + $0xdc8] ss:$16 sps:$4 sm:$0xff]  }
 0x1e5   : > { %4322 = vmatpush1.bf16.msra.mxu0 %v6200_v54  ;;  %v6274_v54 = vld [vmem:[%s6433_s29 + $0xbec] ss:$16 sps:$4 sm:$0xff]  }
 0x1e6   : > { %4363 = vmatpush1.bf16.msra.mxu1 %v6203_v33  ;;  %4323 = vmatprep.subr.bf16.mxu0 %v6208_v49  ;;  %v6277_v33 = vld [vmem:[%s6433_s29 + $0xdec] ss:$16 sps:$4 sm:$0xff]   ;;  %v6272_v49 = vld [vmem:[%s6433_s29 + $0xbe8] ss:$16 sps:$4 sm:$0xff]  }
 0x1e7   : > { %4364 = vmatprep.subr.bf16.mxu1 %v6211_v55  ;;  %v6275_v55 = vld [vmem:[%s6433_s29 + $0xde8] ss:$16 sps:$4 sm:$0xff]  }
 0x1e9   : > { %4324 = vmatpush1.bf16.msra.mxu0 %v6206_v56  ;;  %v6280_v56 = vld [vmem:[%s6433_s29 + $0xe0c] ss:$16 sps:$4 sm:$0xff]  }
 0x1ea   : > { %4365 = vmatpush1.bf16.msra.mxu1 %v6209_v57  ;;  %4325 = vmatprep.subr.bf16.mxu0 %v6214_v20  ;;  %v6283_v57 = vld [vmem:[%s6433_s29 + $0x100c] ss:$16 sps:$4 sm:$0xff]   ;;  %v6278_v20 = vld [vmem:[%s6433_s29 + $0xe08] ss:$16 sps:$4 sm:$0xff]  }
 0x1eb   : > { %4366 = vmatprep.subr.bf16.mxu1 %v6217_v25  ;;  %v4021_v61 = vpop.f32.mrb[12].mxu0  ;;  %v6281_v25 = vld [vmem:[%s6433_s29 + $0x1008] ss:$16 sps:$4 sm:$0xff]  }
 0x1ec   : > { %v4062_v62 = vpop.f32.mrb[12].mxu1  ;;  %v4022_v63 = vadd.f32 %v4021_v61, %v6940_v9  ;;  %v4023_v0 = vpop.f32.mrb[13].mxu0  ;;  %v6226_v9 = vld [vmem:[%s6433_s29 + $0xaec] ss:$16 sps:$4 sm:$0xff]  }
 0x1ed   : > { %v4064_v3 = vpop.f32.mrb[13].mxu1  ;;  %v4024_v4 = vadd.f32 %v4023_v0, %v6944_v58  ;;  %v4025_v5 = vpop.f32.mrb[14].mxu0  ;;  %4326 = vmatpush1.bf16.msra.mxu0 %v6212_v53  ;;  %v6229_v58 = vld [vmem:[%s6433_s29 + $0xcec] ss:$16 sps:$4 sm:$0xff]  }
 0x1ee   : > { %v4066_v6 = vpop.f32.mrb[14].mxu1  ;;  %4367 = vmatpush1.bf16.msra.mxu1 %v6215_v59  ;;  %v7014_v12 = vadd.f32 %v4062_v62, %v4022_v63  ;;  %v4026_v13 = vpop.f32.mrb[15].mxu0  ;;  %4327 = vmatprep.subr.bf16.mxu0 %v6220_v38  ;;  %v6286_v53 = vld [vmem:[%s6433_s29 + $0xe2c] ss:$16 sps:$4 sm:$0xff]   ;;  %v6284_v38 = vld [vmem:[%s6433_s29 + $0xe28] ss:$16 sps:$4 sm:$0xff]  }
 0x1ef   : > { %v4067_v14 = vpop.f32.mrb[15].mxu1  ;;  %4368 = vmatprep.subr.bf16.mxu1 %v6223_v60  ;;  %v7018_v15 = vadd.f32 %v4064_v3, %v4024_v4  ;;  %v6289_v59 = vld [vmem:[%s6433_s29 + $0x102c] ss:$16 sps:$4 sm:$0xff]   ;;  %v6287_v60 = vld [vmem:[%s6433_s29 + $0x1028] ss:$16 sps:$4 sm:$0xff]  }
 0x1f0   : > { %v6292_v61 = vld [vmem:[%s6433_s29 + $0xe4c] ss:$16 sps:$4 sm:$0xff]   ;;  %v6296_v3 = vld [vmem:[%s6433_s29 + $0xe68] ss:$16 sps:$4 sm:$0xff]  }
 0x1f1   : > { %4328 = vmatpush1.bf16.msra.mxu0 %v6218_v7  ;;  %v6295_v62 = vld [vmem:[%s6433_s29 + $0x104c] ss:$16 sps:$4 sm:$0xff]   ;;  %v6302_v5 = vld [vmem:[%s6433_s29 + $0xe88] ss:$16 sps:$4 sm:$0xff]  }
 0x1f2   : > { %4369 = vmatpush1.bf16.msra.mxu1 %v6221_v11  ;;  %4329 = vmatprep.subr.bf16.mxu0 %v6226_v9  ;;  %v6298_v63 = vld [vmem:[%s6433_s29 + $0xe6c] ss:$16 sps:$4 sm:$0xff]   ;;  %v6305_v6 = vld [vmem:[%s6433_s29 + $0x1088] ss:$16 sps:$4 sm:$0xff]  }
 0x1f3   : > { %4370 = vmatprep.subr.bf16.mxu1 %v6229_v58  ;;  %v6301_v0 = vld [vmem:[%s6433_s29 + $0x106c] ss:$16 sps:$4 sm:$0xff]   ;;  %v6308_v13 = vld [vmem:[%s6433_s29 + $0xea8] ss:$16 sps:$4 sm:$0xff]  }
 0x1f4   : > { %v6307_v4 = vld [vmem:[%s6433_s29 + $0x108c] ss:$16 sps:$4 sm:$0xff]   ;;  %v6311_v14 = vld [vmem:[%s6433_s29 + $0x10a8] ss:$16 sps:$4 sm:$0xff]  }
 0x1f5   : > { %4330 = vmatpush1.bf16.msra.mxu0 %v6224_v16  ;;  %v6310_v7 = vld [vmem:[%s6433_s29 + $0xeac] ss:$16 sps:$4 sm:$0xff]   ;;  %v245_v16 = vld [vmem:[#allocation2] sm:$0xff] }
 0x1f6   : > { %4371 = vmatpush1.bf16.msra.mxu1 %v6227_v17  ;;  %4331 = vmatprep.subr.bf16.mxu0 %v6232_v18  ;;  %v6313_v11 = vld [vmem:[%s6433_s29 + $0x10ac] ss:$16 sps:$4 sm:$0xff]  }
 0x1f7   : > { %4372 = vmatprep.subr.bf16.mxu1 %v6235_v19  ;;  %v6316_v9 = vld [vmem:[%s6433_s29 + $0xecc] ss:$16 sps:$4 sm:$0xff]  }
 0x1f8   : > { %v6319_v58 = vld [vmem:[%s6433_s29 + $0x10cc] ss:$16 sps:$4 sm:$0xff]  }
 0x1f9   : > { %4332 = vmatpush1.bf16.msra.mxu0 %v6230_v10  ;;  %v246_v10 = vld [vmem:[#allocation2 + $0x8] sm:$0xff] }
 0x1fa   : > { %4373 = vmatpush1.bf16.msra.mxu1 %v6233_v21  ;;  %4333 = vmatprep.subr.bf16.mxu0 %v6238_v50 }
 0x1fb   : > { %4374 = vmatprep.subr.bf16.mxu1 %v6241_v23 }
 0x1fd   : > { %4334 = vmatpush1.bf16.msra.mxu0 %v6236_v39 }
 0x1fe   : > { %4375 = vmatpush1.bf16.msra.mxu1 %v6239_v41  ;;  %4335 = vmatprep.subr.bf16.mxu0 %v6244_v30  ;;  %v6314_v30 = vld [vmem:[%s6433_s29 + $0xec8] ss:$16 sps:$4 sm:$0xff]  }
 0x1ff   : > { %4376 = vmatprep.subr.bf16.mxu1 %v6247_v24  ;;  %v6317_v24 = vld [vmem:[%s6433_s29 + $0x10c8] ss:$16 sps:$4 sm:$0xff]  }
 0x201   : > { %4336 = vmatpush1.bf16.msra.mxu0 %v6242_v45 }
 0x202   : > { %4377 = vmatpush1.bf16.msra.mxu1 %v6245_v26  ;;  %4337 = vmatprep.subr.bf16.mxu0 %v6250_v27  ;;  %v6322_v27 = vld [vmem:[%s6433_s29 + $0xeec] ss:$16 sps:$4 sm:$0xff]  }
 0x203   : > { %4378 = vmatprep.subr.bf16.mxu1 %v6253_v28  ;;  %v6325_v28 = vld [vmem:[%s6433_s29 + $0x10ec] ss:$16 sps:$4 sm:$0xff]  }
 0x205   : > { %4338 = vmatpush1.bf16.msra.mxu0 %v6248_v29  ;;  %v6320_v29 = vld [vmem:[%s6433_s29 + $0xee8] ss:$16 sps:$4 sm:$0xff]  }
 0x206   : > { %4379 = vmatpush1.bf16.msra.mxu1 %v6251_v31  ;;  %4339 = vmatprep.subr.bf16.mxu0 %v6256_v32  ;;  %v6323_v31 = vld [vmem:[%s6433_s29 + $0x10e8] ss:$16 sps:$4 sm:$0xff]   ;;  %v6328_v32 = vld [vmem:[%s6433_s29 + $0xf0c] ss:$16 sps:$4 sm:$0xff]  }
 0x207   : > { %4380 = vmatprep.subr.bf16.mxu1 %v6259_v34  ;;  %v6331_v34 = vld [vmem:[%s6433_s29 + $0x110c] ss:$16 sps:$4 sm:$0xff]  }
 0x209   : > { %4340 = vmatpush1.bf16.msra.mxu0 %v6254_v35  ;;  %v6326_v35 = vld [vmem:[%s6433_s29 + $0xf08] ss:$16 sps:$4 sm:$0xff]  }
 0x20a   : > { %4381 = vmatpush1.bf16.msra.mxu1 %v6257_v36  ;;  %4341 = vmatprep.subr.bf16.mxu0 %v6262_v37  ;;  %v6329_v36 = vld [vmem:[%s6433_s29 + $0x1108] ss:$16 sps:$4 sm:$0xff]   ;;  %v6334_v37 = vld [vmem:[%s6433_s29 + $0xf2c] ss:$16 sps:$4 sm:$0xff]  }
 0x20b   : > { %4382 = vmatprep.subr.bf16.mxu1 %v6265_v40  ;;  %v6337_v40 = vld [vmem:[%s6433_s29 + $0x112c] ss:$16 sps:$4 sm:$0xff]  }
 0x20d   : > { %4342 = vmatpush1.bf16.msra.mxu0 %v6260_v46  ;;  %v6332_v46 = vld [vmem:[%s6433_s29 + $0xf28] ss:$16 sps:$4 sm:$0xff]  }
 0x20e   : > { %4383 = vmatpush1.bf16.msra.mxu1 %v6263_v47  ;;  %4343 = vmatprep.subr.bf16.mxu0 %v6268_v22  ;;  %v6335_v47 = vld [vmem:[%s6433_s29 + $0x1128] ss:$16 sps:$4 sm:$0xff]   ;;  %v6340_v22 = vld [vmem:[%s6433_s29 + $0xf4c] ss:$16 sps:$4 sm:$0xff]  }
 0x20f   : > { %4384 = vmatprep.subr.bf16.mxu1 %v6271_v43  ;;  %v6343_v43 = vld [vmem:[%s6433_s29 + $0x114c] ss:$16 sps:$4 sm:$0xff]  }
 0x211   : > { %4344 = vmatpush1.bf16.msra.mxu0 %v6266_v48  ;;  %v6338_v48 = vld [vmem:[%s6433_s29 + $0xf48] ss:$16 sps:$4 sm:$0xff]  }
 0x212   : > { %4385 = vmatpush1.bf16.msra.mxu1 %v6269_v52  ;;  %4345 = vmatprep.subr.bf16.mxu0 %v6274_v54  ;;  %v6341_v52 = vld [vmem:[%s6433_s29 + $0x1148] ss:$16 sps:$4 sm:$0xff]   ;;  %v6346_v54 = vld [vmem:[%s6433_s29 + $0xf6c] ss:$16 sps:$4 sm:$0xff]  }
 0x213   : > { %4386 = vmatprep.subr.bf16.mxu1 %v6277_v33  ;;  %v6349_v33 = vld [vmem:[%s6433_s29 + $0x116c] ss:$16 sps:$4 sm:$0xff]  }
 0x215   : > { %4346 = vmatpush1.bf16.msra.mxu0 %v6272_v49  ;;  %v6344_v49 = vld [vmem:[%s6433_s29 + $0xf68] ss:$16 sps:$4 sm:$0xff]  }
 0x216   : > { %4387 = vmatpush1.bf16.msra.mxu1 %v6275_v55  ;;  %4397 = vmatprep.subr.bf16.mxu0 %v6280_v56  ;;  %v6347_v55 = vld [vmem:[%s6433_s29 + $0x1168] ss:$16 sps:$4 sm:$0xff]   ;;  %v6352_v56 = vld [vmem:[%s6433_s29 + $0xf8c] ss:$16 sps:$4 sm:$0xff]  }
 0x217   : > { %4438 = vmatprep.subr.bf16.mxu1 %v6283_v57  ;;  %v6355_v57 = vld [vmem:[%s6433_s29 + $0x118c] ss:$16 sps:$4 sm:$0xff]  }
 0x218   : > { %4348 = vmatmul.mubr.bf16.vlgmr.msra.gmra.mrb[28].mxu0 %v6676_v44  ;;  %v6290_v44 = vld [vmem:[%s6433_s29 + $0xe48] ss:$16 sps:$4 sm:$0xff]  }
 0x219   : > { %4389 = vmatmul.mubr.bf16.vlgmr.msra.gmra.mrb[28].mxu1 %v6752_v1  ;;  %4398 = vmatpush1.bf16.msra.mxu0 %v6278_v20  ;;  %v6293_v1 = vld [vmem:[%s6433_s29 + $0x1048] ss:$16 sps:$4 sm:$0xff]  }
 0x21a   : > { %4439 = vmatpush1.bf16.msra.mxu1 %v6281_v25  ;;  %4399 = vmatprep.subr.bf16.mxu0 %v6286_v53  ;;  %v6350_v20 = vld [vmem:[%s6433_s29 + $0xf88] ss:$16 sps:$4 sm:$0xff]   ;;  %v6358_v53 = vld [vmem:[%s6433_s29 + $0xfac] ss:$16 sps:$4 sm:$0xff]  }
 0x21b   : > { %4440 = vmatprep.subr.bf16.mxu1 %v6289_v59  ;;  %4429 = vmatprep.mubr.bf16.mxu0 %v6684_v51  ;;  %v6299_v51 = vld [vmem:[%s6433_s29 + $0x1068] ss:$16 sps:$4 sm:$0xff]   ;;  %v6361_v59 = vld [vmem:[%s6433_s29 + $0x11ac] ss:$16 sps:$4 sm:$0xff]  }
 0x21c   : > { %4470 = vmatprep.mubr.bf16.mxu1 %v6761_v8  ;;  %v6304_v8 = vld [vmem:[%s6433_s29 + $0xe8c] ss:$16 sps:$4 sm:$0xff]   ;;  %v6353_v25 = vld [vmem:[%s6433_s29 + $0x1188] ss:$16 sps:$4 sm:$0xff]  }
 0x21d   : > { %4400 = vmatpush1.bf16.msra.mxu0 %v6284_v38  ;;  %v6356_v38 = vld [vmem:[%s6433_s29 + $0xfa8] ss:$16 sps:$4 sm:$0xff]  }
 0x21e   : > { %4441 = vmatpush1.bf16.msra.mxu1 %v6287_v60  ;;  %4401 = vmatprep.subr.bf16.mxu0 %v6292_v61  ;;  %v6359_v60 = vld [vmem:[%s6433_s29 + $0x11a8] ss:$16 sps:$4 sm:$0xff]   ;;  %v6364_v61 = vld [vmem:[%s6433_s29 + $0xfcc] ss:$16 sps:$4 sm:$0xff]  }
 0x21f   : > { %4442 = vmatprep.subr.bf16.mxu1 %v6295_v62  ;;  %v6367_v62 = vld [vmem:[%s6433_s29 + $0x11cc] ss:$16 sps:$4 sm:$0xff]  }
 0x221   : > { %4402 = vmatpush1.bf16.msra.mxu0 %v6290_v44  ;;  %v6362_v44 = vld [vmem:[%s6433_s29 + $0xfc8] ss:$16 sps:$4 sm:$0xff]  }
 0x222   : > { %4443 = vmatpush1.bf16.msra.mxu1 %v6293_v1  ;;  %4403 = vmatprep.subr.bf16.mxu0 %v6298_v63  ;;  %v6365_v1 = vld [vmem:[%s6433_s29 + $0x11c8] ss:$16 sps:$4 sm:$0xff]   ;;  %v6370_v63 = vld [vmem:[%s6433_s29 + $0xfec] ss:$16 sps:$4 sm:$0xff]  }
 0x223   : > { %4444 = vmatprep.subr.bf16.mxu1 %v6301_v0  ;;  %v6373_v0 = vld [vmem:[%s6433_s29 + $0x11ec] ss:$16 sps:$4 sm:$0xff]  }
 0x225   : > { %4404 = vmatpush1.bf16.msra.mxu0 %v6296_v3  ;;  %v6368_v3 = vld [vmem:[%s6433_s29 + $0xfe8] ss:$16 sps:$4 sm:$0xff]  }
 0x226   : > { %4445 = vmatpush1.bf16.msra.mxu1 %v6299_v51  ;;  %4405 = vmatprep.subr.bf16.mxu0 %v6304_v8  ;;  %v6371_v51 = vld [vmem:[%s6433_s29 + $0x11e8] ss:$16 sps:$4 sm:$0xff]  }
 0x227   : > { %4446 = vmatprep.subr.bf16.mxu1 %v6307_v4 }
 0x229   : > { %4406 = vmatpush1.bf16.msra.mxu0 %v6302_v5 }
 0x22a   : > { %4447 = vmatpush1.bf16.msra.mxu1 %v6305_v6  ;;  %4407 = vmatprep.subr.bf16.mxu0 %v6310_v7 }
 0x22b   : > { %4448 = vmatprep.subr.bf16.mxu1 %v6313_v11  ;;  %v4103_v17 = vpop.f32.mrb[16].mxu0 }
 0x22c   : > { %v7084_v18 = vpop.f32.mrb[16].mxu1  ;;  %v4104_v19 = vadd.f32 %v4103_v17, %v7014_v12  ;;  %v4105_v21 = vpop.f32.mrb[17].mxu0 }
 0x22d   : > { %v7087_v50 = vpop.f32.mrb[17].mxu1  ;;  %v4106_v23 = vadd.f32 %v4105_v21, %v7018_v15  ;;  %v4107_v39 = vpop.f32.mrb[18].mxu0  ;;  %4408 = vmatpush1.bf16.msra.mxu0 %v6308_v13 }
 0x22e   : > { %v4148_v41 = vpop.f32.mrb[18].mxu1  ;;  %4449 = vmatpush1.bf16.msra.mxu1 %v6311_v14  ;;  %v4479_v45 = vadd.f32 %v4104_v19, %v245_v16  ;;  %v4108_v26 = vpop.f32.mrb[19].mxu0  ;;  %4409 = vmatprep.subr.bf16.mxu0 %v6316_v9 }
 0x22f   : > { %v4149_v12 = vpop.f32.mrb[19].mxu1  ;;  %4450 = vmatprep.subr.bf16.mxu1 %v6319_v58  ;;  %v4480_v15 = vadd.f32 %v4106_v23, %v246_v10 }
 0x230   : > { %4483 = vst [vmem:[#allocation2] sm:$0xff] %v4479_v45 }
 0x231   : > { %4484 = vst [vmem:[#allocation2 + $0x8] sm:$0xff] %v4480_v15  ;;  %4410 = vmatpush1.bf16.msra.mxu0 %v6314_v30 }
 0x232   : > { %4451 = vmatpush1.bf16.msra.mxu1 %v6317_v24  ;;  %4411 = vmatprep.subr.bf16.mxu0 %v6322_v27 }
 0x233   : > { %4452 = vmatprep.subr.bf16.mxu1 %v6325_v28 }
 0x235   : > { %4412 = vmatpush1.bf16.msra.mxu0 %v6320_v29 }
 0x236   : > { %4453 = vmatpush1.bf16.msra.mxu1 %v6323_v31  ;;  %4413 = vmatprep.subr.bf16.mxu0 %v6328_v32 }
 0x237   : > { %4454 = vmatprep.subr.bf16.mxu1 %v6331_v34 }
 0x239   : > { %4414 = vmatpush1.bf16.msra.mxu0 %v6326_v35 }
 0x23a   : > { %4455 = vmatpush1.bf16.msra.mxu1 %v6329_v36  ;;  %4415 = vmatprep.subr.bf16.mxu0 %v6334_v37 }
 0x23b   : > { %4456 = vmatprep.subr.bf16.mxu1 %v6337_v40 }
 0x23d   : > { %4416 = vmatpush1.bf16.msra.mxu0 %v6332_v46 }
 0x23e   : > { %4457 = vmatpush1.bf16.msra.mxu1 %v6335_v47  ;;  %4417 = vmatprep.subr.bf16.mxu0 %v6340_v22 }
 0x23f   : > { %4458 = vmatprep.subr.bf16.mxu1 %v6343_v43  ;;  %v247_v43 = vld [vmem:[#allocation2 + $0x10] sm:$0xff] }
 0x241   : > { %4418 = vmatpush1.bf16.msra.mxu0 %v6338_v48 }
 0x242   : > { %4459 = vmatpush1.bf16.msra.mxu1 %v6341_v52  ;;  %4419 = vmatprep.subr.bf16.mxu0 %v6346_v54 }
 0x243   : > { %4460 = vmatprep.subr.bf16.mxu1 %v6349_v33 }
 0x245   : > { %4420 = vmatpush1.bf16.msra.mxu0 %v6344_v49  ;;  %v248_v49 = vld [vmem:[#allocation2 + $0x18] sm:$0xff] }
 0x246   : > { %4461 = vmatpush1.bf16.msra.mxu1 %v6347_v55  ;;  %4421 = vmatprep.subr.bf16.mxu0 %v6352_v56 }
 0x247   : > { %4462 = vmatprep.subr.bf16.mxu1 %v6355_v57 }
 0x249   : > { %4422 = vmatpush1.bf16.msra.mxu0 %v6350_v20 }
 0x24a   : > { %4463 = vmatpush1.bf16.msra.mxu1 %v6353_v25  ;;  %4423 = vmatprep.subr.bf16.mxu0 %v6358_v53  ;;  %v4541_v53 = vld [vmem:[%s7340_s3 + $0x80] sm:$0xff] (!%p5362_p6) }
 0x24b   : > { %4464 = vmatprep.subr.bf16.mxu1 %v6361_v59  ;;  %v4542_v59 = vld [vmem:[%s7340_s3 + $0x88] sm:$0xff] (!%p5362_p6) }
 0x24d   : > { %4424 = vmatpush1.bf16.msra.mxu0 %v6356_v38  ;;  %v4525_v38 = vld [vmem:[%s7340_s3] sm:$0xff] (!%p5362_p6) }
 0x24e   : > { %4465 = vmatpush1.bf16.msra.mxu1 %v6359_v60  ;;  %4425 = vmatprep.subr.bf16.mxu0 %v6364_v61  ;;  %v5437_v60 = vpack.c.bf16 (!%p5362_p6), %v4542_v59, %v4541_v53  ;;  %v4526_v61 = vld [vmem:[%s7340_s3 + $0x8] sm:$0xff] (!%p5362_p6) }
 0x24f   : > { %4466 = vmatprep.subr.bf16.mxu1 %v6367_v62  ;;  %v4573_v62 = vld [vmem:[%s7340_s3 + $0x180] sm:$0xff] (!%p5362_p6) }
 0x251   : > { %4426 = vmatpush1.bf16.msra.mxu0 %v6362_v44  ;;  %v4574_v44 = vld [vmem:[%s7340_s3 + $0x188] sm:$0xff] (!%p5362_p6) }
 0x252   : > { %4467 = vmatpush1.bf16.msra.mxu1 %v6365_v1  ;;  %4427 = vmatprep.subr.bf16.mxu0 %v6370_v63  ;;  %v5439_v1 = vpack.c.bf16 (!%p5362_p6), %v4526_v61, %v4525_v38  ;;  %v5469_v63 = vpack.c.bf16 (!%p5362_p6), %v4574_v44, %v4573_v62  ;;  %v4536_v61 = vld [vmem:[%s7340_s3 + $0x58] sm:$0xff] (!%p5362_p6)  ;;  %v4567_v62 = vld [vmem:[%s7340_s3 + $0x150] sm:$0xff] (!%p5362_p6) }
 0x253   : > { %4468 = vmatprep.subr.bf16.mxu1 %v6373_v0  ;;  %v4557_v0 = vld [vmem:[%s7340_s3 + $0x100] sm:$0xff] (!%p5362_p6) }
 0x255   : > { %4428 = vmatpush1.bf16.msra.mxu0 %v6368_v3  ;;  %v4558_v3 = vld [vmem:[%s7340_s3 + $0x108] sm:$0xff] (!%p5362_p6) }
 0x256   : > { %4469 = vmatpush1.bf16.msra.mxu1 %v6371_v51  ;;  %v4543_v51 = vld [vmem:[%s7340_s3 + $0x90] sm:$0xff] (!%p5362_p6)  ;;  %5438 = vmatprep.subr.bf16.mxu0 (!%p5362_p6), %v5437_v60 }
 0x257   : > { %5470 = vmatprep.subr.bf16.mxu1 (!%p5362_p6), %v5469_v63  ;;  %v4535_v60 = vld [vmem:[%s7340_s3 + $0x50] sm:$0xff] (!%p5362_p6)  ;;  %v4553_v63 = vld [vmem:[%s7340_s3 + $0xe0] sm:$0xff] (!%p5362_p6) }
 0x258   : > { %4430 = vmatmul.mubr.bf16.vlgmr.msra.gmra.mrb[32].mxu0 %v6754_v2 }
 0x259   : > { %4471 = vmatmul.mubr.bf16.vlgmr.msra.gmra.mrb[32].mxu1 %v6834_v42  ;;  %5440 = vmatpush3.bf16.msra.mxu0 (!%p5362_p6), %v5439_v1  ;;  %v4568_v1 = vld [vmem:[%s7340_s3 + $0x158] sm:$0xff] (!%p5362_p6) }
 0x26b   : > { %v4185_v8 = vpop.f32.mrb[20].mxu0 }
 0x26c   : > { %v4226_v4 = vpop.f32.mrb[20].mxu1  ;;  %v4186_v5 = vadd.f32 %v4185_v8, %v7084_v18  ;;  %v4187_v6 = vpop.f32.mrb[21].mxu0  ;;  %v5471_v8 = vpack.c.bf16 (!%p5362_p6), %v4558_v3, %v4557_v0  ;;  %v4554_v0 = vld [vmem:[%s7340_s3 + $0xe8] sm:$0xff] (!%p5362_p6) }
 0x26d   : > { %v4228_v7 = vpop.f32.mrb[21].mxu1  ;;  %v4188_v11 = vadd.f32 %v4187_v6, %v7087_v50  ;;  %v4189_v13 = vpop.f32.mrb[22].mxu0  ;;  %v4528_v6 = vld [vmem:[%s7340_s3 + $0x18] sm:$0xff] (!%p5362_p6) }
 0x26e   : > { %v4230_v14 = vpop.f32.mrb[22].mxu1  ;;  %v4227_v9 = vadd.f32 %v4226_v4, %v4186_v5  ;;  %v4190_v58 = vpop.f32.mrb[23].mxu0  ;;  %v4544_v4 = vld [vmem:[%s7340_s3 + $0x98] sm:$0xff] (!%p5362_p6)  ;;  %v4527_v5 = vld [vmem:[%s7340_s3 + $0x10] sm:$0xff] (!%p5362_p6)  ;;  %5472 = vmatpush3.bf16.msra.mxu1 (!%p5362_p6), %v5471_v8  ;;  %v4585_v8 = vld [vmem:[%s7340_s3 + $0x1e0] sm:$0xff] (!%p5362_p6) }
 0x26f   : > { %v4231_v16 = vpop.f32.mrb[23].mxu1  ;;  %v4229_v17 = vadd.f32 %v4228_v7, %v4188_v11  ;;  %v5441_v7 = vpack.c.bf16 (!%p5362_p6), %v4544_v4, %v4543_v51  ;;  %v5443_v11 = vpack.c.bf16 (!%p5362_p6), %v4528_v6, %v4527_v5  ;;  %v4575_v13 = vld [vmem:[%s7340_s3 + $0x190] sm:$0xff] (!%p5362_p6)  ;;  %v4576_v14 = vld [vmem:[%s7340_s3 + $0x198] sm:$0xff] (!%p5362_p6)  ;;  %v4586_v4 = vld [vmem:[%s7340_s3 + $0x1e8] sm:$0xff] (!%p5362_p6)  ;;  %v5459_v6 = vpack.c.bf16 (!%p5362_p6), %v4536_v61, %v4535_v60 }
 0x270   : > { %v5473_v58 = vpack.c.bf16 (!%p5362_p6), %v4576_v14, %v4575_v13  ;;  %v4560_v16 = vld [vmem:[%s7340_s3 + $0x118] sm:$0xff] (!%p5362_p6)  ;;  %v4569_v13 = vld [vmem:[%s7340_s3 + $0x160] sm:$0xff] (!%p5362_p6) }
 0x271   : > { %5442 = vmatprep.subr.bf16.mxu0 (!%p5362_p6), %v5441_v7  ;;  %v4537_v7 = vld [vmem:[%s7340_s3 + $0x60] sm:$0xff] (!%p5362_p6) }
 0x272   : > { %5474 = vmatprep.subr.bf16.mxu1 (!%p5362_p6), %v5473_v58  ;;  %5444 = vmatpush3.bf16.msra.mxu0 (!%p5362_p6), %v5443_v11  ;;  %v4538_v11 = vld [vmem:[%s7340_s3 + $0x68] sm:$0xff] (!%p5362_p6)  ;;  %v5461_v58 = vpack.c.bf16 (!%p5362_p6), %v4554_v0, %v4553_v63 }
 0x2ab   : > { %v4267_v19 = vpop.f32.mrb[24].mxu0 }
 0x2ac   : > { %v4308_v10 = vpop.f32.mrb[24].mxu1  ;;  %v4268_v21 = vadd.f32 %v4267_v19, %v4227_v9  ;;  %v4269_v2 = vpop.f32.mrb[25].mxu0  ;;  %v4559_v9 = vld [vmem:[%s7340_s3 + $0x110] sm:$0xff] (!%p5362_p6)  ;;  %v4546_v19 = vld [vmem:[%s7340_s3 + $0xa8] sm:$0xff] (!%p5362_p6) }
 0x2ad   : > { %v4310_v23 = vpop.f32.mrb[25].mxu1  ;;  %v4270_v42 = vadd.f32 %v4269_v2, %v4229_v17  ;;  %v4271_v39 = vpop.f32.mrb[26].mxu0  ;;  %v4545_v17 = vld [vmem:[%s7340_s3 + $0xa0] sm:$0xff] (!%p5362_p6) }
 0x2ae   : > { %v4312_v41 = vpop.f32.mrb[26].mxu1  ;;  %v4309_v30 = vadd.f32 %v4308_v10, %v4268_v21  ;;  %v4272_v18 = vpop.f32.mrb[27].mxu0  ;;  %v5475_v10 = vpack.c.bf16 (!%p5362_p6), %v4560_v16, %v4559_v9  ;;  %v5445_v21 = vpack.c.bf16 (!%p5362_p6), %v4546_v19, %v4545_v17  ;;  %v4529_v2 = vld [vmem:[%s7340_s3 + $0x20] sm:$0xff] (!%p5362_p6)  ;;  %v4578_v39 = vld [vmem:[%s7340_s3 + $0x1a8] sm:$0xff] (!%p5362_p6)  ;;  %v5491_v9 = vpack.c.bf16 (!%p5362_p6), %v4568_v1, %v4567_v62 }
 0x2af   : > { %v4313_v24 = vpop.f32.mrb[27].mxu1  ;;  %v4311_v45 = vadd.f32 %v4310_v23, %v4270_v42  ;;  %v4530_v23 = vld [vmem:[%s7340_s3 + $0x28] sm:$0xff] (!%p5362_p6)  ;;  %v4577_v42 = vld [vmem:[%s7340_s3 + $0x1a0] sm:$0xff] (!%p5362_p6) }
 0x2b0   : > { %v4561_v41 = vld [vmem:[%s7340_s3 + $0x120] sm:$0xff] (!%p5362_p6)  ;;  %v5447_v18 = vpack.c.bf16 (!%p5362_p6), %v4530_v23, %v4529_v2  ;;  %v5477_v24 = vpack.c.bf16 (!%p5362_p6), %v4578_v39, %v4577_v42  ;;  %5476 = vmatpush3.bf16.msra.mxu1 (!%p5362_p6), %v5475_v10  ;;  %5446 = vmatprep.subr.bf16.mxu0 (!%p5362_p6), %v5445_v21  ;;  %v4570_v16 = vld [vmem:[%s7340_s3 + $0x168] sm:$0xff] (!%p5362_p6)  ;;  %v5493_v10 = vpack.c.bf16 (!%p5362_p6), %v4586_v4, %v4585_v8  ;;  %v4555_v21 = vld [vmem:[%s7340_s3 + $0xf0] sm:$0xff] (!%p5362_p6) }
 0x2b1   : > { %v4492_v17 = vld [vmem:[#allocation2 + $0x8] sm:$0xff] (!%p5362_p6)  ;;  %v4495_v19 = vld [vmem:[%s7339_s2] sm:$0xf] (!%p5362_p6)  ;;  %v4556_v2 = vld [vmem:[%s7340_s3 + $0xf8] sm:$0xff] (!%p5362_p6) }
 0x2b2   : > { %5478 = vmatprep.subr.bf16.mxu1 (!%p5362_p6), %v5477_v24  ;;  %5448 = vmatpush3.bf16.msra.mxu0 (!%p5362_p6), %v5447_v18  ;;  %v5463_v24 = vpack.c.bf16 (!%p5362_p6), %v4538_v11, %v4537_v7 }
 0x2eb   : > { %v4349_v26 = vpop.f32.mrb[28].mxu0 }
 0x2ec   : > { %v4390_v50 = vpop.f32.mrb[28].mxu1  ;;  %v4350_v12 = vadd.f32 %v4349_v26, %v4309_v30  ;;  %v4351_v27 = vpop.f32.mrb[29].mxu0  ;;  %v4562_v30 = vld [vmem:[%s7340_s3 + $0x128] sm:$0xff] (!%p5362_p6)  ;;  %v4548_v26 = vld [vmem:[%s7340_s3 + $0xb8] sm:$0xff] (!%p5362_p6) }
 0x2ed   : > { %v4392_v28 = vpop.f32.mrb[29].mxu1  ;;  %v4352_v15 = vadd.f32 %v4351_v27, %v4311_v45  ;;  %v4353_v29 = vpop.f32.mrb[30].mxu0  ;;  %v4547_v45 = vld [vmem:[%s7340_s3 + $0xb0] sm:$0xff] (!%p5362_p6) }
 0x2ee   : > { %v4394_v31 = vpop.f32.mrb[30].mxu1  ;;  %v4391_v32 = vadd.f32 %v4390_v50, %v4350_v12  ;;  %v4354_v34 = vpop.f32.mrb[31].mxu0  ;;  %v4531_v50 = vld [vmem:[%s7340_s3 + $0x30] sm:$0xff] (!%p5362_p6)  ;;  %v5479_v12 = vpack.c.bf16 (!%p5362_p6), %v4562_v30, %v4561_v41  ;;  %v5449_v27 = vpack.c.bf16 (!%p5362_p6), %v4548_v26, %v4547_v45  ;;  %v4580_v29 = vld [vmem:[%s7340_s3 + $0x1b8] sm:$0xff] (!%p5362_p6)  ;;  %v4491_v26 = vld [vmem:[#allocation2] sm:$0xff] (!%p5362_p6) }
 0x2ef   : > { %v4395_v35 = vpop.f32.mrb[31].mxu1  ;;  %v4393_v36 = vadd.f32 %v4392_v28, %v4352_v15  ;;  %v4532_v28 = vld [vmem:[%s7340_s3 + $0x38] sm:$0xff] (!%p5362_p6)  ;;  %v4579_v15 = vld [vmem:[%s7340_s3 + $0x1b0] sm:$0xff] (!%p5362_p6) }
 0x2f0   : > { %v5481_v31 = vpack.c.bf16 (!%p5362_p6), %v4580_v29, %v4579_v15  ;;  %v4564_v34 = vld [vmem:[%s7340_s3 + $0x138] sm:$0xff] (!%p5362_p6)  ;;  %v4549_v35 = vld [vmem:[%s7340_s3 + $0xc0] sm:$0xff] (!%p5362_p6)  ;;  %5480 = vmatpush3.bf16.msra.mxu1 (!%p5362_p6), %v5479_v12  ;;  %5450 = vmatprep.subr.bf16.mxu0 (!%p5362_p6), %v5449_v27  ;;  %v4587_v41 = vld [vmem:[%s7340_s3 + $0x1f0] sm:$0xff] (!%p5362_p6)  ;;  %v5495_v27 = vpack.c.bf16 (!%p5362_p6), %v4570_v16, %v4569_v13 }
 0x2f1   : > { %v4588_v30 = vld [vmem:[%s7340_s3 + $0x1f8] sm:$0xff] (!%p5362_p6)  ;;  %v4539_v15 = vld [vmem:[%s7340_s3 + $0x70] sm:$0xff] (!%p5362_p6) }
 0x2f2   : > { %5482 = vmatprep.subr.bf16.mxu1 (!%p5362_p6), %v5481_v31  ;;  %v4540_v29 = vld [vmem:[%s7340_s3 + $0x78] sm:$0xff] (!%p5362_p6) }
 0x32b   : > { %v4431_v37 = vpop.f32.mrb[32].mxu0 }
 0x32c   : > { %v4472_v40 = vpop.f32.mrb[32].mxu1  ;;  %v4432_v46 = vadd.f32 %v4431_v37, %v4391_v32  ;;  %v4433_v47 = vpop.f32.mrb[33].mxu0  ;;  %v4563_v32 = vld [vmem:[%s7340_s3 + $0x130] sm:$0xff] (!%p5362_p6)  ;;  %v4550_v37 = vld [vmem:[%s7340_s3 + $0xc8] sm:$0xff] (!%p5362_p6) }
 0x32d   : > { %v4474_v22 = vpop.f32.mrb[33].mxu1  ;;  %v4434_v48 = vadd.f32 %v4433_v47, %v4393_v36  ;;  %v4435_v52 = vpop.f32.mrb[34].mxu0  ;;  %4490 = sbr.rel (%p5362_p6) target bundleno = 1057 (0x421), region = 48  ;;  %v4497_v36 = vlaneseq (!%p5362_p6)  ;;  %v4582_v47 = vld [vmem:[%s7340_s3 + $0x1c8] sm:$0xff] (!%p5362_p6) }
 0x32e   : > { %v4476_v54 = vpop.f32.mrb[34].mxu1  ;;  %v4473_v33 = vadd.f32 %v4472_v40, %v4432_v46  ;;  %v4436_v55 = vpop.f32.mrb[35].mxu0  ;;  %v5451_v40 = vpack.c.bf16 (!%p5362_p6), %v4532_v28, %v4531_v50  ;;  %v4581_v46 = vld [vmem:[%s7340_s3 + $0x1c0] sm:$0xff] (!%p5362_p6)  ;;  %v4534_v52 = vld [vmem:[%s7340_s3 + $0x48] sm:$0xff] (!%p5362_p6)  ;;  %v5465_v28 = vpack.c.bf16 (!%p5362_p6), %v4556_v2, %v4555_v21 }
 0x32f   : > { %v4477_v56 = vpop.f32.mrb[35].mxu1  ;;  %v4475_v57 = vadd.f32 %v4474_v22, %v4434_v48  ;;  %v5483_v22 = vpack.c.bf16 (!%p5362_p6), %v4564_v34, %v4563_v32  ;;  %v4533_v48 = vld [vmem:[%s7340_s3 + $0x40] sm:$0xff] (!%p5362_p6)  ;;  %v4551_v55 = vld [vmem:[%s7340_s3 + $0xd0] sm:$0xff] (!%p5362_p6)  ;;  %v5497_v32 = vpack.c.bf16 (!%p5362_p6), %v4588_v30, %v4587_v41 }
 0x330   : > { %v4481_v20 = vadd.f32 %v4473_v33, %v247_v43  ;;  %v5453_v43 = vpack.c.bf16 (!%p5362_p6), %v4550_v37, %v4549_v35  ;;  %v4565_v54 = vld [vmem:[%s7340_s3 + $0x140] sm:$0xff] (!%p5362_p6)  ;;  %v5485_v33 = vpack.c.bf16 (!%p5362_p6), %v4582_v47, %v4581_v46  ;;  %v4552_v56 = vld [vmem:[%s7340_s3 + $0xd8] sm:$0xff] (!%p5362_p6)  ;;  %5452 = vmatpush3.bf16.msra.mxu0 (!%p5362_p6), %v5451_v40  ;;  %v5455_v53 = vpack.c.bf16 (!%p5362_p6), %v4534_v52, %v4533_v48  ;;  %v4571_v34 = vld [vmem:[%s7340_s3 + $0x170] sm:$0xff] (!%p5362_p6) }
 0x331   : > { %v4482_v25 = vadd.f32 %v4475_v57, %v248_v49  ;;  %v4566_v49 = vld [vmem:[%s7340_s3 + $0x148] sm:$0xff] (!%p5362_p6)  ;;  %v4498_v57 = vshrl.u32 (!%p5362_p6), %v4497_v36, 7  ;;  %5484 = vmatpush3.bf16.msra.mxu1 (!%p5362_p6), %v5483_v22  ;;  %v5457_v38 = vpack.c.bf16 (!%p5362_p6), %v4552_v56, %v4551_v55  ;;  %v4572_v35 = vld [vmem:[%s7340_s3 + $0x178] sm:$0xff] (!%p5362_p6)  ;;  %v5467_v46 = vpack.c.bf16 (!%p5362_p6), %v4540_v29, %v4539_v15 }
 0x332   : > { %4485 = vst [vmem:[#allocation2 + $0x10] sm:$0xff] %v4481_v20  ;;  %v4583_v20 = vld [vmem:[%s7340_s3 + $0x1d0] sm:$0xff] (!%p5362_p6)  ;;  %5454 = vmatprep.subr.bf16.mxu0 (!%p5362_p6), %v5453_v43  ;;  %v5487_v59 = vpack.c.bf16 (!%p5362_p6), %v4566_v49, %v4565_v54  ;;  %5486 = vmatprep.subr.bf16.mxu1 (!%p5362_p6), %v5485_v33  ;;  %v5499_v22 = vpack.c.bf16 (!%p5362_p6), %v4572_v35, %v4571_v34  ;;  %v5363_v54 = vld [vmem:[%s7341_s4] ss:$0 sm:$0xff] (!%p5362_p6) }
 0x333   : > { %4486 = vst [vmem:[#allocation2 + $0x18] sm:$0xff] %v4482_v25  ;;  %v4584_v25 = vld [vmem:[%s7340_s3 + $0x1d8] sm:$0xff] (!%p5362_p6)  ;;  %v4503_v3 = vsub.s32 (!%p5362_p6), 1, %v4498_v57  ;;  %v4511_v51 = vsub.s32 (!%p5362_p6), 3, %v4498_v57  ;;  %v4499_v5 = vsub.s32 (!%p5362_p6), 0, %v4498_v57  ;;  %v4507_v14 = vsub.s32 (!%p5362_p6), 2, %v4498_v57 }
 0x334   : > { %v5489_v44 = vpack.c.bf16 %v4584_v25, %v4583_v20  ;;  %5456 = vmatpush3.bf16.msra.mxu0 %v5455_v53 }
 0x335   : > { %5488 = vmatpush3.bf16.msra.mxu1 %v5487_v59  ;;  %5458 = vmatprep.subr.bf16.mxu0 %v5457_v38  ;;  %v4504_v23 = vrot.slane %v4495_v19, %v4503_v3  ;;  %v4512_v39 = vrot.slane %v4495_v19, %v4511_v51  ;;  %v4500_v18 = vrot.slane %v4495_v19, %v4499_v5 }
 0x336   : > { %5490 = vmatprep.subr.bf16.mxu1 %v5489_v44  ;;  %v4508_v12 = vrot.slane %v4495_v19, %v4507_v14 }
 0x337   : > { %v4518_v45 = vadd.f32 %v4504_v23, %v4492_v17  ;;  %v4517_v40 = vadd.f32 %v4500_v18, %v4491_v26 }
 0x338   : > { %5460 = vmatpush3.bf16.msra.mxu0 %v5459_v6 }
 0x339   : > { %5492 = vmatpush3.bf16.msra.mxu1 %v5491_v9  ;;  %5462 = vmatprep.subr.bf16.mxu0 %v5461_v58  ;;  %v4493_v31 = vld [vmem:[#allocation2 + $0x10] sm:$0xff]  ;;  %v4522_v36 = vmax.f32 %v4518_v45, 0.0  ;;  %v4521_v43 = vmax.f32 %v4517_v40, 0.0 }
 0x33a   : > { %v4494_v42 = vld [vmem:[#allocation2 + $0x18] sm:$0xff]  ;;  %5494 = vmatprep.subr.bf16.mxu1 %v5493_v10  ;;  %v4519_v47 = vadd.f32 %v4508_v12, %v4493_v31 }
 0x33b   : > { %v4520_v50 = vadd.f32 %v4512_v39, %v4494_v42  ;;  %4660 = vmatprep.mubr.f32.mxu0 %v4522_v36 }
 0x33c   : > { %5464 = vmatpush3.bf16.msra.mxu0 %v5463_v24  ;;  %v4523_v48 = vmax.f32 %v4519_v47, 0.0 }
 0x33d   : > { %v4524_v37 = vmax.f32 %v4520_v50, 0.0  ;;  %5496 = vmatpush3.bf16.msra.mxu1 %v5495_v27  ;;  %5466 = vmatprep.subr.bf16.mxu0 %v5465_v28 }
 0x33e   : > { %5498 = vmatprep.subr.bf16.mxu1 %v5497_v32 }
 0x33f   : > { %4730 = vmatprep.mubr.f32.mxu1 %v4524_v37 }
 0x340   : > { %5468 = vmatpush3.bf16.msra.mxu0 %v5467_v46 }
 0x341   : > { %5500 = vmatpush3.bf16.msra.mxu1 %v5499_v22 }
 0x343   : > { %4661 = vmatmul.mubr.f32.vlgmr.msra.gmra.mrb[0].mxu0 %v4521_v43 }
 0x344   : > { %4731 = vmatmul.mubr.f32.vlgmr.msra.gmra.mrb[0].mxu1 %v4523_v48 }
 0x416   : > { %v5399_v52 = vpop.f32.mrb[0].mxu0 }
 0x417   : > { %v5400_v33 = vpop.f32.mrb[1].mxu0  ;;  %v5434_v49 = vpop.f32.mrb[0].mxu1 }
 0x418   : > { %v5401_v55 = vadd.f32 %v5400_v33, %v5399_v52  ;;  %v5435_v56 = vpop.f32.mrb[1].mxu1 }
 0x419   : > { %v5436_v57 = vadd.f32 %v5435_v56, %v5434_v49 }
 0x41a   : > { %v4663_v20 = vadd.f32 %v5401_v55, %v5363_v54 }
 0x41c   : > { %v4733_v25 = vadd.f32 %v5436_v57, %v4663_v20 }
 0x41e   : > { %v4736_v53 = vmax.f32 %v4733_v25, 0.0 }
 0x420   : > { %4737 = vst [vmem:[%s7342_s5] sm:$0xff] %v4736_v53 }
 0x421 PF: > { %s15_s18 = sadd.s32 1, %s6380_s18  }
 0x422   : > { %p12_p7 = scmp.ge.s32.totalorder %s15_s18, 6  }
 0x424   :  { %14 = sbr.rel (!%p12_p7) target bundleno = 1 (0x1), region = 77 }

</bundles_post_ra>
